<compile_context>
chip_gen: v6e
topology: v6e:2x2x1
jax: 0.10.0
libtpu: 0.0.40
codegen_flags: <defaults>
</compile_context>

<pallas_src>
import math
import functools

import jax
import jax.numpy as jnp
from jax import lax
from jax.experimental import pallas as pl
from jax.experimental.pallas import tpu as pltpu

CELU_ALPHA = 1.3
LN_EPS = 1e-5
GN_EPS = 1e-5


def _celu(y):
    return jnp.where(y > 0.0, y,
                     CELU_ALPHA * (jnp.exp(jnp.minimum(y, 0.0) / CELU_ALPHA) - 1.0))


def _row_tile(n, cap=512):
    """Largest row tile (multiple that divides n) up to `cap`."""
    if n <= cap:
        return n
    for t in (512, 256, 128, 64, 32, 16, 8):
        if t <= cap and n % t == 0:
            return t
    return n


# ---------------------------------------------------------------------------
# Kernel: fused (Linear -> CELU -> GroupNorm) for TWO projections sharing input.
# Group stats via 0/1 indicator matmuls (lane friendly); centered variance.
# ---------------------------------------------------------------------------
def _proj_gn_kernel(x_ref, w_ref, b_ref, g_ref, be_ref, ind_ref, indt_ref, o_ref,
                    *, group_size):
    y = jnp.dot(x_ref[...], w_ref[...], preferred_element_type=jnp.float32) + b_ref[...]
    y = _celu(y)
    ind = ind_ref[...]          # [Dout, G]  channel -> group indicator
    indt = indt_ref[...]        # [G, Dout]
    inv_gs = 1.0 / group_size
    mean_g = jnp.dot(y, ind, preferred_element_type=jnp.float32) * inv_gs      # [tm, G]
    mean_c = jnp.dot(mean_g, indt, preferred_element_type=jnp.float32)         # [tm, Dout]
    d = y - mean_c                                     # centered, two-pass variance
    var_g = jnp.dot(d * d, ind, preferred_element_type=jnp.float32) * inv_gs
    rstd_c = jnp.dot(lax.rsqrt(var_g + GN_EPS), indt, preferred_element_type=jnp.float32)
    o_ref[...] = d * rstd_c * g_ref[...] + be_ref[...]


def proj2_gn_pallas(x, pa, pb, groups):
    """Two (Linear -> CELU -> GroupNorm) projections of the same input, fused.

    Output is [N, 2*dout]: columns [:dout] are projection `pa`, [dout:] are `pb`.
    Using 2*H groups of size dout//H is identical to two separate GroupNorm(H)."""
    n, din = x.shape
    w = jnp.concatenate([pa["w"], pb["w"]], axis=1)
    b = jnp.concatenate([pa["b"], pb["b"]]).reshape(1, -1)
    gamma = jnp.concatenate([pa["gamma"], pb["gamma"]]).reshape(1, -1)
    beta = jnp.concatenate([pa["beta"], pb["beta"]]).reshape(1, -1)
    dout = w.shape[1]
    gs = dout // groups
    ind = (jnp.arange(dout)[:, None] // gs == jnp.arange(groups)[None, :]).astype(jnp.float32)
    indt = jnp.transpose(ind)
    tm = _row_tile(n)
    row_in = pl.BlockSpec((tm, din), lambda i: (i, 0))
    row_out = pl.BlockSpec((tm, dout), lambda i: (i, 0))
    full = lambda shape: pl.BlockSpec(shape, lambda i: (0, 0))
    kernel = functools.partial(_proj_gn_kernel, group_size=gs)
    return pl.pallas_call(
        kernel,
        out_shape=jax.ShapeDtypeStruct((n, dout), jnp.float32),
        grid=(n // tm,),
        in_specs=[row_in, full((din, dout)), full((1, dout)), full((1, dout)),
                  full((1, dout)), full((dout, groups)), full((groups, dout))],
        out_specs=row_out,
        compiler_params=pltpu.CompilerParams(dimension_semantics=("parallel",)),
    )(x, w, b, gamma, beta, ind, indt)


# ---------------------------------------------------------------------------
# Kernels: fused residual-add + LayerNorm (one- and two-output variants)
# ---------------------------------------------------------------------------
def _add_ln_kernel(a_ref, b_ref, g_ref, be_ref, o_ref):
    s = a_ref[...] + b_ref[...]
    mean = jnp.mean(s, axis=-1, keepdims=True)
    c = s - mean
    var = jnp.mean(c * c, axis=-1, keepdims=True)
    o_ref[...] = c * lax.rsqrt(var + LN_EPS) * g_ref[...] + be_ref[...]


def _add_ln2_kernel(a_ref, b_ref, g_ref, be_ref, s_ref, o_ref):
    s = a_ref[...] + b_ref[...]
    s_ref[...] = s
    mean = jnp.mean(s, axis=-1, keepdims=True)
    c = s - mean
    var = jnp.mean(c * c, axis=-1, keepdims=True)
    o_ref[...] = c * lax.rsqrt(var + LN_EPS) * g_ref[...] + be_ref[...]


def add_ln_pallas(a, b, lnp):
    """out = LayerNorm(a + b)."""
    shp = a.shape
    d = shp[-1]
    a2, b2 = a.reshape(-1, d), b.reshape(-1, d)
    n = a2.shape[0]
    tm = _row_tile(n)
    row = pl.BlockSpec((tm, d), lambda i: (i, 0))
    vec = pl.BlockSpec((1, d), lambda i: (0, 0))
    out = pl.pallas_call(
        _add_ln_kernel,
        out_shape=jax.ShapeDtypeStruct((n, d), jnp.float32),
        grid=(n // tm,),
        in_specs=[row, row, vec, vec],
        out_specs=row,
        compiler_params=pltpu.CompilerParams(dimension_semantics=("parallel",)),
    )(a2, b2, lnp["gamma"].reshape(1, d), lnp["beta"].reshape(1, d))
    return out.reshape(shp)


def add_ln2_pallas(a, b, lnp):
    """returns (a + b, LayerNorm(a + b)) -- fuses the residual sum with the LN."""
    shp = a.shape
    d = shp[-1]
    a2, b2 = a.reshape(-1, d), b.reshape(-1, d)
    n = a2.shape[0]
    tm = _row_tile(n)
    row = pl.BlockSpec((tm, d), lambda i: (i, 0))
    vec = pl.BlockSpec((1, d), lambda i: (0, 0))
    s, o = pl.pallas_call(
        _add_ln2_kernel,
        out_shape=(jax.ShapeDtypeStruct((n, d), jnp.float32),
                   jax.ShapeDtypeStruct((n, d), jnp.float32)),
        grid=(n // tm,),
        in_specs=[row, row, vec, vec],
        out_specs=[row, row],
        compiler_params=pltpu.CompilerParams(dimension_semantics=("parallel",)),
    )(a2, b2, lnp["gamma"].reshape(1, d), lnp["beta"].reshape(1, d))
    return s.reshape(shp), o.reshape(shp)


# ---------------------------------------------------------------------------
# Kernel: SCAtt (X-linear attention core), one batch element per grid step,
# all heads / queries / keys processed together with head-batched einsums.
# ---------------------------------------------------------------------------
def _scatt_kernel(qv_ref, kv_ref, mask_ref,
                  wbt_ref, bb_ref, wl_ref, bl_ref, wl2_ref, bl2_ref,
                  o_ref, *, num_heads, mid_dim):
    H = num_heads
    qv = qv_ref[...]           # [2H, Lq, dh]  (q heads, then v1 heads)
    kv = kv_ref[...]           # [2H, Lk, dh]  (k heads, then v2 heads)
    mask = mask_ref[...]       # [Lq, Lk]
    q, v1 = qv[:H], qv[H:]
    k, v2 = kv[:H], kv[H:]
    wbt = wbt_ref[...]         # [mid, dh]  transposed basic-MLP weight
    bb = bb_ref[...]           # [mid, 1]   basic-MLP bias
    wl = wl_ref[...]           # [mid, 1]   spatial-attention weight
    wl2 = wl2_ref[...]         # [mid, dh]  channel-attention weight

    Lq, dh = q.shape[1], q.shape[2]
    Lk = k.shape[1]
    sp = jnp.zeros((H, Lq, Lk), jnp.float32)    # spatial logits accumulator
    ch = jnp.zeros((H, Lq, dh), jnp.float32)    # channel-gate numerator
    # hidden[h,i,j,m] = relu(sum_d q[h,i,d]*k[h,j,d]*wb[d,m] + bb[m]); the small
    # mid dim is statically unrolled so every op is a head-batched rank-3 matmul
    # (MXU) or a rank-3 elementwise / lane-reduction (VPU/XLU).
    for m in range(mid_dim):
        qb = q * wbt[m:m + 1, :]                                        # [H,Lq,dh]
        hid = jnp.einsum('hqd,hkd->hqk', qb, k,
                         preferred_element_type=jnp.float32)            # [H,Lq,Lk]
        hid = jnp.maximum(hid + bb[m:m + 1, :], 0.0)
        sp = sp + hid * wl[m:m + 1, :]
        pooled = jnp.sum(hid * mask, axis=-1, keepdims=True)            # [H,Lq,1]
        ch = ch + pooled * wl2[m:m + 1, :]                              # [H,Lq,dh]

    msum = jnp.maximum(jnp.sum(mask, axis=-1, keepdims=True), 1.0)      # [Lq,1]
    alpha_ch = jax.nn.sigmoid(ch / msum + bl2_ref[...])                 # [H,Lq,dh]
    # masked softmax over keys (Lk on the lane axis), vectorized over heads+queries
    logits = jnp.where(mask > 0.0, sp + bl_ref[...], -1e9)              # [H,Lq,Lk]
    logits = logits - jnp.max(logits, axis=-1, keepdims=True)
    e = jnp.exp(logits)
    wsp = e / jnp.sum(e, axis=-1, keepdims=True)
    v2att = jnp.einsum('hqk,hkd->hqd', wsp, v2,
                       preferred_element_type=jnp.float32)              # [H,Lq,dh]
    o_ref[...] = v1 * v2att * alpha_ch


def scatt_pallas(qv, kv, mask_b, sp, num_heads):
    B, H2, Lq, dh = qv.shape
    Lk = kv.shape[2]
    H = num_heads
    mid = sp["wb"].shape[1]
    kernel = functools.partial(_scatt_kernel, num_heads=H, mid_dim=mid)
    return pl.pallas_call(
        kernel,
        out_shape=jax.ShapeDtypeStruct((B, H, Lq, dh), jnp.float32),
        grid=(B,),
        in_specs=[
            pl.BlockSpec((None, H2, Lq, dh), lambda b: (b, 0, 0, 0)),
            pl.BlockSpec((None, H2, Lk, dh), lambda b: (b, 0, 0, 0)),
            pl.BlockSpec((None, Lq, Lk), lambda b: (b, 0, 0)),
            pl.BlockSpec((mid, dh), lambda b: (0, 0)),
            pl.BlockSpec((mid, 1), lambda b: (0, 0)),
            pl.BlockSpec((mid, 1), lambda b: (0, 0)),
            pl.BlockSpec((1, 1), lambda b: (0, 0)),
            pl.BlockSpec((mid, dh), lambda b: (0, 0)),
            pl.BlockSpec((1, dh), lambda b: (0, 0)),
        ],
        out_specs=pl.BlockSpec((None, H, Lq, dh), lambda b: (b, 0, 0, 0)),
        compiler_params=pltpu.CompilerParams(dimension_semantics=("parallel",)),
    )(qv, kv, mask_b,
      jnp.transpose(sp["wb"]), sp["bb"].reshape(mid, 1), sp["wl"],
      sp["bl"], sp["wl2"], sp["bl2"])


# ---------------------------------------------------------------------------
# LowRank.forward2 (fused projections + SCAtt); head split is a cheap reshape/
# transpose done once per side on the combined q|v1 / k|v2 tensors.
# ---------------------------------------------------------------------------
def lowrank_forward2(p, query, key, mask, num_heads):
    # In DecoderLayer, value1 == query and value2 == key at every call site, so the
    # q/v1 projections share one input and the k/v2 projections share the other.
    B, Lq, D = query.shape
    Lk = key.shape[1]
    H = num_heads
    dh = D // H
    yq = proj2_gn_pallas(query.reshape(B * Lq, D), p["q"], p["v1"], 2 * H)   # [B*Lq, 2D]
    yk = proj2_gn_pallas(key.reshape(B * Lk, D), p["k"], p["v2"], 2 * H)     # [B*Lk, 2D]
    qv = yq.reshape(B, Lq, 2 * H, dh).transpose(0, 2, 1, 3)                  # [B, 2H, Lq, dh]
    kv = yk.reshape(B, Lk, 2 * H, dh).transpose(0, 2, 1, 3)                  # [B, 2H, Lk, dh]
    mask_b = jnp.broadcast_to(mask.astype(jnp.float32), (B, Lq, Lk))
    att = scatt_pallas(qv, kv, mask_b, p["scatt"], H)                        # [B, H, Lq, dh]
    return att.transpose(0, 2, 1, 3).reshape(B, Lq, D)


# ---------------------------------------------------------------------------
# Kernel: bifeat embedding fused with its residual + LayerNorm
# (concat is replaced by splitting the [2D, D] weight into two [D, D] halves)
# ---------------------------------------------------------------------------
def _bifeat_ln_kernel(gx_ref, wx_ref, wa_ref, wb_ref, b_ref, g_ref, be_ref, o_ref):
    wx = wx_ref[...]
    h = jnp.dot(gx_ref[...], wa_ref[...], preferred_element_type=jnp.float32)
    h = h + jnp.dot(wx, wb_ref[...], preferred_element_type=jnp.float32)
    h = jnp.maximum(h + b_ref[...], 0.0)
    s = h + wx
    mean = jnp.mean(s, axis=-1, keepdims=True)
    c = s - mean
    var = jnp.mean(c * c, axis=-1, keepdims=True)
    o_ref[...] = c * lax.rsqrt(var + LN_EPS) * g_ref[...] + be_ref[...]


def bifeat_ln_pallas(gx2, wx2, bp, lnp):
    n, d = gx2.shape
    wa = bp["w"][:d, :]
    wb = bp["w"][d:, :]
    tm = _row_tile(n)
    row = pl.BlockSpec((tm, d), lambda i: (i, 0))
    full = lambda shape: pl.BlockSpec(shape, lambda i: (0, 0))
    return pl.pallas_call(
        _bifeat_ln_kernel,
        out_shape=jax.ShapeDtypeStruct((n, d), jnp.float32),
        grid=(n // tm,),
        in_specs=[row, row, full((d, d)), full((d, d)), full((1, d)),
                  full((1, d)), full((1, d))],
        out_specs=row,
        compiler_params=pltpu.CompilerParams(dimension_semantics=("parallel",)),
    )(gx2, wx2, wa, wb, bp["b"].reshape(1, d),
      lnp["gamma"].reshape(1, d), lnp["beta"].reshape(1, d))


# ---------------------------------------------------------------------------
# Kernel: feed-forward block fused (fc1 -> ReLU -> fc2 -> +residual -> LN)
# ---------------------------------------------------------------------------
def _ffn_kernel(x_ref, w1_ref, b1_ref, w2_ref, b2_ref, g_ref, be_ref, o_ref):
    x = x_ref[...]
    h = jnp.maximum(jnp.dot(x, w1_ref[...], preferred_element_type=jnp.float32)
                    + b1_ref[...], 0.0)
    f = jnp.dot(h, w2_ref[...], preferred_element_type=jnp.float32) + b2_ref[...]
    s = x + f
    mean = jnp.mean(s, axis=-1, keepdims=True)
    c = s - mean
    var = jnp.mean(c * c, axis=-1, keepdims=True)
    o_ref[...] = c * lax.rsqrt(var + LN_EPS) * g_ref[...] + be_ref[...]


def ffn_pallas(x2, ffp):
    n, d = x2.shape
    dff = ffp["w1"].shape[1]
    tm = _row_tile(n)
    # TODO(synk): at realistic embed_dim the FFN weights should be tiled over the
    # output dim with a K-reduction grid axis + VMEM accumulator (and
    # vmem_limit_bytes set) to respect v7x's 64 MiB VMEM; resident weights are
    # fine at these toy sizes.
    row = pl.BlockSpec((tm, d), lambda i: (i, 0))
    full = lambda shape: pl.BlockSpec(shape, lambda i: (0, 0))
    return pl.pallas_call(
        _ffn_kernel,
        out_shape=jax.ShapeDtypeStruct((n, d), jnp.float32),
        grid=(n // tm,),
        in_specs=[row, full((d, dff)), full((1, dff)), full((dff, d)),
                  full((1, d)), full((1, d)), full((1, d))],
        out_specs=row,
        compiler_params=pltpu.CompilerParams(dimension_semantics=("parallel",)),
    )(x2, ffp["w1"], ffp["b1"].reshape(1, dff), ffp["w2"], ffp["b2"].reshape(1, d),
      ffp["ln"]["gamma"].reshape(1, d), ffp["ln"]["beta"].reshape(1, d))


# ---------------------------------------------------------------------------
# DecoderLayer.forward  (dropouts are identity — eval mode)
# ---------------------------------------------------------------------------
def decoder_layer_forward(params, gx, x, encoder_out, att_mask, seq_mask,
                          num_heads, last_layer=False):
    B, L, D = x.shape
    word_x = x
    # word self-attention (query/value1 = gx, key/value2 = x); word_dropout = id
    a = lowrank_forward2(params["word_attn"], gx, x, seq_mask, num_heads)
    # x1 = x + a (residual), x2 = layer_norm_cross(x1)  -- fused into one kernel
    x1, x2 = add_ln2_pallas(x, a, params["ln_cross"])
    # cross attention against encoder features (query/value1 = x2, key/value2 = enc)
    c = lowrank_forward2(params["cross_att"], x2, encoder_out, att_mask, num_heads)
    gx_new = add_ln_pallas(x1, c, params["ln_gx"])            # gx = LN(x1 + cross)
    if last_layer:
        return gx_new, None
    # bifeat embedding: LN(ReLU([gx, word_x] @ W + b) + word_x), concat-free
    x4 = bifeat_ln_pallas(gx_new.reshape(B * L, D), word_x.reshape(B * L, D),
                          params["bifeat"], params["ln_x"]).reshape(B, L, D)
    # feed-forward: LN(x4 + fc2(ReLU(fc1(x4))))
    x5 = ffn_pallas(x4.reshape(B * L, D), params["ff"]).reshape(B, L, D)
    return gx_new, x5


# ---------------------------------------------------------------------------
# Deterministic parameter initialization (synthetic weights, no checkpoint)
# ---------------------------------------------------------------------------
def _dense_init(k, din, dout):
    return (1.0 / math.sqrt(din)) * jax.random.normal(k, (din, dout), jnp.float32)


def init_lowrank_params(key, D, H, mid):
    dh = D // H
    ks = jax.random.split(key, 24)
    p = {}
    for i, name in enumerate(("q", "k", "v1", "v2")):
        p[name] = dict(
            w=_dense_init(ks[4 * i + 0], D, D),
            b=0.02 * jax.random.normal(ks[4 * i + 1], (D,), jnp.float32),
            gamma=1.0 + 0.05 * jax.random.normal(ks[4 * i + 2], (D,), jnp.float32),
            beta=0.02 * jax.random.normal(ks[4 * i + 3], (D,), jnp.float32),
        )
    p["scatt"] = dict(
        wb=_dense_init(ks[16], dh, mid),
        bb=0.02 * jax.random.normal(ks[17], (1, mid), jnp.float32),
        wl=_dense_init(ks[18], mid, 1),
        bl=jnp.zeros((1, 1), jnp.float32),
        wl2=_dense_init(ks[19], mid, dh),
        bl2=0.02 * jax.random.normal(ks[20], (1, dh), jnp.float32),
    )
    return p


def init_params(key, D, H, mid):
    ks = jax.random.split(key, 16)

    def ln(k):
        k1, k2 = jax.random.split(k)
        return dict(gamma=1.0 + 0.05 * jax.random.normal(k1, (D,), jnp.float32),
                    beta=0.02 * jax.random.normal(k2, (D,), jnp.float32))

    return dict(
        word_attn=init_lowrank_params(ks[0], D, H, mid),
        cross_att=init_lowrank_params(ks[1], D, H, mid),
        ln_cross=ln(ks[2]),
        ln_gx=ln(ks[3]),
        bifeat=dict(w=_dense_init(ks[4], 2 * D, D),
                    b=0.02 * jax.random.normal(ks[5], (D,), jnp.float32)),
        ln_x=ln(ks[6]),
        ff=dict(w1=_dense_init(ks[7], D, 4 * D),
                b1=0.02 * jax.random.normal(ks[8], (4 * D,), jnp.float32),
                w2=_dense_init(ks[9], 4 * D, D),
                b2=0.02 * jax.random.normal(ks[10], (D,), jnp.float32),
                ln=ln(ks[11])),
    )


if __name__ == "__main__":
    # TODO(synk): Dropout layers are identity here (inference semantics); training-mode
    # stochastic dropout is not implemented.
    B, L, M, D, H, MID = 2, 8, 16, 32, 4, 16     # batch, seq, regions, embed, heads, att_mid
    key = jax.random.PRNGKey(0)
    kp, kgx, kx, kenc, kmask = jax.random.split(key, 5)
    params = init_params(kp, D, H, MID)

    gx = jax.random.normal(kgx, (B, L, D), jnp.float32)
    x = jax.random.normal(kx, (B, L, D), jnp.float32)
    encoder_out = jax.random.normal(kenc, (B, M, D), jnp.float32)
    att_mask = (jax.random.uniform(kmask, (B, 1, M)) > 0.2).astype(jnp.float32)
    att_mask = att_mask.at[:, :, 0].set(1.0)      # at least one valid region
    seq_mask = jnp.broadcast_to(jnp.tril(jnp.ones((L, L), jnp.float32)), (B, L, L))

    fwd = jax.jit(functools.partial(decoder_layer_forward, num_heads=H, last_layer=False))
    gx_out, x_out = fwd(params, gx, x, encoder_out, att_mask, seq_mask)
    jax.block_until_ready((gx_out, x_out))

    assert gx_out.shape == (B, L, D) and x_out.shape == (B, L, D)
    assert bool(jnp.all(jnp.isfinite(gx_out))) and bool(jnp.all(jnp.isfinite(x_out)))
    print("KERNEL_OK")
</pallas_src>

<mosaic_0001>
module attributes {stable_mosaic.version = 11 : i64} {
  func.func @_proj_gn_kernel(%arg0: i32, %arg1: memref<16x32xf32, #tpu.memory_space<vmem>>, %arg2: memref<32x64xf32, #tpu.memory_space<vmem>>, %arg3: memref<1x64xf32, #tpu.memory_space<vmem>>, %arg4: memref<1x64xf32, #tpu.memory_space<vmem>>, %arg5: memref<1x64xf32, #tpu.memory_space<vmem>>, %arg6: memref<64x8xf32, #tpu.memory_space<vmem>>, %arg7: memref<8x64xf32, #tpu.memory_space<vmem>>, %arg8: memref<16x64xf32, #tpu.memory_space<vmem>>) attributes {dimension_semantics = [#tpu.dimension_semantics<parallel>], iteration_bounds = array<i64: 1>, scalar_prefetch = 0 : i64, scratch_operands = 0 : i64, tpu.core_type = #tpu.core_type<tc>, window_params = [{transform_indices = @transform_0, window_bounds = array<i64: 16, 32>}, {pipeline_mode = #tpu.pipeline_mode<synchronous>, transform_indices = @transform_1, window_bounds = array<i64: 32, 64>}, {pipeline_mode = #tpu.pipeline_mode<synchronous>, transform_indices = @transform_2, window_bounds = array<i64: 1, 64>}, {pipeline_mode = #tpu.pipeline_mode<synchronous>, transform_indices = @transform_3, window_bounds = array<i64: 1, 64>}, {pipeline_mode = #tpu.pipeline_mode<synchronous>, transform_indices = @transform_4, window_bounds = array<i64: 1, 64>}, {pipeline_mode = #tpu.pipeline_mode<synchronous>, transform_indices = @transform_5, window_bounds = array<i64: 64, 8>}, {pipeline_mode = #tpu.pipeline_mode<synchronous>, transform_indices = @transform_6, window_bounds = array<i64: 8, 64>}, {transform_indices = @transform_7, window_bounds = array<i64: 16, 64>}]} {
    %c0 = arith.constant 0 : index
    %c0_0 = arith.constant 0 : index
    %0 = vector.load %arg1[%c0, %c0_0] : memref<16x32xf32, #tpu.memory_space<vmem>>, vector<16x32xf32>
    %c0_1 = arith.constant 0 : index
    %c0_2 = arith.constant 0 : index
    %1 = vector.load %arg2[%c0_1, %c0_2] : memref<32x64xf32, #tpu.memory_space<vmem>>, vector<32x64xf32>
    %cst = arith.constant dense<0.000000e+00> : vector<16x64xf32>
    %2 = tpu.matmul %0, %1, %cst {dimension_numbers = #tpu.dot_dimension_numbers<[1], [0], [0], [1], [0, 0, 1, 1], [], []>} : vector<16x32xf32>, vector<32x64xf32>, vector<16x64xf32> -> vector<16x64xf32>
    %c0_3 = arith.constant 0 : index
    %c0_4 = arith.constant 0 : index
    %3 = vector.load %arg3[%c0_3, %c0_4] : memref<1x64xf32, #tpu.memory_space<vmem>>, vector<1x64xf32>
    %4 = vector.broadcast %3 : vector<1x64xf32> to vector<16x64xf32>
    %5 = arith.addf %2, %4 : vector<16x64xf32>
    %cst_5 = arith.constant 0.000000e+00 : f32
    %6 = vector.broadcast %cst_5 : f32 to vector<16x64xf32>
    %7 = arith.cmpf ogt, %5, %6 : vector<16x64xf32>
    %cst_6 = arith.constant 0.000000e+00 : f32
    %8 = vector.broadcast %cst_6 : f32 to vector<16x64xf32>
    %9 = arith.minimumf %5, %8 : vector<16x64xf32>
    %cst_7 = arith.constant 1.300000e+00 : f32
    %10 = vector.broadcast %cst_7 : f32 to vector<16x64xf32>
    %11 = arith.divf %9, %10 : vector<16x64xf32>
    %12 = math.exp %11 : vector<16x64xf32>
    %cst_8 = arith.constant 1.000000e+00 : f32
    %13 = vector.broadcast %cst_8 : f32 to vector<16x64xf32>
    %14 = arith.subf %12, %13 : vector<16x64xf32>
    %cst_9 = arith.constant 1.300000e+00 : f32
    %15 = vector.broadcast %cst_9 : f32 to vector<16x64xf32>
    %16 = arith.mulf %15, %14 : vector<16x64xf32>
    %17 = arith.select %7, %5, %16 : vector<16x64xi1>, vector<16x64xf32>
    %c0_10 = arith.constant 0 : index
    %c0_11 = arith.constant 0 : index
    %18 = vector.load %arg6[%c0_10, %c0_11] : memref<64x8xf32, #tpu.memory_space<vmem>>, vector<64x8xf32>
    %c0_12 = arith.constant 0 : index
    %c0_13 = arith.constant 0 : index
    %19 = vector.load %arg7[%c0_12, %c0_13] : memref<8x64xf32, #tpu.memory_space<vmem>>, vector<8x64xf32>
    %cst_14 = arith.constant dense<0.000000e+00> : vector<16x8xf32>
    %20 = tpu.matmul %17, %18, %cst_14 {dimension_numbers = #tpu.dot_dimension_numbers<[1], [0], [0], [1], [0, 0, 1, 1], [], []>} : vector<16x64xf32>, vector<64x8xf32>, vector<16x8xf32> -> vector<16x8xf32>
    %cst_15 = arith.constant 1.250000e-01 : f32
    %21 = vector.broadcast %cst_15 : f32 to vector<16x8xf32>
    %22 = arith.mulf %20, %21 : vector<16x8xf32>
    %cst_16 = arith.constant dense<0.000000e+00> : vector<16x64xf32>
    %23 = tpu.matmul %22, %19, %cst_16 {dimension_numbers = #tpu.dot_dimension_numbers<[1], [0], [0], [1], [0, 0, 1, 1], [], []>} : vector<16x8xf32>, vector<8x64xf32>, vector<16x64xf32> -> vector<16x64xf32>
    %24 = arith.subf %17, %23 : vector<16x64xf32>
    %25 = arith.mulf %24, %24 : vector<16x64xf32>
    %cst_17 = arith.constant dense<0.000000e+00> : vector<16x8xf32>
    %26 = tpu.matmul %25, %18, %cst_17 {dimension_numbers = #tpu.dot_dimension_numbers<[1], [0], [0], [1], [0, 0, 1, 1], [], []>} : vector<16x64xf32>, vector<64x8xf32>, vector<16x8xf32> -> vector<16x8xf32>
    %cst_18 = arith.constant 1.250000e-01 : f32
    %27 = vector.broadcast %cst_18 : f32 to vector<16x8xf32>
    %28 = arith.mulf %26, %27 : vector<16x8xf32>
    %cst_19 = arith.constant 9.99999974E-6 : f32
    %29 = vector.broadcast %cst_19 : f32 to vector<16x8xf32>
    %30 = arith.addf %28, %29 : vector<16x8xf32>
    %31 = math.rsqrt %30 : vector<16x8xf32>
    %cst_20 = arith.constant dense<0.000000e+00> : vector<16x64xf32>
    %32 = tpu.matmul %31, %19, %cst_20 {dimension_numbers = #tpu.dot_dimension_numbers<[1], [0], [0], [1], [0, 0, 1, 1], [], []>} : vector<16x8xf32>, vector<8x64xf32>, vector<16x64xf32> -> vector<16x64xf32>
    %33 = arith.mulf %24, %32 : vector<16x64xf32>
    %c0_21 = arith.constant 0 : index
    %c0_22 = arith.constant 0 : index
    %34 = vector.load %arg4[%c0_21, %c0_22] : memref<1x64xf32, #tpu.memory_space<vmem>>, vector<1x64xf32>
    %35 = vector.broadcast %34 : vector<1x64xf32> to vector<16x64xf32>
    %36 = arith.mulf %33, %35 : vector<16x64xf32>
    %c0_23 = arith.constant 0 : index
    %c0_24 = arith.constant 0 : index
    %37 = vector.load %arg5[%c0_23, %c0_24] : memref<1x64xf32, #tpu.memory_space<vmem>>, vector<1x64xf32>
    %38 = vector.broadcast %37 : vector<1x64xf32> to vector<16x64xf32>
    %39 = arith.addf %36, %38 : vector<16x64xf32>
    %c0_25 = arith.constant 0 : index
    %c0_26 = arith.constant 0 : index
    %40 = vector.load %arg8[%c0_25, %c0_26] : memref<16x64xf32, #tpu.memory_space<vmem>>, vector<16x64xf32>
    tpu.vector_store %arg8[%c0_25, %c0_26], %39 {strides = array<i32>} : memref<16x64xf32, #tpu.memory_space<vmem>>, vector<16x64xf32>,
    return
  }
  func.func @transform_0(%arg0: i32) -> (i32, i32) {
    %c0_i32 = arith.constant 0 : i32
    %c0_i32_0 = arith.constant 0 : i32
    return %arg0, %c0_i32 : i32, i32
  }
  func.func @transform_1(%arg0: i32) -> (i32, i32) {
    %c0_i32 = arith.constant 0 : i32
    %c0_i32_0 = arith.constant 0 : i32
    %c0_i32_1 = arith.constant 0 : i32
    return %c0_i32, %c0_i32_0 : i32, i32
  }
  func.func @transform_2(%arg0: i32) -> (i32, i32) {
    %c0_i32 = arith.constant 0 : i32
    %c0_i32_0 = arith.constant 0 : i32
    %c0_i32_1 = arith.constant 0 : i32
    return %c0_i32, %c0_i32_0 : i32, i32
  }
  func.func @transform_3(%arg0: i32) -> (i32, i32) {
    %c0_i32 = arith.constant 0 : i32
    %c0_i32_0 = arith.constant 0 : i32
    %c0_i32_1 = arith.constant 0 : i32
    return %c0_i32, %c0_i32_0 : i32, i32
  }
  func.func @transform_4(%arg0: i32) -> (i32, i32) {
    %c0_i32 = arith.constant 0 : i32
    %c0_i32_0 = arith.constant 0 : i32
    %c0_i32_1 = arith.constant 0 : i32
    return %c0_i32, %c0_i32_0 : i32, i32
  }
  func.func @transform_5(%arg0: i32) -> (i32, i32) {
    %c0_i32 = arith.constant 0 : i32
    %c0_i32_0 = arith.constant 0 : i32
    %c0_i32_1 = arith.constant 0 : i32
    return %c0_i32, %c0_i32_0 : i32, i32
  }
  func.func @transform_6(%arg0: i32) -> (i32, i32) {
    %c0_i32 = arith.constant 0 : i32
    %c0_i32_0 = arith.constant 0 : i32
    %c0_i32_1 = arith.constant 0 : i32
    return %c0_i32, %c0_i32_0 : i32, i32
  }
  func.func @transform_7(%arg0: i32) -> (i32, i32) {
    %c0_i32 = arith.constant 0 : i32
    %c0_i32_0 = arith.constant 0 : i32
    return %arg0, %c0_i32 : i32, i32
  }
}

module attributes {stable_mosaic.version = 11 : i64} {
  func.func @_add_ln2_kernel(%arg0: i32, %arg1: memref<16x32xf32, #tpu.memory_space<vmem>>, %arg2: memref<16x32xf32, #tpu.memory_space<vmem>>, %arg3: memref<1x32xf32, #tpu.memory_space<vmem>>, %arg4: memref<1x32xf32, #tpu.memory_space<vmem>>, %arg5: memref<16x32xf32, #tpu.memory_space<vmem>>, %arg6: memref<16x32xf32, #tpu.memory_space<vmem>>) attributes {dimension_semantics = [#tpu.dimension_semantics<parallel>], iteration_bounds = array<i64: 1>, scalar_prefetch = 0 : i64, scratch_operands = 0 : i64, tpu.core_type = #tpu.core_type<tc>, window_params = [{transform_indices = @transform_0, window_bounds = array<i64: 16, 32>}, {transform_indices = @transform_1, window_bounds = array<i64: 16, 32>}, {pipeline_mode = #tpu.pipeline_mode<synchronous>, transform_indices = @transform_2, window_bounds = array<i64: 1, 32>}, {pipeline_mode = #tpu.pipeline_mode<synchronous>, transform_indices = @transform_3, window_bounds = array<i64: 1, 32>}, {transform_indices = @transform_4, window_bounds = array<i64: 16, 32>}, {transform_indices = @transform_5, window_bounds = array<i64: 16, 32>}]} {
    %c0 = arith.constant 0 : index
    %c0_0 = arith.constant 0 : index
    %0 = vector.load %arg1[%c0, %c0_0] : memref<16x32xf32, #tpu.memory_space<vmem>>, vector<16x32xf32>
    %c0_1 = arith.constant 0 : index
    %c0_2 = arith.constant 0 : index
    %1 = vector.load %arg2[%c0_1, %c0_2] : memref<16x32xf32, #tpu.memory_space<vmem>>, vector<16x32xf32>
    %2 = arith.addf %0, %1 : vector<16x32xf32>
    %c0_3 = arith.constant 0 : index
    %c0_4 = arith.constant 0 : index
    %3 = vector.load %arg5[%c0_3, %c0_4] : memref<16x32xf32, #tpu.memory_space<vmem>>, vector<16x32xf32>
    tpu.vector_store %arg5[%c0_3, %c0_4], %2 {strides = array<i32>} : memref<16x32xf32, #tpu.memory_space<vmem>>, vector<16x32xf32>,
    %cst = arith.constant dense<0.000000e+00> : vector<16xf32>
    %4 = vector.multi_reduction <add>, %2, %cst [1] : vector<16x32xf32> to vector<16xf32>
    %5 = vector.shape_cast %4 : vector<16xf32> to vector<16x1xf32>
    %cst_5 = arith.constant 3.200000e+01 : f32
    %6 = vector.broadcast %cst_5 : f32 to vector<16x1xf32>
    %7 = arith.divf %5, %6 : vector<16x1xf32>
    %8 = vector.broadcast %7 : vector<16x1xf32> to vector<16x32xf32>
    %9 = arith.subf %2, %8 : vector<16x32xf32>
    %10 = arith.mulf %9, %9 : vector<16x32xf32>
    %cst_6 = arith.constant dense<0.000000e+00> : vector<16xf32>
    %11 = vector.multi_reduction <add>, %10, %cst_6 [1] : vector<16x32xf32> to vector<16xf32>
    %12 = vector.shape_cast %11 : vector<16xf32> to vector<16x1xf32>
    %cst_7 = arith.constant 3.200000e+01 : f32
    %13 = vector.broadcast %cst_7 : f32 to vector<16x1xf32>
    %14 = arith.divf %12, %13 : vector<16x1xf32>
    %cst_8 = arith.constant 9.99999974E-6 : f32
    %15 = vector.broadcast %cst_8 : f32 to vector<16x1xf32>
    %16 = arith.addf %14, %15 : vector<16x1xf32>
    %17 = math.rsqrt %16 : vector<16x1xf32>
    %18 = vector.broadcast %17 : vector<16x1xf32> to vector<16x32xf32>
    %19 = arith.mulf %9, %18 : vector<16x32xf32>
    %c0_9 = arith.constant 0 : index
    %c0_10 = arith.constant 0 : index
    %20 = vector.load %arg3[%c0_9, %c0_10] : memref<1x32xf32, #tpu.memory_space<vmem>>, vector<1x32xf32>
    %21 = vector.broadcast %20 : vector<1x32xf32> to vector<16x32xf32>
    %22 = arith.mulf %19, %21 : vector<16x32xf32>
    %c0_11 = arith.constant 0 : index
    %c0_12 = arith.constant 0 : index
    %23 = vector.load %arg4[%c0_11, %c0_12] : memref<1x32xf32, #tpu.memory_space<vmem>>, vector<1x32xf32>
    %24 = vector.broadcast %23 : vector<1x32xf32> to vector<16x32xf32>
    %25 = arith.addf %22, %24 : vector<16x32xf32>
    %c0_13 = arith.constant 0 : index
    %c0_14 = arith.constant 0 : index
    %26 = vector.load %arg6[%c0_13, %c0_14] : memref<16x32xf32, #tpu.memory_space<vmem>>, vector<16x32xf32>
    tpu.vector_store %arg6[%c0_13, %c0_14], %25 {strides = array<i32>} : memref<16x32xf32, #tpu.memory_space<vmem>>, vector<16x32xf32>,
    return
  }
  func.func @transform_0(%arg0: i32) -> (i32, i32) {
    %c0_i32 = arith.constant 0 : i32
    %c0_i32_0 = arith.constant 0 : i32
    return %arg0, %c0_i32 : i32, i32
  }
  func.func @transform_1(%arg0: i32) -> (i32, i32) {
    %c0_i32 = arith.constant 0 : i32
    %c0_i32_0 = arith.constant 0 : i32
    return %arg0, %c0_i32 : i32, i32
  }
  func.func @transform_2(%arg0: i32) -> (i32, i32) {
    %c0_i32 = arith.constant 0 : i32
    %c0_i32_0 = arith.constant 0 : i32
    %c0_i32_1 = arith.constant 0 : i32
    return %c0_i32, %c0_i32_0 : i32, i32
  }
  func.func @transform_3(%arg0: i32) -> (i32, i32) {
    %c0_i32 = arith.constant 0 : i32
    %c0_i32_0 = arith.constant 0 : i32
    %c0_i32_1 = arith.constant 0 : i32
    return %c0_i32, %c0_i32_0 : i32, i32
  }
  func.func @transform_4(%arg0: i32) -> (i32, i32) {
    %c0_i32 = arith.constant 0 : i32
    %c0_i32_0 = arith.constant 0 : i32
    return %arg0, %c0_i32 : i32, i32
  }
  func.func @transform_5(%arg0: i32) -> (i32, i32) {
    %c0_i32 = arith.constant 0 : i32
    %c0_i32_0 = arith.constant 0 : i32
    return %arg0, %c0_i32 : i32, i32
  }
}

module attributes {stable_mosaic.version = 11 : i64} {
  func.func @_proj_gn_kernel(%arg0: i32, %arg1: memref<32x32xf32, #tpu.memory_space<vmem>>, %arg2: memref<32x64xf32, #tpu.memory_space<vmem>>, %arg3: memref<1x64xf32, #tpu.memory_space<vmem>>, %arg4: memref<1x64xf32, #tpu.memory_space<vmem>>, %arg5: memref<1x64xf32, #tpu.memory_space<vmem>>, %arg6: memref<64x8xf32, #tpu.memory_space<vmem>>, %arg7: memref<8x64xf32, #tpu.memory_space<vmem>>, %arg8: memref<32x64xf32, #tpu.memory_space<vmem>>) attributes {dimension_semantics = [#tpu.dimension_semantics<parallel>], iteration_bounds = array<i64: 1>, scalar_prefetch = 0 : i64, scratch_operands = 0 : i64, tpu.core_type = #tpu.core_type<tc>, window_params = [{transform_indices = @transform_0, window_bounds = array<i64: 32, 32>}, {pipeline_mode = #tpu.pipeline_mode<synchronous>, transform_indices = @transform_1, window_bounds = array<i64: 32, 64>}, {pipeline_mode = #tpu.pipeline_mode<synchronous>, transform_indices = @transform_2, window_bounds = array<i64: 1, 64>}, {pipeline_mode = #tpu.pipeline_mode<synchronous>, transform_indices = @transform_3, window_bounds = array<i64: 1, 64>}, {pipeline_mode = #tpu.pipeline_mode<synchronous>, transform_indices = @transform_4, window_bounds = array<i64: 1, 64>}, {pipeline_mode = #tpu.pipeline_mode<synchronous>, transform_indices = @transform_5, window_bounds = array<i64: 64, 8>}, {pipeline_mode = #tpu.pipeline_mode<synchronous>, transform_indices = @transform_6, window_bounds = array<i64: 8, 64>}, {transform_indices = @transform_7, window_bounds = array<i64: 32, 64>}]} {
    %c0 = arith.constant 0 : index
    %c0_0 = arith.constant 0 : index
    %0 = vector.load %arg1[%c0, %c0_0] : memref<32x32xf32, #tpu.memory_space<vmem>>, vector<32x32xf32>
    %c0_1 = arith.constant 0 : index
    %c0_2 = arith.constant 0 : index
    %1 = vector.load %arg2[%c0_1, %c0_2] : memref<32x64xf32, #tpu.memory_space<vmem>>, vector<32x64xf32>
    %cst = arith.constant dense<0.000000e+00> : vector<32x64xf32>
    %2 = tpu.matmul %0, %1, %cst {dimension_numbers = #tpu.dot_dimension_numbers<[1], [0], [0], [1], [0, 0, 1, 1], [], []>} : vector<32x32xf32>, vector<32x64xf32>, vector<32x64xf32> -> vector<32x64xf32>
    %c0_3 = arith.constant 0 : index
    %c0_4 = arith.constant 0 : index
    %3 = vector.load %arg3[%c0_3, %c0_4] : memref<1x64xf32, #tpu.memory_space<vmem>>, vector<1x64xf32>
    %4 = vector.broadcast %3 : vector<1x64xf32> to vector<32x64xf32>
    %5 = arith.addf %2, %4 : vector<32x64xf32>
    %cst_5 = arith.constant 0.000000e+00 : f32
    %6 = vector.broadcast %cst_5 : f32 to vector<32x64xf32>
    %7 = arith.cmpf ogt, %5, %6 : vector<32x64xf32>
    %cst_6 = arith.constant 0.000000e+00 : f32
    %8 = vector.broadcast %cst_6 : f32 to vector<32x64xf32>
    %9 = arith.minimumf %5, %8 : vector<32x64xf32>
    %cst_7 = arith.constant 1.300000e+00 : f32
    %10 = vector.broadcast %cst_7 : f32 to vector<32x64xf32>
    %11 = arith.divf %9, %10 : vector<32x64xf32>
    %12 = math.exp %11 : vector<32x64xf32>
    %cst_8 = arith.constant 1.000000e+00 : f32
    %13 = vector.broadcast %cst_8 : f32 to vector<32x64xf32>
    %14 = arith.subf %12, %13 : vector<32x64xf32>
    %cst_9 = arith.constant 1.300000e+00 : f32
    %15 = vector.broadcast %cst_9 : f32 to vector<32x64xf32>
    %16 = arith.mulf %15, %14 : vector<32x64xf32>
    %17 = arith.select %7, %5, %16 : vector<32x64xi1>, vector<32x64xf32>
    %c0_10 = arith.constant 0 : index
    %c0_11 = arith.constant 0 : index
    %18 = vector.load %arg6[%c0_10, %c0_11] : memref<64x8xf32, #tpu.memory_space<vmem>>, vector<64x8xf32>
    %c0_12 = arith.constant 0 : index
    %c0_13 = arith.constant 0 : index
    %19 = vector.load %arg7[%c0_12, %c0_13] : memref<8x64xf32, #tpu.memory_space<vmem>>, vector<8x64xf32>
    %cst_14 = arith.constant dense<0.000000e+00> : vector<32x8xf32>
    %20 = tpu.matmul %17, %18, %cst_14 {dimension_numbers = #tpu.dot_dimension_numbers<[1], [0], [0], [1], [0, 0, 1, 1], [], []>} : vector<32x64xf32>, vector<64x8xf32>, vector<32x8xf32> -> vector<32x8xf32>
    %cst_15 = arith.constant 1.250000e-01 : f32
    %21 = vector.broadcast %cst_15 : f32 to vector<32x8xf32>
    %22 = arith.mulf %20, %21 : vector<32x8xf32>
    %cst_16 = arith.constant dense<0.000000e+00> : vector<32x64xf32>
    %23 = tpu.matmul %22, %19, %cst_16 {dimension_numbers = #tpu.dot_dimension_numbers<[1], [0], [0], [1], [0, 0, 1, 1], [], []>} : vector<32x8xf32>, vector<8x64xf32>, vector<32x64xf32> -> vector<32x64xf32>
    %24 = arith.subf %17, %23 : vector<32x64xf32>
    %25 = arith.mulf %24, %24 : vector<32x64xf32>
    %cst_17 = arith.constant dense<0.000000e+00> : vector<32x8xf32>
    %26 = tpu.matmul %25, %18, %cst_17 {dimension_numbers = #tpu.dot_dimension_numbers<[1], [0], [0], [1], [0, 0, 1, 1], [], []>} : vector<32x64xf32>, vector<64x8xf32>, vector<32x8xf32> -> vector<32x8xf32>
    %cst_18 = arith.constant 1.250000e-01 : f32
    %27 = vector.broadcast %cst_18 : f32 to vector<32x8xf32>
    %28 = arith.mulf %26, %27 : vector<32x8xf32>
    %cst_19 = arith.constant 9.99999974E-6 : f32
    %29 = vector.broadcast %cst_19 : f32 to vector<32x8xf32>
    %30 = arith.addf %28, %29 : vector<32x8xf32>
    %31 = math.rsqrt %30 : vector<32x8xf32>
    %cst_20 = arith.constant dense<0.000000e+00> : vector<32x64xf32>
    %32 = tpu.matmul %31, %19, %cst_20 {dimension_numbers = #tpu.dot_dimension_numbers<[1], [0], [0], [1], [0, 0, 1, 1], [], []>} : vector<32x8xf32>, vector<8x64xf32>, vector<32x64xf32> -> vector<32x64xf32>
    %33 = arith.mulf %24, %32 : vector<32x64xf32>
    %c0_21 = arith.constant 0 : index
    %c0_22 = arith.constant 0 : index
    %34 = vector.load %arg4[%c0_21, %c0_22] : memref<1x64xf32, #tpu.memory_space<vmem>>, vector<1x64xf32>
    %35 = vector.broadcast %34 : vector<1x64xf32> to vector<32x64xf32>
    %36 = arith.mulf %33, %35 : vector<32x64xf32>
    %c0_23 = arith.constant 0 : index
    %c0_24 = arith.constant 0 : index
    %37 = vector.load %arg5[%c0_23, %c0_24] : memref<1x64xf32, #tpu.memory_space<vmem>>, vector<1x64xf32>
    %38 = vector.broadcast %37 : vector<1x64xf32> to vector<32x64xf32>
    %39 = arith.addf %36, %38 : vector<32x64xf32>
    %c0_25 = arith.constant 0 : index
    %c0_26 = arith.constant 0 : index
    %40 = vector.load %arg8[%c0_25, %c0_26] : memref<32x64xf32, #tpu.memory_space<vmem>>, vector<32x64xf32>
    tpu.vector_store %arg8[%c0_25, %c0_26], %39 {strides = array<i32>} : memref<32x64xf32, #tpu.memory_space<vmem>>, vector<32x64xf32>,
    return
  }
  func.func @transform_0(%arg0: i32) -> (i32, i32) {
    %c0_i32 = arith.constant 0 : i32
    %c0_i32_0 = arith.constant 0 : i32
    return %arg0, %c0_i32 : i32, i32
  }
  func.func @transform_1(%arg0: i32) -> (i32, i32) {
    %c0_i32 = arith.constant 0 : i32
    %c0_i32_0 = arith.constant 0 : i32
    %c0_i32_1 = arith.constant 0 : i32
    return %c0_i32, %c0_i32_0 : i32, i32
  }
  func.func @transform_2(%arg0: i32) -> (i32, i32) {
    %c0_i32 = arith.constant 0 : i32
    %c0_i32_0 = arith.constant 0 : i32
    %c0_i32_1 = arith.constant 0 : i32
    return %c0_i32, %c0_i32_0 : i32, i32
  }
  func.func @transform_3(%arg0: i32) -> (i32, i32) {
    %c0_i32 = arith.constant 0 : i32
    %c0_i32_0 = arith.constant 0 : i32
    %c0_i32_1 = arith.constant 0 : i32
    return %c0_i32, %c0_i32_0 : i32, i32
  }
  func.func @transform_4(%arg0: i32) -> (i32, i32) {
    %c0_i32 = arith.constant 0 : i32
    %c0_i32_0 = arith.constant 0 : i32
    %c0_i32_1 = arith.constant 0 : i32
    return %c0_i32, %c0_i32_0 : i32, i32
  }
  func.func @transform_5(%arg0: i32) -> (i32, i32) {
    %c0_i32 = arith.constant 0 : i32
    %c0_i32_0 = arith.constant 0 : i32
    %c0_i32_1 = arith.constant 0 : i32
    return %c0_i32, %c0_i32_0 : i32, i32
  }
  func.func @transform_6(%arg0: i32) -> (i32, i32) {
    %c0_i32 = arith.constant 0 : i32
    %c0_i32_0 = arith.constant 0 : i32
    %c0_i32_1 = arith.constant 0 : i32
    return %c0_i32, %c0_i32_0 : i32, i32
  }
  func.func @transform_7(%arg0: i32) -> (i32, i32) {
    %c0_i32 = arith.constant 0 : i32
    %c0_i32_0 = arith.constant 0 : i32
    return %arg0, %c0_i32 : i32, i32
  }
}

module attributes {stable_mosaic.version = 11 : i64} {
  func.func @_scatt_kernel(%arg0: i32, %arg1: memref<1x8x8x8xf32, #tpu.memory_space<vmem>>, %arg2: memref<1x8x8x8xf32, #tpu.memory_space<vmem>>, %arg3: memref<1x8x8xf32, #tpu.memory_space<vmem>>, %arg4: memref<16x8xf32, #tpu.memory_space<vmem>>, %arg5: memref<16x1xf32, #tpu.memory_space<vmem>>, %arg6: memref<16x1xf32, #tpu.memory_space<vmem>>, %arg7: memref<1x1xf32, #tpu.memory_space<vmem>>, %arg8: memref<16x8xf32, #tpu.memory_space<vmem>>, %arg9: memref<1x8xf32, #tpu.memory_space<vmem>>, %arg10: memref<1x4x8x8xf32, #tpu.memory_space<vmem>>) attributes {dimension_semantics = [#tpu.dimension_semantics<parallel>], iteration_bounds = array<i64: 2>, scalar_prefetch = 0 : i64, scratch_operands = 0 : i64, tpu.core_type = #tpu.core_type<tc>, window_params = [{transform_indices = @transform_0, window_bounds = array<i64: 1, 8, 8, 8>}, {transform_indices = @transform_1, window_bounds = array<i64: 1, 8, 8, 8>}, {transform_indices = @transform_2, window_bounds = array<i64: 1, 8, 8>}, {pipeline_mode = #tpu.pipeline_mode<synchronous>, transform_indices = @transform_3, window_bounds = array<i64: 16, 8>}, {pipeline_mode = #tpu.pipeline_mode<synchronous>, transform_indices = @transform_4, window_bounds = array<i64: 16, 1>}, {pipeline_mode = #tpu.pipeline_mode<synchronous>, transform_indices = @transform_5, window_bounds = array<i64: 16, 1>}, {pipeline_mode = #tpu.pipeline_mode<synchronous>, transform_indices = @transform_6, window_bounds = array<i64: 1, 1>}, {pipeline_mode = #tpu.pipeline_mode<synchronous>, transform_indices = @transform_7, window_bounds = array<i64: 16, 8>}, {pipeline_mode = #tpu.pipeline_mode<synchronous>, transform_indices = @transform_8, window_bounds = array<i64: 1, 8>}, {transform_indices = @transform_9, window_bounds = array<i64: 1, 4, 8, 8>}]} {
    %c0 = arith.constant 0 : index
    %c0_0 = arith.constant 0 : index
    %c0_1 = arith.constant 0 : index
    %c0_2 = arith.constant 0 : index
    %0 = vector.load %arg1[%c0, %c0_0, %c0_1, %c0_2] : memref<1x8x8x8xf32, #tpu.memory_space<vmem>>, vector<1x8x8x8xf32>
    %1 = vector.shape_cast %0 : vector<1x8x8x8xf32> to vector<8x8x8xf32>
    %c0_3 = arith.constant 0 : index
    %c0_4 = arith.constant 0 : index
    %c0_5 = arith.constant 0 : index
    %c0_6 = arith.constant 0 : index
    %2 = vector.load %arg2[%c0_3, %c0_4, %c0_5, %c0_6] : memref<1x8x8x8xf32, #tpu.memory_space<vmem>>, vector<1x8x8x8xf32>
    %3 = vector.shape_cast %2 : vector<1x8x8x8xf32> to vector<8x8x8xf32>
    %c0_7 = arith.constant 0 : index
    %c0_8 = arith.constant 0 : index
    %c0_9 = arith.constant 0 : index
    %4 = vector.load %arg3[%c0_7, %c0_8, %c0_9] : memref<1x8x8xf32, #tpu.memory_space<vmem>>, vector<1x8x8xf32>
    %5 = vector.shape_cast %4 : vector<1x8x8xf32> to vector<8x8xf32>
    %6 = vector.extract_strided_slice %1 {offsets = [0, 0, 0], sizes = [4, 8, 8], strides = [1, 1, 1]} : vector<8x8x8xf32> to vector<4x8x8xf32>
    %7 = vector.extract_strided_slice %1 {offsets = [4, 0, 0], sizes = [4, 8, 8], strides = [1, 1, 1]} : vector<8x8x8xf32> to vector<4x8x8xf32>
    %8 = vector.extract_strided_slice %3 {offsets = [0, 0, 0], sizes = [4, 8, 8], strides = [1, 1, 1]} : vector<8x8x8xf32> to vector<4x8x8xf32>
    %9 = vector.extract_strided_slice %3 {offsets = [4, 0, 0], sizes = [4, 8, 8], strides = [1, 1, 1]} : vector<8x8x8xf32> to vector<4x8x8xf32>
    %c0_10 = arith.constant 0 : index
    %c0_11 = arith.constant 0 : index
    %10 = vector.load %arg4[%c0_10, %c0_11] : memref<16x8xf32, #tpu.memory_space<vmem>>, vector<16x8xf32>
    %c0_12 = arith.constant 0 : index
    %c0_13 = arith.constant 0 : index
    %11 = vector.load %arg5[%c0_12, %c0_13] : memref<16x1xf32, #tpu.memory_space<vmem>>, vector<16x1xf32>
    %c0_14 = arith.constant 0 : index
    %c0_15 = arith.constant 0 : index
    %12 = vector.load %arg6[%c0_14, %c0_15] : memref<16x1xf32, #tpu.memory_space<vmem>>, vector<16x1xf32>
    %c0_16 = arith.constant 0 : index
    %c0_17 = arith.constant 0 : index
    %13 = vector.load %arg8[%c0_16, %c0_17] : memref<16x8xf32, #tpu.memory_space<vmem>>, vector<16x8xf32>
    %cst = arith.constant 0.000000e+00 : f32
    %14 = vector.broadcast %cst : f32 to vector<4x8x8xf32>
    %cst_18 = arith.constant 0.000000e+00 : f32
    %15 = vector.broadcast %cst_18 : f32 to vector<4x8x8xf32>
    %16 = vector.extract_strided_slice %10 {offsets = [0, 0], sizes = [1, 8], strides = [1, 1]} : vector<16x8xf32> to vector<1x8xf32>
    %17 = vector.shape_cast %16 : vector<1x8xf32> to vector<1x1x8xf32>
    %18 = vector.broadcast %17 : vector<1x1x8xf32> to vector<4x8x8xf32>
    %19 = arith.mulf %6, %18 : vector<4x8x8xf32>
    "tpu.trace_start"() <{level = 10 : i32, message = "hqd,hkd->hqk"}> : () -> ()
    %cst_19 = arith.constant dense<0.000000e+00> : vector<4x8x8xf32>
    %20 = tpu.matmul %19, %8, %cst_19 {dimension_numbers = #tpu.dot_dimension_numbers<[2], [2], [1], [1], [0, 0, 0, 1, 1, 1], [0], [0]>} : vector<4x8x8xf32>, vector<4x8x8xf32>, vector<4x8x8xf32> -> vector<4x8x8xf32>
    "tpu.trace_stop"() : () -> ()
    %21 = vector.extract_strided_slice %11 {offsets = [0, 0], sizes = [1, 1], strides = [1, 1]} : vector<16x1xf32> to vector<1x1xf32>
    %22 = vector.shape_cast %21 : vector<1x1xf32> to vector<1x1x1xf32>
    %23 = vector.broadcast %22 : vector<1x1x1xf32> to vector<4x8x8xf32>
    %24 = arith.addf %20, %23 : vector<4x8x8xf32>
    %cst_20 = arith.constant 0.000000e+00 : f32
    %25 = vector.broadcast %cst_20 : f32 to vector<4x8x8xf32>
    %26 = arith.maximumf %24, %25 : vector<4x8x8xf32>
    %27 = vector.extract_strided_slice %12 {offsets = [0, 0], sizes = [1, 1], strides = [1, 1]} : vector<16x1xf32> to vector<1x1xf32>
    %28 = vector.shape_cast %27 : vector<1x1xf32> to vector<1x1x1xf32>
    %29 = vector.broadcast %28 : vector<1x1x1xf32> to vector<4x8x8xf32>
    %30 = arith.mulf %26, %29 : vector<4x8x8xf32>
    %31 = arith.addf %14, %30 : vector<4x8x8xf32>
    %32 = vector.shape_cast %5 : vector<8x8xf32> to vector<1x8x8xf32>
    %33 = vector.broadcast %32 : vector<1x8x8xf32> to vector<4x8x8xf32>
    %34 = arith.mulf %26, %33 : vector<4x8x8xf32>
    %cst_21 = arith.constant dense<0.000000e+00> : vector<4x8xf32>
    %35 = vector.multi_reduction <add>, %34, %cst_21 [2] : vector<4x8x8xf32> to vector<4x8xf32>
    %36 = vector.shape_cast %35 : vector<4x8xf32> to vector<4x8x1xf32>
    %37 = vector.extract_strided_slice %13 {offsets = [0, 0], sizes = [1, 8], strides = [1, 1]} : vector<16x8xf32> to vector<1x8xf32>
    %38 = vector.shape_cast %37 : vector<1x8xf32> to vector<1x1x8xf32>
    %39 = vector.broadcast %36 : vector<4x8x1xf32> to vector<4x8x8xf32>
    %40 = vector.broadcast %38 : vector<1x1x8xf32> to vector<4x8x8xf32>
    %41 = arith.mulf %39, %40 : vector<4x8x8xf32>
    %42 = arith.addf %15, %41 : vector<4x8x8xf32>
    %43 = vector.extract_strided_slice %10 {offsets = [1, 0], sizes = [1, 8], strides = [1, 1]} : vector<16x8xf32> to vector<1x8xf32>
    %44 = vector.shape_cast %43 : vector<1x8xf32> to vector<1x1x8xf32>
    %45 = vector.broadcast %44 : vector<1x1x8xf32> to vector<4x8x8xf32>
    %46 = arith.mulf %6, %45 : vector<4x8x8xf32>
    "tpu.trace_start"() <{level = 10 : i32, message = "hqd,hkd->hqk"}> : () -> ()
    %cst_22 = arith.constant dense<0.000000e+00> : vector<4x8x8xf32>
    %47 = tpu.matmul %46, %8, %cst_22 {dimension_numbers = #tpu.dot_dimension_numbers<[2], [2], [1], [1], [0, 0, 0, 1, 1, 1], [0], [0]>} : vector<4x8x8xf32>, vector<4x8x8xf32>, vector<4x8x8xf32> -> vector<4x8x8xf32>
    "tpu.trace_stop"() : () -> ()
    %48 = vector.extract_strided_slice %11 {offsets = [1, 0], sizes = [1, 1], strides = [1, 1]} : vector<16x1xf32> to vector<1x1xf32>
    %49 = vector.shape_cast %48 : vector<1x1xf32> to vector<1x1x1xf32>
    %50 = vector.broadcast %49 : vector<1x1x1xf32> to vector<4x8x8xf32>
    %51 = arith.addf %47, %50 : vector<4x8x8xf32>
    %cst_23 = arith.constant 0.000000e+00 : f32
    %52 = vector.broadcast %cst_23 : f32 to vector<4x8x8xf32>
    %53 = arith.maximumf %51, %52 : vector<4x8x8xf32>
    %54 = vector.extract_strided_slice %12 {offsets = [1, 0], sizes = [1, 1], strides = [1, 1]} : vector<16x1xf32> to vector<1x1xf32>
    %55 = vector.shape_cast %54 : vector<1x1xf32> to vector<1x1x1xf32>
    %56 = vector.broadcast %55 : vector<1x1x1xf32> to vector<4x8x8xf32>
    %57 = arith.mulf %53, %56 : vector<4x8x8xf32>
    %58 = arith.addf %31, %57 : vector<4x8x8xf32>
    %59 = vector.shape_cast %5 : vector<8x8xf32> to vector<1x8x8xf32>
    %60 = vector.broadcast %59 : vector<1x8x8xf32> to vector<4x8x8xf32>
    %61 = arith.mulf %53, %60 : vector<4x8x8xf32>
    %cst_24 = arith.constant dense<0.000000e+00> : vector<4x8xf32>
    %62 = vector.multi_reduction <add>, %61, %cst_24 [2] : vector<4x8x8xf32> to vector<4x8xf32>
    %63 = vector.shape_cast %62 : vector<4x8xf32> to vector<4x8x1xf32>
    %64 = vector.extract_strided_slice %13 {offsets = [1, 0], sizes = [1, 8], strides = [1, 1]} : vector<16x8xf32> to vector<1x8xf32>
    %65 = vector.shape_cast %64 : vector<1x8xf32> to vector<1x1x8xf32>
    %66 = vector.broadcast %63 : vector<4x8x1xf32> to vector<4x8x8xf32>
    %67 = vector.broadcast %65 : vector<1x1x8xf32> to vector<4x8x8xf32>
    %68 = arith.mulf %66, %67 : vector<4x8x8xf32>
    %69 = arith.addf %42, %68 : vector<4x8x8xf32>
    %70 = vector.extract_strided_slice %10 {offsets = [2, 0], sizes = [1, 8], strides = [1, 1]} : vector<16x8xf32> to vector<1x8xf32>
    %71 = vector.shape_cast %70 : vector<1x8xf32> to vector<1x1x8xf32>
    %72 = vector.broadcast %71 : vector<1x1x8xf32> to vector<4x8x8xf32>
    %73 = arith.mulf %6, %72 : vector<4x8x8xf32>
    "tpu.trace_start"() <{level = 10 : i32, message = "hqd,hkd->hqk"}> : () -> ()
    %cst_25 = arith.constant dense<0.000000e+00> : vector<4x8x8xf32>
    %74 = tpu.matmul %73, %8, %cst_25 {dimension_numbers = #tpu.dot_dimension_numbers<[2], [2], [1], [1], [0, 0, 0, 1, 1, 1], [0], [0]>} : vector<4x8x8xf32>, vector<4x8x8xf32>, vector<4x8x8xf32> -> vector<4x8x8xf32>
    "tpu.trace_stop"() : () -> ()
    %75 = vector.extract_strided_slice %11 {offsets = [2, 0], sizes = [1, 1], strides = [1, 1]} : vector<16x1xf32> to vector<1x1xf32>
    %76 = vector.shape_cast %75 : vector<1x1xf32> to vector<1x1x1xf32>
    %77 = vector.broadcast %76 : vector<1x1x1xf32> to vector<4x8x8xf32>
    %78 = arith.addf %74, %77 : vector<4x8x8xf32>
    %cst_26 = arith.constant 0.000000e+00 : f32
    %79 = vector.broadcast %cst_26 : f32 to vector<4x8x8xf32>
    %80 = arith.maximumf %78, %79 : vector<4x8x8xf32>
    %81 = vector.extract_strided_slice %12 {offsets = [2, 0], sizes = [1, 1], strides = [1, 1]} : vector<16x1xf32> to vector<1x1xf32>
    %82 = vector.shape_cast %81 : vector<1x1xf32> to vector<1x1x1xf32>
    %83 = vector.broadcast %82 : vector<1x1x1xf32> to vector<4x8x8xf32>
    %84 = arith.mulf %80, %83 : vector<4x8x8xf32>
    %85 = arith.addf %58, %84 : vector<4x8x8xf32>
    %86 = vector.shape_cast %5 : vector<8x8xf32> to vector<1x8x8xf32>
    %87 = vector.broadcast %86 : vector<1x8x8xf32> to vector<4x8x8xf32>
    %88 = arith.mulf %80, %87 : vector<4x8x8xf32>
    %cst_27 = arith.constant dense<0.000000e+00> : vector<4x8xf32>
    %89 = vector.multi_reduction <add>, %88, %cst_27 [2] : vector<4x8x8xf32> to vector<4x8xf32>
    %90 = vector.shape_cast %89 : vector<4x8xf32> to vector<4x8x1xf32>
    %91 = vector.extract_strided_slice %13 {offsets = [2, 0], sizes = [1, 8], strides = [1, 1]} : vector<16x8xf32> to vector<1x8xf32>
    %92 = vector.shape_cast %91 : vector<1x8xf32> to vector<1x1x8xf32>
    %93 = vector.broadcast %90 : vector<4x8x1xf32> to vector<4x8x8xf32>
    %94 = vector.broadcast %92 : vector<1x1x8xf32> to vector<4x8x8xf32>
    %95 = arith.mulf %93, %94 : vector<4x8x8xf32>
    %96 = arith.addf %69, %95 : vector<4x8x8xf32>
    %97 = vector.extract_strided_slice %10 {offsets = [3, 0], sizes = [1, 8], strides = [1, 1]} : vector<16x8xf32> to vector<1x8xf32>
    %98 = vector.shape_cast %97 : vector<1x8xf32> to vector<1x1x8xf32>
    %99 = vector.broadcast %98 : vector<1x1x8xf32> to vector<4x8x8xf32>
    %100 = arith.mulf %6, %99 : vector<4x8x8xf32>
    "tpu.trace_start"() <{level = 10 : i32, message = "hqd,hkd->hqk"}> : () -> ()
    %cst_28 = arith.constant dense<0.000000e+00> : vector<4x8x8xf32>
    %101 = tpu.matmul %100, %8, %cst_28 {dimension_numbers = #tpu.dot_dimension_numbers<[2], [2], [1], [1], [0, 0, 0, 1, 1, 1], [0], [0]>} : vector<4x8x8xf32>, vector<4x8x8xf32>, vector<4x8x8xf32> -> vector<4x8x8xf32>
    "tpu.trace_stop"() : () -> ()
    %102 = vector.extract_strided_slice %11 {offsets = [3, 0], sizes = [1, 1], strides = [1, 1]} : vector<16x1xf32> to vector<1x1xf32>
    %103 = vector.shape_cast %102 : vector<1x1xf32> to vector<1x1x1xf32>
    %104 = vector.broadcast %103 : vector<1x1x1xf32> to vector<4x8x8xf32>
    %105 = arith.addf %101, %104 : vector<4x8x8xf32>
    %cst_29 = arith.constant 0.000000e+00 : f32
    %106 = vector.broadcast %cst_29 : f32 to vector<4x8x8xf32>
    %107 = arith.maximumf %105, %106 : vector<4x8x8xf32>
    %108 = vector.extract_strided_slice %12 {offsets = [3, 0], sizes = [1, 1], strides = [1, 1]} : vector<16x1xf32> to vector<1x1xf32>
    %109 = vector.shape_cast %108 : vector<1x1xf32> to vector<1x1x1xf32>
    %110 = vector.broadcast %109 : vector<1x1x1xf32> to vector<4x8x8xf32>
    %111 = arith.mulf %107, %110 : vector<4x8x8xf32>
    %112 = arith.addf %85, %111 : vector<4x8x8xf32>
    %113 = vector.shape_cast %5 : vector<8x8xf32> to vector<1x8x8xf32>
    %114 = vector.broadcast %113 : vector<1x8x8xf32> to vector<4x8x8xf32>
    %115 = arith.mulf %107, %114 : vector<4x8x8xf32>
    %cst_30 = arith.constant dense<0.000000e+00> : vector<4x8xf32>
    %116 = vector.multi_reduction <add>, %115, %cst_30 [2] : vector<4x8x8xf32> to vector<4x8xf32>
    %117 = vector.shape_cast %116 : vector<4x8xf32> to vector<4x8x1xf32>
    %118 = vector.extract_strided_slice %13 {offsets = [3, 0], sizes = [1, 8], strides = [1, 1]} : vector<16x8xf32> to vector<1x8xf32>
    %119 = vector.shape_cast %118 : vector<1x8xf32> to vector<1x1x8xf32>
    %120 = vector.broadcast %117 : vector<4x8x1xf32> to vector<4x8x8xf32>
    %121 = vector.broadcast %119 : vector<1x1x8xf32> to vector<4x8x8xf32>
    %122 = arith.mulf %120, %121 : vector<4x8x8xf32>
    %123 = arith.addf %96, %122 : vector<4x8x8xf32>
    %124 = vector.extract_strided_slice %10 {offsets = [4, 0], sizes = [1, 8], strides = [1, 1]} : vector<16x8xf32> to vector<1x8xf32>
    %125 = vector.shape_cast %124 : vector<1x8xf32> to vector<1x1x8xf32>
    %126 = vector.broadcast %125 : vector<1x1x8xf32> to vector<4x8x8xf32>
    %127 = arith.mulf %6, %126 : vector<4x8x8xf32>
    "tpu.trace_start"() <{level = 10 : i32, message = "hqd,hkd->hqk"}> : () -> ()
    %cst_31 = arith.constant dense<0.000000e+00> : vector<4x8x8xf32>
    %128 = tpu.matmul %127, %8, %cst_31 {dimension_numbers = #tpu.dot_dimension_numbers<[2], [2], [1], [1], [0, 0, 0, 1, 1, 1], [0], [0]>} : vector<4x8x8xf32>, vector<4x8x8xf32>, vector<4x8x8xf32> -> vector<4x8x8xf32>
    "tpu.trace_stop"() : () -> ()
    %129 = vector.extract_strided_slice %11 {offsets = [4, 0], sizes = [1, 1], strides = [1, 1]} : vector<16x1xf32> to vector<1x1xf32>
    %130 = vector.shape_cast %129 : vector<1x1xf32> to vector<1x1x1xf32>
    %131 = vector.broadcast %130 : vector<1x1x1xf32> to vector<4x8x8xf32>
    %132 = arith.addf %128, %131 : vector<4x8x8xf32>
    %cst_32 = arith.constant 0.000000e+00 : f32
    %133 = vector.broadcast %cst_32 : f32 to vector<4x8x8xf32>
    %134 = arith.maximumf %132, %133 : vector<4x8x8xf32>
    %135 = vector.extract_strided_slice %12 {offsets = [4, 0], sizes = [1, 1], strides = [1, 1]} : vector<16x1xf32> to vector<1x1xf32>
    %136 = vector.shape_cast %135 : vector<1x1xf32> to vector<1x1x1xf32>
    %137 = vector.broadcast %136 : vector<1x1x1xf32> to vector<4x8x8xf32>
    %138 = arith.mulf %134, %137 : vector<4x8x8xf32>
    %139 = arith.addf %112, %138 : vector<4x8x8xf32>
    %140 = vector.shape_cast %5 : vector<8x8xf32> to vector<1x8x8xf32>
    %141 = vector.broadcast %140 : vector<1x8x8xf32> to vector<4x8x8xf32>
    %142 = arith.mulf %134, %141 : vector<4x8x8xf32>
    %cst_33 = arith.constant dense<0.000000e+00> : vector<4x8xf32>
    %143 = vector.multi_reduction <add>, %142, %cst_33 [2] : vector<4x8x8xf32> to vector<4x8xf32>
    %144 = vector.shape_cast %143 : vector<4x8xf32> to vector<4x8x1xf32>
    %145 = vector.extract_strided_slice %13 {offsets = [4, 0], sizes = [1, 8], strides = [1, 1]} : vector<16x8xf32> to vector<1x8xf32>
    %146 = vector.shape_cast %145 : vector<1x8xf32> to vector<1x1x8xf32>
    %147 = vector.broadcast %144 : vector<4x8x1xf32> to vector<4x8x8xf32>
    %148 = vector.broadcast %146 : vector<1x1x8xf32> to vector<4x8x8xf32>
    %149 = arith.mulf %147, %148 : vector<4x8x8xf32>
    %150 = arith.addf %123, %149 : vector<4x8x8xf32>
    %151 = vector.extract_strided_slice %10 {offsets = [5, 0], sizes = [1, 8], strides = [1, 1]} : vector<16x8xf32> to vector<1x8xf32>
    %152 = vector.shape_cast %151 : vector<1x8xf32> to vector<1x1x8xf32>
    %153 = vector.broadcast %152 : vector<1x1x8xf32> to vector<4x8x8xf32>
    %154 = arith.mulf %6, %153 : vector<4x8x8xf32>
    "tpu.trace_start"() <{level = 10 : i32, message = "hqd,hkd->hqk"}> : () -> ()
    %cst_34 = arith.constant dense<0.000000e+00> : vector<4x8x8xf32>
    %155 = tpu.matmul %154, %8, %cst_34 {dimension_numbers = #tpu.dot_dimension_numbers<[2], [2], [1], [1], [0, 0, 0, 1, 1, 1], [0], [0]>} : vector<4x8x8xf32>, vector<4x8x8xf32>, vector<4x8x8xf32> -> vector<4x8x8xf32>
    "tpu.trace_stop"() : () -> ()
    %156 = vector.extract_strided_slice %11 {offsets = [5, 0], sizes = [1, 1], strides = [1, 1]} : vector<16x1xf32> to vector<1x1xf32>
    %157 = vector.shape_cast %156 : vector<1x1xf32> to vector<1x1x1xf32>
    %158 = vector.broadcast %157 : vector<1x1x1xf32> to vector<4x8x8xf32>
    %159 = arith.addf %155, %158 : vector<4x8x8xf32>
    %cst_35 = arith.constant 0.000000e+00 : f32
    %160 = vector.broadcast %cst_35 : f32 to vector<4x8x8xf32>
    %161 = arith.maximumf %159, %160 : vector<4x8x8xf32>
    %162 = vector.extract_strided_slice %12 {offsets = [5, 0], sizes = [1, 1], strides = [1, 1]} : vector<16x1xf32> to vector<1x1xf32>
    %163 = vector.shape_cast %162 : vector<1x1xf32> to vector<1x1x1xf32>
    %164 = vector.broadcast %163 : vector<1x1x1xf32> to vector<4x8x8xf32>
    %165 = arith.mulf %161, %164 : vector<4x8x8xf32>
    %166 = arith.addf %139, %165 : vector<4x8x8xf32>
    %167 = vector.shape_cast %5 : vector<8x8xf32> to vector<1x8x8xf32>
    %168 = vector.broadcast %167 : vector<1x8x8xf32> to vector<4x8x8xf32>
    %169 = arith.mulf %161, %168 : vector<4x8x8xf32>
    %cst_36 = arith.constant dense<0.000000e+00> : vector<4x8xf32>
    %170 = vector.multi_reduction <add>, %169, %cst_36 [2] : vector<4x8x8xf32> to vector<4x8xf32>
    %171 = vector.shape_cast %170 : vector<4x8xf32> to vector<4x8x1xf32>
    %172 = vector.extract_strided_slice %13 {offsets = [5, 0], sizes = [1, 8], strides = [1, 1]} : vector<16x8xf32> to vector<1x8xf32>
    %173 = vector.shape_cast %172 : vector<1x8xf32> to vector<1x1x8xf32>
    %174 = vector.broadcast %171 : vector<4x8x1xf32> to vector<4x8x8xf32>
    %175 = vector.broadcast %173 : vector<1x1x8xf32> to vector<4x8x8xf32>
    %176 = arith.mulf %174, %175 : vector<4x8x8xf32>
    %177 = arith.addf %150, %176 : vector<4x8x8xf32>
    %178 = vector.extract_strided_slice %10 {offsets = [6, 0], sizes = [1, 8], strides = [1, 1]} : vector<16x8xf32> to vector<1x8xf32>
    %179 = vector.shape_cast %178 : vector<1x8xf32> to vector<1x1x8xf32>
    %180 = vector.broadcast %179 : vector<1x1x8xf32> to vector<4x8x8xf32>
    %181 = arith.mulf %6, %180 : vector<4x8x8xf32>
    "tpu.trace_start"() <{level = 10 : i32, message = "hqd,hkd->hqk"}> : () -> ()
    %cst_37 = arith.constant dense<0.000000e+00> : vector<4x8x8xf32>
    %182 = tpu.matmul %181, %8, %cst_37 {dimension_numbers = #tpu.dot_dimension_numbers<[2], [2], [1], [1], [0, 0, 0, 1, 1, 1], [0], [0]>} : vector<4x8x8xf32>, vector<4x8x8xf32>, vector<4x8x8xf32> -> vector<4x8x8xf32>
    "tpu.trace_stop"() : () -> ()
    %183 = vector.extract_strided_slice %11 {offsets = [6, 0], sizes = [1, 1], strides = [1, 1]} : vector<16x1xf32> to vector<1x1xf32>
    %184 = vector.shape_cast %183 : vector<1x1xf32> to vector<1x1x1xf32>
    %185 = vector.broadcast %184 : vector<1x1x1xf32> to vector<4x8x8xf32>
    %186 = arith.addf %182, %185 : vector<4x8x8xf32>
    %cst_38 = arith.constant 0.000000e+00 : f32
    %187 = vector.broadcast %cst_38 : f32 to vector<4x8x8xf32>
    %188 = arith.maximumf %186, %187 : vector<4x8x8xf32>
    %189 = vector.extract_strided_slice %12 {offsets = [6, 0], sizes = [1, 1], strides = [1, 1]} : vector<16x1xf32> to vector<1x1xf32>
    %190 = vector.shape_cast %189 : vector<1x1xf32> to vector<1x1x1xf32>
    %191 = vector.broadcast %190 : vector<1x1x1xf32> to vector<4x8x8xf32>
    %192 = arith.mulf %188, %191 : vector<4x8x8xf32>
    %193 = arith.addf %166, %192 : vector<4x8x8xf32>
    %194 = vector.shape_cast %5 : vector<8x8xf32> to vector<1x8x8xf32>
    %195 = vector.broadcast %194 : vector<1x8x8xf32> to vector<4x8x8xf32>
    %196 = arith.mulf %188, %195 : vector<4x8x8xf32>
    %cst_39 = arith.constant dense<0.000000e+00> : vector<4x8xf32>
    %197 = vector.multi_reduction <add>, %196, %cst_39 [2] : vector<4x8x8xf32> to vector<4x8xf32>
    %198 = vector.shape_cast %197 : vector<4x8xf32> to vector<4x8x1xf32>
    %199 = vector.extract_strided_slice %13 {offsets = [6, 0], sizes = [1, 8], strides = [1, 1]} : vector<16x8xf32> to vector<1x8xf32>
    %200 = vector.shape_cast %199 : vector<1x8xf32> to vector<1x1x8xf32>
    %201 = vector.broadcast %198 : vector<4x8x1xf32> to vector<4x8x8xf32>
    %202 = vector.broadcast %200 : vector<1x1x8xf32> to vector<4x8x8xf32>
    %203 = arith.mulf %201, %202 : vector<4x8x8xf32>
    %204 = arith.addf %177, %203 : vector<4x8x8xf32>
    %205 = vector.extract_strided_slice %10 {offsets = [7, 0], sizes = [1, 8], strides = [1, 1]} : vector<16x8xf32> to vector<1x8xf32>
    %206 = vector.shape_cast %205 : vector<1x8xf32> to vector<1x1x8xf32>
    %207 = vector.broadcast %206 : vector<1x1x8xf32> to vector<4x8x8xf32>
    %208 = arith.mulf %6, %207 : vector<4x8x8xf32>
    "tpu.trace_start"() <{level = 10 : i32, message = "hqd,hkd->hqk"}> : () -> ()
    %cst_40 = arith.constant dense<0.000000e+00> : vector<4x8x8xf32>
    %209 = tpu.matmul %208, %8, %cst_40 {dimension_numbers = #tpu.dot_dimension_numbers<[2], [2], [1], [1], [0, 0, 0, 1, 1, 1], [0], [0]>} : vector<4x8x8xf32>, vector<4x8x8xf32>, vector<4x8x8xf32> -> vector<4x8x8xf32>
    "tpu.trace_stop"() : () -> ()
    %210 = vector.extract_strided_slice %11 {offsets = [7, 0], sizes = [1, 1], strides = [1, 1]} : vector<16x1xf32> to vector<1x1xf32>
    %211 = vector.shape_cast %210 : vector<1x1xf32> to vector<1x1x1xf32>
    %212 = vector.broadcast %211 : vector<1x1x1xf32> to vector<4x8x8xf32>
    %213 = arith.addf %209, %212 : vector<4x8x8xf32>
    %cst_41 = arith.constant 0.000000e+00 : f32
    %214 = vector.broadcast %cst_41 : f32 to vector<4x8x8xf32>
    %215 = arith.maximumf %213, %214 : vector<4x8x8xf32>
    %216 = vector.extract_strided_slice %12 {offsets = [7, 0], sizes = [1, 1], strides = [1, 1]} : vector<16x1xf32> to vector<1x1xf32>
    %217 = vector.shape_cast %216 : vector<1x1xf32> to vector<1x1x1xf32>
    %218 = vector.broadcast %217 : vector<1x1x1xf32> to vector<4x8x8xf32>
    %219 = arith.mulf %215, %218 : vector<4x8x8xf32>
    %220 = arith.addf %193, %219 : vector<4x8x8xf32>
    %221 = vector.shape_cast %5 : vector<8x8xf32> to vector<1x8x8xf32>
    %222 = vector.broadcast %221 : vector<1x8x8xf32> to vector<4x8x8xf32>
    %223 = arith.mulf %215, %222 : vector<4x8x8xf32>
    %cst_42 = arith.constant dense<0.000000e+00> : vector<4x8xf32>
    %224 = vector.multi_reduction <add>, %223, %cst_42 [2] : vector<4x8x8xf32> to vector<4x8xf32>
    %225 = vector.shape_cast %224 : vector<4x8xf32> to vector<4x8x1xf32>
    %226 = vector.extract_strided_slice %13 {offsets = [7, 0], sizes = [1, 8], strides = [1, 1]} : vector<16x8xf32> to vector<1x8xf32>
    %227 = vector.shape_cast %226 : vector<1x8xf32> to vector<1x1x8xf32>
    %228 = vector.broadcast %225 : vector<4x8x1xf32> to vector<4x8x8xf32>
    %229 = vector.broadcast %227 : vector<1x1x8xf32> to vector<4x8x8xf32>
    %230 = arith.mulf %228, %229 : vector<4x8x8xf32>
    %231 = arith.addf %204, %230 : vector<4x8x8xf32>
    %232 = vector.extract_strided_slice %10 {offsets = [8, 0], sizes = [1, 8], strides = [1, 1]} : vector<16x8xf32> to vector<1x8xf32>
    %233 = vector.shape_cast %232 : vector<1x8xf32> to vector<1x1x8xf32>
    %234 = vector.broadcast %233 : vector<1x1x8xf32> to vector<4x8x8xf32>
    %235 = arith.mulf %6, %234 : vector<4x8x8xf32>
    "tpu.trace_start"() <{level = 10 : i32, message = "hqd,hkd->hqk"}> : () -> ()
    %cst_43 = arith.constant dense<0.000000e+00> : vector<4x8x8xf32>
    %236 = tpu.matmul %235, %8, %cst_43 {dimension_numbers = #tpu.dot_dimension_numbers<[2], [2], [1], [1], [0, 0, 0, 1, 1, 1], [0], [0]>} : vector<4x8x8xf32>, vector<4x8x8xf32>, vector<4x8x8xf32> -> vector<4x8x8xf32>
    "tpu.trace_stop"() : () -> ()
    %237 = vector.extract_strided_slice %11 {offsets = [8, 0], sizes = [1, 1], strides = [1, 1]} : vector<16x1xf32> to vector<1x1xf32>
    %238 = vector.shape_cast %237 : vector<1x1xf32> to vector<1x1x1xf32>
    %239 = vector.broadcast %238 : vector<1x1x1xf32> to vector<4x8x8xf32>
    %240 = arith.addf %236, %239 : vector<4x8x8xf32>
    %cst_44 = arith.constant 0.000000e+00 : f32
    %241 = vector.broadcast %cst_44 : f32 to vector<4x8x8xf32>
    %242 = arith.maximumf %240, %241 : vector<4x8x8xf32>
    %243 = vector.extract_strided_slice %12 {offsets = [8, 0], sizes = [1, 1], strides = [1, 1]} : vector<16x1xf32> to vector<1x1xf32>
    %244 = vector.shape_cast %243 : vector<1x1xf32> to vector<1x1x1xf32>
    %245 = vector.broadcast %244 : vector<1x1x1xf32> to vector<4x8x8xf32>
    %246 = arith.mulf %242, %245 : vector<4x8x8xf32>
    %247 = arith.addf %220, %246 : vector<4x8x8xf32>
    %248 = vector.shape_cast %5 : vector<8x8xf32> to vector<1x8x8xf32>
    %249 = vector.broadcast %248 : vector<1x8x8xf32> to vector<4x8x8xf32>
    %250 = arith.mulf %242, %249 : vector<4x8x8xf32>
    %cst_45 = arith.constant dense<0.000000e+00> : vector<4x8xf32>
    %251 = vector.multi_reduction <add>, %250, %cst_45 [2] : vector<4x8x8xf32> to vector<4x8xf32>
    %252 = vector.shape_cast %251 : vector<4x8xf32> to vector<4x8x1xf32>
    %253 = vector.extract_strided_slice %13 {offsets = [8, 0], sizes = [1, 8], strides = [1, 1]} : vector<16x8xf32> to vector<1x8xf32>
    %254 = vector.shape_cast %253 : vector<1x8xf32> to vector<1x1x8xf32>
    %255 = vector.broadcast %252 : vector<4x8x1xf32> to vector<4x8x8xf32>
    %256 = vector.broadcast %254 : vector<1x1x8xf32> to vector<4x8x8xf32>
    %257 = arith.mulf %255, %256 : vector<4x8x8xf32>
    %258 = arith.addf %231, %257 : vector<4x8x8xf32>
    %259 = vector.extract_strided_slice %10 {offsets = [9, 0], sizes = [1, 8], strides = [1, 1]} : vector<16x8xf32> to vector<1x8xf32>
    %260 = vector.shape_cast %259 : vector<1x8xf32> to vector<1x1x8xf32>
    %261 = vector.broadcast %260 : vector<1x1x8xf32> to vector<4x8x8xf32>
    %262 = arith.mulf %6, %261 : vector<4x8x8xf32>
    "tpu.trace_start"() <{level = 10 : i32, message = "hqd,hkd->hqk"}> : () -> ()
    %cst_46 = arith.constant dense<0.000000e+00> : vector<4x8x8xf32>
    %263 = tpu.matmul %262, %8, %cst_46 {dimension_numbers = #tpu.dot_dimension_numbers<[2], [2], [1], [1], [0, 0, 0, 1, 1, 1], [0], [0]>} : vector<4x8x8xf32>, vector<4x8x8xf32>, vector<4x8x8xf32> -> vector<4x8x8xf32>
    "tpu.trace_stop"() : () -> ()
    %264 = vector.extract_strided_slice %11 {offsets = [9, 0], sizes = [1, 1], strides = [1, 1]} : vector<16x1xf32> to vector<1x1xf32>
    %265 = vector.shape_cast %264 : vector<1x1xf32> to vector<1x1x1xf32>
    %266 = vector.broadcast %265 : vector<1x1x1xf32> to vector<4x8x8xf32>
    %267 = arith.addf %263, %266 : vector<4x8x8xf32>
    %cst_47 = arith.constant 0.000000e+00 : f32
    %268 = vector.broadcast %cst_47 : f32 to vector<4x8x8xf32>
    %269 = arith.maximumf %267, %268 : vector<4x8x8xf32>
    %270 = vector.extract_strided_slice %12 {offsets = [9, 0], sizes = [1, 1], strides = [1, 1]} : vector<16x1xf32> to vector<1x1xf32>
    %271 = vector.shape_cast %270 : vector<1x1xf32> to vector<1x1x1xf32>
    %272 = vector.broadcast %271 : vector<1x1x1xf32> to vector<4x8x8xf32>
    %273 = arith.mulf %269, %272 : vector<4x8x8xf32>
    %274 = arith.addf %247, %273 : vector<4x8x8xf32>
    %275 = vector.shape_cast %5 : vector<8x8xf32> to vector<1x8x8xf32>
    %276 = vector.broadcast %275 : vector<1x8x8xf32> to vector<4x8x8xf32>
    %277 = arith.mulf %269, %276 : vector<4x8x8xf32>
    %cst_48 = arith.constant dense<0.000000e+00> : vector<4x8xf32>
    %278 = vector.multi_reduction <add>, %277, %cst_48 [2] : vector<4x8x8xf32> to vector<4x8xf32>
    %279 = vector.shape_cast %278 : vector<4x8xf32> to vector<4x8x1xf32>
    %280 = vector.extract_strided_slice %13 {offsets = [9, 0], sizes = [1, 8], strides = [1, 1]} : vector<16x8xf32> to vector<1x8xf32>
    %281 = vector.shape_cast %280 : vector<1x8xf32> to vector<1x1x8xf32>
    %282 = vector.broadcast %279 : vector<4x8x1xf32> to vector<4x8x8xf32>
    %283 = vector.broadcast %281 : vector<1x1x8xf32> to vector<4x8x8xf32>
    %284 = arith.mulf %282, %283 : vector<4x8x8xf32>
    %285 = arith.addf %258, %284 : vector<4x8x8xf32>
    %286 = vector.extract_strided_slice %10 {offsets = [10, 0], sizes = [1, 8], strides = [1, 1]} : vector<16x8xf32> to vector<1x8xf32>
    %287 = vector.shape_cast %286 : vector<1x8xf32> to vector<1x1x8xf32>
    %288 = vector.broadcast %287 : vector<1x1x8xf32> to vector<4x8x8xf32>
    %289 = arith.mulf %6, %288 : vector<4x8x8xf32>
    "tpu.trace_start"() <{level = 10 : i32, message = "hqd,hkd->hqk"}> : () -> ()
    %cst_49 = arith.constant dense<0.000000e+00> : vector<4x8x8xf32>
    %290 = tpu.matmul %289, %8, %cst_49 {dimension_numbers = #tpu.dot_dimension_numbers<[2], [2], [1], [1], [0, 0, 0, 1, 1, 1], [0], [0]>} : vector<4x8x8xf32>, vector<4x8x8xf32>, vector<4x8x8xf32> -> vector<4x8x8xf32>
    "tpu.trace_stop"() : () -> ()
    %291 = vector.extract_strided_slice %11 {offsets = [10, 0], sizes = [1, 1], strides = [1, 1]} : vector<16x1xf32> to vector<1x1xf32>
    %292 = vector.shape_cast %291 : vector<1x1xf32> to vector<1x1x1xf32>
    %293 = vector.broadcast %292 : vector<1x1x1xf32> to vector<4x8x8xf32>
    %294 = arith.addf %290, %293 : vector<4x8x8xf32>
    %cst_50 = arith.constant 0.000000e+00 : f32
    %295 = vector.broadcast %cst_50 : f32 to vector<4x8x8xf32>
    %296 = arith.maximumf %294, %295 : vector<4x8x8xf32>
    %297 = vector.extract_strided_slice %12 {offsets = [10, 0], sizes = [1, 1], strides = [1, 1]} : vector<16x1xf32> to vector<1x1xf32>
    %298 = vector.shape_cast %297 : vector<1x1xf32> to vector<1x1x1xf32>
    %299 = vector.broadcast %298 : vector<1x1x1xf32> to vector<4x8x8xf32>
    %300 = arith.mulf %296, %299 : vector<4x8x8xf32>
    %301 = arith.addf %274, %300 : vector<4x8x8xf32>
    %302 = vector.shape_cast %5 : vector<8x8xf32> to vector<1x8x8xf32>
    %303 = vector.broadcast %302 : vector<1x8x8xf32> to vector<4x8x8xf32>
    %304 = arith.mulf %296, %303 : vector<4x8x8xf32>
    %cst_51 = arith.constant dense<0.000000e+00> : vector<4x8xf32>
    %305 = vector.multi_reduction <add>, %304, %cst_51 [2] : vector<4x8x8xf32> to vector<4x8xf32>
    %306 = vector.shape_cast %305 : vector<4x8xf32> to vector<4x8x1xf32>
    %307 = vector.extract_strided_slice %13 {offsets = [10, 0], sizes = [1, 8], strides = [1, 1]} : vector<16x8xf32> to vector<1x8xf32>
    %308 = vector.shape_cast %307 : vector<1x8xf32> to vector<1x1x8xf32>
    %309 = vector.broadcast %306 : vector<4x8x1xf32> to vector<4x8x8xf32>
    %310 = vector.broadcast %308 : vector<1x1x8xf32> to vector<4x8x8xf32>
    %311 = arith.mulf %309, %310 : vector<4x8x8xf32>
    %312 = arith.addf %285, %311 : vector<4x8x8xf32>
    %313 = vector.extract_strided_slice %10 {offsets = [11, 0], sizes = [1, 8], strides = [1, 1]} : vector<16x8xf32> to vector<1x8xf32>
    %314 = vector.shape_cast %313 : vector<1x8xf32> to vector<1x1x8xf32>
    %315 = vector.broadcast %314 : vector<1x1x8xf32> to vector<4x8x8xf32>
    %316 = arith.mulf %6, %315 : vector<4x8x8xf32>
    "tpu.trace_start"() <{level = 10 : i32, message = "hqd,hkd->hqk"}> : () -> ()
    %cst_52 = arith.constant dense<0.000000e+00> : vector<4x8x8xf32>
    %317 = tpu.matmul %316, %8, %cst_52 {dimension_numbers = #tpu.dot_dimension_numbers<[2], [2], [1], [1], [0, 0, 0, 1, 1, 1], [0], [0]>} : vector<4x8x8xf32>, vector<4x8x8xf32>, vector<4x8x8xf32> -> vector<4x8x8xf32>
    "tpu.trace_stop"() : () -> ()
    %318 = vector.extract_strided_slice %11 {offsets = [11, 0], sizes = [1, 1], strides = [1, 1]} : vector<16x1xf32> to vector<1x1xf32>
    %319 = vector.shape_cast %318 : vector<1x1xf32> to vector<1x1x1xf32>
    %320 = vector.broadcast %319 : vector<1x1x1xf32> to vector<4x8x8xf32>
    %321 = arith.addf %317, %320 : vector<4x8x8xf32>
    %cst_53 = arith.constant 0.000000e+00 : f32
    %322 = vector.broadcast %cst_53 : f32 to vector<4x8x8xf32>
    %323 = arith.maximumf %321, %322 : vector<4x8x8xf32>
    %324 = vector.extract_strided_slice %12 {offsets = [11, 0], sizes = [1, 1], strides = [1, 1]} : vector<16x1xf32> to vector<1x1xf32>
    %325 = vector.shape_cast %324 : vector<1x1xf32> to vector<1x1x1xf32>
    %326 = vector.broadcast %325 : vector<1x1x1xf32> to vector<4x8x8xf32>
    %327 = arith.mulf %323, %326 : vector<4x8x8xf32>
    %328 = arith.addf %301, %327 : vector<4x8x8xf32>
    %329 = vector.shape_cast %5 : vector<8x8xf32> to vector<1x8x8xf32>
    %330 = vector.broadcast %329 : vector<1x8x8xf32> to vector<4x8x8xf32>
    %331 = arith.mulf %323, %330 : vector<4x8x8xf32>
    %cst_54 = arith.constant dense<0.000000e+00> : vector<4x8xf32>
    %332 = vector.multi_reduction <add>, %331, %cst_54 [2] : vector<4x8x8xf32> to vector<4x8xf32>
    %333 = vector.shape_cast %332 : vector<4x8xf32> to vector<4x8x1xf32>
    %334 = vector.extract_strided_slice %13 {offsets = [11, 0], sizes = [1, 8], strides = [1, 1]} : vector<16x8xf32> to vector<1x8xf32>
    %335 = vector.shape_cast %334 : vector<1x8xf32> to vector<1x1x8xf32>
    %336 = vector.broadcast %333 : vector<4x8x1xf32> to vector<4x8x8xf32>
    %337 = vector.broadcast %335 : vector<1x1x8xf32> to vector<4x8x8xf32>
    %338 = arith.mulf %336, %337 : vector<4x8x8xf32>
    %339 = arith.addf %312, %338 : vector<4x8x8xf32>
    %340 = vector.extract_strided_slice %10 {offsets = [12, 0], sizes = [1, 8], strides = [1, 1]} : vector<16x8xf32> to vector<1x8xf32>
    %341 = vector.shape_cast %340 : vector<1x8xf32> to vector<1x1x8xf32>
    %342 = vector.broadcast %341 : vector<1x1x8xf32> to vector<4x8x8xf32>
    %343 = arith.mulf %6, %342 : vector<4x8x8xf32>
    "tpu.trace_start"() <{level = 10 : i32, message = "hqd,hkd->hqk"}> : () -> ()
    %cst_55 = arith.constant dense<0.000000e+00> : vector<4x8x8xf32>
    %344 = tpu.matmul %343, %8, %cst_55 {dimension_numbers = #tpu.dot_dimension_numbers<[2], [2], [1], [1], [0, 0, 0, 1, 1, 1], [0], [0]>} : vector<4x8x8xf32>, vector<4x8x8xf32>, vector<4x8x8xf32> -> vector<4x8x8xf32>
    "tpu.trace_stop"() : () -> ()
    %345 = vector.extract_strided_slice %11 {offsets = [12, 0], sizes = [1, 1], strides = [1, 1]} : vector<16x1xf32> to vector<1x1xf32>
    %346 = vector.shape_cast %345 : vector<1x1xf32> to vector<1x1x1xf32>
    %347 = vector.broadcast %346 : vector<1x1x1xf32> to vector<4x8x8xf32>
    %348 = arith.addf %344, %347 : vector<4x8x8xf32>
    %cst_56 = arith.constant 0.000000e+00 : f32
    %349 = vector.broadcast %cst_56 : f32 to vector<4x8x8xf32>
    %350 = arith.maximumf %348, %349 : vector<4x8x8xf32>
    %351 = vector.extract_strided_slice %12 {offsets = [12, 0], sizes = [1, 1], strides = [1, 1]} : vector<16x1xf32> to vector<1x1xf32>
    %352 = vector.shape_cast %351 : vector<1x1xf32> to vector<1x1x1xf32>
    %353 = vector.broadcast %352 : vector<1x1x1xf32> to vector<4x8x8xf32>
    %354 = arith.mulf %350, %353 : vector<4x8x8xf32>
    %355 = arith.addf %328, %354 : vector<4x8x8xf32>
    %356 = vector.shape_cast %5 : vector<8x8xf32> to vector<1x8x8xf32>
    %357 = vector.broadcast %356 : vector<1x8x8xf32> to vector<4x8x8xf32>
    %358 = arith.mulf %350, %357 : vector<4x8x8xf32>
    %cst_57 = arith.constant dense<0.000000e+00> : vector<4x8xf32>
    %359 = vector.multi_reduction <add>, %358, %cst_57 [2] : vector<4x8x8xf32> to vector<4x8xf32>
    %360 = vector.shape_cast %359 : vector<4x8xf32> to vector<4x8x1xf32>
    %361 = vector.extract_strided_slice %13 {offsets = [12, 0], sizes = [1, 8], strides = [1, 1]} : vector<16x8xf32> to vector<1x8xf32>
    %362 = vector.shape_cast %361 : vector<1x8xf32> to vector<1x1x8xf32>
    %363 = vector.broadcast %360 : vector<4x8x1xf32> to vector<4x8x8xf32>
    %364 = vector.broadcast %362 : vector<1x1x8xf32> to vector<4x8x8xf32>
    %365 = arith.mulf %363, %364 : vector<4x8x8xf32>
    %366 = arith.addf %339, %365 : vector<4x8x8xf32>
    %367 = vector.extract_strided_slice %10 {offsets = [13, 0], sizes = [1, 8], strides = [1, 1]} : vector<16x8xf32> to vector<1x8xf32>
    %368 = vector.shape_cast %367 : vector<1x8xf32> to vector<1x1x8xf32>
    %369 = vector.broadcast %368 : vector<1x1x8xf32> to vector<4x8x8xf32>
    %370 = arith.mulf %6, %369 : vector<4x8x8xf32>
    "tpu.trace_start"() <{level = 10 : i32, message = "hqd,hkd->hqk"}> : () -> ()
    %cst_58 = arith.constant dense<0.000000e+00> : vector<4x8x8xf32>
    %371 = tpu.matmul %370, %8, %cst_58 {dimension_numbers = #tpu.dot_dimension_numbers<[2], [2], [1], [1], [0, 0, 0, 1, 1, 1], [0], [0]>} : vector<4x8x8xf32>, vector<4x8x8xf32>, vector<4x8x8xf32> -> vector<4x8x8xf32>
    "tpu.trace_stop"() : () -> ()
    %372 = vector.extract_strided_slice %11 {offsets = [13, 0], sizes = [1, 1], strides = [1, 1]} : vector<16x1xf32> to vector<1x1xf32>
    %373 = vector.shape_cast %372 : vector<1x1xf32> to vector<1x1x1xf32>
    %374 = vector.broadcast %373 : vector<1x1x1xf32> to vector<4x8x8xf32>
    %375 = arith.addf %371, %374 : vector<4x8x8xf32>
    %cst_59 = arith.constant 0.000000e+00 : f32
    %376 = vector.broadcast %cst_59 : f32 to vector<4x8x8xf32>
    %377 = arith.maximumf %375, %376 : vector<4x8x8xf32>
    %378 = vector.extract_strided_slice %12 {offsets = [13, 0], sizes = [1, 1], strides = [1, 1]} : vector<16x1xf32> to vector<1x1xf32>
    %379 = vector.shape_cast %378 : vector<1x1xf32> to vector<1x1x1xf32>
    %380 = vector.broadcast %379 : vector<1x1x1xf32> to vector<4x8x8xf32>
    %381 = arith.mulf %377, %380 : vector<4x8x8xf32>
    %382 = arith.addf %355, %381 : vector<4x8x8xf32>
    %383 = vector.shape_cast %5 : vector<8x8xf32> to vector<1x8x8xf32>
    %384 = vector.broadcast %383 : vector<1x8x8xf32> to vector<4x8x8xf32>
    %385 = arith.mulf %377, %384 : vector<4x8x8xf32>
    %cst_60 = arith.constant dense<0.000000e+00> : vector<4x8xf32>
    %386 = vector.multi_reduction <add>, %385, %cst_60 [2] : vector<4x8x8xf32> to vector<4x8xf32>
    %387 = vector.shape_cast %386 : vector<4x8xf32> to vector<4x8x1xf32>
    %388 = vector.extract_strided_slice %13 {offsets = [13, 0], sizes = [1, 8], strides = [1, 1]} : vector<16x8xf32> to vector<1x8xf32>
    %389 = vector.shape_cast %388 : vector<1x8xf32> to vector<1x1x8xf32>
    %390 = vector.broadcast %387 : vector<4x8x1xf32> to vector<4x8x8xf32>
    %391 = vector.broadcast %389 : vector<1x1x8xf32> to vector<4x8x8xf32>
    %392 = arith.mulf %390, %391 : vector<4x8x8xf32>
    %393 = arith.addf %366, %392 : vector<4x8x8xf32>
    %394 = vector.extract_strided_slice %10 {offsets = [14, 0], sizes = [1, 8], strides = [1, 1]} : vector<16x8xf32> to vector<1x8xf32>
    %395 = vector.shape_cast %394 : vector<1x8xf32> to vector<1x1x8xf32>
    %396 = vector.broadcast %395 : vector<1x1x8xf32> to vector<4x8x8xf32>
    %397 = arith.mulf %6, %396 : vector<4x8x8xf32>
    "tpu.trace_start"() <{level = 10 : i32, message = "hqd,hkd->hqk"}> : () -> ()
    %cst_61 = arith.constant dense<0.000000e+00> : vector<4x8x8xf32>
    %398 = tpu.matmul %397, %8, %cst_61 {dimension_numbers = #tpu.dot_dimension_numbers<[2], [2], [1], [1], [0, 0, 0, 1, 1, 1], [0], [0]>} : vector<4x8x8xf32>, vector<4x8x8xf32>, vector<4x8x8xf32> -> vector<4x8x8xf32>
    "tpu.trace_stop"() : () -> ()
    %399 = vector.extract_strided_slice %11 {offsets = [14, 0], sizes = [1, 1], strides = [1, 1]} : vector<16x1xf32> to vector<1x1xf32>
    %400 = vector.shape_cast %399 : vector<1x1xf32> to vector<1x1x1xf32>
    %401 = vector.broadcast %400 : vector<1x1x1xf32> to vector<4x8x8xf32>
    %402 = arith.addf %398, %401 : vector<4x8x8xf32>
    %cst_62 = arith.constant 0.000000e+00 : f32
    %403 = vector.broadcast %cst_62 : f32 to vector<4x8x8xf32>
    %404 = arith.maximumf %402, %403 : vector<4x8x8xf32>
    %405 = vector.extract_strided_slice %12 {offsets = [14, 0], sizes = [1, 1], strides = [1, 1]} : vector<16x1xf32> to vector<1x1xf32>
    %406 = vector.shape_cast %405 : vector<1x1xf32> to vector<1x1x1xf32>
    %407 = vector.broadcast %406 : vector<1x1x1xf32> to vector<4x8x8xf32>
    %408 = arith.mulf %404, %407 : vector<4x8x8xf32>
    %409 = arith.addf %382, %408 : vector<4x8x8xf32>
    %410 = vector.shape_cast %5 : vector<8x8xf32> to vector<1x8x8xf32>
    %411 = vector.broadcast %410 : vector<1x8x8xf32> to vector<4x8x8xf32>
    %412 = arith.mulf %404, %411 : vector<4x8x8xf32>
    %cst_63 = arith.constant dense<0.000000e+00> : vector<4x8xf32>
    %413 = vector.multi_reduction <add>, %412, %cst_63 [2] : vector<4x8x8xf32> to vector<4x8xf32>
    %414 = vector.shape_cast %413 : vector<4x8xf32> to vector<4x8x1xf32>
    %415 = vector.extract_strided_slice %13 {offsets = [14, 0], sizes = [1, 8], strides = [1, 1]} : vector<16x8xf32> to vector<1x8xf32>
    %416 = vector.shape_cast %415 : vector<1x8xf32> to vector<1x1x8xf32>
    %417 = vector.broadcast %414 : vector<4x8x1xf32> to vector<4x8x8xf32>
    %418 = vector.broadcast %416 : vector<1x1x8xf32> to vector<4x8x8xf32>
    %419 = arith.mulf %417, %418 : vector<4x8x8xf32>
    %420 = arith.addf %393, %419 : vector<4x8x8xf32>
    %421 = vector.extract_strided_slice %10 {offsets = [15, 0], sizes = [1, 8], strides = [1, 1]} : vector<16x8xf32> to vector<1x8xf32>
    %422 = vector.shape_cast %421 : vector<1x8xf32> to vector<1x1x8xf32>
    %423 = vector.broadcast %422 : vector<1x1x8xf32> to vector<4x8x8xf32>
    %424 = arith.mulf %6, %423 : vector<4x8x8xf32>
    "tpu.trace_start"() <{level = 10 : i32, message = "hqd,hkd->hqk"}> : () -> ()
    %cst_64 = arith.constant dense<0.000000e+00> : vector<4x8x8xf32>
    %425 = tpu.matmul %424, %8, %cst_64 {dimension_numbers = #tpu.dot_dimension_numbers<[2], [2], [1], [1], [0, 0, 0, 1, 1, 1], [0], [0]>} : vector<4x8x8xf32>, vector<4x8x8xf32>, vector<4x8x8xf32> -> vector<4x8x8xf32>
    "tpu.trace_stop"() : () -> ()
    %426 = vector.extract_strided_slice %11 {offsets = [15, 0], sizes = [1, 1], strides = [1, 1]} : vector<16x1xf32> to vector<1x1xf32>
    %427 = vector.shape_cast %426 : vector<1x1xf32> to vector<1x1x1xf32>
    %428 = vector.broadcast %427 : vector<1x1x1xf32> to vector<4x8x8xf32>
    %429 = arith.addf %425, %428 : vector<4x8x8xf32>
    %cst_65 = arith.constant 0.000000e+00 : f32
    %430 = vector.broadcast %cst_65 : f32 to vector<4x8x8xf32>
    %431 = arith.maximumf %429, %430 : vector<4x8x8xf32>
    %432 = vector.extract_strided_slice %12 {offsets = [15, 0], sizes = [1, 1], strides = [1, 1]} : vector<16x1xf32> to vector<1x1xf32>
    %433 = vector.shape_cast %432 : vector<1x1xf32> to vector<1x1x1xf32>
    %434 = vector.broadcast %433 : vector<1x1x1xf32> to vector<4x8x8xf32>
    %435 = arith.mulf %431, %434 : vector<4x8x8xf32>
    %436 = arith.addf %409, %435 : vector<4x8x8xf32>
    %437 = vector.shape_cast %5 : vector<8x8xf32> to vector<1x8x8xf32>
    %438 = vector.broadcast %437 : vector<1x8x8xf32> to vector<4x8x8xf32>
    %439 = arith.mulf %431, %438 : vector<4x8x8xf32>
    %cst_66 = arith.constant dense<0.000000e+00> : vector<4x8xf32>
    %440 = vector.multi_reduction <add>, %439, %cst_66 [2] : vector<4x8x8xf32> to vector<4x8xf32>
    %441 = vector.shape_cast %440 : vector<4x8xf32> to vector<4x8x1xf32>
    %442 = vector.extract_strided_slice %13 {offsets = [15, 0], sizes = [1, 8], strides = [1, 1]} : vector<16x8xf32> to vector<1x8xf32>
    %443 = vector.shape_cast %442 : vector<1x8xf32> to vector<1x1x8xf32>
    %444 = vector.broadcast %441 : vector<4x8x1xf32> to vector<4x8x8xf32>
    %445 = vector.broadcast %443 : vector<1x1x8xf32> to vector<4x8x8xf32>
    %446 = arith.mulf %444, %445 : vector<4x8x8xf32>
    %447 = arith.addf %420, %446 : vector<4x8x8xf32>
    %cst_67 = arith.constant dense<0.000000e+00> : vector<8xf32>
    %448 = vector.multi_reduction <add>, %5, %cst_67 [1] : vector<8x8xf32> to vector<8xf32>
    %449 = vector.shape_cast %448 : vector<8xf32> to vector<8x1xf32>
    %cst_68 = arith.constant 1.000000e+00 : f32
    %450 = vector.broadcast %cst_68 : f32 to vector<8x1xf32>
    %451 = arith.maximumf %449, %450 : vector<8x1xf32>
    %452 = vector.shape_cast %451 : vector<8x1xf32> to vector<1x8x1xf32>
    %453 = vector.broadcast %452 : vector<1x8x1xf32> to vector<4x8x8xf32>
    %454 = arith.divf %447, %453 : vector<4x8x8xf32>
    %c0_69 = arith.constant 0 : index
    %c0_70 = arith.constant 0 : index
    %455 = vector.load %arg9[%c0_69, %c0_70] : memref<1x8xf32, #tpu.memory_space<vmem>>, vector<1x8xf32>
    %456 = vector.shape_cast %455 : vector<1x8xf32> to vector<1x1x8xf32>
    %457 = vector.broadcast %456 : vector<1x1x8xf32> to vector<4x8x8xf32>
    %458 = arith.addf %454, %457 : vector<4x8x8xf32>
    %459 = arith.negf %458 : vector<4x8x8xf32>
    %460 = math.exp %459 : vector<4x8x8xf32>
    %cst_71 = arith.constant 1.000000e+00 : f32
    %461 = vector.broadcast %cst_71 : f32 to vector<4x8x8xf32>
    %462 = arith.addf %461, %460 : vector<4x8x8xf32>
    %463 = arith.divf %461, %462 : vector<4x8x8xf32>
    %cst_72 = arith.constant 0.000000e+00 : f32
    %464 = vector.broadcast %cst_72 : f32 to vector<8x8xf32>
    %465 = arith.cmpf ogt, %5, %464 : vector<8x8xf32>
    %c0_73 = arith.constant 0 : index
    %c0_74 = arith.constant 0 : index
    %466 = vector.load %arg7[%c0_73, %c0_74] : memref<1x1xf32, #tpu.memory_space<vmem>>, vector<1x1xf32>
    %467 = vector.shape_cast %466 : vector<1x1xf32> to vector<1x1x1xf32>
    %468 = vector.broadcast %467 : vector<1x1x1xf32> to vector<4x8x8xf32>
    %469 = arith.addf %436, %468 : vector<4x8x8xf32>
    %cst_75 = arith.constant -1.000000e+09 : f32
    %470 = vector.shape_cast %465 : vector<8x8xi1> to vector<1x8x8xi1>
    %471 = vector.broadcast %470 : vector<1x8x8xi1> to vector<4x8x8xi1>
    %472 = vector.broadcast %cst_75 : f32 to vector<4x8x8xf32>
    %473 = arith.select %471, %469, %472 : vector<4x8x8xi1>, vector<4x8x8xf32>
    %cst_76 = arith.constant dense<0xFF800000> : vector<4x8xf32>
    %474 = vector.multi_reduction <maximumf>, %473, %cst_76 [2] : vector<4x8x8xf32> to vector<4x8xf32>
    %475 = vector.shape_cast %474 : vector<4x8xf32> to vector<4x8x1xf32>
    %476 = vector.broadcast %475 : vector<4x8x1xf32> to vector<4x8x8xf32>
    %477 = arith.subf %473, %476 : vector<4x8x8xf32>
    %478 = math.exp %477 : vector<4x8x8xf32>
    %cst_77 = arith.constant dense<0.000000e+00> : vector<4x8xf32>
    %479 = vector.multi_reduction <add>, %478, %cst_77 [2] : vector<4x8x8xf32> to vector<4x8xf32>
    %480 = vector.shape_cast %479 : vector<4x8xf32> to vector<4x8x1xf32>
    %481 = vector.broadcast %480 : vector<4x8x1xf32> to vector<4x8x8xf32>
    %482 = arith.divf %478, %481 : vector<4x8x8xf32>
    "tpu.trace_start"() <{level = 10 : i32, message = "hqk,hkd->hqd"}> : () -> ()
    %cst_78 = arith.constant dense<0.000000e+00> : vector<4x8x8xf32>
    %483 = tpu.matmul %482, %9, %cst_78 {dimension_numbers = #tpu.dot_dimension_numbers<[2], [1], [1], [2], [0, 0, 0, 1, 1, 2], [0], [0]>} : vector<4x8x8xf32>, vector<4x8x8xf32>, vector<4x8x8xf32> -> vector<4x8x8xf32>
    "tpu.trace_stop"() : () -> ()
    %484 = arith.mulf %7, %483 : vector<4x8x8xf32>
    %485 = arith.mulf %484, %463 : vector<4x8x8xf32>
    %c0_79 = arith.constant 0 : index
    %c0_80 = arith.constant 0 : index
    %c0_81 = arith.constant 0 : index
    %c0_82 = arith.constant 0 : index
    %486 = vector.load %arg10[%c0_79, %c0_80, %c0_81, %c0_82] : memref<1x4x8x8xf32, #tpu.memory_space<vmem>>, vector<1x4x8x8xf32>
    %487 = vector.shape_cast %486 : vector<1x4x8x8xf32> to vector<4x8x8xf32>
    %488 = vector.shape_cast %485 : vector<4x8x8xf32> to vector<1x4x8x8xf32>
    tpu.vector_store %arg10[%c0_79, %c0_80, %c0_81, %c0_82], %488 {strides = array<i32>} : memref<1x4x8x8xf32, #tpu.memory_space<vmem>>, vector<1x4x8x8xf32>,
    return
  }
  func.func @transform_0(%arg0: i32) -> (i32, i32, i32, i32) {
    %c0_i32 = arith.constant 0 : i32
    %c0_i32_0 = arith.constant 0 : i32
    %c0_i32_1 = arith.constant 0 : i32
    %c0_i32_2 = arith.constant 0 : i32
    return %arg0, %c0_i32, %c0_i32_0, %c0_i32_1 : i32, i32, i32, i32
  }
  func.func @transform_1(%arg0: i32) -> (i32, i32, i32, i32) {
    %c0_i32 = arith.constant 0 : i32
    %c0_i32_0 = arith.constant 0 : i32
    %c0_i32_1 = arith.constant 0 : i32
    %c0_i32_2 = arith.constant 0 : i32
    return %arg0, %c0_i32, %c0_i32_0, %c0_i32_1 : i32, i32, i32, i32
  }
  func.func @transform_2(%arg0: i32) -> (i32, i32, i32) {
    %c0_i32 = arith.constant 0 : i32
    %c0_i32_0 = arith.constant 0 : i32
    %c0_i32_1 = arith.constant 0 : i32
    return %arg0, %c0_i32, %c0_i32_0 : i32, i32, i32
  }
  func.func @transform_3(%arg0: i32) -> (i32, i32) {
    %c0_i32 = arith.constant 0 : i32
    %c0_i32_0 = arith.constant 0 : i32
    %c0_i32_1 = arith.constant 0 : i32
    return %c0_i32, %c0_i32_0 : i32, i32
  }
  func.func @transform_4(%arg0: i32) -> (i32, i32) {
    %c0_i32 = arith.constant 0 : i32
    %c0_i32_0 = arith.constant 0 : i32
    %c0_i32_1 = arith.constant 0 : i32
    return %c0_i32, %c0_i32_0 : i32, i32
  }
  func.func @transform_5(%arg0: i32) -> (i32, i32) {
    %c0_i32 = arith.constant 0 : i32
    %c0_i32_0 = arith.constant 0 : i32
    %c0_i32_1 = arith.constant 0 : i32
    return %c0_i32, %c0_i32_0 : i32, i32
  }
  func.func @transform_6(%arg0: i32) -> (i32, i32) {
    %c0_i32 = arith.constant 0 : i32
    %c0_i32_0 = arith.constant 0 : i32
    %c0_i32_1 = arith.constant 0 : i32
    return %c0_i32, %c0_i32_0 : i32, i32
  }
  func.func @transform_7(%arg0: i32) -> (i32, i32) {
    %c0_i32 = arith.constant 0 : i32
    %c0_i32_0 = arith.constant 0 : i32
    %c0_i32_1 = arith.constant 0 : i32
    return %c0_i32, %c0_i32_0 : i32, i32
  }
  func.func @transform_8(%arg0: i32) -> (i32, i32) {
    %c0_i32 = arith.constant 0 : i32
    %c0_i32_0 = arith.constant 0 : i32
    %c0_i32_1 = arith.constant 0 : i32
    return %c0_i32, %c0_i32_0 : i32, i32
  }
  func.func @transform_9(%arg0: i32) -> (i32, i32, i32, i32) {
    %c0_i32 = arith.constant 0 : i32
    %c0_i32_0 = arith.constant 0 : i32
    %c0_i32_1 = arith.constant 0 : i32
    %c0_i32_2 = arith.constant 0 : i32
    return %arg0, %c0_i32, %c0_i32_0, %c0_i32_1 : i32, i32, i32, i32
  }
}

module attributes {stable_mosaic.version = 11 : i64} {
  func.func @_scatt_kernel(%arg0: i32, %arg1: memref<1x8x8x8xf32, #tpu.memory_space<vmem>>, %arg2: memref<1x8x16x8xf32, #tpu.memory_space<vmem>>, %arg3: memref<1x8x16xf32, #tpu.memory_space<vmem>>, %arg4: memref<16x8xf32, #tpu.memory_space<vmem>>, %arg5: memref<16x1xf32, #tpu.memory_space<vmem>>, %arg6: memref<16x1xf32, #tpu.memory_space<vmem>>, %arg7: memref<1x1xf32, #tpu.memory_space<vmem>>, %arg8: memref<16x8xf32, #tpu.memory_space<vmem>>, %arg9: memref<1x8xf32, #tpu.memory_space<vmem>>, %arg10: memref<1x4x8x8xf32, #tpu.memory_space<vmem>>) attributes {dimension_semantics = [#tpu.dimension_semantics<parallel>], iteration_bounds = array<i64: 2>, scalar_prefetch = 0 : i64, scratch_operands = 0 : i64, tpu.core_type = #tpu.core_type<tc>, window_params = [{transform_indices = @transform_0, window_bounds = array<i64: 1, 8, 8, 8>}, {transform_indices = @transform_1, window_bounds = array<i64: 1, 8, 16, 8>}, {transform_indices = @transform_2, window_bounds = array<i64: 1, 8, 16>}, {pipeline_mode = #tpu.pipeline_mode<synchronous>, transform_indices = @transform_3, window_bounds = array<i64: 16, 8>}, {pipeline_mode = #tpu.pipeline_mode<synchronous>, transform_indices = @transform_4, window_bounds = array<i64: 16, 1>}, {pipeline_mode = #tpu.pipeline_mode<synchronous>, transform_indices = @transform_5, window_bounds = array<i64: 16, 1>}, {pipeline_mode = #tpu.pipeline_mode<synchronous>, transform_indices = @transform_6, window_bounds = array<i64: 1, 1>}, {pipeline_mode = #tpu.pipeline_mode<synchronous>, transform_indices = @transform_7, window_bounds = array<i64: 16, 8>}, {pipeline_mode = #tpu.pipeline_mode<synchronous>, transform_indices = @transform_8, window_bounds = array<i64: 1, 8>}, {transform_indices = @transform_9, window_bounds = array<i64: 1, 4, 8, 8>}]} {
    %c0 = arith.constant 0 : index
    %c0_0 = arith.constant 0 : index
    %c0_1 = arith.constant 0 : index
    %c0_2 = arith.constant 0 : index
    %0 = vector.load %arg1[%c0, %c0_0, %c0_1, %c0_2] : memref<1x8x8x8xf32, #tpu.memory_space<vmem>>, vector<1x8x8x8xf32>
    %1 = vector.shape_cast %0 : vector<1x8x8x8xf32> to vector<8x8x8xf32>
    %c0_3 = arith.constant 0 : index
    %c0_4 = arith.constant 0 : index
    %c0_5 = arith.constant 0 : index
    %c0_6 = arith.constant 0 : index
    %2 = vector.load %arg2[%c0_3, %c0_4, %c0_5, %c0_6] : memref<1x8x16x8xf32, #tpu.memory_space<vmem>>, vector<1x8x16x8xf32>
    %3 = vector.shape_cast %2 : vector<1x8x16x8xf32> to vector<8x16x8xf32>
    %c0_7 = arith.constant 0 : index
    %c0_8 = arith.constant 0 : index
    %c0_9 = arith.constant 0 : index
    %4 = vector.load %arg3[%c0_7, %c0_8, %c0_9] : memref<1x8x16xf32, #tpu.memory_space<vmem>>, vector<1x8x16xf32>
    %5 = vector.shape_cast %4 : vector<1x8x16xf32> to vector<8x16xf32>
    %6 = vector.extract_strided_slice %1 {offsets = [0, 0, 0], sizes = [4, 8, 8], strides = [1, 1, 1]} : vector<8x8x8xf32> to vector<4x8x8xf32>
    %7 = vector.extract_strided_slice %1 {offsets = [4, 0, 0], sizes = [4, 8, 8], strides = [1, 1, 1]} : vector<8x8x8xf32> to vector<4x8x8xf32>
    %8 = vector.extract_strided_slice %3 {offsets = [0, 0, 0], sizes = [4, 16, 8], strides = [1, 1, 1]} : vector<8x16x8xf32> to vector<4x16x8xf32>
    %9 = vector.extract_strided_slice %3 {offsets = [4, 0, 0], sizes = [4, 16, 8], strides = [1, 1, 1]} : vector<8x16x8xf32> to vector<4x16x8xf32>
    %c0_10 = arith.constant 0 : index
    %c0_11 = arith.constant 0 : index
    %10 = vector.load %arg4[%c0_10, %c0_11] : memref<16x8xf32, #tpu.memory_space<vmem>>, vector<16x8xf32>
    %c0_12 = arith.constant 0 : index
    %c0_13 = arith.constant 0 : index
    %11 = vector.load %arg5[%c0_12, %c0_13] : memref<16x1xf32, #tpu.memory_space<vmem>>, vector<16x1xf32>
    %c0_14 = arith.constant 0 : index
    %c0_15 = arith.constant 0 : index
    %12 = vector.load %arg6[%c0_14, %c0_15] : memref<16x1xf32, #tpu.memory_space<vmem>>, vector<16x1xf32>
    %c0_16 = arith.constant 0 : index
    %c0_17 = arith.constant 0 : index
    %13 = vector.load %arg8[%c0_16, %c0_17] : memref<16x8xf32, #tpu.memory_space<vmem>>, vector<16x8xf32>
    %cst = arith.constant 0.000000e+00 : f32
    %14 = vector.broadcast %cst : f32 to vector<4x8x16xf32>
    %cst_18 = arith.constant 0.000000e+00 : f32
    %15 = vector.broadcast %cst_18 : f32 to vector<4x8x8xf32>
    %16 = vector.extract_strided_slice %10 {offsets = [0, 0], sizes = [1, 8], strides = [1, 1]} : vector<16x8xf32> to vector<1x8xf32>
    %17 = vector.shape_cast %16 : vector<1x8xf32> to vector<1x1x8xf32>
    %18 = vector.broadcast %17 : vector<1x1x8xf32> to vector<4x8x8xf32>
    %19 = arith.mulf %6, %18 : vector<4x8x8xf32>
    "tpu.trace_start"() <{level = 10 : i32, message = "hqd,hkd->hqk"}> : () -> ()
    %cst_19 = arith.constant dense<0.000000e+00> : vector<4x8x16xf32>
    %20 = tpu.matmul %19, %8, %cst_19 {dimension_numbers = #tpu.dot_dimension_numbers<[2], [2], [1], [1], [0, 0, 0, 1, 1, 1], [0], [0]>} : vector<4x8x8xf32>, vector<4x16x8xf32>, vector<4x8x16xf32> -> vector<4x8x16xf32>
    "tpu.trace_stop"() : () -> ()
    %21 = vector.extract_strided_slice %11 {offsets = [0, 0], sizes = [1, 1], strides = [1, 1]} : vector<16x1xf32> to vector<1x1xf32>
    %22 = vector.shape_cast %21 : vector<1x1xf32> to vector<1x1x1xf32>
    %23 = vector.broadcast %22 : vector<1x1x1xf32> to vector<4x8x16xf32>
    %24 = arith.addf %20, %23 : vector<4x8x16xf32>
    %cst_20 = arith.constant 0.000000e+00 : f32
    %25 = vector.broadcast %cst_20 : f32 to vector<4x8x16xf32>
    %26 = arith.maximumf %24, %25 : vector<4x8x16xf32>
    %27 = vector.extract_strided_slice %12 {offsets = [0, 0], sizes = [1, 1], strides = [1, 1]} : vector<16x1xf32> to vector<1x1xf32>
    %28 = vector.shape_cast %27 : vector<1x1xf32> to vector<1x1x1xf32>
    %29 = vector.broadcast %28 : vector<1x1x1xf32> to vector<4x8x16xf32>
    %30 = arith.mulf %26, %29 : vector<4x8x16xf32>
    %31 = arith.addf %14, %30 : vector<4x8x16xf32>
    %32 = vector.shape_cast %5 : vector<8x16xf32> to vector<1x8x16xf32>
    %33 = vector.broadcast %32 : vector<1x8x16xf32> to vector<4x8x16xf32>
    %34 = arith.mulf %26, %33 : vector<4x8x16xf32>
    %cst_21 = arith.constant dense<0.000000e+00> : vector<4x8xf32>
    %35 = vector.multi_reduction <add>, %34, %cst_21 [2] : vector<4x8x16xf32> to vector<4x8xf32>
    %36 = vector.shape_cast %35 : vector<4x8xf32> to vector<4x8x1xf32>
    %37 = vector.extract_strided_slice %13 {offsets = [0, 0], sizes = [1, 8], strides = [1, 1]} : vector<16x8xf32> to vector<1x8xf32>
    %38 = vector.shape_cast %37 : vector<1x8xf32> to vector<1x1x8xf32>
    %39 = vector.broadcast %36 : vector<4x8x1xf32> to vector<4x8x8xf32>
    %40 = vector.broadcast %38 : vector<1x1x8xf32> to vector<4x8x8xf32>
    %41 = arith.mulf %39, %40 : vector<4x8x8xf32>
    %42 = arith.addf %15, %41 : vector<4x8x8xf32>
    %43 = vector.extract_strided_slice %10 {offsets = [1, 0], sizes = [1, 8], strides = [1, 1]} : vector<16x8xf32> to vector<1x8xf32>
    %44 = vector.shape_cast %43 : vector<1x8xf32> to vector<1x1x8xf32>
    %45 = vector.broadcast %44 : vector<1x1x8xf32> to vector<4x8x8xf32>
    %46 = arith.mulf %6, %45 : vector<4x8x8xf32>
    "tpu.trace_start"() <{level = 10 : i32, message = "hqd,hkd->hqk"}> : () -> ()
    %cst_22 = arith.constant dense<0.000000e+00> : vector<4x8x16xf32>
    %47 = tpu.matmul %46, %8, %cst_22 {dimension_numbers = #tpu.dot_dimension_numbers<[2], [2], [1], [1], [0, 0, 0, 1, 1, 1], [0], [0]>} : vector<4x8x8xf32>, vector<4x16x8xf32>, vector<4x8x16xf32> -> vector<4x8x16xf32>
    "tpu.trace_stop"() : () -> ()
    %48 = vector.extract_strided_slice %11 {offsets = [1, 0], sizes = [1, 1], strides = [1, 1]} : vector<16x1xf32> to vector<1x1xf32>
    %49 = vector.shape_cast %48 : vector<1x1xf32> to vector<1x1x1xf32>
    %50 = vector.broadcast %49 : vector<1x1x1xf32> to vector<4x8x16xf32>
    %51 = arith.addf %47, %50 : vector<4x8x16xf32>
    %cst_23 = arith.constant 0.000000e+00 : f32
    %52 = vector.broadcast %cst_23 : f32 to vector<4x8x16xf32>
    %53 = arith.maximumf %51, %52 : vector<4x8x16xf32>
    %54 = vector.extract_strided_slice %12 {offsets = [1, 0], sizes = [1, 1], strides = [1, 1]} : vector<16x1xf32> to vector<1x1xf32>
    %55 = vector.shape_cast %54 : vector<1x1xf32> to vector<1x1x1xf32>
    %56 = vector.broadcast %55 : vector<1x1x1xf32> to vector<4x8x16xf32>
    %57 = arith.mulf %53, %56 : vector<4x8x16xf32>
    %58 = arith.addf %31, %57 : vector<4x8x16xf32>
    %59 = vector.shape_cast %5 : vector<8x16xf32> to vector<1x8x16xf32>
    %60 = vector.broadcast %59 : vector<1x8x16xf32> to vector<4x8x16xf32>
    %61 = arith.mulf %53, %60 : vector<4x8x16xf32>
    %cst_24 = arith.constant dense<0.000000e+00> : vector<4x8xf32>
    %62 = vector.multi_reduction <add>, %61, %cst_24 [2] : vector<4x8x16xf32> to vector<4x8xf32>
    %63 = vector.shape_cast %62 : vector<4x8xf32> to vector<4x8x1xf32>
    %64 = vector.extract_strided_slice %13 {offsets = [1, 0], sizes = [1, 8], strides = [1, 1]} : vector<16x8xf32> to vector<1x8xf32>
    %65 = vector.shape_cast %64 : vector<1x8xf32> to vector<1x1x8xf32>
    %66 = vector.broadcast %63 : vector<4x8x1xf32> to vector<4x8x8xf32>
    %67 = vector.broadcast %65 : vector<1x1x8xf32> to vector<4x8x8xf32>
    %68 = arith.mulf %66, %67 : vector<4x8x8xf32>
    %69 = arith.addf %42, %68 : vector<4x8x8xf32>
    %70 = vector.extract_strided_slice %10 {offsets = [2, 0], sizes = [1, 8], strides = [1, 1]} : vector<16x8xf32> to vector<1x8xf32>
    %71 = vector.shape_cast %70 : vector<1x8xf32> to vector<1x1x8xf32>
    %72 = vector.broadcast %71 : vector<1x1x8xf32> to vector<4x8x8xf32>
    %73 = arith.mulf %6, %72 : vector<4x8x8xf32>
    "tpu.trace_start"() <{level = 10 : i32, message = "hqd,hkd->hqk"}> : () -> ()
    %cst_25 = arith.constant dense<0.000000e+00> : vector<4x8x16xf32>
    %74 = tpu.matmul %73, %8, %cst_25 {dimension_numbers = #tpu.dot_dimension_numbers<[2], [2], [1], [1], [0, 0, 0, 1, 1, 1], [0], [0]>} : vector<4x8x8xf32>, vector<4x16x8xf32>, vector<4x8x16xf32> -> vector<4x8x16xf32>
    "tpu.trace_stop"() : () -> ()
    %75 = vector.extract_strided_slice %11 {offsets = [2, 0], sizes = [1, 1], strides = [1, 1]} : vector<16x1xf32> to vector<1x1xf32>
    %76 = vector.shape_cast %75 : vector<1x1xf32> to vector<1x1x1xf32>
    %77 = vector.broadcast %76 : vector<1x1x1xf32> to vector<4x8x16xf32>
    %78 = arith.addf %74, %77 : vector<4x8x16xf32>
    %cst_26 = arith.constant 0.000000e+00 : f32
    %79 = vector.broadcast %cst_26 : f32 to vector<4x8x16xf32>
    %80 = arith.maximumf %78, %79 : vector<4x8x16xf32>
    %81 = vector.extract_strided_slice %12 {offsets = [2, 0], sizes = [1, 1], strides = [1, 1]} : vector<16x1xf32> to vector<1x1xf32>
    %82 = vector.shape_cast %81 : vector<1x1xf32> to vector<1x1x1xf32>
    %83 = vector.broadcast %82 : vector<1x1x1xf32> to vector<4x8x16xf32>
    %84 = arith.mulf %80, %83 : vector<4x8x16xf32>
    %85 = arith.addf %58, %84 : vector<4x8x16xf32>
    %86 = vector.shape_cast %5 : vector<8x16xf32> to vector<1x8x16xf32>
    %87 = vector.broadcast %86 : vector<1x8x16xf32> to vector<4x8x16xf32>
    %88 = arith.mulf %80, %87 : vector<4x8x16xf32>
    %cst_27 = arith.constant dense<0.000000e+00> : vector<4x8xf32>
    %89 = vector.multi_reduction <add>, %88, %cst_27 [2] : vector<4x8x16xf32> to vector<4x8xf32>
    %90 = vector.shape_cast %89 : vector<4x8xf32> to vector<4x8x1xf32>
    %91 = vector.extract_strided_slice %13 {offsets = [2, 0], sizes = [1, 8], strides = [1, 1]} : vector<16x8xf32> to vector<1x8xf32>
    %92 = vector.shape_cast %91 : vector<1x8xf32> to vector<1x1x8xf32>
    %93 = vector.broadcast %90 : vector<4x8x1xf32> to vector<4x8x8xf32>
    %94 = vector.broadcast %92 : vector<1x1x8xf32> to vector<4x8x8xf32>
    %95 = arith.mulf %93, %94 : vector<4x8x8xf32>
    %96 = arith.addf %69, %95 : vector<4x8x8xf32>
    %97 = vector.extract_strided_slice %10 {offsets = [3, 0], sizes = [1, 8], strides = [1, 1]} : vector<16x8xf32> to vector<1x8xf32>
    %98 = vector.shape_cast %97 : vector<1x8xf32> to vector<1x1x8xf32>
    %99 = vector.broadcast %98 : vector<1x1x8xf32> to vector<4x8x8xf32>
    %100 = arith.mulf %6, %99 : vector<4x8x8xf32>
    "tpu.trace_start"() <{level = 10 : i32, message = "hqd,hkd->hqk"}> : () -> ()
    %cst_28 = arith.constant dense<0.000000e+00> : vector<4x8x16xf32>
    %101 = tpu.matmul %100, %8, %cst_28 {dimension_numbers = #tpu.dot_dimension_numbers<[2], [2], [1], [1], [0, 0, 0, 1, 1, 1], [0], [0]>} : vector<4x8x8xf32>, vector<4x16x8xf32>, vector<4x8x16xf32> -> vector<4x8x16xf32>
    "tpu.trace_stop"() : () -> ()
    %102 = vector.extract_strided_slice %11 {offsets = [3, 0], sizes = [1, 1], strides = [1, 1]} : vector<16x1xf32> to vector<1x1xf32>
    %103 = vector.shape_cast %102 : vector<1x1xf32> to vector<1x1x1xf32>
    %104 = vector.broadcast %103 : vector<1x1x1xf32> to vector<4x8x16xf32>
    %105 = arith.addf %101, %104 : vector<4x8x16xf32>
    %cst_29 = arith.constant 0.000000e+00 : f32
    %106 = vector.broadcast %cst_29 : f32 to vector<4x8x16xf32>
    %107 = arith.maximumf %105, %106 : vector<4x8x16xf32>
    %108 = vector.extract_strided_slice %12 {offsets = [3, 0], sizes = [1, 1], strides = [1, 1]} : vector<16x1xf32> to vector<1x1xf32>
    %109 = vector.shape_cast %108 : vector<1x1xf32> to vector<1x1x1xf32>
    %110 = vector.broadcast %109 : vector<1x1x1xf32> to vector<4x8x16xf32>
    %111 = arith.mulf %107, %110 : vector<4x8x16xf32>
    %112 = arith.addf %85, %111 : vector<4x8x16xf32>
    %113 = vector.shape_cast %5 : vector<8x16xf32> to vector<1x8x16xf32>
    %114 = vector.broadcast %113 : vector<1x8x16xf32> to vector<4x8x16xf32>
    %115 = arith.mulf %107, %114 : vector<4x8x16xf32>
    %cst_30 = arith.constant dense<0.000000e+00> : vector<4x8xf32>
    %116 = vector.multi_reduction <add>, %115, %cst_30 [2] : vector<4x8x16xf32> to vector<4x8xf32>
    %117 = vector.shape_cast %116 : vector<4x8xf32> to vector<4x8x1xf32>
    %118 = vector.extract_strided_slice %13 {offsets = [3, 0], sizes = [1, 8], strides = [1, 1]} : vector<16x8xf32> to vector<1x8xf32>
    %119 = vector.shape_cast %118 : vector<1x8xf32> to vector<1x1x8xf32>
    %120 = vector.broadcast %117 : vector<4x8x1xf32> to vector<4x8x8xf32>
    %121 = vector.broadcast %119 : vector<1x1x8xf32> to vector<4x8x8xf32>
    %122 = arith.mulf %120, %121 : vector<4x8x8xf32>
    %123 = arith.addf %96, %122 : vector<4x8x8xf32>
    %124 = vector.extract_strided_slice %10 {offsets = [4, 0], sizes = [1, 8], strides = [1, 1]} : vector<16x8xf32> to vector<1x8xf32>
    %125 = vector.shape_cast %124 : vector<1x8xf32> to vector<1x1x8xf32>
    %126 = vector.broadcast %125 : vector<1x1x8xf32> to vector<4x8x8xf32>
    %127 = arith.mulf %6, %126 : vector<4x8x8xf32>
    "tpu.trace_start"() <{level = 10 : i32, message = "hqd,hkd->hqk"}> : () -> ()
    %cst_31 = arith.constant dense<0.000000e+00> : vector<4x8x16xf32>
    %128 = tpu.matmul %127, %8, %cst_31 {dimension_numbers = #tpu.dot_dimension_numbers<[2], [2], [1], [1], [0, 0, 0, 1, 1, 1], [0], [0]>} : vector<4x8x8xf32>, vector<4x16x8xf32>, vector<4x8x16xf32> -> vector<4x8x16xf32>
    "tpu.trace_stop"() : () -> ()
    %129 = vector.extract_strided_slice %11 {offsets = [4, 0], sizes = [1, 1], strides = [1, 1]} : vector<16x1xf32> to vector<1x1xf32>
    %130 = vector.shape_cast %129 : vector<1x1xf32> to vector<1x1x1xf32>
    %131 = vector.broadcast %130 : vector<1x1x1xf32> to vector<4x8x16xf32>
    %132 = arith.addf %128, %131 : vector<4x8x16xf32>
    %cst_32 = arith.constant 0.000000e+00 : f32
    %133 = vector.broadcast %cst_32 : f32 to vector<4x8x16xf32>
    %134 = arith.maximumf %132, %133 : vector<4x8x16xf32>
    %135 = vector.extract_strided_slice %12 {offsets = [4, 0], sizes = [1, 1], strides = [1, 1]} : vector<16x1xf32> to vector<1x1xf32>
    %136 = vector.shape_cast %135 : vector<1x1xf32> to vector<1x1x1xf32>
    %137 = vector.broadcast %136 : vector<1x1x1xf32> to vector<4x8x16xf32>
    %138 = arith.mulf %134, %137 : vector<4x8x16xf32>
    %139 = arith.addf %112, %138 : vector<4x8x16xf32>
    %140 = vector.shape_cast %5 : vector<8x16xf32> to vector<1x8x16xf32>
    %141 = vector.broadcast %140 : vector<1x8x16xf32> to vector<4x8x16xf32>
    %142 = arith.mulf %134, %141 : vector<4x8x16xf32>
    %cst_33 = arith.constant dense<0.000000e+00> : vector<4x8xf32>
    %143 = vector.multi_reduction <add>, %142, %cst_33 [2] : vector<4x8x16xf32> to vector<4x8xf32>
    %144 = vector.shape_cast %143 : vector<4x8xf32> to vector<4x8x1xf32>
    %145 = vector.extract_strided_slice %13 {offsets = [4, 0], sizes = [1, 8], strides = [1, 1]} : vector<16x8xf32> to vector<1x8xf32>
    %146 = vector.shape_cast %145 : vector<1x8xf32> to vector<1x1x8xf32>
    %147 = vector.broadcast %144 : vector<4x8x1xf32> to vector<4x8x8xf32>
    %148 = vector.broadcast %146 : vector<1x1x8xf32> to vector<4x8x8xf32>
    %149 = arith.mulf %147, %148 : vector<4x8x8xf32>
    %150 = arith.addf %123, %149 : vector<4x8x8xf32>
    %151 = vector.extract_strided_slice %10 {offsets = [5, 0], sizes = [1, 8], strides = [1, 1]} : vector<16x8xf32> to vector<1x8xf32>
    %152 = vector.shape_cast %151 : vector<1x8xf32> to vector<1x1x8xf32>
    %153 = vector.broadcast %152 : vector<1x1x8xf32> to vector<4x8x8xf32>
    %154 = arith.mulf %6, %153 : vector<4x8x8xf32>
    "tpu.trace_start"() <{level = 10 : i32, message = "hqd,hkd->hqk"}> : () -> ()
    %cst_34 = arith.constant dense<0.000000e+00> : vector<4x8x16xf32>
    %155 = tpu.matmul %154, %8, %cst_34 {dimension_numbers = #tpu.dot_dimension_numbers<[2], [2], [1], [1], [0, 0, 0, 1, 1, 1], [0], [0]>} : vector<4x8x8xf32>, vector<4x16x8xf32>, vector<4x8x16xf32> -> vector<4x8x16xf32>
    "tpu.trace_stop"() : () -> ()
    %156 = vector.extract_strided_slice %11 {offsets = [5, 0], sizes = [1, 1], strides = [1, 1]} : vector<16x1xf32> to vector<1x1xf32>
    %157 = vector.shape_cast %156 : vector<1x1xf32> to vector<1x1x1xf32>
    %158 = vector.broadcast %157 : vector<1x1x1xf32> to vector<4x8x16xf32>
    %159 = arith.addf %155, %158 : vector<4x8x16xf32>
    %cst_35 = arith.constant 0.000000e+00 : f32
    %160 = vector.broadcast %cst_35 : f32 to vector<4x8x16xf32>
    %161 = arith.maximumf %159, %160 : vector<4x8x16xf32>
    %162 = vector.extract_strided_slice %12 {offsets = [5, 0], sizes = [1, 1], strides = [1, 1]} : vector<16x1xf32> to vector<1x1xf32>
    %163 = vector.shape_cast %162 : vector<1x1xf32> to vector<1x1x1xf32>
    %164 = vector.broadcast %163 : vector<1x1x1xf32> to vector<4x8x16xf32>
    %165 = arith.mulf %161, %164 : vector<4x8x16xf32>
    %166 = arith.addf %139, %165 : vector<4x8x16xf32>
    %167 = vector.shape_cast %5 : vector<8x16xf32> to vector<1x8x16xf32>
    %168 = vector.broadcast %167 : vector<1x8x16xf32> to vector<4x8x16xf32>
    %169 = arith.mulf %161, %168 : vector<4x8x16xf32>
    %cst_36 = arith.constant dense<0.000000e+00> : vector<4x8xf32>
    %170 = vector.multi_reduction <add>, %169, %cst_36 [2] : vector<4x8x16xf32> to vector<4x8xf32>
    %171 = vector.shape_cast %170 : vector<4x8xf32> to vector<4x8x1xf32>
    %172 = vector.extract_strided_slice %13 {offsets = [5, 0], sizes = [1, 8], strides = [1, 1]} : vector<16x8xf32> to vector<1x8xf32>
    %173 = vector.shape_cast %172 : vector<1x8xf32> to vector<1x1x8xf32>
    %174 = vector.broadcast %171 : vector<4x8x1xf32> to vector<4x8x8xf32>
    %175 = vector.broadcast %173 : vector<1x1x8xf32> to vector<4x8x8xf32>
    %176 = arith.mulf %174, %175 : vector<4x8x8xf32>
    %177 = arith.addf %150, %176 : vector<4x8x8xf32>
    %178 = vector.extract_strided_slice %10 {offsets = [6, 0], sizes = [1, 8], strides = [1, 1]} : vector<16x8xf32> to vector<1x8xf32>
    %179 = vector.shape_cast %178 : vector<1x8xf32> to vector<1x1x8xf32>
    %180 = vector.broadcast %179 : vector<1x1x8xf32> to vector<4x8x8xf32>
    %181 = arith.mulf %6, %180 : vector<4x8x8xf32>
    "tpu.trace_start"() <{level = 10 : i32, message = "hqd,hkd->hqk"}> : () -> ()
    %cst_37 = arith.constant dense<0.000000e+00> : vector<4x8x16xf32>
    %182 = tpu.matmul %181, %8, %cst_37 {dimension_numbers = #tpu.dot_dimension_numbers<[2], [2], [1], [1], [0, 0, 0, 1, 1, 1], [0], [0]>} : vector<4x8x8xf32>, vector<4x16x8xf32>, vector<4x8x16xf32> -> vector<4x8x16xf32>
    "tpu.trace_stop"() : () -> ()
    %183 = vector.extract_strided_slice %11 {offsets = [6, 0], sizes = [1, 1], strides = [1, 1]} : vector<16x1xf32> to vector<1x1xf32>
    %184 = vector.shape_cast %183 : vector<1x1xf32> to vector<1x1x1xf32>
    %185 = vector.broadcast %184 : vector<1x1x1xf32> to vector<4x8x16xf32>
    %186 = arith.addf %182, %185 : vector<4x8x16xf32>
    %cst_38 = arith.constant 0.000000e+00 : f32
    %187 = vector.broadcast %cst_38 : f32 to vector<4x8x16xf32>
    %188 = arith.maximumf %186, %187 : vector<4x8x16xf32>
    %189 = vector.extract_strided_slice %12 {offsets = [6, 0], sizes = [1, 1], strides = [1, 1]} : vector<16x1xf32> to vector<1x1xf32>
    %190 = vector.shape_cast %189 : vector<1x1xf32> to vector<1x1x1xf32>
    %191 = vector.broadcast %190 : vector<1x1x1xf32> to vector<4x8x16xf32>
    %192 = arith.mulf %188, %191 : vector<4x8x16xf32>
    %193 = arith.addf %166, %192 : vector<4x8x16xf32>
    %194 = vector.shape_cast %5 : vector<8x16xf32> to vector<1x8x16xf32>
    %195 = vector.broadcast %194 : vector<1x8x16xf32> to vector<4x8x16xf32>
    %196 = arith.mulf %188, %195 : vector<4x8x16xf32>
    %cst_39 = arith.constant dense<0.000000e+00> : vector<4x8xf32>
    %197 = vector.multi_reduction <add>, %196, %cst_39 [2] : vector<4x8x16xf32> to vector<4x8xf32>
    %198 = vector.shape_cast %197 : vector<4x8xf32> to vector<4x8x1xf32>
    %199 = vector.extract_strided_slice %13 {offsets = [6, 0], sizes = [1, 8], strides = [1, 1]} : vector<16x8xf32> to vector<1x8xf32>
    %200 = vector.shape_cast %199 : vector<1x8xf32> to vector<1x1x8xf32>
    %201 = vector.broadcast %198 : vector<4x8x1xf32> to vector<4x8x8xf32>
    %202 = vector.broadcast %200 : vector<1x1x8xf32> to vector<4x8x8xf32>
    %203 = arith.mulf %201, %202 : vector<4x8x8xf32>
    %204 = arith.addf %177, %203 : vector<4x8x8xf32>
    %205 = vector.extract_strided_slice %10 {offsets = [7, 0], sizes = [1, 8], strides = [1, 1]} : vector<16x8xf32> to vector<1x8xf32>
    %206 = vector.shape_cast %205 : vector<1x8xf32> to vector<1x1x8xf32>
    %207 = vector.broadcast %206 : vector<1x1x8xf32> to vector<4x8x8xf32>
    %208 = arith.mulf %6, %207 : vector<4x8x8xf32>
    "tpu.trace_start"() <{level = 10 : i32, message = "hqd,hkd->hqk"}> : () -> ()
    %cst_40 = arith.constant dense<0.000000e+00> : vector<4x8x16xf32>
    %209 = tpu.matmul %208, %8, %cst_40 {dimension_numbers = #tpu.dot_dimension_numbers<[2], [2], [1], [1], [0, 0, 0, 1, 1, 1], [0], [0]>} : vector<4x8x8xf32>, vector<4x16x8xf32>, vector<4x8x16xf32> -> vector<4x8x16xf32>
    "tpu.trace_stop"() : () -> ()
    %210 = vector.extract_strided_slice %11 {offsets = [7, 0], sizes = [1, 1], strides = [1, 1]} : vector<16x1xf32> to vector<1x1xf32>
    %211 = vector.shape_cast %210 : vector<1x1xf32> to vector<1x1x1xf32>
    %212 = vector.broadcast %211 : vector<1x1x1xf32> to vector<4x8x16xf32>
    %213 = arith.addf %209, %212 : vector<4x8x16xf32>
    %cst_41 = arith.constant 0.000000e+00 : f32
    %214 = vector.broadcast %cst_41 : f32 to vector<4x8x16xf32>
    %215 = arith.maximumf %213, %214 : vector<4x8x16xf32>
    %216 = vector.extract_strided_slice %12 {offsets = [7, 0], sizes = [1, 1], strides = [1, 1]} : vector<16x1xf32> to vector<1x1xf32>
    %217 = vector.shape_cast %216 : vector<1x1xf32> to vector<1x1x1xf32>
    %218 = vector.broadcast %217 : vector<1x1x1xf32> to vector<4x8x16xf32>
    %219 = arith.mulf %215, %218 : vector<4x8x16xf32>
    %220 = arith.addf %193, %219 : vector<4x8x16xf32>
    %221 = vector.shape_cast %5 : vector<8x16xf32> to vector<1x8x16xf32>
    %222 = vector.broadcast %221 : vector<1x8x16xf32> to vector<4x8x16xf32>
    %223 = arith.mulf %215, %222 : vector<4x8x16xf32>
    %cst_42 = arith.constant dense<0.000000e+00> : vector<4x8xf32>
    %224 = vector.multi_reduction <add>, %223, %cst_42 [2] : vector<4x8x16xf32> to vector<4x8xf32>
    %225 = vector.shape_cast %224 : vector<4x8xf32> to vector<4x8x1xf32>
    %226 = vector.extract_strided_slice %13 {offsets = [7, 0], sizes = [1, 8], strides = [1, 1]} : vector<16x8xf32> to vector<1x8xf32>
    %227 = vector.shape_cast %226 : vector<1x8xf32> to vector<1x1x8xf32>
    %228 = vector.broadcast %225 : vector<4x8x1xf32> to vector<4x8x8xf32>
    %229 = vector.broadcast %227 : vector<1x1x8xf32> to vector<4x8x8xf32>
    %230 = arith.mulf %228, %229 : vector<4x8x8xf32>
    %231 = arith.addf %204, %230 : vector<4x8x8xf32>
    %232 = vector.extract_strided_slice %10 {offsets = [8, 0], sizes = [1, 8], strides = [1, 1]} : vector<16x8xf32> to vector<1x8xf32>
    %233 = vector.shape_cast %232 : vector<1x8xf32> to vector<1x1x8xf32>
    %234 = vector.broadcast %233 : vector<1x1x8xf32> to vector<4x8x8xf32>
    %235 = arith.mulf %6, %234 : vector<4x8x8xf32>
    "tpu.trace_start"() <{level = 10 : i32, message = "hqd,hkd->hqk"}> : () -> ()
    %cst_43 = arith.constant dense<0.000000e+00> : vector<4x8x16xf32>
    %236 = tpu.matmul %235, %8, %cst_43 {dimension_numbers = #tpu.dot_dimension_numbers<[2], [2], [1], [1], [0, 0, 0, 1, 1, 1], [0], [0]>} : vector<4x8x8xf32>, vector<4x16x8xf32>, vector<4x8x16xf32> -> vector<4x8x16xf32>
    "tpu.trace_stop"() : () -> ()
    %237 = vector.extract_strided_slice %11 {offsets = [8, 0], sizes = [1, 1], strides = [1, 1]} : vector<16x1xf32> to vector<1x1xf32>
    %238 = vector.shape_cast %237 : vector<1x1xf32> to vector<1x1x1xf32>
    %239 = vector.broadcast %238 : vector<1x1x1xf32> to vector<4x8x16xf32>
    %240 = arith.addf %236, %239 : vector<4x8x16xf32>
    %cst_44 = arith.constant 0.000000e+00 : f32
    %241 = vector.broadcast %cst_44 : f32 to vector<4x8x16xf32>
    %242 = arith.maximumf %240, %241 : vector<4x8x16xf32>
    %243 = vector.extract_strided_slice %12 {offsets = [8, 0], sizes = [1, 1], strides = [1, 1]} : vector<16x1xf32> to vector<1x1xf32>
    %244 = vector.shape_cast %243 : vector<1x1xf32> to vector<1x1x1xf32>
    %245 = vector.broadcast %244 : vector<1x1x1xf32> to vector<4x8x16xf32>
    %246 = arith.mulf %242, %245 : vector<4x8x16xf32>
    %247 = arith.addf %220, %246 : vector<4x8x16xf32>
    %248 = vector.shape_cast %5 : vector<8x16xf32> to vector<1x8x16xf32>
    %249 = vector.broadcast %248 : vector<1x8x16xf32> to vector<4x8x16xf32>
    %250 = arith.mulf %242, %249 : vector<4x8x16xf32>
    %cst_45 = arith.constant dense<0.000000e+00> : vector<4x8xf32>
    %251 = vector.multi_reduction <add>, %250, %cst_45 [2] : vector<4x8x16xf32> to vector<4x8xf32>
    %252 = vector.shape_cast %251 : vector<4x8xf32> to vector<4x8x1xf32>
    %253 = vector.extract_strided_slice %13 {offsets = [8, 0], sizes = [1, 8], strides = [1, 1]} : vector<16x8xf32> to vector<1x8xf32>
    %254 = vector.shape_cast %253 : vector<1x8xf32> to vector<1x1x8xf32>
    %255 = vector.broadcast %252 : vector<4x8x1xf32> to vector<4x8x8xf32>
    %256 = vector.broadcast %254 : vector<1x1x8xf32> to vector<4x8x8xf32>
    %257 = arith.mulf %255, %256 : vector<4x8x8xf32>
    %258 = arith.addf %231, %257 : vector<4x8x8xf32>
    %259 = vector.extract_strided_slice %10 {offsets = [9, 0], sizes = [1, 8], strides = [1, 1]} : vector<16x8xf32> to vector<1x8xf32>
    %260 = vector.shape_cast %259 : vector<1x8xf32> to vector<1x1x8xf32>
    %261 = vector.broadcast %260 : vector<1x1x8xf32> to vector<4x8x8xf32>
    %262 = arith.mulf %6, %261 : vector<4x8x8xf32>
    "tpu.trace_start"() <{level = 10 : i32, message = "hqd,hkd->hqk"}> : () -> ()
    %cst_46 = arith.constant dense<0.000000e+00> : vector<4x8x16xf32>
    %263 = tpu.matmul %262, %8, %cst_46 {dimension_numbers = #tpu.dot_dimension_numbers<[2], [2], [1], [1], [0, 0, 0, 1, 1, 1], [0], [0]>} : vector<4x8x8xf32>, vector<4x16x8xf32>, vector<4x8x16xf32> -> vector<4x8x16xf32>
    "tpu.trace_stop"() : () -> ()
    %264 = vector.extract_strided_slice %11 {offsets = [9, 0], sizes = [1, 1], strides = [1, 1]} : vector<16x1xf32> to vector<1x1xf32>
    %265 = vector.shape_cast %264 : vector<1x1xf32> to vector<1x1x1xf32>
    %266 = vector.broadcast %265 : vector<1x1x1xf32> to vector<4x8x16xf32>
    %267 = arith.addf %263, %266 : vector<4x8x16xf32>
    %cst_47 = arith.constant 0.000000e+00 : f32
    %268 = vector.broadcast %cst_47 : f32 to vector<4x8x16xf32>
    %269 = arith.maximumf %267, %268 : vector<4x8x16xf32>
    %270 = vector.extract_strided_slice %12 {offsets = [9, 0], sizes = [1, 1], strides = [1, 1]} : vector<16x1xf32> to vector<1x1xf32>
    %271 = vector.shape_cast %270 : vector<1x1xf32> to vector<1x1x1xf32>
    %272 = vector.broadcast %271 : vector<1x1x1xf32> to vector<4x8x16xf32>
    %273 = arith.mulf %269, %272 : vector<4x8x16xf32>
    %274 = arith.addf %247, %273 : vector<4x8x16xf32>
    %275 = vector.shape_cast %5 : vector<8x16xf32> to vector<1x8x16xf32>
    %276 = vector.broadcast %275 : vector<1x8x16xf32> to vector<4x8x16xf32>
    %277 = arith.mulf %269, %276 : vector<4x8x16xf32>
    %cst_48 = arith.constant dense<0.000000e+00> : vector<4x8xf32>
    %278 = vector.multi_reduction <add>, %277, %cst_48 [2] : vector<4x8x16xf32> to vector<4x8xf32>
    %279 = vector.shape_cast %278 : vector<4x8xf32> to vector<4x8x1xf32>
    %280 = vector.extract_strided_slice %13 {offsets = [9, 0], sizes = [1, 8], strides = [1, 1]} : vector<16x8xf32> to vector<1x8xf32>
    %281 = vector.shape_cast %280 : vector<1x8xf32> to vector<1x1x8xf32>
    %282 = vector.broadcast %279 : vector<4x8x1xf32> to vector<4x8x8xf32>
    %283 = vector.broadcast %281 : vector<1x1x8xf32> to vector<4x8x8xf32>
    %284 = arith.mulf %282, %283 : vector<4x8x8xf32>
    %285 = arith.addf %258, %284 : vector<4x8x8xf32>
    %286 = vector.extract_strided_slice %10 {offsets = [10, 0], sizes = [1, 8], strides = [1, 1]} : vector<16x8xf32> to vector<1x8xf32>
    %287 = vector.shape_cast %286 : vector<1x8xf32> to vector<1x1x8xf32>
    %288 = vector.broadcast %287 : vector<1x1x8xf32> to vector<4x8x8xf32>
    %289 = arith.mulf %6, %288 : vector<4x8x8xf32>
    "tpu.trace_start"() <{level = 10 : i32, message = "hqd,hkd->hqk"}> : () -> ()
    %cst_49 = arith.constant dense<0.000000e+00> : vector<4x8x16xf32>
    %290 = tpu.matmul %289, %8, %cst_49 {dimension_numbers = #tpu.dot_dimension_numbers<[2], [2], [1], [1], [0, 0, 0, 1, 1, 1], [0], [0]>} : vector<4x8x8xf32>, vector<4x16x8xf32>, vector<4x8x16xf32> -> vector<4x8x16xf32>
    "tpu.trace_stop"() : () -> ()
    %291 = vector.extract_strided_slice %11 {offsets = [10, 0], sizes = [1, 1], strides = [1, 1]} : vector<16x1xf32> to vector<1x1xf32>
    %292 = vector.shape_cast %291 : vector<1x1xf32> to vector<1x1x1xf32>
    %293 = vector.broadcast %292 : vector<1x1x1xf32> to vector<4x8x16xf32>
    %294 = arith.addf %290, %293 : vector<4x8x16xf32>
    %cst_50 = arith.constant 0.000000e+00 : f32
    %295 = vector.broadcast %cst_50 : f32 to vector<4x8x16xf32>
    %296 = arith.maximumf %294, %295 : vector<4x8x16xf32>
    %297 = vector.extract_strided_slice %12 {offsets = [10, 0], sizes = [1, 1], strides = [1, 1]} : vector<16x1xf32> to vector<1x1xf32>
    %298 = vector.shape_cast %297 : vector<1x1xf32> to vector<1x1x1xf32>
    %299 = vector.broadcast %298 : vector<1x1x1xf32> to vector<4x8x16xf32>
    %300 = arith.mulf %296, %299 : vector<4x8x16xf32>
    %301 = arith.addf %274, %300 : vector<4x8x16xf32>
    %302 = vector.shape_cast %5 : vector<8x16xf32> to vector<1x8x16xf32>
    %303 = vector.broadcast %302 : vector<1x8x16xf32> to vector<4x8x16xf32>
    %304 = arith.mulf %296, %303 : vector<4x8x16xf32>
    %cst_51 = arith.constant dense<0.000000e+00> : vector<4x8xf32>
    %305 = vector.multi_reduction <add>, %304, %cst_51 [2] : vector<4x8x16xf32> to vector<4x8xf32>
    %306 = vector.shape_cast %305 : vector<4x8xf32> to vector<4x8x1xf32>
    %307 = vector.extract_strided_slice %13 {offsets = [10, 0], sizes = [1, 8], strides = [1, 1]} : vector<16x8xf32> to vector<1x8xf32>
    %308 = vector.shape_cast %307 : vector<1x8xf32> to vector<1x1x8xf32>
    %309 = vector.broadcast %306 : vector<4x8x1xf32> to vector<4x8x8xf32>
    %310 = vector.broadcast %308 : vector<1x1x8xf32> to vector<4x8x8xf32>
    %311 = arith.mulf %309, %310 : vector<4x8x8xf32>
    %312 = arith.addf %285, %311 : vector<4x8x8xf32>
    %313 = vector.extract_strided_slice %10 {offsets = [11, 0], sizes = [1, 8], strides = [1, 1]} : vector<16x8xf32> to vector<1x8xf32>
    %314 = vector.shape_cast %313 : vector<1x8xf32> to vector<1x1x8xf32>
    %315 = vector.broadcast %314 : vector<1x1x8xf32> to vector<4x8x8xf32>
    %316 = arith.mulf %6, %315 : vector<4x8x8xf32>
    "tpu.trace_start"() <{level = 10 : i32, message = "hqd,hkd->hqk"}> : () -> ()
    %cst_52 = arith.constant dense<0.000000e+00> : vector<4x8x16xf32>
    %317 = tpu.matmul %316, %8, %cst_52 {dimension_numbers = #tpu.dot_dimension_numbers<[2], [2], [1], [1], [0, 0, 0, 1, 1, 1], [0], [0]>} : vector<4x8x8xf32>, vector<4x16x8xf32>, vector<4x8x16xf32> -> vector<4x8x16xf32>
    "tpu.trace_stop"() : () -> ()
    %318 = vector.extract_strided_slice %11 {offsets = [11, 0], sizes = [1, 1], strides = [1, 1]} : vector<16x1xf32> to vector<1x1xf32>
    %319 = vector.shape_cast %318 : vector<1x1xf32> to vector<1x1x1xf32>
    %320 = vector.broadcast %319 : vector<1x1x1xf32> to vector<4x8x16xf32>
    %321 = arith.addf %317, %320 : vector<4x8x16xf32>
    %cst_53 = arith.constant 0.000000e+00 : f32
    %322 = vector.broadcast %cst_53 : f32 to vector<4x8x16xf32>
    %323 = arith.maximumf %321, %322 : vector<4x8x16xf32>
    %324 = vector.extract_strided_slice %12 {offsets = [11, 0], sizes = [1, 1], strides = [1, 1]} : vector<16x1xf32> to vector<1x1xf32>
    %325 = vector.shape_cast %324 : vector<1x1xf32> to vector<1x1x1xf32>
    %326 = vector.broadcast %325 : vector<1x1x1xf32> to vector<4x8x16xf32>
    %327 = arith.mulf %323, %326 : vector<4x8x16xf32>
    %328 = arith.addf %301, %327 : vector<4x8x16xf32>
    %329 = vector.shape_cast %5 : vector<8x16xf32> to vector<1x8x16xf32>
    %330 = vector.broadcast %329 : vector<1x8x16xf32> to vector<4x8x16xf32>
    %331 = arith.mulf %323, %330 : vector<4x8x16xf32>
    %cst_54 = arith.constant dense<0.000000e+00> : vector<4x8xf32>
    %332 = vector.multi_reduction <add>, %331, %cst_54 [2] : vector<4x8x16xf32> to vector<4x8xf32>
    %333 = vector.shape_cast %332 : vector<4x8xf32> to vector<4x8x1xf32>
    %334 = vector.extract_strided_slice %13 {offsets = [11, 0], sizes = [1, 8], strides = [1, 1]} : vector<16x8xf32> to vector<1x8xf32>
    %335 = vector.shape_cast %334 : vector<1x8xf32> to vector<1x1x8xf32>
    %336 = vector.broadcast %333 : vector<4x8x1xf32> to vector<4x8x8xf32>
    %337 = vector.broadcast %335 : vector<1x1x8xf32> to vector<4x8x8xf32>
    %338 = arith.mulf %336, %337 : vector<4x8x8xf32>
    %339 = arith.addf %312, %338 : vector<4x8x8xf32>
    %340 = vector.extract_strided_slice %10 {offsets = [12, 0], sizes = [1, 8], strides = [1, 1]} : vector<16x8xf32> to vector<1x8xf32>
    %341 = vector.shape_cast %340 : vector<1x8xf32> to vector<1x1x8xf32>
    %342 = vector.broadcast %341 : vector<1x1x8xf32> to vector<4x8x8xf32>
    %343 = arith.mulf %6, %342 : vector<4x8x8xf32>
    "tpu.trace_start"() <{level = 10 : i32, message = "hqd,hkd->hqk"}> : () -> ()
    %cst_55 = arith.constant dense<0.000000e+00> : vector<4x8x16xf32>
    %344 = tpu.matmul %343, %8, %cst_55 {dimension_numbers = #tpu.dot_dimension_numbers<[2], [2], [1], [1], [0, 0, 0, 1, 1, 1], [0], [0]>} : vector<4x8x8xf32>, vector<4x16x8xf32>, vector<4x8x16xf32> -> vector<4x8x16xf32>
    "tpu.trace_stop"() : () -> ()
    %345 = vector.extract_strided_slice %11 {offsets = [12, 0], sizes = [1, 1], strides = [1, 1]} : vector<16x1xf32> to vector<1x1xf32>
    %346 = vector.shape_cast %345 : vector<1x1xf32> to vector<1x1x1xf32>
    %347 = vector.broadcast %346 : vector<1x1x1xf32> to vector<4x8x16xf32>
    %348 = arith.addf %344, %347 : vector<4x8x16xf32>
    %cst_56 = arith.constant 0.000000e+00 : f32
    %349 = vector.broadcast %cst_56 : f32 to vector<4x8x16xf32>
    %350 = arith.maximumf %348, %349 : vector<4x8x16xf32>
    %351 = vector.extract_strided_slice %12 {offsets = [12, 0], sizes = [1, 1], strides = [1, 1]} : vector<16x1xf32> to vector<1x1xf32>
    %352 = vector.shape_cast %351 : vector<1x1xf32> to vector<1x1x1xf32>
    %353 = vector.broadcast %352 : vector<1x1x1xf32> to vector<4x8x16xf32>
    %354 = arith.mulf %350, %353 : vector<4x8x16xf32>
    %355 = arith.addf %328, %354 : vector<4x8x16xf32>
    %356 = vector.shape_cast %5 : vector<8x16xf32> to vector<1x8x16xf32>
    %357 = vector.broadcast %356 : vector<1x8x16xf32> to vector<4x8x16xf32>
    %358 = arith.mulf %350, %357 : vector<4x8x16xf32>
    %cst_57 = arith.constant dense<0.000000e+00> : vector<4x8xf32>
    %359 = vector.multi_reduction <add>, %358, %cst_57 [2] : vector<4x8x16xf32> to vector<4x8xf32>
    %360 = vector.shape_cast %359 : vector<4x8xf32> to vector<4x8x1xf32>
    %361 = vector.extract_strided_slice %13 {offsets = [12, 0], sizes = [1, 8], strides = [1, 1]} : vector<16x8xf32> to vector<1x8xf32>
    %362 = vector.shape_cast %361 : vector<1x8xf32> to vector<1x1x8xf32>
    %363 = vector.broadcast %360 : vector<4x8x1xf32> to vector<4x8x8xf32>
    %364 = vector.broadcast %362 : vector<1x1x8xf32> to vector<4x8x8xf32>
    %365 = arith.mulf %363, %364 : vector<4x8x8xf32>
    %366 = arith.addf %339, %365 : vector<4x8x8xf32>
    %367 = vector.extract_strided_slice %10 {offsets = [13, 0], sizes = [1, 8], strides = [1, 1]} : vector<16x8xf32> to vector<1x8xf32>
    %368 = vector.shape_cast %367 : vector<1x8xf32> to vector<1x1x8xf32>
    %369 = vector.broadcast %368 : vector<1x1x8xf32> to vector<4x8x8xf32>
    %370 = arith.mulf %6, %369 : vector<4x8x8xf32>
    "tpu.trace_start"() <{level = 10 : i32, message = "hqd,hkd->hqk"}> : () -> ()
    %cst_58 = arith.constant dense<0.000000e+00> : vector<4x8x16xf32>
    %371 = tpu.matmul %370, %8, %cst_58 {dimension_numbers = #tpu.dot_dimension_numbers<[2], [2], [1], [1], [0, 0, 0, 1, 1, 1], [0], [0]>} : vector<4x8x8xf32>, vector<4x16x8xf32>, vector<4x8x16xf32> -> vector<4x8x16xf32>
    "tpu.trace_stop"() : () -> ()
    %372 = vector.extract_strided_slice %11 {offsets = [13, 0], sizes = [1, 1], strides = [1, 1]} : vector<16x1xf32> to vector<1x1xf32>
    %373 = vector.shape_cast %372 : vector<1x1xf32> to vector<1x1x1xf32>
    %374 = vector.broadcast %373 : vector<1x1x1xf32> to vector<4x8x16xf32>
    %375 = arith.addf %371, %374 : vector<4x8x16xf32>
    %cst_59 = arith.constant 0.000000e+00 : f32
    %376 = vector.broadcast %cst_59 : f32 to vector<4x8x16xf32>
    %377 = arith.maximumf %375, %376 : vector<4x8x16xf32>
    %378 = vector.extract_strided_slice %12 {offsets = [13, 0], sizes = [1, 1], strides = [1, 1]} : vector<16x1xf32> to vector<1x1xf32>
    %379 = vector.shape_cast %378 : vector<1x1xf32> to vector<1x1x1xf32>
    %380 = vector.broadcast %379 : vector<1x1x1xf32> to vector<4x8x16xf32>
    %381 = arith.mulf %377, %380 : vector<4x8x16xf32>
    %382 = arith.addf %355, %381 : vector<4x8x16xf32>
    %383 = vector.shape_cast %5 : vector<8x16xf32> to vector<1x8x16xf32>
    %384 = vector.broadcast %383 : vector<1x8x16xf32> to vector<4x8x16xf32>
    %385 = arith.mulf %377, %384 : vector<4x8x16xf32>
    %cst_60 = arith.constant dense<0.000000e+00> : vector<4x8xf32>
    %386 = vector.multi_reduction <add>, %385, %cst_60 [2] : vector<4x8x16xf32> to vector<4x8xf32>
    %387 = vector.shape_cast %386 : vector<4x8xf32> to vector<4x8x1xf32>
    %388 = vector.extract_strided_slice %13 {offsets = [13, 0], sizes = [1, 8], strides = [1, 1]} : vector<16x8xf32> to vector<1x8xf32>
    %389 = vector.shape_cast %388 : vector<1x8xf32> to vector<1x1x8xf32>
    %390 = vector.broadcast %387 : vector<4x8x1xf32> to vector<4x8x8xf32>
    %391 = vector.broadcast %389 : vector<1x1x8xf32> to vector<4x8x8xf32>
    %392 = arith.mulf %390, %391 : vector<4x8x8xf32>
    %393 = arith.addf %366, %392 : vector<4x8x8xf32>
    %394 = vector.extract_strided_slice %10 {offsets = [14, 0], sizes = [1, 8], strides = [1, 1]} : vector<16x8xf32> to vector<1x8xf32>
    %395 = vector.shape_cast %394 : vector<1x8xf32> to vector<1x1x8xf32>
    %396 = vector.broadcast %395 : vector<1x1x8xf32> to vector<4x8x8xf32>
    %397 = arith.mulf %6, %396 : vector<4x8x8xf32>
    "tpu.trace_start"() <{level = 10 : i32, message = "hqd,hkd->hqk"}> : () -> ()
    %cst_61 = arith.constant dense<0.000000e+00> : vector<4x8x16xf32>
    %398 = tpu.matmul %397, %8, %cst_61 {dimension_numbers = #tpu.dot_dimension_numbers<[2], [2], [1], [1], [0, 0, 0, 1, 1, 1], [0], [0]>} : vector<4x8x8xf32>, vector<4x16x8xf32>, vector<4x8x16xf32> -> vector<4x8x16xf32>
    "tpu.trace_stop"() : () -> ()
    %399 = vector.extract_strided_slice %11 {offsets = [14, 0], sizes = [1, 1], strides = [1, 1]} : vector<16x1xf32> to vector<1x1xf32>
    %400 = vector.shape_cast %399 : vector<1x1xf32> to vector<1x1x1xf32>
    %401 = vector.broadcast %400 : vector<1x1x1xf32> to vector<4x8x16xf32>
    %402 = arith.addf %398, %401 : vector<4x8x16xf32>
    %cst_62 = arith.constant 0.000000e+00 : f32
    %403 = vector.broadcast %cst_62 : f32 to vector<4x8x16xf32>
    %404 = arith.maximumf %402, %403 : vector<4x8x16xf32>
    %405 = vector.extract_strided_slice %12 {offsets = [14, 0], sizes = [1, 1], strides = [1, 1]} : vector<16x1xf32> to vector<1x1xf32>
    %406 = vector.shape_cast %405 : vector<1x1xf32> to vector<1x1x1xf32>
    %407 = vector.broadcast %406 : vector<1x1x1xf32> to vector<4x8x16xf32>
    %408 = arith.mulf %404, %407 : vector<4x8x16xf32>
    %409 = arith.addf %382, %408 : vector<4x8x16xf32>
    %410 = vector.shape_cast %5 : vector<8x16xf32> to vector<1x8x16xf32>
    %411 = vector.broadcast %410 : vector<1x8x16xf32> to vector<4x8x16xf32>
    %412 = arith.mulf %404, %411 : vector<4x8x16xf32>
    %cst_63 = arith.constant dense<0.000000e+00> : vector<4x8xf32>
    %413 = vector.multi_reduction <add>, %412, %cst_63 [2] : vector<4x8x16xf32> to vector<4x8xf32>
    %414 = vector.shape_cast %413 : vector<4x8xf32> to vector<4x8x1xf32>
    %415 = vector.extract_strided_slice %13 {offsets = [14, 0], sizes = [1, 8], strides = [1, 1]} : vector<16x8xf32> to vector<1x8xf32>
    %416 = vector.shape_cast %415 : vector<1x8xf32> to vector<1x1x8xf32>
    %417 = vector.broadcast %414 : vector<4x8x1xf32> to vector<4x8x8xf32>
    %418 = vector.broadcast %416 : vector<1x1x8xf32> to vector<4x8x8xf32>
    %419 = arith.mulf %417, %418 : vector<4x8x8xf32>
    %420 = arith.addf %393, %419 : vector<4x8x8xf32>
    %421 = vector.extract_strided_slice %10 {offsets = [15, 0], sizes = [1, 8], strides = [1, 1]} : vector<16x8xf32> to vector<1x8xf32>
    %422 = vector.shape_cast %421 : vector<1x8xf32> to vector<1x1x8xf32>
    %423 = vector.broadcast %422 : vector<1x1x8xf32> to vector<4x8x8xf32>
    %424 = arith.mulf %6, %423 : vector<4x8x8xf32>
    "tpu.trace_start"() <{level = 10 : i32, message = "hqd,hkd->hqk"}> : () -> ()
    %cst_64 = arith.constant dense<0.000000e+00> : vector<4x8x16xf32>
    %425 = tpu.matmul %424, %8, %cst_64 {dimension_numbers = #tpu.dot_dimension_numbers<[2], [2], [1], [1], [0, 0, 0, 1, 1, 1], [0], [0]>} : vector<4x8x8xf32>, vector<4x16x8xf32>, vector<4x8x16xf32> -> vector<4x8x16xf32>
    "tpu.trace_stop"() : () -> ()
    %426 = vector.extract_strided_slice %11 {offsets = [15, 0], sizes = [1, 1], strides = [1, 1]} : vector<16x1xf32> to vector<1x1xf32>
    %427 = vector.shape_cast %426 : vector<1x1xf32> to vector<1x1x1xf32>
    %428 = vector.broadcast %427 : vector<1x1x1xf32> to vector<4x8x16xf32>
    %429 = arith.addf %425, %428 : vector<4x8x16xf32>
    %cst_65 = arith.constant 0.000000e+00 : f32
    %430 = vector.broadcast %cst_65 : f32 to vector<4x8x16xf32>
    %431 = arith.maximumf %429, %430 : vector<4x8x16xf32>
    %432 = vector.extract_strided_slice %12 {offsets = [15, 0], sizes = [1, 1], strides = [1, 1]} : vector<16x1xf32> to vector<1x1xf32>
    %433 = vector.shape_cast %432 : vector<1x1xf32> to vector<1x1x1xf32>
    %434 = vector.broadcast %433 : vector<1x1x1xf32> to vector<4x8x16xf32>
    %435 = arith.mulf %431, %434 : vector<4x8x16xf32>
    %436 = arith.addf %409, %435 : vector<4x8x16xf32>
    %437 = vector.shape_cast %5 : vector<8x16xf32> to vector<1x8x16xf32>
    %438 = vector.broadcast %437 : vector<1x8x16xf32> to vector<4x8x16xf32>
    %439 = arith.mulf %431, %438 : vector<4x8x16xf32>
    %cst_66 = arith.constant dense<0.000000e+00> : vector<4x8xf32>
    %440 = vector.multi_reduction <add>, %439, %cst_66 [2] : vector<4x8x16xf32> to vector<4x8xf32>
    %441 = vector.shape_cast %440 : vector<4x8xf32> to vector<4x8x1xf32>
    %442 = vector.extract_strided_slice %13 {offsets = [15, 0], sizes = [1, 8], strides = [1, 1]} : vector<16x8xf32> to vector<1x8xf32>
    %443 = vector.shape_cast %442 : vector<1x8xf32> to vector<1x1x8xf32>
    %444 = vector.broadcast %441 : vector<4x8x1xf32> to vector<4x8x8xf32>
    %445 = vector.broadcast %443 : vector<1x1x8xf32> to vector<4x8x8xf32>
    %446 = arith.mulf %444, %445 : vector<4x8x8xf32>
    %447 = arith.addf %420, %446 : vector<4x8x8xf32>
    %cst_67 = arith.constant dense<0.000000e+00> : vector<8xf32>
    %448 = vector.multi_reduction <add>, %5, %cst_67 [1] : vector<8x16xf32> to vector<8xf32>
    %449 = vector.shape_cast %448 : vector<8xf32> to vector<8x1xf32>
    %cst_68 = arith.constant 1.000000e+00 : f32
    %450 = vector.broadcast %cst_68 : f32 to vector<8x1xf32>
    %451 = arith.maximumf %449, %450 : vector<8x1xf32>
    %452 = vector.shape_cast %451 : vector<8x1xf32> to vector<1x8x1xf32>
    %453 = vector.broadcast %452 : vector<1x8x1xf32> to vector<4x8x8xf32>
    %454 = arith.divf %447, %453 : vector<4x8x8xf32>
    %c0_69 = arith.constant 0 : index
    %c0_70 = arith.constant 0 : index
    %455 = vector.load %arg9[%c0_69, %c0_70] : memref<1x8xf32, #tpu.memory_space<vmem>>, vector<1x8xf32>
    %456 = vector.shape_cast %455 : vector<1x8xf32> to vector<1x1x8xf32>
    %457 = vector.broadcast %456 : vector<1x1x8xf32> to vector<4x8x8xf32>
    %458 = arith.addf %454, %457 : vector<4x8x8xf32>
    %459 = arith.negf %458 : vector<4x8x8xf32>
    %460 = math.exp %459 : vector<4x8x8xf32>
    %cst_71 = arith.constant 1.000000e+00 : f32
    %461 = vector.broadcast %cst_71 : f32 to vector<4x8x8xf32>
    %462 = arith.addf %461, %460 : vector<4x8x8xf32>
    %463 = arith.divf %461, %462 : vector<4x8x8xf32>
    %cst_72 = arith.constant 0.000000e+00 : f32
    %464 = vector.broadcast %cst_72 : f32 to vector<8x16xf32>
    %465 = arith.cmpf ogt, %5, %464 : vector<8x16xf32>
    %c0_73 = arith.constant 0 : index
    %c0_74 = arith.constant 0 : index
    %466 = vector.load %arg7[%c0_73, %c0_74] : memref<1x1xf32, #tpu.memory_space<vmem>>, vector<1x1xf32>
    %467 = vector.shape_cast %466 : vector<1x1xf32> to vector<1x1x1xf32>
    %468 = vector.broadcast %467 : vector<1x1x1xf32> to vector<4x8x16xf32>
    %469 = arith.addf %436, %468 : vector<4x8x16xf32>
    %cst_75 = arith.constant -1.000000e+09 : f32
    %470 = vector.shape_cast %465 : vector<8x16xi1> to vector<1x8x16xi1>
    %471 = vector.broadcast %470 : vector<1x8x16xi1> to vector<4x8x16xi1>
    %472 = vector.broadcast %cst_75 : f32 to vector<4x8x16xf32>
    %473 = arith.select %471, %469, %472 : vector<4x8x16xi1>, vector<4x8x16xf32>
    %cst_76 = arith.constant dense<0xFF800000> : vector<4x8xf32>
    %474 = vector.multi_reduction <maximumf>, %473, %cst_76 [2] : vector<4x8x16xf32> to vector<4x8xf32>
    %475 = vector.shape_cast %474 : vector<4x8xf32> to vector<4x8x1xf32>
    %476 = vector.broadcast %475 : vector<4x8x1xf32> to vector<4x8x16xf32>
    %477 = arith.subf %473, %476 : vector<4x8x16xf32>
    %478 = math.exp %477 : vector<4x8x16xf32>
    %cst_77 = arith.constant dense<0.000000e+00> : vector<4x8xf32>
    %479 = vector.multi_reduction <add>, %478, %cst_77 [2] : vector<4x8x16xf32> to vector<4x8xf32>
    %480 = vector.shape_cast %479 : vector<4x8xf32> to vector<4x8x1xf32>
    %481 = vector.broadcast %480 : vector<4x8x1xf32> to vector<4x8x16xf32>
    %482 = arith.divf %478, %481 : vector<4x8x16xf32>
    "tpu.trace_start"() <{level = 10 : i32, message = "hqk,hkd->hqd"}> : () -> ()
    %cst_78 = arith.constant dense<0.000000e+00> : vector<4x8x8xf32>
    %483 = tpu.matmul %482, %9, %cst_78 {dimension_numbers = #tpu.dot_dimension_numbers<[2], [1], [1], [2], [0, 0, 0, 1, 1, 2], [0], [0]>} : vector<4x8x16xf32>, vector<4x16x8xf32>, vector<4x8x8xf32> -> vector<4x8x8xf32>
    "tpu.trace_stop"() : () -> ()
    %484 = arith.mulf %7, %483 : vector<4x8x8xf32>
    %485 = arith.mulf %484, %463 : vector<4x8x8xf32>
    %c0_79 = arith.constant 0 : index
    %c0_80 = arith.constant 0 : index
    %c0_81 = arith.constant 0 : index
    %c0_82 = arith.constant 0 : index
    %486 = vector.load %arg10[%c0_79, %c0_80, %c0_81, %c0_82] : memref<1x4x8x8xf32, #tpu.memory_space<vmem>>, vector<1x4x8x8xf32>
    %487 = vector.shape_cast %486 : vector<1x4x8x8xf32> to vector<4x8x8xf32>
    %488 = vector.shape_cast %485 : vector<4x8x8xf32> to vector<1x4x8x8xf32>
    tpu.vector_store %arg10[%c0_79, %c0_80, %c0_81, %c0_82], %488 {strides = array<i32>} : memref<1x4x8x8xf32, #tpu.memory_space<vmem>>, vector<1x4x8x8xf32>,
    return
  }
  func.func @transform_0(%arg0: i32) -> (i32, i32, i32, i32) {
    %c0_i32 = arith.constant 0 : i32
    %c0_i32_0 = arith.constant 0 : i32
    %c0_i32_1 = arith.constant 0 : i32
    %c0_i32_2 = arith.constant 0 : i32
    return %arg0, %c0_i32, %c0_i32_0, %c0_i32_1 : i32, i32, i32, i32
  }
  func.func @transform_1(%arg0: i32) -> (i32, i32, i32, i32) {
    %c0_i32 = arith.constant 0 : i32
    %c0_i32_0 = arith.constant 0 : i32
    %c0_i32_1 = arith.constant 0 : i32
    %c0_i32_2 = arith.constant 0 : i32
    return %arg0, %c0_i32, %c0_i32_0, %c0_i32_1 : i32, i32, i32, i32
  }
  func.func @transform_2(%arg0: i32) -> (i32, i32, i32) {
    %c0_i32 = arith.constant 0 : i32
    %c0_i32_0 = arith.constant 0 : i32
    %c0_i32_1 = arith.constant 0 : i32
    return %arg0, %c0_i32, %c0_i32_0 : i32, i32, i32
  }
  func.func @transform_3(%arg0: i32) -> (i32, i32) {
    %c0_i32 = arith.constant 0 : i32
    %c0_i32_0 = arith.constant 0 : i32
    %c0_i32_1 = arith.constant 0 : i32
    return %c0_i32, %c0_i32_0 : i32, i32
  }
  func.func @transform_4(%arg0: i32) -> (i32, i32) {
    %c0_i32 = arith.constant 0 : i32
    %c0_i32_0 = arith.constant 0 : i32
    %c0_i32_1 = arith.constant 0 : i32
    return %c0_i32, %c0_i32_0 : i32, i32
  }
  func.func @transform_5(%arg0: i32) -> (i32, i32) {
    %c0_i32 = arith.constant 0 : i32
    %c0_i32_0 = arith.constant 0 : i32
    %c0_i32_1 = arith.constant 0 : i32
    return %c0_i32, %c0_i32_0 : i32, i32
  }
  func.func @transform_6(%arg0: i32) -> (i32, i32) {
    %c0_i32 = arith.constant 0 : i32
    %c0_i32_0 = arith.constant 0 : i32
    %c0_i32_1 = arith.constant 0 : i32
    return %c0_i32, %c0_i32_0 : i32, i32
  }
  func.func @transform_7(%arg0: i32) -> (i32, i32) {
    %c0_i32 = arith.constant 0 : i32
    %c0_i32_0 = arith.constant 0 : i32
    %c0_i32_1 = arith.constant 0 : i32
    return %c0_i32, %c0_i32_0 : i32, i32
  }
  func.func @transform_8(%arg0: i32) -> (i32, i32) {
    %c0_i32 = arith.constant 0 : i32
    %c0_i32_0 = arith.constant 0 : i32
    %c0_i32_1 = arith.constant 0 : i32
    return %c0_i32, %c0_i32_0 : i32, i32
  }
  func.func @transform_9(%arg0: i32) -> (i32, i32, i32, i32) {
    %c0_i32 = arith.constant 0 : i32
    %c0_i32_0 = arith.constant 0 : i32
    %c0_i32_1 = arith.constant 0 : i32
    %c0_i32_2 = arith.constant 0 : i32
    return %arg0, %c0_i32, %c0_i32_0, %c0_i32_1 : i32, i32, i32, i32
  }
}

module attributes {stable_mosaic.version = 11 : i64} {
  func.func @_bifeat_ln_kernel(%arg0: i32, %arg1: memref<16x32xf32, #tpu.memory_space<vmem>>, %arg2: memref<16x32xf32, #tpu.memory_space<vmem>>, %arg3: memref<32x32xf32, #tpu.memory_space<vmem>>, %arg4: memref<32x32xf32, #tpu.memory_space<vmem>>, %arg5: memref<1x32xf32, #tpu.memory_space<vmem>>, %arg6: memref<1x32xf32, #tpu.memory_space<vmem>>, %arg7: memref<1x32xf32, #tpu.memory_space<vmem>>, %arg8: memref<16x32xf32, #tpu.memory_space<vmem>>) attributes {dimension_semantics = [#tpu.dimension_semantics<parallel>], iteration_bounds = array<i64: 1>, scalar_prefetch = 0 : i64, scratch_operands = 0 : i64, tpu.core_type = #tpu.core_type<tc>, window_params = [{transform_indices = @transform_0, window_bounds = array<i64: 16, 32>}, {transform_indices = @transform_1, window_bounds = array<i64: 16, 32>}, {pipeline_mode = #tpu.pipeline_mode<synchronous>, transform_indices = @transform_2, window_bounds = array<i64: 32, 32>}, {pipeline_mode = #tpu.pipeline_mode<synchronous>, transform_indices = @transform_3, window_bounds = array<i64: 32, 32>}, {pipeline_mode = #tpu.pipeline_mode<synchronous>, transform_indices = @transform_4, window_bounds = array<i64: 1, 32>}, {pipeline_mode = #tpu.pipeline_mode<synchronous>, transform_indices = @transform_5, window_bounds = array<i64: 1, 32>}, {pipeline_mode = #tpu.pipeline_mode<synchronous>, transform_indices = @transform_6, window_bounds = array<i64: 1, 32>}, {transform_indices = @transform_7, window_bounds = array<i64: 16, 32>}]} {
    %c0 = arith.constant 0 : index
    %c0_0 = arith.constant 0 : index
    %0 = vector.load %arg2[%c0, %c0_0] : memref<16x32xf32, #tpu.memory_space<vmem>>, vector<16x32xf32>
    %c0_1 = arith.constant 0 : index
    %c0_2 = arith.constant 0 : index
    %1 = vector.load %arg1[%c0_1, %c0_2] : memref<16x32xf32, #tpu.memory_space<vmem>>, vector<16x32xf32>
    %c0_3 = arith.constant 0 : index
    %c0_4 = arith.constant 0 : index
    %2 = vector.load %arg3[%c0_3, %c0_4] : memref<32x32xf32, #tpu.memory_space<vmem>>, vector<32x32xf32>
    %cst = arith.constant dense<0.000000e+00> : vector<16x32xf32>
    %3 = tpu.matmul %1, %2, %cst {dimension_numbers = #tpu.dot_dimension_numbers<[1], [0], [0], [1], [0, 0, 1, 1], [], []>} : vector<16x32xf32>, vector<32x32xf32>, vector<16x32xf32> -> vector<16x32xf32>
    %c0_5 = arith.constant 0 : index
    %c0_6 = arith.constant 0 : index
    %4 = vector.load %arg4[%c0_5, %c0_6] : memref<32x32xf32, #tpu.memory_space<vmem>>, vector<32x32xf32>
    %cst_7 = arith.constant dense<0.000000e+00> : vector<16x32xf32>
    %5 = tpu.matmul %0, %4, %cst_7 {dimension_numbers = #tpu.dot_dimension_numbers<[1], [0], [0], [1], [0, 0, 1, 1], [], []>} : vector<16x32xf32>, vector<32x32xf32>, vector<16x32xf32> -> vector<16x32xf32>
    %6 = arith.addf %3, %5 : vector<16x32xf32>
    %c0_8 = arith.constant 0 : index
    %c0_9 = arith.constant 0 : index
    %7 = vector.load %arg5[%c0_8, %c0_9] : memref<1x32xf32, #tpu.memory_space<vmem>>, vector<1x32xf32>
    %8 = vector.broadcast %7 : vector<1x32xf32> to vector<16x32xf32>
    %9 = arith.addf %6, %8 : vector<16x32xf32>
    %cst_10 = arith.constant 0.000000e+00 : f32
    %10 = vector.broadcast %cst_10 : f32 to vector<16x32xf32>
    %11 = arith.maximumf %9, %10 : vector<16x32xf32>
    %12 = arith.addf %11, %0 : vector<16x32xf32>
    %cst_11 = arith.constant dense<0.000000e+00> : vector<16xf32>
    %13 = vector.multi_reduction <add>, %12, %cst_11 [1] : vector<16x32xf32> to vector<16xf32>
    %14 = vector.shape_cast %13 : vector<16xf32> to vector<16x1xf32>
    %cst_12 = arith.constant 3.200000e+01 : f32
    %15 = vector.broadcast %cst_12 : f32 to vector<16x1xf32>
    %16 = arith.divf %14, %15 : vector<16x1xf32>
    %17 = vector.broadcast %16 : vector<16x1xf32> to vector<16x32xf32>
    %18 = arith.subf %12, %17 : vector<16x32xf32>
    %19 = arith.mulf %18, %18 : vector<16x32xf32>
    %cst_13 = arith.constant dense<0.000000e+00> : vector<16xf32>
    %20 = vector.multi_reduction <add>, %19, %cst_13 [1] : vector<16x32xf32> to vector<16xf32>
    %21 = vector.shape_cast %20 : vector<16xf32> to vector<16x1xf32>
    %cst_14 = arith.constant 3.200000e+01 : f32
    %22 = vector.broadcast %cst_14 : f32 to vector<16x1xf32>
    %23 = arith.divf %21, %22 : vector<16x1xf32>
    %cst_15 = arith.constant 9.99999974E-6 : f32
    %24 = vector.broadcast %cst_15 : f32 to vector<16x1xf32>
    %25 = arith.addf %23, %24 : vector<16x1xf32>
    %26 = math.rsqrt %25 : vector<16x1xf32>
    %27 = vector.broadcast %26 : vector<16x1xf32> to vector<16x32xf32>
    %28 = arith.mulf %18, %27 : vector<16x32xf32>
    %c0_16 = arith.constant 0 : index
    %c0_17 = arith.constant 0 : index
    %29 = vector.load %arg6[%c0_16, %c0_17] : memref<1x32xf32, #tpu.memory_space<vmem>>, vector<1x32xf32>
    %30 = vector.broadcast %29 : vector<1x32xf32> to vector<16x32xf32>
    %31 = arith.mulf %28, %30 : vector<16x32xf32>
    %c0_18 = arith.constant 0 : index
    %c0_19 = arith.constant 0 : index
    %32 = vector.load %arg7[%c0_18, %c0_19] : memref<1x32xf32, #tpu.memory_space<vmem>>, vector<1x32xf32>
    %33 = vector.broadcast %32 : vector<1x32xf32> to vector<16x32xf32>
    %34 = arith.addf %31, %33 : vector<16x32xf32>
    %c0_20 = arith.constant 0 : index
    %c0_21 = arith.constant 0 : index
    %35 = vector.load %arg8[%c0_20, %c0_21] : memref<16x32xf32, #tpu.memory_space<vmem>>, vector<16x32xf32>
    tpu.vector_store %arg8[%c0_20, %c0_21], %34 {strides = array<i32>} : memref<16x32xf32, #tpu.memory_space<vmem>>, vector<16x32xf32>,
    return
  }
  func.func @transform_0(%arg0: i32) -> (i32, i32) {
    %c0_i32 = arith.constant 0 : i32
    %c0_i32_0 = arith.constant 0 : i32
    return %arg0, %c0_i32 : i32, i32
  }
  func.func @transform_1(%arg0: i32) -> (i32, i32) {
    %c0_i32 = arith.constant 0 : i32
    %c0_i32_0 = arith.constant 0 : i32
    return %arg0, %c0_i32 : i32, i32
  }
  func.func @transform_2(%arg0: i32) -> (i32, i32) {
    %c0_i32 = arith.constant 0 : i32
    %c0_i32_0 = arith.constant 0 : i32
    %c0_i32_1 = arith.constant 0 : i32
    return %c0_i32, %c0_i32_0 : i32, i32
  }
  func.func @transform_3(%arg0: i32) -> (i32, i32) {
    %c0_i32 = arith.constant 0 : i32
    %c0_i32_0 = arith.constant 0 : i32
    %c0_i32_1 = arith.constant 0 : i32
    return %c0_i32, %c0_i32_0 : i32, i32
  }
  func.func @transform_4(%arg0: i32) -> (i32, i32) {
    %c0_i32 = arith.constant 0 : i32
    %c0_i32_0 = arith.constant 0 : i32
    %c0_i32_1 = arith.constant 0 : i32
    return %c0_i32, %c0_i32_0 : i32, i32
  }
  func.func @transform_5(%arg0: i32) -> (i32, i32) {
    %c0_i32 = arith.constant 0 : i32
    %c0_i32_0 = arith.constant 0 : i32
    %c0_i32_1 = arith.constant 0 : i32
    return %c0_i32, %c0_i32_0 : i32, i32
  }
  func.func @transform_6(%arg0: i32) -> (i32, i32) {
    %c0_i32 = arith.constant 0 : i32
    %c0_i32_0 = arith.constant 0 : i32
    %c0_i32_1 = arith.constant 0 : i32
    return %c0_i32, %c0_i32_0 : i32, i32
  }
  func.func @transform_7(%arg0: i32) -> (i32, i32) {
    %c0_i32 = arith.constant 0 : i32
    %c0_i32_0 = arith.constant 0 : i32
    return %arg0, %c0_i32 : i32, i32
  }
}

module attributes {stable_mosaic.version = 11 : i64} {
  func.func @_add_ln_kernel(%arg0: i32, %arg1: memref<16x32xf32, #tpu.memory_space<vmem>>, %arg2: memref<16x32xf32, #tpu.memory_space<vmem>>, %arg3: memref<1x32xf32, #tpu.memory_space<vmem>>, %arg4: memref<1x32xf32, #tpu.memory_space<vmem>>, %arg5: memref<16x32xf32, #tpu.memory_space<vmem>>) attributes {dimension_semantics = [#tpu.dimension_semantics<parallel>], iteration_bounds = array<i64: 1>, scalar_prefetch = 0 : i64, scratch_operands = 0 : i64, tpu.core_type = #tpu.core_type<tc>, window_params = [{transform_indices = @transform_0, window_bounds = array<i64: 16, 32>}, {transform_indices = @transform_1, window_bounds = array<i64: 16, 32>}, {pipeline_mode = #tpu.pipeline_mode<synchronous>, transform_indices = @transform_2, window_bounds = array<i64: 1, 32>}, {pipeline_mode = #tpu.pipeline_mode<synchronous>, transform_indices = @transform_3, window_bounds = array<i64: 1, 32>}, {transform_indices = @transform_4, window_bounds = array<i64: 16, 32>}]} {
    %c0 = arith.constant 0 : index
    %c0_0 = arith.constant 0 : index
    %0 = vector.load %arg1[%c0, %c0_0] : memref<16x32xf32, #tpu.memory_space<vmem>>, vector<16x32xf32>
    %c0_1 = arith.constant 0 : index
    %c0_2 = arith.constant 0 : index
    %1 = vector.load %arg2[%c0_1, %c0_2] : memref<16x32xf32, #tpu.memory_space<vmem>>, vector<16x32xf32>
    %2 = arith.addf %0, %1 : vector<16x32xf32>
    %cst = arith.constant dense<0.000000e+00> : vector<16xf32>
    %3 = vector.multi_reduction <add>, %2, %cst [1] : vector<16x32xf32> to vector<16xf32>
    %4 = vector.shape_cast %3 : vector<16xf32> to vector<16x1xf32>
    %cst_3 = arith.constant 3.200000e+01 : f32
    %5 = vector.broadcast %cst_3 : f32 to vector<16x1xf32>
    %6 = arith.divf %4, %5 : vector<16x1xf32>
    %7 = vector.broadcast %6 : vector<16x1xf32> to vector<16x32xf32>
    %8 = arith.subf %2, %7 : vector<16x32xf32>
    %9 = arith.mulf %8, %8 : vector<16x32xf32>
    %cst_4 = arith.constant dense<0.000000e+00> : vector<16xf32>
    %10 = vector.multi_reduction <add>, %9, %cst_4 [1] : vector<16x32xf32> to vector<16xf32>
    %11 = vector.shape_cast %10 : vector<16xf32> to vector<16x1xf32>
    %cst_5 = arith.constant 3.200000e+01 : f32
    %12 = vector.broadcast %cst_5 : f32 to vector<16x1xf32>
    %13 = arith.divf %11, %12 : vector<16x1xf32>
    %cst_6 = arith.constant 9.99999974E-6 : f32
    %14 = vector.broadcast %cst_6 : f32 to vector<16x1xf32>
    %15 = arith.addf %13, %14 : vector<16x1xf32>
    %16 = math.rsqrt %15 : vector<16x1xf32>
    %17 = vector.broadcast %16 : vector<16x1xf32> to vector<16x32xf32>
    %18 = arith.mulf %8, %17 : vector<16x32xf32>
    %c0_7 = arith.constant 0 : index
    %c0_8 = arith.constant 0 : index
    %19 = vector.load %arg3[%c0_7, %c0_8] : memref<1x32xf32, #tpu.memory_space<vmem>>, vector<1x32xf32>
    %20 = vector.broadcast %19 : vector<1x32xf32> to vector<16x32xf32>
    %21 = arith.mulf %18, %20 : vector<16x32xf32>
    %c0_9 = arith.constant 0 : index
    %c0_10 = arith.constant 0 : index
    %22 = vector.load %arg4[%c0_9, %c0_10] : memref<1x32xf32, #tpu.memory_space<vmem>>, vector<1x32xf32>
    %23 = vector.broadcast %22 : vector<1x32xf32> to vector<16x32xf32>
    %24 = arith.addf %21, %23 : vector<16x32xf32>
    %c0_11 = arith.constant 0 : index
    %c0_12 = arith.constant 0 : index
    %25 = vector.load %arg5[%c0_11, %c0_12] : memref<16x32xf32, #tpu.memory_space<vmem>>, vector<16x32xf32>
    tpu.vector_store %arg5[%c0_11, %c0_12], %24 {strides = array<i32>} : memref<16x32xf32, #tpu.memory_space<vmem>>, vector<16x32xf32>,
    return
  }
  func.func @transform_0(%arg0: i32) -> (i32, i32) {
    %c0_i32 = arith.constant 0 : i32
    %c0_i32_0 = arith.constant 0 : i32
    return %arg0, %c0_i32 : i32, i32
  }
  func.func @transform_1(%arg0: i32) -> (i32, i32) {
    %c0_i32 = arith.constant 0 : i32
    %c0_i32_0 = arith.constant 0 : i32
    return %arg0, %c0_i32 : i32, i32
  }
  func.func @transform_2(%arg0: i32) -> (i32, i32) {
    %c0_i32 = arith.constant 0 : i32
    %c0_i32_0 = arith.constant 0 : i32
    %c0_i32_1 = arith.constant 0 : i32
    return %c0_i32, %c0_i32_0 : i32, i32
  }
  func.func @transform_3(%arg0: i32) -> (i32, i32) {
    %c0_i32 = arith.constant 0 : i32
    %c0_i32_0 = arith.constant 0 : i32
    %c0_i32_1 = arith.constant 0 : i32
    return %c0_i32, %c0_i32_0 : i32, i32
  }
  func.func @transform_4(%arg0: i32) -> (i32, i32) {
    %c0_i32 = arith.constant 0 : i32
    %c0_i32_0 = arith.constant 0 : i32
    return %arg0, %c0_i32 : i32, i32
  }
}

module attributes {stable_mosaic.version = 11 : i64} {
  func.func @_ffn_kernel(%arg0: i32, %arg1: memref<16x32xf32, #tpu.memory_space<vmem>>, %arg2: memref<32x128xf32, #tpu.memory_space<vmem>>, %arg3: memref<1x128xf32, #tpu.memory_space<vmem>>, %arg4: memref<128x32xf32, #tpu.memory_space<vmem>>, %arg5: memref<1x32xf32, #tpu.memory_space<vmem>>, %arg6: memref<1x32xf32, #tpu.memory_space<vmem>>, %arg7: memref<1x32xf32, #tpu.memory_space<vmem>>, %arg8: memref<16x32xf32, #tpu.memory_space<vmem>>) attributes {dimension_semantics = [#tpu.dimension_semantics<parallel>], iteration_bounds = array<i64: 1>, scalar_prefetch = 0 : i64, scratch_operands = 0 : i64, tpu.core_type = #tpu.core_type<tc>, window_params = [{transform_indices = @transform_0, window_bounds = array<i64: 16, 32>}, {pipeline_mode = #tpu.pipeline_mode<synchronous>, transform_indices = @transform_1, window_bounds = array<i64: 32, 128>}, {pipeline_mode = #tpu.pipeline_mode<synchronous>, transform_indices = @transform_2, window_bounds = array<i64: 1, 128>}, {pipeline_mode = #tpu.pipeline_mode<synchronous>, transform_indices = @transform_3, window_bounds = array<i64: 128, 32>}, {pipeline_mode = #tpu.pipeline_mode<synchronous>, transform_indices = @transform_4, window_bounds = array<i64: 1, 32>}, {pipeline_mode = #tpu.pipeline_mode<synchronous>, transform_indices = @transform_5, window_bounds = array<i64: 1, 32>}, {pipeline_mode = #tpu.pipeline_mode<synchronous>, transform_indices = @transform_6, window_bounds = array<i64: 1, 32>}, {transform_indices = @transform_7, window_bounds = array<i64: 16, 32>}]} {
    %c0 = arith.constant 0 : index
    %c0_0 = arith.constant 0 : index
    %0 = vector.load %arg1[%c0, %c0_0] : memref<16x32xf32, #tpu.memory_space<vmem>>, vector<16x32xf32>
    %c0_1 = arith.constant 0 : index
    %c0_2 = arith.constant 0 : index
    %1 = vector.load %arg2[%c0_1, %c0_2] : memref<32x128xf32, #tpu.memory_space<vmem>>, vector<32x128xf32>
    %cst = arith.constant dense<0.000000e+00> : vector<16x128xf32>
    %2 = tpu.matmul %0, %1, %cst {dimension_numbers = #tpu.dot_dimension_numbers<[1], [0], [0], [1], [0, 0, 1, 1], [], []>} : vector<16x32xf32>, vector<32x128xf32>, vector<16x128xf32> -> vector<16x128xf32>
    %c0_3 = arith.constant 0 : index
    %c0_4 = arith.constant 0 : index
    %3 = vector.load %arg3[%c0_3, %c0_4] : memref<1x128xf32, #tpu.memory_space<vmem>>, vector<1x128xf32>
    %4 = vector.broadcast %3 : vector<1x128xf32> to vector<16x128xf32>
    %5 = arith.addf %2, %4 : vector<16x128xf32>
    %cst_5 = arith.constant 0.000000e+00 : f32
    %6 = vector.broadcast %cst_5 : f32 to vector<16x128xf32>
    %7 = arith.maximumf %5, %6 : vector<16x128xf32>
    %c0_6 = arith.constant 0 : index
    %c0_7 = arith.constant 0 : index
    %8 = vector.load %arg4[%c0_6, %c0_7] : memref<128x32xf32, #tpu.memory_space<vmem>>, vector<128x32xf32>
    %cst_8 = arith.constant dense<0.000000e+00> : vector<16x32xf32>
    %9 = tpu.matmul %7, %8, %cst_8 {dimension_numbers = #tpu.dot_dimension_numbers<[1], [0], [0], [1], [0, 0, 1, 1], [], []>} : vector<16x128xf32>, vector<128x32xf32>, vector<16x32xf32> -> vector<16x32xf32>
    %c0_9 = arith.constant 0 : index
    %c0_10 = arith.constant 0 : index
    %10 = vector.load %arg5[%c0_9, %c0_10] : memref<1x32xf32, #tpu.memory_space<vmem>>, vector<1x32xf32>
    %11 = vector.broadcast %10 : vector<1x32xf32> to vector<16x32xf32>
    %12 = arith.addf %9, %11 : vector<16x32xf32>
    %13 = arith.addf %0, %12 : vector<16x32xf32>
    %cst_11 = arith.constant dense<0.000000e+00> : vector<16xf32>
    %14 = vector.multi_reduction <add>, %13, %cst_11 [1] : vector<16x32xf32> to vector<16xf32>
    %15 = vector.shape_cast %14 : vector<16xf32> to vector<16x1xf32>
    %cst_12 = arith.constant 3.200000e+01 : f32
    %16 = vector.broadcast %cst_12 : f32 to vector<16x1xf32>
    %17 = arith.divf %15, %16 : vector<16x1xf32>
    %18 = vector.broadcast %17 : vector<16x1xf32> to vector<16x32xf32>
    %19 = arith.subf %13, %18 : vector<16x32xf32>
    %20 = arith.mulf %19, %19 : vector<16x32xf32>
    %cst_13 = arith.constant dense<0.000000e+00> : vector<16xf32>
    %21 = vector.multi_reduction <add>, %20, %cst_13 [1] : vector<16x32xf32> to vector<16xf32>
    %22 = vector.shape_cast %21 : vector<16xf32> to vector<16x1xf32>
    %cst_14 = arith.constant 3.200000e+01 : f32
    %23 = vector.broadcast %cst_14 : f32 to vector<16x1xf32>
    %24 = arith.divf %22, %23 : vector<16x1xf32>
    %cst_15 = arith.constant 9.99999974E-6 : f32
    %25 = vector.broadcast %cst_15 : f32 to vector<16x1xf32>
    %26 = arith.addf %24, %25 : vector<16x1xf32>
    %27 = math.rsqrt %26 : vector<16x1xf32>
    %28 = vector.broadcast %27 : vector<16x1xf32> to vector<16x32xf32>
    %29 = arith.mulf %19, %28 : vector<16x32xf32>
    %c0_16 = arith.constant 0 : index
    %c0_17 = arith.constant 0 : index
    %30 = vector.load %arg6[%c0_16, %c0_17] : memref<1x32xf32, #tpu.memory_space<vmem>>, vector<1x32xf32>
    %31 = vector.broadcast %30 : vector<1x32xf32> to vector<16x32xf32>
    %32 = arith.mulf %29, %31 : vector<16x32xf32>
    %c0_18 = arith.constant 0 : index
    %c0_19 = arith.constant 0 : index
    %33 = vector.load %arg7[%c0_18, %c0_19] : memref<1x32xf32, #tpu.memory_space<vmem>>, vector<1x32xf32>
    %34 = vector.broadcast %33 : vector<1x32xf32> to vector<16x32xf32>
    %35 = arith.addf %32, %34 : vector<16x32xf32>
    %c0_20 = arith.constant 0 : index
    %c0_21 = arith.constant 0 : index
    %36 = vector.load %arg8[%c0_20, %c0_21] : memref<16x32xf32, #tpu.memory_space<vmem>>, vector<16x32xf32>
    tpu.vector_store %arg8[%c0_20, %c0_21], %35 {strides = array<i32>} : memref<16x32xf32, #tpu.memory_space<vmem>>, vector<16x32xf32>,
    return
  }
  func.func @transform_0(%arg0: i32) -> (i32, i32) {
    %c0_i32 = arith.constant 0 : i32
    %c0_i32_0 = arith.constant 0 : i32
    return %arg0, %c0_i32 : i32, i32
  }
  func.func @transform_1(%arg0: i32) -> (i32, i32) {
    %c0_i32 = arith.constant 0 : i32
    %c0_i32_0 = arith.constant 0 : i32
    %c0_i32_1 = arith.constant 0 : i32
    return %c0_i32, %c0_i32_0 : i32, i32
  }
  func.func @transform_2(%arg0: i32) -> (i32, i32) {
    %c0_i32 = arith.constant 0 : i32
    %c0_i32_0 = arith.constant 0 : i32
    %c0_i32_1 = arith.constant 0 : i32
    return %c0_i32, %c0_i32_0 : i32, i32
  }
  func.func @transform_3(%arg0: i32) -> (i32, i32) {
    %c0_i32 = arith.constant 0 : i32
    %c0_i32_0 = arith.constant 0 : i32
    %c0_i32_1 = arith.constant 0 : i32
    return %c0_i32, %c0_i32_0 : i32, i32
  }
  func.func @transform_4(%arg0: i32) -> (i32, i32) {
    %c0_i32 = arith.constant 0 : i32
    %c0_i32_0 = arith.constant 0 : i32
    %c0_i32_1 = arith.constant 0 : i32
    return %c0_i32, %c0_i32_0 : i32, i32
  }
  func.func @transform_5(%arg0: i32) -> (i32, i32) {
    %c0_i32 = arith.constant 0 : i32
    %c0_i32_0 = arith.constant 0 : i32
    %c0_i32_1 = arith.constant 0 : i32
    return %c0_i32, %c0_i32_0 : i32, i32
  }
  func.func @transform_6(%arg0: i32) -> (i32, i32) {
    %c0_i32 = arith.constant 0 : i32
    %c0_i32_0 = arith.constant 0 : i32
    %c0_i32_1 = arith.constant 0 : i32
    return %c0_i32, %c0_i32_0 : i32, i32
  }
  func.func @transform_7(%arg0: i32) -> (i32, i32) {
    %c0_i32 = arith.constant 0 : i32
    %c0_i32_0 = arith.constant 0 : i32
    return %arg0, %c0_i32 : i32, i32
  }
}

</mosaic_0001>

<bundles_post_ra>
// kernel: decoder_layer_forward.10
= control target key start
LH: loop header
LB: loop body
LE: loop exit
PB: predicated region body
PF: predicated region fallthrough
CT: control target
= control target key end

     0   :  { %vm39_vm0 = vcmask 261120   ;;  %vm147_vm1 = vcmask 523264   ;;  %vm231_vm4 = vcmask 64512   ;;  %s737_s1 = inlined_call_operand.vmem [shape: f32[32,64], index: 1, kind: input, shape index: {}]   ;;  %s738_s0 = inlined_call_operand.vmem [shape: f32[16,32], index: 0, kind: input, shape index: {}]   ;;  %s739_s5 = inlined_call_operand.vmem [shape: f32[64,8], index: 5, kind: input, shape index: {}]   ;;  %s740_s2 = inlined_call_operand.vmem [shape: f32[1,64], index: 2, kind: input, shape index: {}]   ;;  %s741_s6 = inlined_call_operand.vmem [shape: f32[8,64], index: 6, kind: input, shape index: {}]   ;;  %s742_s3 = inlined_call_operand.vmem [shape: f32[1,64], index: 3, kind: input, shape index: {}]   ;;  %s743_s4 = inlined_call_operand.vmem [shape: f32[1,64], index: 4, kind: input, shape index: {}]   ;;  %s744_s7 = inlined_call_operand.vmem [shape: f32[16,64], index: 7, kind: output, shape index: {}]  }
   0x1   :  { %v31_v0 = vld [vmem:[%s737_s1 + $0x18] sm:$0xff]  ;;  %v30_v1 = vld [vmem:[%s737_s1 + $0x10] sm:$0xff]  ;;  %v26_v2 = vld [vmem:[%s738_s0] sm:$0xff] }
   0x2   :  { %558 = vmatprep.subr.mxu0 %v31_v0  ;;  %v29_v3 = vld [vmem:[%s737_s1 + $0x8] sm:$0xff]  ;;  %566 = vmatprep.mubr.msk.f32.mxu0 %vm39_vm0, %v26_v2  ;;  %v28_v4 = vld [vmem:[%s737_s1] sm:$0xff]  ;;  %v145_v6 = vld [vmem:[%s739_s5 + $0x38] sm:$0xff] }
   0x3   :  { %559 = vmatpush3.msra.mxu0 %v31_v0  ;;  %v27_v5 = vld [vmem:[%s738_s0 + $0x8] sm:$0xff]  ;;  %v144_v7 = vld [vmem:[%s739_s5 + $0x30] sm:$0xff]  ;;  %569 = vmatprep.subr.mxu1 %v145_v6  ;;  %v142_v9 = vld [vmem:[%s739_s5 + $0x20] sm:$0xff] }
   0x4   :  { %560 = vmatprep.subr.mxu0 %v30_v1  ;;  %570 = vmatpush3.msra.mxu1 %v145_v6  ;;  %v143_v8 = vld [vmem:[%s739_s5 + $0x28] sm:$0xff]  ;;  %v141_v10 = vld [vmem:[%s739_s5 + $0x18] sm:$0xff]  ;;  %v140_v11 = vld [vmem:[%s739_s5 + $0x10] sm:$0xff] }
   0x5   :  { %561 = vmatpush3.msra.mxu0 %v30_v1  ;;  %571 = vmatprep.subr.mxu1 %v144_v7  ;;  %v139_v12 = vld [vmem:[%s739_s5 + $0x8] sm:$0xff]  ;;  %v138_v13 = vld [vmem:[%s739_s5] sm:$0xff] }
   0x6   :  { %562 = vmatprep.subr.mxu0 %v29_v3  ;;  %572 = vmatpush3.msra.mxu1 %v144_v7  ;;  %v511_v14 = vld [vmem:[%s740_s2] ss:$0 sm:$0xff] }
   0x7   :  { %563 = vmatpush3.msra.mxu0 %v29_v3  ;;  %573 = vmatprep.subr.mxu1 %v143_v8  ;;  %v146_v33 = vld [vmem:[%s741_s6] sm:$0xff] }
   0x8   :  { %564 = vmatprep.subr.mxu0 %v28_v4  ;;  %574 = vmatpush3.msra.mxu1 %v143_v8  ;;  %v524_v53 = vld [vmem:[%s742_s3] ss:$0 sm:$0xff] }
   0x9   :  { %565 = vmatpush3.msra.mxu0 %v28_v4  ;;  %575 = vmatprep.subr.mxu1 %v142_v9  ;;  %v525_v55 = vld [vmem:[%s743_s4] ss:$0 sm:$0xff] }
   0xa   :  { %567 = vmatmul.mubr.msk.f32.vlgmr.msra.gmra.mxu0 %vm39_vm0, %v27_v5  ;;  %593 = vmatprep.subr.mxu0 %v145_v6 }
   0xb   :  { %594 = vmatpush3.msra.mxu0 %v145_v6  ;;  %576 = vmatpush3.msra.mxu1 %v142_v9 }
   0xc   :  { %595 = vmatprep.subr.mxu0 %v144_v7  ;;  %577 = vmatprep.subr.mxu1 %v141_v10 }
   0xd   :  { %596 = vmatpush3.msra.mxu0 %v144_v7  ;;  %578 = vmatpush3.msra.mxu1 %v141_v10 }
   0xe   :  { %597 = vmatprep.subr.mxu0 %v143_v8  ;;  %579 = vmatprep.subr.mxu1 %v140_v11 }
   0xf   :  { %598 = vmatpush3.msra.mxu0 %v143_v8  ;;  %580 = vmatpush3.msra.mxu1 %v140_v11 }
  0x10   :  { %599 = vmatprep.subr.mxu0 %v142_v9  ;;  %581 = vmatprep.subr.mxu1 %v139_v12 }
  0x11   :  { %600 = vmatpush3.msra.mxu0 %v142_v9  ;;  %582 = vmatpush3.msra.mxu1 %v139_v12 }
  0x12   :  { %601 = vmatprep.subr.mxu0 %v141_v10  ;;  %583 = vmatprep.subr.mxu1 %v138_v13 }
  0x13   :  { %602 = vmatpush3.msra.mxu0 %v141_v10  ;;  %584 = vmatpush3.msra.mxu1 %v138_v13 }
  0x14   :  { %603 = vmatprep.subr.mxu0 %v140_v11  ;;  %588 = vmatprep.subr.mxu1 %v146_v33 }
  0x15   :  { %604 = vmatpush3.msra.mxu0 %v140_v11 }
  0x16   :  { %605 = vmatprep.subr.mxu0 %v139_v12 }
  0x17   :  { %606 = vmatpush3.msra.mxu0 %v139_v12 }
  0x18   :  { %607 = vmatprep.subr.mxu0 %v138_v13 }
  0x19   :  { %608 = vmatpush3.msra.mxu0 %v138_v13 }
  0xca   :  { %v568_v15 = vpop.f32.mrf.mxu0 }
  0xcb   :  { %v118_v16 = vadd.f32 %v568_v15, %v511_v14 }
  0xcc   :  { %v112_v17 = vpop.f32.mrf.mxu0 }
  0xcd   :  { %v124_v18 = vmin.f32 %v118_v16, 0.0  ;;  %v113_v19 = vadd.f32 %v511_v14, %v112_v17  ;;  %vm122_vm3 = vcmp.gt.f32.partialorder %v118_v16, 0.0 }
  0xcf   :  { %v127_v20 = vmul.f32 0.7692308, %v124_v18  ;;  %v123_v21 = vmin.f32 %v113_v19, 0.0  ;;  %vm121_vm2 = vcmp.gt.f32.partialorder %v113_v19, 0.0 }
  0xd1   :  { %v130_v22 = vmul.f32 1.442695, %v127_v20  ;;  %v126_v23 = vmul.f32 0.7692308, %v123_v21 }
  0xd3   :  { %617 = vpow2.f32 %v130_v22  ;;  %v128_v24 = vmul.f32 1.442695, %v126_v23 }
  0xd5   :  { %619 = vpow2.f32 %v128_v24 }
  0xe0   :  { %v618_v25 = vpop.eup %617 }
  0xe1   :  { %v515_v26 = vadd.f32 -1.0, %v618_v25 }
  0xe2   :  { %v620_v27 = vpop.eup %619 }
  0xe3   :  { %v514_v28 = vadd.f32 -1.0, %v620_v27  ;;  %v135_v29 = vmul.f32 1.3, %v515_v26 }
  0xe5   :  { %v134_v30 = vmul.f32 1.3, %v514_v28  ;;  %v137_v32 = vsel %vm122_vm3, %v118_v16, %v135_v29 }
  0xe7   :  { %v136_v31 = vsel %vm121_vm2, %v113_v19, %v134_v30 }
  0xe8   :  { %585 = vmatprep.mubr.msk.f32.mxu1 %vm147_vm1, %v136_v31 }
  0xe9   :  { %586 = vmatmul.mubr.msk.f32.vlgmr.msra.gmra.mxu1 %vm147_vm1, %v137_v32 }
  0xea   :  { %589 = vmatpush3.msra.mxu1 %v146_v33 }
  0xeb   :  { %612 = vmatprep.subr.mxu1 %v146_v33 }
 0x1a9   :  { %v587_v34 = vpop.f32.mrf.mxu1 }
 0x1aa   :  { %v230_v37 = vmul.f32 0.125, %v587_v34 }
 0x1ab   :  { %v220_v35 = vpop.f32.mrf.mxu1 }
 0x1ac   :  { %v229_v36 = vmul.f32 0.125, %v220_v35 }
 0x1ae   :  { %590 = vmatprep.mubr.msk.f32.mxu1 %vm231_vm4, %v229_v36 }
 0x1af   :  { %591 = vmatmul.mubr.msk.f32.vlgmr.msra.gmra.mxu1 %vm231_vm4, %v230_v37 }
 0x1b0   :  { %613 = vmatpush3.msra.mxu1 %v146_v33 }
 0x26f   :  { %v592_v38 = vpop.f32.mrf.mxu1 }
 0x270   :  { %v314_v39 = vsub.f32 %v137_v32, %v592_v38 }
 0x271   :  { %v304_v40 = vpop.f32.mrf.mxu1 }
 0x272   :  { %v313_v41 = vsub.f32 %v136_v31, %v304_v40  ;;  %v316_v43 = vmul.f32 %v314_v39, %v314_v39 }
 0x274   :  { %v315_v42 = vmul.f32 %v313_v41, %v313_v41 }
 0x276   :  { %609 = vmatprep.mubr.msk.f32.mxu0 %vm147_vm1, %v315_v42 }
 0x277   :  { %610 = vmatmul.mubr.msk.f32.vlgmr.msra.gmra.mxu0 %vm147_vm1, %v316_v43 }
 0x337   :  { %v611_v44 = vpop.f32.mrf.mxu0 }
 0x338   :  { %v399_v45 = vmul.f32 0.125, %v611_v44 }
 0x339   :  { %v389_v46 = vpop.f32.mrf.mxu0 }
 0x33a   :  { %v398_v47 = vmul.f32 0.125, %v389_v46  ;;  %v401_v48 = vadd.f32 1e-05, %v399_v45 }
 0x33c   :  { %v400_v49 = vadd.f32 1e-05, %v398_v47 }
 0x33e   :  { %621 = vrsqrt.f32 %v400_v49 }
 0x33f   :  { %623 = vrsqrt.f32 %v401_v48 }
 0x34b   :  { %v622_v50 = vpop.eup %621 }
 0x34c   :  { %v624_v51 = vpop.eup %623  ;;  %614 = vmatprep.mubr.msk.f32.mxu1 %vm231_vm4, %v622_v50 }
 0x34d   :  { %615 = vmatmul.mubr.msk.f32.vlgmr.msra.gmra.mxu1 %vm231_vm4, %v624_v51 }
 0x40d   :  { %v616_v52 = vpop.f32.mrf.mxu1 }
 0x40e   :  { %v486_v54 = vmul.f32 %v616_v52, %v314_v39 }
 0x40f   :  { %v476_v56 = vpop.f32.mrf.mxu1 }
 0x410   :  { %v495_v57 = vmul.f32 %v524_v53, %v486_v54  ;;  %v485_v58 = vmul.f32 %v476_v56, %v313_v41 }
 0x412   :  { %v504_v59 = vadd.f32 %v525_v55, %v495_v57  ;;  %v494_v60 = vmul.f32 %v524_v53, %v485_v58 }
 0x414   :  { %506 = vst.msk [vmem:[%s744_s7 + $0x8] sm:$0xff] %vm147_vm1, %v504_v59  ;;  %v503_v61 = vadd.f32 %v525_v55, %v494_v60 }
 0x416   :  { %505 = vst.msk [vmem:[%s744_s7] sm:$0xff] %vm147_vm1, %v503_v61 }

// kernel: decoder_layer_forward.13
= control target key start
LH: loop header
LB: loop body
LE: loop exit
PB: predicated region body
PF: predicated region fallthrough
CT: control target
= control target key end

     0   :  { %vm25_vm0 = vcmask 261120   ;;  %s157_s0 = inlined_call_operand.vmem [shape: f32[16,32], index: 0, kind: input, shape index: {}]   ;;  %s158_s1 = inlined_call_operand.vmem [shape: f32[16,32], index: 1, kind: input, shape index: {}]   ;;  %s159_s4 = inlined_call_operand.vmem [shape: f32[16,32], index: 4, kind: output, shape index: {0}]   ;;  %s160_s2 = inlined_call_operand.vmem [shape: f32[1,32], index: 2, kind: input, shape index: {}]   ;;  %s161_s3 = inlined_call_operand.vmem [shape: f32[1,32], index: 3, kind: input, shape index: {}]   ;;  %s162_s5 = inlined_call_operand.vmem [shape: f32[16,32], index: 5, kind: output, shape index: {1}]  }
   0x1   :  { %v19_v0 = vld [vmem:[%s157_s0] sm:$0xff]  ;;  %v20_v2 = vld [vmem:[%s157_s0 + $0x8] sm:$0xff] }
   0x2   :  { %v21_v1 = vld [vmem:[%s158_s1] sm:$0xff]  ;;  %v22_v4 = vld [vmem:[%s158_s1 + $0x8] sm:$0xff] }
   0x3   :  { %v23_v3 = vadd.f32 %v21_v1, %v19_v0  ;;  %v24_v5 = vadd.f32 %v22_v4, %v20_v2  ;;  %v83_v25 = vld [vmem:[%s160_s2] ss:$0 sm:$0xff] }
   0x4   :  { %v84_v27 = vld [vmem:[%s161_s3] ss:$0 sm:$0xff] }
   0x5   :  { %v28_v6 = vsel %vm25_vm0, %v23_v3, 0.0  ;;  %26 = vst.msk [vmem:[%s159_s4] sm:$0xff] %vm25_vm0, %v23_v3  ;;  %27 = vst.msk [vmem:[%s159_s4 + $0x8] sm:$0xff] %vm25_vm0, %v24_v5  ;;  %v31_v7 = vsel %vm25_vm0, %v24_v5, 0.0 }
   0x6   :  { %29 = vadd.xlane.f32.xlu0 %v28_v6 }
   0xa   :  { %32 = vadd.xlane.f32.xlu0 %v31_v7 }
  0x8f   :  { %v30_v8 = vpop.xlane.xlu0 %29 }
  0x90   :  { %v35_v9 = vmul.f32 0.03125, %v30_v8 }
  0x92   :  { %v37_v10 = vsub.f32 %v23_v3, %v35_v9 }
  0x93   :  { %v33_v11 = vpop.xlane.xlu0 %32 }
  0x94   :  { %v36_v12 = vmul.f32 0.03125, %v33_v11  ;;  %v39_v13 = vmul.f32 %v37_v10, %v37_v10 }
  0x96   :  { %v38_v14 = vsub.f32 %v24_v5, %v36_v12  ;;  %v41_v15 = vsel %vm25_vm0, %v39_v13, 0.0 }
  0x97   :  { %42 = vadd.xlane.f32.xlu1 %v41_v15 }
  0x98   :  { %v40_v16 = vmul.f32 %v38_v14, %v38_v14 }
  0x9a   :  { %v44_v17 = vsel %vm25_vm0, %v40_v16, 0.0 }
  0x9b   :  { %45 = vadd.xlane.f32.xlu1 %v44_v17 }
 0x120   :  { %v43_v18 = vpop.xlane.xlu1 %42 }
 0x121   :  { %v47_v19 = vmul.f32 0.03125, %v43_v18 }
 0x123   :  { %v49_v20 = vadd.f32 1e-05, %v47_v19 }
 0x124   :  { %v46_v21 = vpop.xlane.xlu1 %45 }
 0x125   :  { %85 = vrsqrt.f32 %v49_v20  ;;  %v48_v22 = vmul.f32 0.03125, %v46_v21 }
 0x127   :  { %v50_v23 = vadd.f32 1e-05, %v48_v22 }
 0x129   :  { %87 = vrsqrt.f32 %v50_v23 }
 0x132   :  { %v86_v24 = vpop.eup %85 }
 0x133   :  { %v53_v26 = vmul.f32 %v86_v24, %v37_v10 }
 0x135   :  { %v62_v28 = vmul.f32 %v83_v25, %v53_v26 }
 0x136   :  { %v88_v29 = vpop.eup %87 }
 0x137   :  { %v71_v30 = vadd.f32 %v84_v27, %v62_v28  ;;  %v54_v31 = vmul.f32 %v88_v29, %v38_v14 }
 0x139   :  { %73 = vst.msk [vmem:[%s162_s5] sm:$0xff] %vm25_vm0, %v71_v30  ;;  %v63_v32 = vmul.f32 %v83_v25, %v54_v31 }
 0x13b   :  { %v72_v33 = vadd.f32 %v84_v27, %v63_v32 }
 0x13d   :  { %74 = vst.msk [vmem:[%s162_s5 + $0x8] sm:$0xff] %vm25_vm0, %v72_v33 }

// kernel: decoder_layer_forward.15
= control target key start
LH: loop header
LB: loop body
LE: loop exit
PB: predicated region body
PF: predicated region fallthrough
CT: control target
= control target key end

     0   :  { %vm41_vm0 = vcmask 261120   ;;  %vm181_vm1 = vcmask 523264   ;;  %vm283_vm6 = vcmask 64512   ;;  %s972_s1 = inlined_call_operand.vmem [shape: f32[32,64], index: 1, kind: input, shape index: {}]   ;;  %s973_s0 = inlined_call_operand.vmem [shape: f32[32,32], index: 0, kind: input, shape index: {}]   ;;  %s974_s5 = inlined_call_operand.vmem [shape: f32[64,8], index: 5, kind: input, shape index: {}]   ;;  %s975_s6 = inlined_call_operand.vmem [shape: f32[8,64], index: 6, kind: input, shape index: {}]   ;;  %s976_s2 = inlined_call_operand.vmem [shape: f32[1,64], index: 2, kind: input, shape index: {}]   ;;  %s977_s3 = inlined_call_operand.vmem [shape: f32[1,64], index: 3, kind: input, shape index: {}]   ;;  %s978_s4 = inlined_call_operand.vmem [shape: f32[1,64], index: 4, kind: input, shape index: {}]   ;;  %s979_s7 = inlined_call_operand.vmem [shape: f32[32,64], index: 7, kind: output, shape index: {}]  }
   0x1   :  { %v33_v0 = vld [vmem:[%s972_s1 + $0x18] sm:$0xff]  ;;  %v32_v1 = vld [vmem:[%s972_s1 + $0x10] sm:$0xff]  ;;  %v26_v2 = vld [vmem:[%s973_s0] sm:$0xff] }
   0x2   :  { %698 = vmatprep.subr.mxu0 %v33_v0  ;;  %v31_v3 = vld [vmem:[%s972_s1 + $0x8] sm:$0xff]  ;;  %706 = vmatprep.mubr.msk.f32.mxu0 %vm41_vm0, %v26_v2  ;;  %v30_v4 = vld [vmem:[%s972_s1] sm:$0xff]  ;;  %v28_v6 = vld [vmem:[%s973_s0 + $0x10] sm:$0xff] }
   0x3   :  { %699 = vmatpush3.msra.mxu0 %v33_v0  ;;  %v27_v5 = vld [vmem:[%s973_s0 + $0x8] sm:$0xff]  ;;  %v29_v7 = vld [vmem:[%s973_s0 + $0x18] sm:$0xff]  ;;  %v865_v9 = vld [vmem:[%s974_s5 + $0x30] sm:$0xff] }
   0x4   :  { %700 = vmatprep.subr.mxu0 %v32_v1  ;;  %v859_v8 = vld [vmem:[%s974_s5 + $0x38] sm:$0xff]  ;;  %v871_v10 = vld [vmem:[%s974_s5 + $0x28] sm:$0xff]  ;;  %v878_v11 = vld [vmem:[%s974_s5 + $0x20] sm:$0xff] }
   0x5   :  { %701 = vmatpush3.msra.mxu0 %v32_v1  ;;  %712 = vmatprep.subr.mxu1 %v859_v8  ;;  %v885_v12 = vld [vmem:[%s974_s5 + $0x18] sm:$0xff]  ;;  %v892_v13 = vld [vmem:[%s974_s5 + $0x10] sm:$0xff]  ;;  %v899_v14 = vld [vmem:[%s974_s5 + $0x8] sm:$0xff] }
   0x6   :  { %702 = vmatprep.subr.mxu0 %v31_v3  ;;  %713 = vmatpush3.msra.mxu1 %v859_v8  ;;  %v906_v15 = vld [vmem:[%s974_s5] sm:$0xff] }
   0x7   :  { %703 = vmatpush3.msra.mxu0 %v31_v3  ;;  %714 = vmatprep.subr.mxu1 %v865_v9  ;;  %v180_v16 = vld [vmem:[%s975_s6] sm:$0xff] }
   0x8   :  { %704 = vmatprep.subr.mxu0 %v30_v4  ;;  %715 = vmatpush3.msra.mxu1 %v865_v9  ;;  %v629_v17 = vld [vmem:[%s976_s2] ss:$0 sm:$0xff] }
   0x9   :  { %705 = vmatpush3.msra.mxu0 %v30_v4  ;;  %716 = vmatprep.subr.mxu1 %v871_v10 }
   0xa   :  { %707 = vmatmul.mubr.msk.f32.vlgmr.msra.gmra.mxu0 %vm41_vm0, %v27_v5  ;;  %717 = vmatpush3.msra.mxu1 %v871_v10 }
   0xb   :  { %709 = vmatprep.mubr.msk.f32.mxu0 %vm41_vm0, %v28_v6  ;;  %718 = vmatprep.subr.mxu1 %v878_v11 }
   0xc   :  { %719 = vmatpush3.msra.mxu1 %v878_v11  ;;  %734 = vmatprep.subr.mxu0 %v180_v16 }
   0xd   :  { %720 = vmatprep.subr.mxu1 %v885_v12  ;;  %735 = vmatpush3.msra.mxu0 %v180_v16 }
   0xe   :  { %710 = vmatmul.mubr.msk.f32.gmra.mxu0 %vm41_vm0, %v29_v7  ;;  %721 = vmatpush3.msra.mxu1 %v885_v12 }
   0xf   :  { %722 = vmatprep.subr.mxu1 %v892_v13  ;;  %742 = vmatprep.subr.mxu0 %v859_v8 }
  0x10   :  { %723 = vmatpush3.msra.mxu1 %v892_v13 }
  0x11   :  { %724 = vmatprep.subr.mxu1 %v899_v14 }
  0x12   :  { %725 = vmatpush3.msra.mxu1 %v899_v14 }
  0x13   :  { %726 = vmatprep.subr.mxu1 %v906_v15 }
  0x14   :  { %727 = vmatpush3.msra.mxu1 %v906_v15 }
  0x15   :  { %764 = vmatprep.subr.mxu1 %v180_v16 }
  0xca   :  { %v708_v18 = vpop.f32.mrf.mxu0 }
  0xcb   :  { %v126_v19 = vadd.f32 %v708_v18, %v629_v17 }
  0xcc   :  { %v120_v20 = vpop.f32.mrf.mxu0 }
  0xcd   :  { %v144_v21 = vmin.f32 %v126_v19, 0.0  ;;  %v121_v22 = vadd.f32 %v629_v17, %v120_v20  ;;  %vm140_vm3 = vcmp.gt.f32.partialorder %v126_v19, 0.0 }
  0xce   :  { %v711_v23 = vpop.f32.mrf.mxu0 }
  0xcf   :  { %v149_v24 = vmul.f32 0.7692308, %v144_v21  ;;  %v143_v25 = vmin.f32 %v121_v22, 0.0  ;;  %v136_v26 = vadd.f32 %v711_v23, %v629_v17  ;;  %vm139_vm2 = vcmp.gt.f32.partialorder %v121_v22, 0.0 }
  0xd0   :  { %v130_v27 = vpop.f32.mrf.mxu0 }
  0xd1   :  { %v154_v28 = vmul.f32 1.442695, %v149_v24  ;;  %v148_v29 = vmul.f32 0.7692308, %v143_v25  ;;  %v146_v30 = vmin.f32 %v136_v26, 0.0  ;;  %v131_v31 = vadd.f32 %v629_v17, %v130_v27 }
  0xd2   :  { %vm142_vm5 = vcmp.gt.f32.partialorder %v136_v26, 0.0  ;;  %v654_v27 = vld [vmem:[%s977_s3] ss:$0 sm:$0xff] }
  0xd3   :  { %772 = vpow2.f32 %v154_v28  ;;  %v152_v32 = vmul.f32 1.442695, %v148_v29  ;;  %v151_v33 = vmul.f32 0.7692308, %v146_v30  ;;  %v145_v34 = vmin.f32 %v131_v31, 0.0 }
  0xd4   :  { %vm141_vm4 = vcmp.gt.f32.partialorder %v131_v31, 0.0  ;;  %v655_v29 = vld [vmem:[%s978_s4] ss:$0 sm:$0xff] }
  0xd5   :  { %774 = vpow2.f32 %v152_v32  ;;  %v158_v35 = vmul.f32 1.442695, %v151_v33  ;;  %v150_v36 = vmul.f32 0.7692308, %v145_v34 }
  0xd7   :  { %776 = vpow2.f32 %v158_v35  ;;  %v156_v37 = vmul.f32 1.442695, %v150_v36 }
  0xd9   :  { %778 = vpow2.f32 %v156_v37 }
  0xe0   :  { %v773_v38 = vpop.eup %772 }
  0xe1   :  { %v635_v39 = vadd.f32 -1.0, %v773_v38 }
  0xe2   :  { %v775_v40 = vpop.eup %774 }
  0xe3   :  { %v634_v41 = vadd.f32 -1.0, %v775_v40  ;;  %v165_v43 = vmul.f32 1.3, %v635_v39 }
  0xe4   :  { %v777_v42 = vpop.eup %776 }
  0xe5   :  { %v164_v44 = vmul.f32 1.3, %v634_v41  ;;  %v637_v45 = vadd.f32 -1.0, %v777_v42  ;;  %v169_v48 = vsel %vm140_vm3, %v126_v19, %v165_v43 }
  0xe6   :  { %v779_v46 = vpop.eup %778 }
  0xe7   :  { %v168_v47 = vsel %vm139_vm2, %v121_v22, %v164_v44  ;;  %v636_v49 = vadd.f32 -1.0, %v779_v46  ;;  %v167_v50 = vmul.f32 1.3, %v637_v45 }
  0xe8   :  { %728 = vmatprep.mubr.msk.f32.mxu1 %vm181_vm1, %v168_v47 }
  0xe9   :  { %729 = vmatmul.mubr.msk.f32.vlgmr.msra.gmra.mxu1 %vm181_vm1, %v169_v48  ;;  %v166_v51 = vmul.f32 1.3, %v636_v49  ;;  %v171_v53 = vsel %vm142_vm5, %v136_v26, %v167_v50 }
  0xea   :  { %765 = vmatpush3.msra.mxu1 %v180_v16 }
  0xeb   :  { %v170_v52 = vsel %vm141_vm4, %v131_v31, %v166_v51 }
  0xec   :  { %731 = vmatprep.mubr.msk.f32.mxu1 %vm181_vm1, %v170_v52 }
  0xed   :  { %732 = vmatmul.mubr.msk.f32.gmra.mxu1 %vm181_vm1, %v171_v53 }
 0x1a9   :  { %v730_v54 = vpop.f32.mrf.mxu1 }
 0x1aa   :  { %v280_v57 = vmul.f32 0.125, %v730_v54 }
 0x1ab   :  { %v260_v55 = vpop.f32.mrf.mxu1 }
 0x1ac   :  { %v279_v56 = vmul.f32 0.125, %v260_v55 }
 0x1ad   :  { %v733_v58 = vpop.f32.mrf.mxu1 }
 0x1ae   :  { %736 = vmatprep.mubr.msk.f32.mxu0 %vm283_vm6, %v279_v56  ;;  %v282_v61 = vmul.f32 0.125, %v733_v58 }
 0x1af   :  { %737 = vmatmul.mubr.msk.f32.vlgmr.msra.gmra.mxu0 %vm283_vm6, %v280_v57  ;;  %v270_v59 = vpop.f32.mrf.mxu1 }
 0x1b0   :  { %743 = vmatpush3.msra.mxu0 %v859_v8  ;;  %v281_v60 = vmul.f32 0.125, %v270_v59 }
 0x1b1   :  { %744 = vmatprep.subr.mxu0 %v865_v9 }
 0x1b2   :  { %745 = vmatpush3.msra.mxu0 %v865_v9  ;;  %739 = vmatprep.mubr.msk.f32.mxu0 %vm283_vm6, %v281_v60 }
 0x1b3   :  { %746 = vmatprep.subr.mxu0 %v871_v10  ;;  %740 = vmatmul.mubr.msk.f32.gmra.mxu0 %vm283_vm6, %v282_v61 }
 0x1b4   :  { %747 = vmatpush3.msra.mxu0 %v871_v10 }
 0x1b5   :  { %748 = vmatprep.subr.mxu0 %v878_v11 }
 0x1b6   :  { %749 = vmatpush3.msra.mxu0 %v878_v11 }
 0x1b7   :  { %750 = vmatprep.subr.mxu0 %v885_v12 }
 0x1b8   :  { %751 = vmatpush3.msra.mxu0 %v885_v12 }
 0x1b9   :  { %752 = vmatprep.subr.mxu0 %v892_v13 }
 0x1ba   :  { %753 = vmatpush3.msra.mxu0 %v892_v13 }
 0x1bb   :  { %754 = vmatprep.subr.mxu0 %v899_v14 }
 0x1bc   :  { %755 = vmatpush3.msra.mxu0 %v899_v14 }
 0x1bd   :  { %756 = vmatprep.subr.mxu0 %v906_v15 }
 0x1be   :  { %757 = vmatpush3.msra.mxu0 %v906_v15 }
 0x26f   :  { %v738_v62 = vpop.f32.mrf.mxu0 }
 0x270   :  { %v382_v63 = vsub.f32 %v169_v48, %v738_v62 }
 0x271   :  { %v362_v0 = vpop.f32.mrf.mxu0 }
 0x272   :  { %v381_v1 = vsub.f32 %v168_v47, %v362_v0  ;;  %v386_v4 = vmul.f32 %v382_v63, %v382_v63 }
 0x273   :  { %v741_v3 = vpop.f32.mrf.mxu0 }
 0x274   :  { %v385_v2 = vmul.f32 %v381_v1, %v381_v1  ;;  %v384_v5 = vsub.f32 %v171_v53, %v741_v3 }
 0x275   :  { %v372_v6 = vpop.f32.mrf.mxu0 }
 0x276   :  { %758 = vmatprep.mubr.msk.f32.mxu0 %vm181_vm1, %v385_v2  ;;  %v383_v7 = vsub.f32 %v170_v52, %v372_v6  ;;  %v388_v9 = vmul.f32 %v384_v5, %v384_v5 }
 0x277   :  { %759 = vmatmul.mubr.msk.f32.vlgmr.msra.gmra.mxu0 %vm181_vm1, %v386_v4 }
 0x278   :  { %v387_v8 = vmul.f32 %v383_v7, %v383_v7 }
 0x27a   :  { %761 = vmatprep.mubr.msk.f32.mxu0 %vm181_vm1, %v387_v8 }
 0x27b   :  { %762 = vmatmul.mubr.msk.f32.gmra.mxu0 %vm181_vm1, %v388_v9 }
 0x337   :  { %v760_v10 = vpop.f32.mrf.mxu0 }
 0x338   :  { %v487_v11 = vmul.f32 0.125, %v760_v10 }
 0x339   :  { %v467_v12 = vpop.f32.mrf.mxu0 }
 0x33a   :  { %v486_v13 = vmul.f32 0.125, %v467_v12  ;;  %v491_v14 = vadd.f32 1e-05, %v487_v11 }
 0x33b   :  { %v763_v16 = vpop.f32.mrf.mxu0 }
 0x33c   :  { %v490_v15 = vadd.f32 1e-05, %v486_v13  ;;  %v489_v17 = vmul.f32 0.125, %v763_v16 }
 0x33d   :  { %v477_v18 = vpop.f32.mrf.mxu0 }
 0x33e   :  { %780 = vrsqrt.f32 %v490_v15  ;;  %v488_v19 = vmul.f32 0.125, %v477_v18  ;;  %v493_v20 = vadd.f32 1e-05, %v489_v17 }
 0x33f   :  { %782 = vrsqrt.f32 %v491_v14 }
 0x340   :  { %v492_v21 = vadd.f32 1e-05, %v488_v19 }
 0x342   :  { %784 = vrsqrt.f32 %v492_v21 }
 0x343   :  { %786 = vrsqrt.f32 %v493_v20 }
 0x34b   :  { %v781_v22 = vpop.eup %780 }
 0x34c   :  { %v783_v23 = vpop.eup %782  ;;  %766 = vmatprep.mubr.msk.f32.mxu1 %vm283_vm6, %v781_v22 }
 0x34d   :  { %767 = vmatmul.mubr.msk.f32.vlgmr.msra.gmra.mxu1 %vm283_vm6, %v783_v23 }
 0x34f   :  { %v785_v24 = vpop.eup %784 }
 0x350   :  { %v787_v25 = vpop.eup %786  ;;  %769 = vmatprep.mubr.msk.f32.mxu1 %vm283_vm6, %v785_v24 }
 0x351   :  { %770 = vmatmul.mubr.msk.f32.gmra.mxu1 %vm283_vm6, %v787_v25 }
 0x40d   :  { %v768_v26 = vpop.f32.mrf.mxu1 }
 0x40e   :  { %v596_v28 = vmul.f32 %v768_v26, %v382_v63 }
 0x40f   :  { %v576_v30 = vpop.f32.mrf.mxu1 }
 0x410   :  { %v607_v31 = vmul.f32 %v654_v27, %v596_v28  ;;  %v595_v32 = vmul.f32 %v576_v30, %v381_v1 }
 0x411   :  { %v771_v35 = vpop.f32.mrf.mxu1 }
 0x412   :  { %v618_v33 = vadd.f32 %v655_v29, %v607_v31  ;;  %v606_v34 = vmul.f32 %v654_v27, %v595_v32  ;;  %v598_v36 = vmul.f32 %v771_v35, %v384_v5 }
 0x413   :  { %v586_v38 = vpop.f32.mrf.mxu1 }
 0x414   :  { %622 = vst.msk [vmem:[%s979_s7 + $0x8] sm:$0xff] %vm181_vm1, %v618_v33  ;;  %v617_v37 = vadd.f32 %v655_v29, %v606_v34  ;;  %v609_v39 = vmul.f32 %v654_v27, %v598_v36  ;;  %v597_v40 = vmul.f32 %v586_v38, %v383_v7 }
 0x416   :  { %621 = vst.msk [vmem:[%s979_s7] sm:$0xff] %vm181_vm1, %v617_v37  ;;  %v620_v41 = vadd.f32 %v655_v29, %v609_v39  ;;  %v608_v42 = vmul.f32 %v654_v27, %v597_v40 }
 0x418   :  { %624 = vst.msk [vmem:[%s979_s7 + $0x18] sm:$0xff] %vm181_vm1, %v620_v41  ;;  %v619_v43 = vadd.f32 %v655_v29, %v608_v42 }
 0x41a   :  { %623 = vst.msk [vmem:[%s979_s7 + $0x10] sm:$0xff] %vm181_vm1, %v619_v43 }

// kernel: decoder_layer_forward.18
= control target key start
LH: loop header
LB: loop body
LE: loop exit
PB: predicated region body
PF: predicated region fallthrough
CT: control target
= control target key end

     0   :  { %vm38_vm0 = vcmask 261120   ;;  %s411_s3 = inlined_call_operand.vmem [shape: f32[32,32], index: 3, kind: input, shape index: {}]   ;;  %s412_s2 = inlined_call_operand.vmem [shape: f32[32,32], index: 2, kind: input, shape index: {}]   ;;  %s413_s1 = inlined_call_operand.vmem [shape: f32[16,32], index: 1, kind: input, shape index: {}]   ;;  %s414_s0 = inlined_call_operand.vmem [shape: f32[16,32], index: 0, kind: input, shape index: {}]   ;;  %s415_s4 = inlined_call_operand.vmem [shape: f32[1,32], index: 4, kind: input, shape index: {}]   ;;  %s416_s5 = inlined_call_operand.vmem [shape: f32[1,32], index: 5, kind: input, shape index: {}]   ;;  %s417_s6 = inlined_call_operand.vmem [shape: f32[1,32], index: 6, kind: input, shape index: {}]   ;;  %s418_s7 = inlined_call_operand.vmem [shape: f32[16,32], index: 7, kind: output, shape index: {}]  }
   0x1   :  { %v37_v0 = vld [vmem:[%s411_s3 + $0x18] sm:$0xff]  ;;  %v36_v2 = vld [vmem:[%s411_s3 + $0x10] sm:$0xff]  ;;  %v35_v4 = vld [vmem:[%s411_s3 + $0x8] sm:$0xff] }
   0x2   :  { %v33_v1 = vld [vmem:[%s412_s2 + $0x18] sm:$0xff]  ;;  %284 = vmatprep.subr.mxu0 %v37_v0  ;;  %v32_v3 = vld [vmem:[%s412_s2 + $0x10] sm:$0xff]  ;;  %v31_v5 = vld [vmem:[%s412_s2 + $0x8] sm:$0xff] }
   0x3   :  { %295 = vmatprep.subr.mxu1 %v33_v1  ;;  %285 = vmatpush3.msra.mxu0 %v37_v0  ;;  %v34_v6 = vld [vmem:[%s411_s3] sm:$0xff]  ;;  %v27_v10 = vld [vmem:[%s413_s1 + $0x8] sm:$0xff] }
   0x4   :  { %296 = vmatpush3.msra.mxu1 %v33_v1  ;;  %286 = vmatprep.subr.mxu0 %v36_v2  ;;  %v30_v7 = vld [vmem:[%s412_s2] sm:$0xff]  ;;  %v29_v11 = vld [vmem:[%s414_s0 + $0x8] sm:$0xff] }
   0x5   :  { %297 = vmatprep.subr.mxu1 %v32_v3  ;;  %287 = vmatpush3.msra.mxu0 %v36_v2  ;;  %v26_v8 = vld [vmem:[%s413_s1] sm:$0xff] }
   0x6   :  { %298 = vmatpush3.msra.mxu1 %v32_v3  ;;  %288 = vmatprep.subr.mxu0 %v35_v4  ;;  %v28_v9 = vld [vmem:[%s414_s0] sm:$0xff] }
   0x7   :  { %299 = vmatprep.subr.mxu1 %v31_v5  ;;  %289 = vmatpush3.msra.mxu0 %v35_v4  ;;  %v269_v14 = vld [vmem:[%s415_s4] ss:$0 sm:$0xff] }
   0x8   :  { %300 = vmatpush3.msra.mxu1 %v31_v5  ;;  %290 = vmatprep.subr.mxu0 %v34_v6  ;;  %v270_v44 = vld [vmem:[%s416_s5] ss:$0 sm:$0xff] }
   0x9   :  { %301 = vmatprep.subr.mxu1 %v30_v7  ;;  %291 = vmatpush3.msra.mxu0 %v34_v6  ;;  %v271_v46 = vld [vmem:[%s417_s6] ss:$0 sm:$0xff] }
   0xa   :  { %292 = vmatprep.mubr.msk.f32.mxu0 %vm38_vm0, %v26_v8  ;;  %302 = vmatpush3.msra.mxu1 %v30_v7 }
   0xb   :  { %303 = vmatprep.mubr.msk.f32.mxu1 %vm38_vm0, %v28_v9  ;;  %293 = vmatmul.mubr.msk.f32.vlgmr.msra.gmra.mxu0 %vm38_vm0, %v27_v10 }
   0xc   :  { %304 = vmatmul.mubr.msk.f32.vlgmr.msra.gmra.mxu1 %vm38_vm0, %v29_v11 }
  0xcb   :  { %v294_v12 = vpop.f32.mrf.mxu0 }
  0xcc   :  { %v305_v13 = vpop.f32.mrf.mxu1 }
  0xcd   :  { %v198_v15 = vadd.f32 %v305_v13, %v294_v12  ;;  %v111_v16 = vpop.f32.mrf.mxu0 }
  0xce   :  { %v192_v17 = vpop.f32.mrf.mxu1 }
  0xcf   :  { %v209_v18 = vadd.f32 %v269_v14, %v198_v15  ;;  %v193_v19 = vadd.f32 %v192_v17, %v111_v16 }
  0xd1   :  { %v208_v20 = vadd.f32 %v269_v14, %v193_v19  ;;  %v211_v21 = vmax.f32 %v209_v18, 0.0 }
  0xd3   :  { %v210_v22 = vmax.f32 %v208_v20, 0.0  ;;  %v213_v25 = vadd.f32 %v211_v21, %v27_v10 }
  0xd5   :  { %v212_v23 = vadd.f32 %v210_v22, %v26_v8  ;;  %v217_v26 = vsel %vm38_vm0, %v213_v25, 0.0 }
  0xd7   :  { %v214_v24 = vsel %vm38_vm0, %v212_v23, 0.0 }
  0xd8   :  { %215 = vadd.xlane.f32.xlu0 %v214_v24 }
  0xdc   :  { %218 = vadd.xlane.f32.xlu0 %v217_v26 }
 0x161   :  { %v216_v27 = vpop.xlane.xlu0 %215 }
 0x162   :  { %v221_v28 = vmul.f32 0.03125, %v216_v27 }
 0x164   :  { %v223_v29 = vsub.f32 %v212_v23, %v221_v28 }
 0x165   :  { %v219_v30 = vpop.xlane.xlu0 %218 }
 0x166   :  { %v222_v31 = vmul.f32 0.03125, %v219_v30  ;;  %v225_v32 = vmul.f32 %v223_v29, %v223_v29 }
 0x168   :  { %v224_v33 = vsub.f32 %v213_v25, %v222_v31  ;;  %v227_v34 = vsel %vm38_vm0, %v225_v32, 0.0 }
 0x169   :  { %228 = vadd.xlane.f32.xlu1 %v227_v34 }
 0x16a   :  { %v226_v35 = vmul.f32 %v224_v33, %v224_v33 }
 0x16c   :  { %v230_v36 = vsel %vm38_vm0, %v226_v35, 0.0 }
 0x16d   :  { %231 = vadd.xlane.f32.xlu1 %v230_v36 }
 0x1f2   :  { %v229_v37 = vpop.xlane.xlu1 %228 }
 0x1f3   :  { %v233_v38 = vmul.f32 0.03125, %v229_v37 }
 0x1f5   :  { %v235_v39 = vadd.f32 1e-05, %v233_v38 }
 0x1f6   :  { %v232_v40 = vpop.xlane.xlu1 %231 }
 0x1f7   :  { %306 = vrsqrt.f32 %v235_v39  ;;  %v234_v41 = vmul.f32 0.03125, %v232_v40 }
 0x1f9   :  { %v236_v42 = vadd.f32 1e-05, %v234_v41 }
 0x1fb   :  { %308 = vrsqrt.f32 %v236_v42 }
 0x204   :  { %v307_v43 = vpop.eup %306 }
 0x205   :  { %v239_v45 = vmul.f32 %v307_v43, %v223_v29 }
 0x207   :  { %v248_v47 = vmul.f32 %v270_v44, %v239_v45 }
 0x208   :  { %v309_v48 = vpop.eup %308 }
 0x209   :  { %v257_v49 = vadd.f32 %v271_v46, %v248_v47  ;;  %v240_v50 = vmul.f32 %v309_v48, %v224_v33 }
 0x20b   :  { %259 = vst.msk [vmem:[%s418_s7] sm:$0xff] %vm38_vm0, %v257_v49  ;;  %v249_v51 = vmul.f32 %v270_v44, %v240_v50 }
 0x20d   :  { %v258_v52 = vadd.f32 %v271_v46, %v249_v51 }
 0x20f   :  { %260 = vst.msk [vmem:[%s418_s7 + $0x8] sm:$0xff] %vm38_vm0, %v258_v52 }

// kernel: decoder_layer_forward.17
= control target key start
LH: loop header
LB: loop body
LE: loop exit
PB: predicated region body
PF: predicated region fallthrough
CT: control target
= control target key end

     0   :  { %vm23_vm0 = vcmask 261120   ;;  %s136_s0 = inlined_call_operand.vmem [shape: f32[16,32], index: 0, kind: input, shape index: {}]   ;;  %s137_s1 = inlined_call_operand.vmem [shape: f32[16,32], index: 1, kind: input, shape index: {}]   ;;  %s138_s2 = inlined_call_operand.vmem [shape: f32[1,32], index: 2, kind: input, shape index: {}]   ;;  %s139_s3 = inlined_call_operand.vmem [shape: f32[1,32], index: 3, kind: input, shape index: {}]   ;;  %s140_s4 = inlined_call_operand.vmem [shape: f32[16,32], index: 4, kind: output, shape index: {}]  }
   0x1   :  { %v17_v0 = vld [vmem:[%s136_s0] sm:$0xff]  ;;  %v18_v2 = vld [vmem:[%s136_s0 + $0x8] sm:$0xff] }
   0x2   :  { %v19_v1 = vld [vmem:[%s137_s1] sm:$0xff]  ;;  %v20_v4 = vld [vmem:[%s137_s1 + $0x8] sm:$0xff] }
   0x3   :  { %v21_v3 = vadd.f32 %v19_v1, %v17_v0  ;;  %v22_v5 = vadd.f32 %v20_v4, %v18_v2  ;;  %v75_v25 = vld [vmem:[%s138_s2] ss:$0 sm:$0xff] }
   0x4   :  { %v76_v27 = vld [vmem:[%s139_s3] ss:$0 sm:$0xff] }
   0x5   :  { %v24_v6 = vsel %vm23_vm0, %v21_v3, 0.0  ;;  %v27_v7 = vsel %vm23_vm0, %v22_v5, 0.0 }
   0x6   :  { %25 = vadd.xlane.f32.xlu0 %v24_v6 }
   0xa   :  { %28 = vadd.xlane.f32.xlu0 %v27_v7 }
  0x8f   :  { %v26_v8 = vpop.xlane.xlu0 %25 }
  0x90   :  { %v31_v9 = vmul.f32 0.03125, %v26_v8 }
  0x92   :  { %v33_v10 = vsub.f32 %v21_v3, %v31_v9 }
  0x93   :  { %v29_v11 = vpop.xlane.xlu0 %28 }
  0x94   :  { %v32_v12 = vmul.f32 0.03125, %v29_v11  ;;  %v35_v13 = vmul.f32 %v33_v10, %v33_v10 }
  0x96   :  { %v34_v14 = vsub.f32 %v22_v5, %v32_v12  ;;  %v37_v15 = vsel %vm23_vm0, %v35_v13, 0.0 }
  0x97   :  { %38 = vadd.xlane.f32.xlu1 %v37_v15 }
  0x98   :  { %v36_v16 = vmul.f32 %v34_v14, %v34_v14 }
  0x9a   :  { %v40_v17 = vsel %vm23_vm0, %v36_v16, 0.0 }
  0x9b   :  { %41 = vadd.xlane.f32.xlu1 %v40_v17 }
 0x120   :  { %v39_v18 = vpop.xlane.xlu1 %38 }
 0x121   :  { %v43_v19 = vmul.f32 0.03125, %v39_v18 }
 0x123   :  { %v45_v20 = vadd.f32 1e-05, %v43_v19 }
 0x124   :  { %v42_v21 = vpop.xlane.xlu1 %41 }
 0x125   :  { %77 = vrsqrt.f32 %v45_v20  ;;  %v44_v22 = vmul.f32 0.03125, %v42_v21 }
 0x127   :  { %v46_v23 = vadd.f32 1e-05, %v44_v22 }
 0x129   :  { %79 = vrsqrt.f32 %v46_v23 }
 0x132   :  { %v78_v24 = vpop.eup %77 }
 0x133   :  { %v49_v26 = vmul.f32 %v78_v24, %v33_v10 }
 0x135   :  { %v58_v28 = vmul.f32 %v75_v25, %v49_v26 }
 0x136   :  { %v80_v29 = vpop.eup %79 }
 0x137   :  { %v67_v30 = vadd.f32 %v76_v27, %v58_v28  ;;  %v50_v31 = vmul.f32 %v80_v29, %v34_v14 }
 0x139   :  { %69 = vst.msk [vmem:[%s140_s4] sm:$0xff] %vm23_vm0, %v67_v30  ;;  %v59_v32 = vmul.f32 %v75_v25, %v50_v31 }
 0x13b   :  { %v68_v33 = vadd.f32 %v76_v27, %v59_v32 }
 0x13d   :  { %70 = vst.msk [vmem:[%s140_s4 + $0x8] sm:$0xff] %vm23_vm0, %v68_v33 }

// kernel: decoder_layer_forward.19
= control target key start
LH: loop header
LB: loop body
LE: loop exit
PB: predicated region body
PF: predicated region fallthrough
CT: control target
= control target key end

     0   :  { %vm40_vm0 = vcmask 261120   ;;  %s532_s0 = inlined_call_operand.vmem [shape: f32[16,32], index: 0, kind: input, shape index: {}]   ;;  %s533_s1 = inlined_call_operand.vmem [shape: f32[32,128], index: 1, kind: input, shape index: {}]   ;;  %s534_s2 = inlined_call_operand.vmem [shape: f32[1,128], index: 2, kind: input, shape index: {}]   ;;  %s535_s3 = inlined_call_operand.vmem [shape: f32[128,32], index: 3, kind: input, shape index: {}]   ;;  %s536_s4 = inlined_call_operand.vmem [shape: f32[1,32], index: 4, kind: input, shape index: {}]   ;;  %s537_s5 = inlined_call_operand.vmem [shape: f32[1,32], index: 5, kind: input, shape index: {}]   ;;  %s538_s6 = inlined_call_operand.vmem [shape: f32[1,32], index: 6, kind: input, shape index: {}]   ;;  %s539_s7 = inlined_call_operand.hbm [shape: f32[16,32], index: 7, kind: output, shape index: {}]  }
   0x1   :  { %v32_v0 = vld [vmem:[%s533_s1 + $0x18] sm:$0xff]  ;;  %v31_v1 = vld [vmem:[%s533_s1 + $0x10] sm:$0xff]  ;;  %v444_v2 = vld [vmem:[%s532_s0] sm:$0xff] }
   0x2   :  { %317 = vmatprep.subr.mxu0 %v32_v0  ;;  %v30_v3 = vld [vmem:[%s533_s1 + $0x8] sm:$0xff]  ;;  %325 = vmatprep.mubr.msk.f32.mxu0 %vm40_vm0, %v444_v2  ;;  %v139_v4 = vld [vmem:[%s535_s3 + $0x78] sm:$0xff]  ;;  %v138_v5 = vld [vmem:[%s535_s3 + $0x70] sm:$0xff] }
   0x3   :  { %318 = vmatpush3.msra.mxu0 %v32_v0  ;;  %328 = vmatprep.subr.mxu1 %v139_v4  ;;  %v29_v6 = vld [vmem:[%s533_s1] sm:$0xff]  ;;  %v137_v7 = vld [vmem:[%s535_s3 + $0x68] sm:$0xff] }
   0x4   :  { %319 = vmatprep.subr.mxu0 %v31_v1  ;;  %329 = vmatpush3.msra.mxu1 %v139_v4  ;;  %v466_v8 = vld [vmem:[%s532_s0 + $0x8] sm:$0xff]  ;;  %v136_v9 = vld [vmem:[%s535_s3 + $0x60] sm:$0xff] }
   0x5   :  { %320 = vmatpush3.msra.mxu0 %v31_v1  ;;  %330 = vmatprep.subr.mxu1 %v138_v5 }
   0x6   :  { %321 = vmatprep.subr.mxu0 %v30_v3  ;;  %331 = vmatpush3.msra.mxu1 %v138_v5 }
   0x7   :  { %322 = vmatpush3.msra.mxu0 %v30_v3 }
   0x8   :  { %12 = vsyncpa [#allocation3], 0  ;;  %323 = vmatprep.subr.mxu0 %v29_v6  ;;  %332 = vmatprep.subr.mxu1 %v137_v7  ;;  %v135_v10 = vld [vmem:[%s535_s3 + $0x58] sm:$0xff]  ;;  %v134_v11 = vld [vmem:[%s535_s3 + $0x50] sm:$0xff]  ;;  %s392_s23 = smov [#allocation2]  }
   0x9   :  { %324 = vmatpush3.msra.mxu0 %v29_v6  ;;  %333 = vmatpush3.msra.mxu1 %v137_v7  ;;  %v133_v12 = vld [vmem:[%s535_s3 + $0x48] sm:$0xff]  ;;  %v132_v13 = vld [vmem:[%s535_s3 + $0x40] sm:$0xff]  ;;  %v131_v14 = vld [vmem:[%s535_s3 + $0x38] sm:$0xff]  ;;  %s276_s24 = sshll.u32 %s392_s23, 4  ;;  %s277_s24 = int_to_ptr.vmem [resolvable:$true] %s276_s24 }
   0xa   :  { %326 = vmatmul.mubr.msk.f32.vlgmr.msra.gmra.mxu0 %vm40_vm0, %v466_v8  ;;  %334 = vmatprep.subr.mxu1 %v136_v9  ;;  %v130_v15 = vld [vmem:[%s535_s3 + $0x30] sm:$0xff]  ;;  %v129_v16 = vld [vmem:[%s535_s3 + $0x28] sm:$0xff]  ;;  %v128_v17 = vld [vmem:[%s535_s3 + $0x20] sm:$0xff]  ;;  %s370_s25 = scalar_lea.vmem %s277_s24, 256  ;;  %p375_p1 = scmp.lt.s32.totalorder %s277_s24, %s277_s24 }
   0xb   :  { %335 = vmatpush3.msra.mxu1 %v136_v9  ;;  %v127_v18 = vld [vmem:[%s535_s3 + $0x18] sm:$0xff]  ;;  %v126_v19 = vld [vmem:[%s535_s3 + $0x10] sm:$0xff]  ;;  %v125_v20 = vld [vmem:[%s535_s3 + $0x8] sm:$0xff]  ;;  %p371_p0 = scmp.ne.s32.totalorder %s277_s24, %s370_s25  ;;  %p376_p2 = scmp.lt.s32.totalorder %s370_s25, %s370_s25 }
   0xc   :  { %336 = vmatprep.subr.mxu1 %v135_v10  ;;  %v124_v21 = vld [vmem:[%s535_s3] sm:$0xff] }
   0xd   :  { %337 = vmatpush3.msra.mxu1 %v135_v10  ;;  %v287_v22 = vld [vmem:[%s534_s2] ss:$0 sm:$0xff]  ;;  %p377_p3 = por %p376_p2, %p375_p1 }
   0xe   :  { %338 = vmatprep.subr.mxu1 %v134_v11  ;;  %v290_v30 = vld [vmem:[%s536_s4] ss:$0 sm:$0xff] }
   0xf   :  { %339 = vmatpush3.msra.mxu1 %v134_v11  ;;  %v291_v55 = vld [vmem:[%s537_s5] ss:$0 sm:$0xff]  ;;  %p378_p4 = pnand %p377_p3, %p371_p0 }
  0x10   :  { %340 = vmatprep.subr.mxu1 %v133_v12  ;;  %v292_v57 = vld [vmem:[%s538_s6] ss:$0 sm:$0xff] }
  0x11   :  { %341 = vmatpush3.msra.mxu1 %v133_v12 }
  0x12   :  { %342 = vmatprep.subr.mxu1 %v132_v13 }
  0x13   :  { %343 = vmatpush3.msra.mxu1 %v132_v13 }
  0x14   :  { %344 = vmatprep.subr.mxu1 %v131_v14 }
  0x15   :  { %345 = vmatpush3.msra.mxu1 %v131_v14 }
  0x16   :  { %346 = vmatprep.subr.mxu1 %v130_v15 }
  0x17   :  { %347 = vmatpush3.msra.mxu1 %v130_v15 }
  0x18   :  { %348 = vmatprep.subr.mxu1 %v129_v16 }
  0x19   :  { %349 = vmatpush3.msra.mxu1 %v129_v16 }
  0x1a   :  { %350 = vmatprep.subr.mxu1 %v128_v17 }
  0x1b   :  { %351 = vmatpush3.msra.mxu1 %v128_v17 }
  0x1c   :  { %352 = vmatprep.subr.mxu1 %v127_v18 }
  0x1d   :  { %353 = vmatpush3.msra.mxu1 %v127_v18 }
  0x1e   :  { %354 = vmatprep.subr.mxu1 %v126_v19 }
  0x1f   :  { %355 = vmatpush3.msra.mxu1 %v126_v19 }
  0x20   :  { %356 = vmatprep.subr.mxu1 %v125_v20 }
  0x21   :  { %357 = vmatpush3.msra.mxu1 %v125_v20 }
  0x22   :  { %358 = vmatprep.subr.mxu1 %v124_v21 }
  0x23   :  { %359 = vmatpush3.msra.mxu1 %v124_v21 }
  0xca   :  { %v327_v23 = vpop.f32.mrf.mxu0 }
  0xcb   :  { %v119_v24 = vadd.f32 %v327_v23, %v287_v22 }
  0xcc   :  { %v113_v25 = vpop.f32.mrf.mxu0 }
  0xcd   :  { %v114_v26 = vadd.f32 %v287_v22, %v113_v25  ;;  %v123_v28 = vmax.f32 %v119_v24, 0.0 }
  0xcf   :  { %v122_v27 = vmax.f32 %v114_v26, 0.0 }
  0xd1   :  { %360 = vmatprep.mubr.f32.mxu1 %v122_v27 }
  0xd2   :  { %361 = vmatmul.mubr.f32.vlgmr.msra.gmra.mxu1 %v123_v28 }
 0x192   :  { %v362_v29 = vpop.f32.mrf.mxu1 }
 0x193   :  { %v219_v32 = vadd.f32 %v362_v29, %v290_v30 }
 0x194   :  { %v213_v31 = vpop.f32.mrf.mxu1 }
 0x195   :  { %v214_v33 = vadd.f32 %v290_v30, %v213_v31  ;;  %v223_v36 = vadd.f32 %v219_v32, %v466_v8 }
 0x197   :  { %v222_v34 = vadd.f32 %v214_v33, %v444_v2  ;;  %v227_v37 = vsel %vm40_vm0, %v223_v36, 0.0 }
 0x199   :  { %v224_v35 = vsel %vm40_vm0, %v222_v34, 0.0 }
 0x19a   :  { %225 = vadd.xlane.f32.xlu0 %v224_v35 }
 0x19e   :  { %228 = vadd.xlane.f32.xlu0 %v227_v37 }
 0x223   :  { %v226_v38 = vpop.xlane.xlu0 %225 }
 0x224   :  { %v231_v39 = vmul.f32 0.03125, %v226_v38 }
 0x226   :  { %v233_v40 = vsub.f32 %v222_v34, %v231_v39 }
 0x227   :  { %v229_v41 = vpop.xlane.xlu0 %228 }
 0x228   :  { %v232_v42 = vmul.f32 0.03125, %v229_v41  ;;  %v235_v43 = vmul.f32 %v233_v40, %v233_v40 }
 0x22a   :  { %v234_v44 = vsub.f32 %v223_v36, %v232_v42  ;;  %v237_v45 = vsel %vm40_vm0, %v235_v43, 0.0 }
 0x22b   :  { %238 = vadd.xlane.f32.xlu1 %v237_v45 }
 0x22c   :  { %v236_v46 = vmul.f32 %v234_v44, %v234_v44 }
 0x22e   :  { %v240_v47 = vsel %vm40_vm0, %v236_v46, 0.0 }
 0x22f   :  { %241 = vadd.xlane.f32.xlu1 %v240_v47 }
 0x2b4   :  { %v239_v48 = vpop.xlane.xlu1 %238 }
 0x2b5   :  { %v243_v49 = vmul.f32 0.03125, %v239_v48 }
 0x2b7   :  { %v245_v50 = vadd.f32 1e-05, %v243_v49 }
 0x2b8   :  { %v242_v51 = vpop.xlane.xlu1 %241 }
 0x2b9   :  { %366 = vrsqrt.f32 %v245_v50  ;;  %v244_v52 = vmul.f32 0.03125, %v242_v51 }
 0x2bb   :  { %v246_v53 = vadd.f32 1e-05, %v244_v52 }
 0x2bd   :  { %368 = vrsqrt.f32 %v246_v53 }
 0x2c6   :  { %v367_v54 = vpop.eup %366 }
 0x2c7   :  { %v249_v56 = vmul.f32 %v367_v54, %v233_v40 }
 0x2c9   :  { %v258_v58 = vmul.f32 %v291_v55, %v249_v56 }
 0x2ca   :  { %v369_v59 = vpop.eup %368 }
 0x2cb   :  { %v250_v60 = vmul.f32 %v369_v59, %v234_v44  ;;  %v267_v61 = vadd.f32 %v292_v57, %v258_v58 }
 0x2cd   :  { %v259_v62 = vmul.f32 %v291_v55, %v250_v60  ;;  %269 = vst.msk [vmem:[#allocation2] sm:$0xff] %vm40_vm0, %v267_v61 }
 0x2cf   :  { %v268_v63 = vadd.f32 %v292_v57, %v259_v62 }
 0x2d1   :  { %270 = vst.msk [vmem:[#allocation2 + $0x8] sm:$0xff] %vm40_vm0, %v268_v63 }
 0x2d2   :  { %381 = shalt.err (!%p378_p4)
}
 0x2d3   :  { %s393_s5 = smov 128   ;;  %s394_s6 = smov 8  }
 0x2d4   :  { %282 = dma.vmem_to_hbm [thread:$0]  %s277_s24, 256, %s539_s7, [#allocation3], %s393_s5, %s393_s5, %s394_s6  }
 0x2d5   :  { %390 = dma.done.wait [#allocation3], 256  }
 0x2d6   :  { %391 = vsyncadd [#allocation3], 4294967040 }
 0x2d7   :  { %286 = vsyncpa [#allocation3], 1 }

// kernel: decoder_layer_forward.12
= control target key start
LH: loop header
LB: loop body
LE: loop exit
PB: predicated region body
PF: predicated region fallthrough
CT: control target
= control target key end

     0   :  { %s7275_s11 = smov 0   ;;  %s8904_s0 = inlined_call_operand.vmem [shape: f32[2,8,8,8], index: 0, kind: input, shape index: {}]   ;;  %s8905_s1 = inlined_call_operand.vmem [shape: f32[2,8,8,8], index: 1, kind: input, shape index: {}]   ;;  %s8906_s2 = inlined_call_operand.vmem [shape: f32[2,8,8], index: 2, kind: input, shape index: {}]   ;;  %s8907_s3 = inlined_call_operand.vmem [shape: f32[16,8], index: 3, kind: input, shape index: {}]   ;;  %s8908_s4 = inlined_call_operand.vmem [shape: f32[16,1], index: 4, kind: input, shape index: {}]   ;;  %s8909_s5 = inlined_call_operand.vmem [shape: f32[16,1], index: 5, kind: input, shape index: {}]   ;;  %s8910_s6 = inlined_call_operand.<no memory space> [shape: f32[1,1], index: 6, kind: input, shape index: {}]   ;;  %s8911_s7 = inlined_call_operand.vmem [shape: f32[16,8], index: 7, kind: input, shape index: {}]   ;;  %s8912_s8 = inlined_call_operand.vmem [shape: f32[1,8], index: 8, kind: input, shape index: {}]   ;;  %s8913_s9 = inlined_call_operand.vmem [shape: f32[2,4,8,8], index: 9, kind: output, shape index: {}]  }
   0x1   :  { %v14_v0 = vstv %s8910_s6 }
   0x2   :  { %15 = vst [vmem:[#allocation2] sm:$0x1] %v14_v0 }
   0x3 LB: > { %s6470_s12 = sadd.s32 4294967295, %s7217_s11   ;;  %p6474_p0 = scmp.ge.s32.totalorder %s7217_s11, 1  ;;  %s7217_s11 = sphi %s7275_s11, %s21_s11  }
   0x4   : > { %p308_p1 = scmp.lt.s32.totalorder %s7217_s11, 3 }
   0x6   : > { %p309_p2 = pnand %p6474_p0, %p308_p1 }
   0x8   : > { %312 = sbr.rel (%p309_p2) target bundleno = 869 (0x365), region = 56 }
   0xd   : > { %p353_p3 = scmp.lt.s32.totalorder %s6470_s12, 1  ;;  %v397_v1 = vlaneseq  ;;  %v8920_v2 = vmov 0.0   ;;  %vm7220_vm0 = vmmov 0   ;;  %v7296_v4 = vld [vmem:[%s8907_s3] sm:$0xff]  ;;  %vm409_vm1 = vcmask 64512  }
   0xe   : > { %6761 = vmatprep.subr.mxu0 %v8920_v2  ;;  %6766 = vmatprep.subr.mxu1 %v8920_v2  ;;  %v7352_v18 = vld [vmem:[%s8908_s4] sm:$0xff] }
   0xf   : > { %s9152_s12 = smov (!%p353_p3, %s6470_s12), 1  ;;  %6763 = vmatprep.mubr.msk.f32.mxu0 %vm7220_vm0, %v8920_v2  ;;  %6768 = vmatprep.mubr.msk.f32.mxu1 %vm7220_vm0, %v8920_v2  ;;  %v7291_v3 = vshrl.u32 %v397_v1, 7  ;;  %v7357_v19 = vld [vmem:[%s8909_s5] sm:$0xff]  ;;  %7101 = vpush %v7352_v18  ;;  %v766_v23 = vrot.slane %v7352_v18, 1  ;;  %v1114_v28 = vrot.slane %v7352_v18, 2  ;;  %v1462_v33 = vrot.slane %v7352_v18, 3 }
  0x10   : > { %s6622_s14 = sshll.u32 %s9152_s12, 6  ;;  %7103 = vpush %v7357_v19  ;;  %v1066_v24 = vrot.slane %v7357_v19, 1  ;;  %v1414_v29 = vrot.slane %v7357_v19, 2  ;;  %v1762_v34 = vrot.slane %v7357_v19, 3  ;;  %v1810_v38 = vrot.slane %v7352_v18, 4 }
  0x11   : > { %v7300_v5 = vsub.s32 0, %v7291_v3  ;;  %s7305_s17 = scalar_lea.vmem %s8904_s0, %s6622_s14  ;;  %s7310_s20 = scalar_lea.vmem %s8905_s1, %s6622_s14  ;;  %v7324_v10 = vsub.s32 1, %v7291_v3  ;;  %v7384_v27 = vsub.s32 2, %v7291_v3  ;;  %7105 = vpush %v766_v23  ;;  %v7421_v37 = vsub.s32 3, %v7291_v3 }
  0x12   : > { %v7313_v6 = vld [vmem:[%s7310_s20] sm:$0xff]  ;;  %v7316_v7 = vld [vmem:[%s7310_s20 + $0x8] sm:$0xff]  ;;  %v7334_v12 = vld [vmem:[%s7310_s20 + $0x10] sm:$0xff]  ;;  %7107 = vpush %v1066_v24  ;;  %v2110_v39 = vrot.slane %v7357_v19, 4  ;;  %v2158_v43 = vrot.slane %v7352_v18, 5  ;;  %v2458_v44 = vrot.slane %v7357_v19, 5 }
  0x13   : > { %9001 = vst [vmem:[#allocation3_spill] sm:$0xff] %v7300_v5  ;;  %v7319_v8 = vld [vmem:[%s7305_s17] sm:$0xff]  ;;  %v400_v9 = vrot.slane %v7296_v4, %v7300_v5  ;;  %9002 = vst [vmem:[#allocation4_spill] sm:$0xff] %v7324_v10  ;;  %6762 = vmatpush3.xpose.msk.msra.mxu0 %vm409_vm1, %v7313_v6  ;;  %6767 = vmatpush3.xpose.msk.msra.mxu1 %vm409_vm1, %v7316_v7  ;;  %v7331_v11 = vld [vmem:[%s7305_s17 + $0x8] sm:$0xff]  ;;  %v761_v22 = vrot.slane %v7296_v4, %v7324_v10  ;;  %v2506_v45 = vrot.slane %v7352_v18, 6 }
  0x14   : > { %6771 = vmatprep.subr.mxu0 %v8920_v2  ;;  %6776 = vmatprep.subr.mxu1 %v8920_v2  ;;  %v7341_v15 = vld [vmem:[%s7310_s20 + $0x18] sm:$0xff]  ;;  %v7344_v16 = vld [vmem:[%s7305_s17 + $0x10] sm:$0xff]  ;;  %9003 = vst [vmem:[#allocation5_spill] sm:$0xff] %v7384_v27  ;;  %v1109_v32 = vrot.slane %v7296_v4, %v7384_v27  ;;  %7109 = vpush %v1114_v28  ;;  %v1457_v42 = vrot.slane %v7296_v4, %v7421_v37  ;;  %v7459_v48 = vsub.s32 4, %v7291_v3 }
  0x15   : > { %v401_v13 = vmul.f32 %v400_v9, %v7319_v8  ;;  %v402_v14 = vmul.f32 %v400_v9, %v7331_v11  ;;  %v7347_v17 = vld [vmem:[%s7305_s17 + $0x18] sm:$0xff]  ;;  %v403_v20 = vmul.f32 %v400_v9, %v7344_v16  ;;  %v762_v25 = vmul.f32 %v761_v22, %v7319_v8  ;;  %7111 = vpush %v1414_v29 }
  0x16   : > { %v404_v21 = vmul.f32 %v400_v9, %v7347_v17  ;;  %v763_v26 = vmul.f32 %v761_v22, %v7331_v11  ;;  %v764_v30 = vmul.f32 %v761_v22, %v7344_v16  ;;  %v765_v31 = vmul.f32 %v761_v22, %v7347_v17  ;;  %9004 = vst [vmem:[#allocation6_spill] sm:$0xff] %v7421_v37 }
  0x17   : > { %6764 = vmatmul.mubr.msk.f32.vlgmr.msra.gmra.mxu0 %vm409_vm1, %v401_v13  ;;  %6769 = vmatmul.mubr.msk.f32.vlgmr.msra.gmra.mxu1 %vm409_vm1, %v402_v14  ;;  %v1110_v35 = vmul.f32 %v1109_v32, %v7319_v8  ;;  %v1111_v36 = vmul.f32 %v1109_v32, %v7331_v11  ;;  %7113 = vpush %v1462_v33  ;;  %9005 = vst [vmem:[#allocation7_spill] sm:$0xff] %v7459_v48  ;;  %v7492_v54 = vsub.s32 5, %v7291_v3 }
  0x18   : > { %6772 = vmatpush3.xpose.msk.msra.mxu0 %vm409_vm1, %v7334_v12  ;;  %6777 = vmatpush3.xpose.msk.msra.mxu1 %vm409_vm1, %v7341_v15  ;;  %7115 = vpush %v1762_v34  ;;  %v1112_v40 = vmul.f32 %v1109_v32, %v7344_v16  ;;  %v1113_v41 = vmul.f32 %v1109_v32, %v7347_v17  ;;  %v7525_v60 = vsub.s32 6, %v7291_v3  ;;  %v7558_v9 = vsub.s32 7, %v7291_v3 }
  0x19   : > { %6773 = vmatprep.mubr.msk.f32.mxu0 %vm7220_vm0, %v8920_v2  ;;  %6778 = vmatprep.mubr.msk.f32.mxu1 %vm7220_vm0, %v8920_v2  ;;  %7117 = vpush %v1810_v38  ;;  %v1458_v46 = vmul.f32 %v1457_v42, %v7319_v8  ;;  %v1459_v47 = vmul.f32 %v1457_v42, %v7331_v11  ;;  %9006 = vst [vmem:[#allocation8_spill] sm:$0xff] %v7492_v54  ;;  %v2854_v34 = vrot.slane %v7352_v18, 7 }
  0x1a   : > { %6781 = vmatprep.subr.mxu0 %v8920_v2  ;;  %6786 = vmatprep.subr.mxu1 %v8920_v2  ;;  %7119 = vpush %v2110_v39  ;;  %v1460_v49 = vmul.f32 %v1457_v42, %v7344_v16  ;;  %v1461_v50 = vmul.f32 %v1457_v42, %v7347_v17  ;;  %9007 = vst [vmem:[#allocation9_spill] sm:$0xff] %v7525_v60  ;;  %v3154_v38 = vrot.slane %v7357_v19, 7 }
  0x1b   : > { %6774 = vmatmul.mubr.msk.f32.vlgmr.msra.gmra.mxu0 %vm409_vm1, %v403_v20  ;;  %6779 = vmatmul.mubr.msk.f32.vlgmr.msra.gmra.mxu1 %vm409_vm1, %v404_v21  ;;  %7121 = vpush %v2158_v43  ;;  %v1805_v51 = vrot.slane %v7296_v4, %v7459_v48  ;;  %v2153_v57 = vrot.slane %v7296_v4, %v7492_v54  ;;  %9008 = vst [vmem:[#allocation10_spill] sm:$0xff] %v7558_v9  ;;  %v7597_v21 = vld [vmem:[%s8907_s3 + $0x8] sm:$0xff] }
  0x1c   : > { %6782 = vmatpush3.xpose.msk.msra.mxu0 %vm409_vm1, %v7313_v6  ;;  %6787 = vmatpush3.xpose.msk.msra.mxu1 %vm409_vm1, %v7316_v7  ;;  %7123 = vpush %v2458_v44  ;;  %v2501_v63 = vrot.slane %v7296_v4, %v7525_v60  ;;  %v2849_v14 = vrot.slane %v7296_v4, %v7558_v9  ;;  %v7717_v44 = vld [vmem:[%s8909_s5 + $0x8] sm:$0xff] }
  0x1d   : > { %6783 = vmatprep.mubr.msk.f32.mxu0 %vm7220_vm0, %v8920_v2  ;;  %6788 = vmatprep.mubr.msk.f32.mxu1 %vm7220_vm0, %v8920_v2  ;;  %7125 = vpush %v2506_v45  ;;  %v1806_v52 = vmul.f32 %v1805_v51, %v7319_v8  ;;  %v1807_v53 = vmul.f32 %v1805_v51, %v7331_v11 }
  0x1e   : > { %6791 = vmatprep.subr.mxu0 %v8920_v2  ;;  %6796 = vmatprep.subr.mxu1 %v8920_v2  ;;  %v1808_v55 = vmul.f32 %v1805_v51, %v7344_v16  ;;  %v1809_v56 = vmul.f32 %v1805_v51, %v7347_v17  ;;  %v2154_v58 = vmul.f32 %v2153_v57, %v7319_v8 }
  0x1f   : > { %6784 = vmatmul.mubr.msk.f32.vlgmr.msra.gmra.mxu0 %vm409_vm1, %v762_v25  ;;  %6789 = vmatmul.mubr.msk.f32.vlgmr.msra.gmra.mxu1 %vm409_vm1, %v763_v26  ;;  %v2155_v59 = vmul.f32 %v2153_v57, %v7331_v11  ;;  %v2156_v61 = vmul.f32 %v2153_v57, %v7344_v16  ;;  %v2157_v62 = vmul.f32 %v2153_v57, %v7347_v17 }
  0x20   : > { %6792 = vmatpush3.xpose.msk.msra.mxu0 %vm409_vm1, %v7334_v12  ;;  %6797 = vmatpush3.xpose.msk.msra.mxu1 %vm409_vm1, %v7341_v15  ;;  %v2502_v0 = vmul.f32 %v2501_v63, %v7319_v8  ;;  %v2503_v1 = vmul.f32 %v2501_v63, %v7331_v11  ;;  %v2504_v3 = vmul.f32 %v2501_v63, %v7344_v16 }
  0x21   : > { %6793 = vmatprep.mubr.msk.f32.mxu0 %vm7220_vm0, %v8920_v2  ;;  %6798 = vmatprep.mubr.msk.f32.mxu1 %vm7220_vm0, %v8920_v2  ;;  %v2505_v13 = vmul.f32 %v2501_v63, %v7347_v17  ;;  %v2850_v4 = vmul.f32 %v2849_v14, %v7319_v8  ;;  %v2851_v20 = vmul.f32 %v2849_v14, %v7331_v11 }
  0x22   : > { %6801 = vmatprep.subr.mxu0 %v8920_v2  ;;  %6806 = vmatprep.subr.mxu1 %v8920_v2  ;;  %v2852_v22 = vmul.f32 %v2849_v14, %v7344_v16  ;;  %v2853_v23 = vmul.f32 %v2849_v14, %v7347_v17  ;;  %v3197_v24 = vrot.slane %v7597_v21, %v7300_v5  ;;  %v4546_v14 = vrot.slane %v7717_v44, 3 }
  0x23   : > { %6794 = vmatmul.mubr.msk.f32.vlgmr.msra.gmra.mxu0 %vm409_vm1, %v764_v30  ;;  %6799 = vmatmul.mubr.msk.f32.vlgmr.msra.gmra.mxu1 %vm409_vm1, %v765_v31  ;;  %v3545_v30 = vrot.slane %v7597_v21, %v7324_v10  ;;  %v2806_v31 = vrot.slane %v7357_v19, 6  ;;  %v4241_v43 = vrot.slane %v7597_v21, %v7421_v37  ;;  %v4589_v51 = vrot.slane %v7597_v21, %v7459_v48 }
  0x24   : > { %6802 = vmatpush3.xpose.msk.msra.mxu0 %vm409_vm1, %v7313_v6  ;;  %6807 = vmatpush3.xpose.msk.msra.mxu1 %vm409_vm1, %v7316_v7  ;;  %v3198_v25 = vmul.f32 %v3197_v24, %v7319_v8  ;;  %v3199_v26 = vmul.f32 %v3197_v24, %v7331_v11  ;;  %v3200_v28 = vmul.f32 %v3197_v24, %v7344_v16 }
  0x25   : > { %6803 = vmatprep.mubr.msk.f32.mxu0 %vm7220_vm0, %v8920_v2  ;;  %6808 = vmatprep.mubr.msk.f32.mxu1 %vm7220_vm0, %v8920_v2  ;;  %v3201_v29 = vmul.f32 %v3197_v24, %v7347_v17  ;;  %7127 = vpush %v2806_v31  ;;  %v3546_v32 = vmul.f32 %v3545_v30, %v7319_v8 }
  0x26   : > { %6811 = vmatprep.subr.mxu0 %v8920_v2  ;;  %6816 = vmatprep.subr.mxu1 %v8920_v2  ;;  %v3547_v33 = vmul.f32 %v3545_v30, %v7331_v11  ;;  %7129 = vpush %v2854_v34  ;;  %v3548_v18 = vmul.f32 %v3545_v30, %v7344_v16 }
  0x27   : > { %6804 = vmatmul.mubr.msk.f32.vlgmr.msra.gmra.mxu0 %vm409_vm1, %v1110_v35  ;;  %6809 = vmatmul.mubr.msk.f32.vlgmr.msra.gmra.mxu1 %vm409_vm1, %v1111_v36  ;;  %v3549_v35 = vmul.f32 %v3545_v30, %v7347_v17  ;;  %v3893_v36 = vrot.slane %v7597_v21, %v7384_v27  ;;  %7131 = vpush %v3154_v38  ;;  %v7221_v30 = vmov 0  }
  0x28   : > { %6812 = vmatpush3.xpose.msk.msra.mxu0 %vm409_vm1, %v7334_v12  ;;  %6817 = vmatpush3.xpose.msk.msra.mxu1 %vm409_vm1, %v7341_v15  ;;  %v4242_v45 = vmul.f32 %v4241_v43, %v7319_v8  ;;  %v4592_v57 = vmul.f32 %v4589_v51, %v7344_v16 }
  0x29   : > { %6813 = vmatprep.mubr.msk.f32.mxu0 %vm7220_vm0, %v8920_v2  ;;  %6818 = vmatprep.mubr.msk.f32.mxu1 %vm7220_vm0, %v8920_v2  ;;  %v3894_v19 = vmul.f32 %v3893_v36, %v7319_v8  ;;  %v3895_v39 = vmul.f32 %v3893_v36, %v7331_v11  ;;  %v3897_v42 = vmul.f32 %v3893_v36, %v7347_v17 }
  0x2a   : > { %6821 = vmatprep.subr.mxu0 %v8920_v2  ;;  %6826 = vmatprep.subr.mxu1 %v8920_v2 }
  0x2b   : > { %6814 = vmatmul.mubr.msk.f32.vlgmr.msra.gmra.mxu0 %vm409_vm1, %v1112_v40  ;;  %6819 = vmatmul.mubr.msk.f32.vlgmr.msra.gmra.mxu1 %vm409_vm1, %v1113_v41  ;;  %v7695_v40 = vld [vmem:[%s8908_s4 + $0x8] sm:$0xff]  ;;  %v3896_v41 = vmul.f32 %v3893_v36, %v7344_v16 }
  0x2c   : > { %6822 = vmatpush3.xpose.msk.msra.mxu0 %vm409_vm1, %v7313_v6  ;;  %6827 = vmatpush3.xpose.msk.msra.mxu1 %vm409_vm1, %v7316_v7  ;;  %7133 = vpush %v7695_v40 }
  0x2d   : > { %6823 = vmatprep.mubr.msk.f32.mxu0 %vm7220_vm0, %v8920_v2  ;;  %6828 = vmatprep.mubr.msk.f32.mxu1 %vm7220_vm0, %v8920_v2  ;;  %7135 = vpush %v7717_v44 }
  0x2e   : > { %6831 = vmatprep.subr.mxu0 %v8920_v2  ;;  %6836 = vmatprep.subr.mxu1 %v8920_v2 }
  0x2f   : > { %6824 = vmatmul.mubr.msk.f32.vlgmr.msra.gmra.mxu0 %vm409_vm1, %v1458_v46  ;;  %6829 = vmatmul.mubr.msk.f32.vlgmr.msra.gmra.mxu1 %vm409_vm1, %v1459_v47  ;;  %v4243_v46 = vmul.f32 %v4241_v43, %v7331_v11  ;;  %v3550_v47 = vrot.slane %v7695_v40, 1 }
  0x30   : > { %6832 = vmatpush3.xpose.msk.msra.mxu0 %vm409_vm1, %v7334_v12  ;;  %6837 = vmatpush3.xpose.msk.msra.mxu1 %vm409_vm1, %v7341_v15 }
  0x31   : > { %6833 = vmatprep.mubr.msk.f32.mxu0 %vm7220_vm0, %v8920_v2  ;;  %6838 = vmatprep.mubr.msk.f32.mxu1 %vm7220_vm0, %v8920_v2  ;;  %7137 = vpush %v3550_v47 }
  0x32   : > { %6841 = vmatprep.subr.mxu0 %v8920_v2  ;;  %6846 = vmatprep.subr.mxu1 %v8920_v2 }
  0x33   : > { %6834 = vmatmul.mubr.msk.f32.vlgmr.msra.gmra.mxu0 %vm409_vm1, %v1460_v49  ;;  %6839 = vmatmul.mubr.msk.f32.vlgmr.msra.gmra.mxu1 %vm409_vm1, %v1461_v50  ;;  %v4244_v49 = vmul.f32 %v4241_v43, %v7344_v16  ;;  %v4245_v50 = vmul.f32 %v4241_v43, %v7347_v17 }
  0x34   : > { %6842 = vmatpush3.xpose.msk.msra.mxu0 %vm409_vm1, %v7313_v6  ;;  %6847 = vmatpush3.xpose.msk.msra.mxu1 %vm409_vm1, %v7316_v7 }
  0x35   : > { %6843 = vmatprep.mubr.msk.f32.mxu0 %vm7220_vm0, %v8920_v2  ;;  %6848 = vmatprep.mubr.msk.f32.mxu1 %vm7220_vm0, %v8920_v2 }
  0x36   : > { %6851 = vmatprep.subr.mxu0 %v8920_v2  ;;  %6856 = vmatprep.subr.mxu1 %v8920_v2 }
  0x37   : > { %6844 = vmatmul.mubr.msk.f32.vlgmr.msra.gmra.mxu0 %vm409_vm1, %v1806_v52  ;;  %6849 = vmatmul.mubr.msk.f32.vlgmr.msra.gmra.mxu1 %vm409_vm1, %v1807_v53  ;;  %v3850_v52 = vrot.slane %v7717_v44, 1  ;;  %v4590_v53 = vmul.f32 %v4589_v51, %v7319_v8 }
  0x38   : > { %6852 = vmatpush3.xpose.msk.msra.mxu0 %vm409_vm1, %v7334_v12  ;;  %6857 = vmatpush3.xpose.msk.msra.mxu1 %vm409_vm1, %v7341_v15 }
  0x39   : > { %6853 = vmatprep.mubr.msk.f32.mxu0 %vm7220_vm0, %v8920_v2  ;;  %6858 = vmatprep.mubr.msk.f32.mxu1 %vm7220_vm0, %v8920_v2  ;;  %7139 = vpush %v3850_v52 }
  0x3a   : > { %6861 = vmatprep.subr.mxu0 %v8920_v2  ;;  %6866 = vmatprep.subr.mxu1 %v8920_v2 }
  0x3b   : > { %6854 = vmatmul.mubr.msk.f32.vlgmr.msra.gmra.mxu0 %vm409_vm1, %v1808_v55  ;;  %6859 = vmatmul.mubr.msk.f32.vlgmr.msra.gmra.mxu1 %vm409_vm1, %v1809_v56  ;;  %v4591_v55 = vmul.f32 %v4589_v51, %v7331_v11  ;;  %v3898_v56 = vrot.slane %v7695_v40, 2 }
  0x3c   : > { %6862 = vmatpush3.xpose.msk.msra.mxu0 %vm409_vm1, %v7313_v6  ;;  %6867 = vmatpush3.xpose.msk.msra.mxu1 %vm409_vm1, %v7316_v7 }
  0x3d   : > { %6863 = vmatprep.mubr.msk.f32.mxu0 %vm7220_vm0, %v8920_v2  ;;  %6868 = vmatprep.mubr.msk.f32.mxu1 %vm7220_vm0, %v8920_v2  ;;  %7141 = vpush %v3898_v56 }
  0x3e   : > { %6871 = vmatprep.subr.mxu0 %v8920_v2  ;;  %6876 = vmatprep.subr.mxu1 %v8920_v2 }
  0x3f   : > { %6864 = vmatmul.mubr.msk.f32.vlgmr.msra.gmra.mxu0 %vm409_vm1, %v2154_v58  ;;  %6869 = vmatmul.mubr.msk.f32.vlgmr.msra.gmra.mxu1 %vm409_vm1, %v2155_v59  ;;  %v4593_v58 = vmul.f32 %v4589_v51, %v7347_v17  ;;  %v4937_v59 = vrot.slane %v7597_v21, %v7492_v54 }
  0x40   : > { %6872 = vmatpush3.xpose.msk.msra.mxu0 %vm409_vm1, %v7334_v12  ;;  %6877 = vmatpush3.xpose.msk.msra.mxu1 %vm409_vm1, %v7341_v15  ;;  %s7102_s10 = spop %7101 }
  0x41   : > { %6873 = vmatprep.mubr.msk.f32.mxu0 %vm7220_vm0, %v8920_v2  ;;  %6878 = vmatprep.mubr.msk.f32.mxu1 %vm7220_vm0, %v8920_v2  ;;  %v4939_v63 = vmul.f32 %v4937_v59, %v7331_v11  ;;  %s7104_s6 = spop %7103 }
  0x42   : > { %6881 = vmatprep.subr.mxu0 %v8920_v2  ;;  %6886 = vmatprep.subr.mxu1 %v8920_v2  ;;  %s7106_s13 = spop %7105 }
  0x43   : > { %6874 = vmatmul.mubr.msk.f32.vlgmr.msra.gmra.mxu0 %vm409_vm1, %v2156_v61  ;;  %6879 = vmatmul.mubr.msk.f32.vlgmr.msra.gmra.mxu1 %vm409_vm1, %v2157_v62  ;;  %v4198_v61 = vrot.slane %v7717_v44, 2  ;;  %v4938_v62 = vmul.f32 %v4937_v59, %v7319_v8  ;;  %s7108_s14 = spop %7107 }
  0x44   : > { %6882 = vmatpush3.xpose.msk.msra.mxu0 %vm409_vm1, %v7313_v6  ;;  %6887 = vmatpush3.xpose.msk.msra.mxu1 %vm409_vm1, %v7316_v7 }
  0x45   : > { %6883 = vmatprep.mubr.msk.f32.mxu0 %vm7220_vm0, %v8920_v2  ;;  %6888 = vmatprep.mubr.msk.f32.mxu1 %vm7220_vm0, %v8920_v2  ;;  %7143 = vpush %v4198_v61  ;;  %s7110_s15 = spop %7109 }
  0x46   : > { %6891 = vmatprep.subr.mxu0 %v8920_v2  ;;  %6896 = vmatprep.subr.mxu1 %v8920_v2  ;;  %s7112_s16 = spop %7111 }
  0x47   : > { %6884 = vmatmul.mubr.msk.f32.vlgmr.msra.gmra.mxu0 %vm409_vm1, %v2502_v0  ;;  %6889 = vmatmul.mubr.msk.f32.vlgmr.msra.gmra.mxu1 %vm409_vm1, %v2503_v1  ;;  %v4246_v0 = vrot.slane %v7695_v40, 3  ;;  %v4940_v1 = vmul.f32 %v4937_v59, %v7344_v16 }
  0x48   : > { %6892 = vmatpush3.xpose.msk.msra.mxu0 %vm409_vm1, %v7334_v12  ;;  %6897 = vmatpush3.xpose.msk.msra.mxu1 %vm409_vm1, %v7341_v15  ;;  %s7114_s18 = spop %7113 }
  0x49   : > { %6893 = vmatprep.mubr.msk.f32.mxu0 %vm7220_vm0, %v8920_v2  ;;  %6898 = vmatprep.mubr.msk.f32.mxu1 %vm7220_vm0, %v8920_v2  ;;  %7145 = vpush %v4246_v0  ;;  %s7116_s19 = spop %7115 }
  0x4a   : > { %6901 = vmatprep.subr.mxu0 %v8920_v2  ;;  %6906 = vmatprep.subr.mxu1 %v8920_v2  ;;  %7147 = vpush %v4546_v14  ;;  %s7118_s21 = spop %7117 }
  0x4b   : > { %6894 = vmatmul.mubr.msk.f32.vlgmr.msra.gmra.mxu0 %vm409_vm1, %v2504_v3  ;;  %6899 = vmatmul.mubr.msk.f32.vlgmr.msra.gmra.mxu1 %vm409_vm1, %v2505_v13  ;;  %v4941_v3 = vmul.f32 %v4937_v59, %v7347_v17  ;;  %v5285_v13 = vrot.slane %v7597_v21, %v7525_v60  ;;  %s7120_s22 = spop %7119 }
  0x4c   : > { %6902 = vmatpush3.xpose.msk.msra.mxu0 %vm409_vm1, %v7313_v6  ;;  %6907 = vmatpush3.xpose.msk.msra.mxu1 %vm409_vm1, %v7316_v7  ;;  %s7122_s23 = spop %7121 }
  0x4d   : > { %6903 = vmatprep.mubr.msk.f32.mxu0 %vm7220_vm0, %v8920_v2  ;;  %6908 = vmatprep.mubr.msk.f32.mxu1 %vm7220_vm0, %v8920_v2  ;;  %v5289_v24 = vmul.f32 %v5285_v13, %v7347_v17  ;;  %s7124_s24 = spop %7123 }
  0x4e   : > { %6911 = vmatprep.subr.mxu0 %v8920_v2  ;;  %6916 = vmatprep.subr.mxu1 %v8920_v2  ;;  %s7126_s25 = spop %7125 }
  0x4f   : > { %6904 = vmatmul.mubr.msk.f32.vlgmr.msra.gmra.mxu0 %vm409_vm1, %v2850_v4  ;;  %6909 = vmatmul.mubr.msk.f32.vlgmr.msra.gmra.mxu1 %vm409_vm1, %v2851_v20  ;;  %v5286_v4 = vmul.f32 %v5285_v13, %v7319_v8  ;;  %v5287_v20 = vmul.f32 %v5285_v13, %v7331_v11 }
  0x50   : > { %6912 = vmatpush3.xpose.msk.msra.mxu0 %vm409_vm1, %v7334_v12  ;;  %6917 = vmatpush3.xpose.msk.msra.mxu1 %vm409_vm1, %v7341_v15 }
  0x51   : > { %6913 = vmatprep.mubr.msk.f32.mxu0 %vm7220_vm0, %v8920_v2  ;;  %6918 = vmatprep.mubr.msk.f32.mxu1 %vm7220_vm0, %v8920_v2 }
  0x52   : > { %6921 = vmatprep.subr.mxu0 %v8920_v2  ;;  %6926 = vmatprep.subr.mxu1 %v8920_v2 }
  0x53   : > { %6914 = vmatmul.mubr.msk.f32.vlgmr.msra.gmra.mxu0 %vm409_vm1, %v2852_v22  ;;  %6919 = vmatmul.mubr.msk.f32.vlgmr.msra.gmra.mxu1 %vm409_vm1, %v2853_v23  ;;  %v4594_v22 = vrot.slane %v7695_v40, 4  ;;  %v5288_v23 = vmul.f32 %v5285_v13, %v7344_v16 }
  0x54   : > { %6922 = vmatpush3.xpose.msk.msra.mxu0 %vm409_vm1, %v7313_v6  ;;  %6927 = vmatpush3.xpose.msk.msra.mxu1 %vm409_vm1, %v7316_v7 }
  0x55   : > { %6923 = vmatprep.mubr.msk.f32.mxu0 %vm7220_vm0, %v8920_v2  ;;  %6928 = vmatprep.mubr.msk.f32.mxu1 %vm7220_vm0, %v8920_v2  ;;  %7149 = vpush %v4594_v22  ;;  %v1116_v22 = vstv %s7110_s15 }
  0x56   : > { %6931 = vmatprep.subr.mxu0 %v8920_v2  ;;  %6936 = vmatprep.subr.mxu1 %v8920_v2  ;;  %s7128_s26 = spop %7127 }
  0x57   : > { %6924 = vmatmul.mubr.msk.f32.vlgmr.msra.gmra.mxu0 %vm409_vm1, %v3198_v25  ;;  %6929 = vmatmul.mubr.msk.f32.vlgmr.msra.gmra.mxu1 %vm409_vm1, %v3199_v26  ;;  %v5633_v25 = vrot.slane %v7597_v21, %v7558_v9  ;;  %v4894_v26 = vrot.slane %v7717_v44, 4  ;;  %s7130_s27 = spop %7129 }
  0x58   : > { %6932 = vmatpush3.xpose.msk.msra.mxu0 %vm409_vm1, %v7334_v12  ;;  %6937 = vmatpush3.xpose.msk.msra.mxu1 %vm409_vm1, %v7341_v15  ;;  %s8026_s28 = spop %7131 }
  0x59   : > { %6933 = vmatprep.mubr.msk.f32.mxu0 %vm7220_vm0, %v8920_v2  ;;  %6938 = vmatprep.mubr.msk.f32.mxu1 %vm7220_vm0, %v8920_v2  ;;  %7151 = vpush %v4894_v26  ;;  %v5634_v21 = vmul.f32 %v5633_v25, %v7319_v8  ;;  %v5637_v8 = vmul.f32 %v5633_v25, %v7347_v17  ;;  %v5938_v17 = vrot.slane %v7717_v44, 7 }
  0x5a   : > { %6941 = vmatprep.subr.mxu0 %v8920_v2  ;;  %6946 = vmatprep.subr.mxu1 %v8920_v2 }
  0x5b   : > { %6934 = vmatmul.mubr.msk.f32.vlgmr.msra.gmra.mxu0 %vm409_vm1, %v3200_v28  ;;  %6939 = vmatmul.mubr.msk.f32.vlgmr.msra.gmra.mxu1 %vm409_vm1, %v3201_v29  ;;  %v5635_v28 = vmul.f32 %v5633_v25, %v7331_v11  ;;  %v4942_v29 = vrot.slane %v7695_v40, 5  ;;  %v6615_v11 = vld [vmem:[#allocation2] ss:$0 sm:$0xff] }
  0x5c   : > { %6942 = vmatpush3.xpose.msk.msra.mxu0 %vm409_vm1, %v7313_v6  ;;  %6947 = vmatpush3.xpose.msk.msra.mxu1 %vm409_vm1, %v7316_v7 }
  0x5d   : > { %6943 = vmatprep.mubr.msk.f32.mxu0 %vm7220_vm0, %v8920_v2  ;;  %6948 = vmatprep.mubr.msk.f32.mxu1 %vm7220_vm0, %v8920_v2  ;;  %7153 = vpush %v4942_v29  ;;  %s8032_s29 = spop %7133 }
  0x5e   : > { %6951 = vmatprep.subr.mxu0 %v8920_v2  ;;  %6956 = vmatprep.subr.mxu1 %v8920_v2  ;;  %s8034_s30 = spop %7135  ;;  %v3204_v60 = vstv %s8032_s29 }
  0x5f   : > { %6944 = vmatmul.mubr.msk.f32.vlgmr.msra.gmra.mxu0 %vm409_vm1, %v3546_v32  ;;  %6949 = vmatmul.mubr.msk.f32.vlgmr.msra.gmra.mxu1 %vm409_vm1, %v3547_v33  ;;  %v407_v33 = vstv %s7102_s10 }
  0x60   : > { %6952 = vmatpush3.xpose.msk.msra.mxu0 %vm409_vm1, %v7334_v12  ;;  %6957 = vmatpush3.xpose.msk.msra.mxu1 %vm409_vm1, %v7341_v15 }
  0x61   : > { %6953 = vmatprep.mubr.msk.f32.mxu0 %vm7220_vm0, %v8920_v2  ;;  %6958 = vmatprep.mubr.msk.f32.mxu1 %vm7220_vm0, %v8920_v2 }
  0x62   : > { %6961 = vmatprep.subr.mxu0 %v8920_v2  ;;  %6966 = vmatprep.subr.mxu1 %v8920_v2  ;;  %s8036_s10 = spop %7137 }
  0x63   : > { %6954 = vmatmul.mubr.msk.f32.vlgmr.msra.gmra.mxu0 %vm409_vm1, %v3548_v18  ;;  %6959 = vmatmul.mubr.msk.f32.vlgmr.msra.gmra.mxu1 %vm409_vm1, %v3549_v35 }
  0x64   : > { %6962 = vmatpush3.xpose.msk.msra.mxu0 %vm409_vm1, %v7313_v6  ;;  %6967 = vmatpush3.xpose.msk.msra.mxu1 %vm409_vm1, %v7316_v7 }
  0x65   : > { %6963 = vmatprep.mubr.msk.f32.mxu0 %vm7220_vm0, %v8920_v2  ;;  %6968 = vmatprep.mubr.msk.f32.mxu1 %vm7220_vm0, %v8920_v2 }
  0x66   : > { %6971 = vmatprep.subr.mxu0 %v8920_v2  ;;  %6976 = vmatprep.subr.mxu1 %v8920_v2 }
  0x67   : > { %6964 = vmatmul.mubr.msk.f32.vlgmr.msra.gmra.mxu0 %vm409_vm1, %v3894_v19  ;;  %6969 = vmatmul.mubr.msk.f32.vlgmr.msra.gmra.mxu1 %vm409_vm1, %v3895_v39 }
  0x68   : > { %6972 = vmatpush3.xpose.msk.msra.mxu0 %vm409_vm1, %v7334_v12  ;;  %6977 = vmatpush3.xpose.msk.msra.mxu1 %vm409_vm1, %v7341_v15 }
  0x69   : > { %6973 = vmatprep.mubr.msk.f32.mxu0 %vm7220_vm0, %v8920_v2  ;;  %6978 = vmatprep.mubr.msk.f32.mxu1 %vm7220_vm0, %v8920_v2 }
  0x6a   : > { %6981 = vmatprep.subr.mxu0 %v8920_v2  ;;  %6986 = vmatprep.subr.mxu1 %v8920_v2 }
  0x6b   : > { %6974 = vmatmul.mubr.msk.f32.vlgmr.msra.gmra.mxu0 %vm409_vm1, %v3896_v41  ;;  %6979 = vmatmul.mubr.msk.f32.vlgmr.msra.gmra.mxu1 %vm409_vm1, %v3897_v42  ;;  %v768_v41 = vstv %s7106_s13 }
  0x6c   : > { %6982 = vmatpush3.xpose.msk.msra.mxu0 %vm409_vm1, %v7313_v6  ;;  %6987 = vmatpush3.xpose.msk.msra.mxu1 %vm409_vm1, %v7316_v7 }
  0x6d   : > { %6983 = vmatprep.mubr.msk.f32.mxu0 %vm7220_vm0, %v8920_v2  ;;  %6988 = vmatprep.mubr.msk.f32.mxu1 %vm7220_vm0, %v8920_v2 }
  0x6e   : > { %6991 = vmatprep.subr.mxu0 %v8920_v2  ;;  %6996 = vmatprep.subr.mxu1 %v8920_v2 }
  0x6f   : > { %6984 = vmatmul.mubr.msk.f32.vlgmr.msra.gmra.mxu0 %vm409_vm1, %v4242_v45  ;;  %6989 = vmatmul.mubr.msk.f32.vlgmr.msra.gmra.mxu1 %vm409_vm1, %v4243_v46 }
  0x70   : > { %6992 = vmatpush3.xpose.msk.msra.mxu0 %vm409_vm1, %v7334_v12  ;;  %6997 = vmatpush3.xpose.msk.msra.mxu1 %vm409_vm1, %v7341_v15 }
  0x71   : > { %6993 = vmatprep.mubr.msk.f32.mxu0 %vm7220_vm0, %v8920_v2  ;;  %6998 = vmatprep.mubr.msk.f32.mxu1 %vm7220_vm0, %v8920_v2 }
  0x72   : > { %7001 = vmatprep.subr.mxu0 %v8920_v2  ;;  %7006 = vmatprep.subr.mxu1 %v8920_v2 }
  0x73   : > { %6994 = vmatmul.mubr.msk.f32.vlgmr.msra.gmra.mxu0 %vm409_vm1, %v4244_v49  ;;  %6999 = vmatmul.mubr.msk.f32.vlgmr.msra.gmra.mxu1 %vm409_vm1, %v4245_v50  ;;  %v720_v49 = vstv %s7104_s6  ;;  %s8038_s6 = spop %7139 }
  0x74   : > { %7002 = vmatpush3.xpose.msk.msra.mxu0 %vm409_vm1, %v7313_v6  ;;  %7007 = vmatpush3.xpose.msk.msra.mxu1 %vm409_vm1, %v7316_v7  ;;  %s8044_s13 = spop %7141 }
  0x75   : > { %7003 = vmatprep.mubr.msk.f32.mxu0 %vm7220_vm0, %v8920_v2  ;;  %7008 = vmatprep.mubr.msk.f32.mxu1 %vm7220_vm0, %v8920_v2 }
  0x76   : > { %7011 = vmatprep.subr.mxu0 %v8920_v2  ;;  %7016 = vmatprep.subr.mxu1 %v8920_v2 }
  0x77   : > { %7004 = vmatmul.mubr.msk.f32.vlgmr.msra.gmra.mxu0 %vm409_vm1, %v4590_v53  ;;  %7009 = vmatmul.mubr.msk.f32.vlgmr.msra.gmra.mxu1 %vm409_vm1, %v4591_v55  ;;  %v1068_v55 = vstv %s7108_s14  ;;  %s8046_s14 = spop %7143 }
  0x78   : > { %7012 = vmatpush3.xpose.msk.msra.mxu0 %vm409_vm1, %v7334_v12  ;;  %7017 = vmatpush3.xpose.msk.msra.mxu1 %vm409_vm1, %v7341_v15 }
  0x79   : > { %7013 = vmatprep.mubr.msk.f32.mxu0 %vm7220_vm0, %v8920_v2  ;;  %7018 = vmatprep.mubr.msk.f32.mxu1 %vm7220_vm0, %v8920_v2 }
  0x7a   : > { %7021 = vmatprep.subr.mxu0 %v8920_v2  ;;  %7026 = vmatprep.subr.mxu1 %v8920_v2  ;;  %s8052_s15 = spop %7145 }
  0x7b   : > { %7014 = vmatmul.mubr.msk.f32.vlgmr.msra.gmra.mxu0 %vm409_vm1, %v4592_v57  ;;  %7019 = vmatmul.mubr.msk.f32.vlgmr.msra.gmra.mxu1 %vm409_vm1, %v4593_v58 }
  0x7c   : > { %7022 = vmatpush3.xpose.msk.msra.mxu0 %vm409_vm1, %v7313_v6  ;;  %7027 = vmatpush3.xpose.msk.msra.mxu1 %vm409_vm1, %v7316_v7 }
  0x7d   : > { %7023 = vmatprep.mubr.msk.f32.mxu0 %vm7220_vm0, %v8920_v2  ;;  %7028 = vmatprep.mubr.msk.f32.mxu1 %vm7220_vm0, %v8920_v2 }
  0x7e   : > { %7031 = vmatprep.subr.mxu0 %v8920_v2  ;;  %7036 = vmatprep.subr.mxu1 %v8920_v2 }
  0x7f   : > { %7024 = vmatmul.mubr.msk.f32.vlgmr.msra.gmra.mxu0 %vm409_vm1, %v4938_v62  ;;  %7029 = vmatmul.mubr.msk.f32.vlgmr.msra.gmra.mxu1 %vm409_vm1, %v4939_v63 }
  0x80   : > { %7032 = vmatpush3.xpose.msk.msra.mxu0 %vm409_vm1, %v7334_v12  ;;  %7037 = vmatpush3.xpose.msk.msra.mxu1 %vm409_vm1, %v7341_v15 }
  0x81   : > { %7033 = vmatprep.mubr.msk.f32.mxu0 %vm7220_vm0, %v8920_v2  ;;  %7038 = vmatprep.mubr.msk.f32.mxu1 %vm7220_vm0, %v8920_v2 }
  0x82   : > { %7041 = vmatprep.subr.mxu0 %v8920_v2  ;;  %7046 = vmatprep.subr.mxu1 %v8920_v2 }
  0x83   : > { %7034 = vmatmul.mubr.msk.f32.vlgmr.msra.gmra.mxu0 %vm409_vm1, %v4940_v1  ;;  %7039 = vmatmul.mubr.msk.f32.vlgmr.msra.gmra.mxu1 %vm409_vm1, %v4941_v3 }
  0x84   : > { %7042 = vmatpush3.xpose.msk.msra.mxu0 %vm409_vm1, %v7313_v6  ;;  %7047 = vmatpush3.xpose.msk.msra.mxu1 %vm409_vm1, %v7316_v7 }
  0x85   : > { %7043 = vmatprep.mubr.msk.f32.mxu0 %vm7220_vm0, %v8920_v2  ;;  %7048 = vmatprep.mubr.msk.f32.mxu1 %vm7220_vm0, %v8920_v2 }
  0x86   : > { %7051 = vmatprep.subr.mxu0 %v8920_v2  ;;  %7056 = vmatprep.subr.mxu1 %v8920_v2 }
  0x87   : > { %7044 = vmatmul.mubr.msk.f32.vlgmr.msra.gmra.mxu0 %vm409_vm1, %v5286_v4  ;;  %7049 = vmatmul.mubr.msk.f32.vlgmr.msra.gmra.mxu1 %vm409_vm1, %v5287_v20 }
  0x88   : > { %7052 = vmatpush3.xpose.msk.msra.mxu0 %vm409_vm1, %v7334_v12  ;;  %7057 = vmatpush3.xpose.msk.msra.mxu1 %vm409_vm1, %v7341_v15 }
  0x89   : > { %7053 = vmatprep.mubr.msk.f32.mxu0 %vm7220_vm0, %v8920_v2  ;;  %7058 = vmatprep.mubr.msk.f32.mxu1 %vm7220_vm0, %v8920_v2 }
  0x8a   : > { %7061 = vmatprep.subr.mxu0 %v8920_v2  ;;  %7066 = vmatprep.subr.mxu1 %v8920_v2 }
  0x8b   : > { %7054 = vmatmul.mubr.msk.f32.vlgmr.msra.gmra.mxu0 %vm409_vm1, %v5288_v23  ;;  %7059 = vmatmul.mubr.msk.f32.vlgmr.msra.gmra.mxu1 %vm409_vm1, %v5289_v24 }
  0x8c   : > { %7062 = vmatpush3.xpose.msk.msra.mxu0 %vm409_vm1, %v7313_v6  ;;  %7067 = vmatpush3.xpose.msk.msra.mxu1 %vm409_vm1, %v7316_v7  ;;  %v5636_v6 = vmul.f32 %v5633_v25, %v7344_v16  ;;  %v5242_v7 = vrot.slane %v7717_v44, 5  ;;  %v5638_v16 = vrot.slane %v7695_v40, 7 }
  0x8d   : > { %7063 = vmatprep.mubr.msk.f32.mxu0 %vm7220_vm0, %v8920_v2  ;;  %7068 = vmatprep.mubr.msk.f32.mxu1 %vm7220_vm0, %v8920_v2 }
  0x8e   : > { %7071 = vmatprep.subr.mxu0 %v8920_v2  ;;  %7076 = vmatprep.subr.mxu1 %v8920_v2  ;;  %7155 = vpush %v5242_v7 }
  0x8f   : > { %7064 = vmatmul.mubr.msk.f32.vlgmr.msra.gmra.mxu0 %vm409_vm1, %v5634_v21  ;;  %7069 = vmatmul.mubr.msk.f32.vlgmr.msra.gmra.mxu1 %vm409_vm1, %v5635_v28 }
  0x90   : > { %7072 = vmatpush3.xpose.msk.msra.mxu0 %vm409_vm1, %v7334_v12  ;;  %7077 = vmatpush3.xpose.msk.msra.mxu1 %vm409_vm1, %v7341_v15  ;;  %v5290_v12 = vrot.slane %v7695_v40, 6  ;;  %v5590_v15 = vrot.slane %v7717_v44, 6 }
  0x91   : > { %7073 = vmatprep.mubr.msk.f32.mxu0 %vm7220_vm0, %v8920_v2  ;;  %7078 = vmatprep.mubr.msk.f32.mxu1 %vm7220_vm0, %v8920_v2 }
  0x92   : > { %7176 = vset.pattern.permute.xlu0 %v7221_v30  ;;  %7081 = vmatprep.subr.mxu0 %v8920_v2  ;;  %7157 = vpush %v5290_v12 }
  0x93   : > { %7074 = vmatmul.mubr.msk.f32.vlgmr.msra.gmra.mxu0 %vm409_vm1, %v5636_v6  ;;  %7079 = vmatmul.mubr.msk.f32.vlgmr.msra.gmra.mxu1 %vm409_vm1, %v5637_v8  ;;  %7159 = vpush %v5590_v15 }
  0x94   : > { %6030 = vperm.xlu0 %7176, %v6615_v11   ;;  %7083 = vmatprep.mubr.msk.f32.mxu0 %vm7220_vm0, %v8920_v2  ;;  %7161 = vpush %v5638_v16  ;;  %v1416_v16 = vstv %s7112_s16  ;;  %s8058_s16 = spop %7147 }
  0x95   : > { %7086 = vmatprep.subr.mxu1 %v8920_v2  ;;  %7088 = vmatprep.mubr.msk.f32.mxu1 %vm7220_vm0, %v8920_v2  ;;  %7163 = vpush %v5938_v17 }
  0xd7   : > { %v482_v31 = vpop.f32.mrf.mxu0  ;;  %v558_v32 = vpop.f32.mrf.mxu1 }
  0xd8   : > { %v7894_v35 = vadd.f32 %v482_v31, %v407_v33  ;;  %v7896_v36 = vadd.f32 %v558_v32, %v407_v33 }
  0xd9   : > { %v6765_v34 = vpop.f32.mrf.mxu0  ;;  %v6770_v18 = vpop.f32.mrf.mxu1 }
  0xda   : > { %9009 = vst [vmem:[#allocation11_spill] sm:$0xff] %v7894_v35  ;;  %9010 = vst [vmem:[#allocation12_spill] sm:$0xff] %v7896_v36  ;;  %v8926_v42 = vmax.f32 %v7894_v35, 0.0  ;;  %v8925_v43 = vmax.f32 %v7896_v36, 0.0 }
  0xdb   : > { %v634_v38 = vpop.f32.mrf.mxu0  ;;  %v710_v19 = vpop.f32.mrf.mxu1 }
  0xdc   : > { %v7900_v44 = vadd.f32 %v634_v38, %v407_v33  ;;  %v7902_v45 = vadd.f32 %v710_v19, %v407_v33  ;;  %v722_v61 = vmul.f32 %v720_v49, %v8926_v42  ;;  %v723_v62 = vmul.f32 %v720_v49, %v8925_v43 }
  0xdd   : > { %v6775_v39 = vpop.f32.mrf.mxu0  ;;  %v6780_v40 = vpop.f32.mrf.mxu1 }
  0xde   : > { %9011 = vst [vmem:[#allocation13_spill] sm:$0xff] %v7902_v45  ;;  %v8936_v58 = vmax.f32 %v7900_v44, 0.0  ;;  %v8924_v59 = vmax.f32 %v7902_v45, 0.0 }
  0xdf   : > { %v839_v46 = vpop.f32.mrf.mxu0  ;;  %v912_v47 = vpop.f32.mrf.mxu1 }
  0xe0   : > { %v7904_v50 = vadd.f32 %v839_v46, %v768_v41  ;;  %v7906_v51 = vadd.f32 %v912_v47, %v768_v41  ;;  %v724_v21 = vmul.f32 %v720_v49, %v8936_v58  ;;  %v725_v28 = vmul.f32 %v720_v49, %v8924_v59 }
  0xe1   : > { %v6785_v52 = vpop.f32.mrf.mxu0  ;;  %v6790_v53 = vpop.f32.mrf.mxu1  ;;  %v1464_v47 = vstv %s7114_s18  ;;  %s8062_s18 = spop %7149 }
  0xe2   : > { %9012 = vst [vmem:[#allocation14_spill] sm:$0xff] %v7906_v51  ;;  %v8935_v56 = vmax.f32 %v7904_v50, 0.0  ;;  %v8923_v57 = vmax.f32 %v7906_v51, 0.0  ;;  %v8115_v45 = vstv %s8062_s18 }
  0xe3   : > { %v985_v63 = vpop.f32.mrf.mxu0  ;;  %v1058_v0 = vpop.f32.mrf.mxu1 }
  0xe4   : > { %v1070_v1 = vmul.f32 %v1068_v55, %v8935_v56  ;;  %v1071_v3 = vmul.f32 %v1068_v55, %v8923_v57  ;;  %v7920_v13 = vadd.f32 %v985_v63, %v768_v41  ;;  %v7922_v14 = vadd.f32 %v1058_v0, %v768_v41 }
  0xe5   : > { %v6795_v4 = vpop.f32.mrf.mxu0  ;;  %v6800_v20 = vpop.f32.mrf.mxu1 }
  0xe6   : > { %9013 = vst [vmem:[#allocation15_spill] sm:$0xff] %v7922_v14  ;;  %v1074_v23 = vadd.f32 %v1070_v1, %v722_v61  ;;  %v1075_v24 = vadd.f32 %v1071_v3, %v723_v62  ;;  %v8934_v25 = vmax.f32 %v7920_v13, 0.0  ;;  %v8919_v26 = vmax.f32 %v7922_v14, 0.0 }
  0xe7   : > { %v1187_v29 = vpop.f32.mrf.mxu0  ;;  %v1260_v6 = vpop.f32.mrf.mxu1 }
  0xe8   : > { %v1072_v8 = vmul.f32 %v1068_v55, %v8934_v25  ;;  %v1073_v7 = vmul.f32 %v1068_v55, %v8919_v26  ;;  %v7934_v11 = vadd.f32 %v1187_v29, %v1116_v22  ;;  %v7936_v30 = vadd.f32 %v1260_v6, %v1116_v22 }
  0xe9   : > { %v6805_v12 = vpop.f32.mrf.mxu0  ;;  %v6810_v15 = vpop.f32.mrf.mxu1  ;;  %v8003_v26 = vstv %s7124_s24 }
  0xea   : > { %9014 = vst [vmem:[#allocation16_spill] sm:$0xff] %v7936_v30  ;;  %v1076_v17 = vadd.f32 %v1072_v8, %v724_v21  ;;  %v1077_v31 = vadd.f32 %v1073_v7, %v725_v28  ;;  %v8933_v32 = vmax.f32 %v7934_v11, 0.0  ;;  %v8918_v33 = vmax.f32 %v7936_v30, 0.0 }
  0xeb   : > { %v1333_v34 = vpop.f32.mrf.mxu0  ;;  %v1406_v18 = vpop.f32.mrf.mxu1  ;;  %v8106_v30 = vstv %s8058_s16  ;;  %s6624_s16 = sshll.u32 %s9152_s12, 5 }
  0xec   : > { %v1418_v38 = vmul.f32 %v1416_v16, %v8933_v32  ;;  %v1419_v19 = vmul.f32 %v1416_v16, %v8918_v33  ;;  %v7944_v39 = vadd.f32 %v1333_v34, %v1116_v22  ;;  %v7946_v40 = vadd.f32 %v1406_v18, %v1116_v22 }
  0xed   : > { %v6815_v41 = vpop.f32.mrf.mxu0  ;;  %v6820_v46 = vpop.f32.mrf.mxu1  ;;  %v1764_v22 = vstv %s7116_s19  ;;  %s7152_s19 = spop %7151 }
  0xee   : > { %9015 = vst [vmem:[#allocation17_spill] sm:$0xff] %v7946_v40  ;;  %v1422_v49 = vadd.f32 %v1418_v38, %v1074_v23  ;;  %v1423_v52 = vadd.f32 %v1419_v19, %v1075_v24  ;;  %v8932_v53 = vmax.f32 %v7944_v39, 0.0  ;;  %v8917_v55 = vmax.f32 %v7946_v40, 0.0 }
  0xef   : > { %v1535_v61 = vpop.f32.mrf.mxu0  ;;  %v1608_v62 = vpop.f32.mrf.mxu1  ;;  %v8103_v40 = vstv %s8052_s15 }
  0xf0   : > { %v1420_v63 = vmul.f32 %v1416_v16, %v8932_v53  ;;  %v1421_v0 = vmul.f32 %v1416_v16, %v8917_v55  ;;  %v7954_v1 = vadd.f32 %v1535_v61, %v1464_v47  ;;  %v7956_v3 = vadd.f32 %v1608_v62, %v1464_v47 }
  0xf1   : > { %v6825_v4 = vpop.f32.mrf.mxu0  ;;  %v6830_v20 = vpop.f32.mrf.mxu1 }
  0xf2   : > { %9016 = vst [vmem:[#allocation18_spill] sm:$0xff] %v7956_v3  ;;  %v1424_v23 = vadd.f32 %v1420_v63, %v1076_v17  ;;  %v1425_v24 = vadd.f32 %v1421_v0, %v1077_v31  ;;  %v8931_v21 = vmax.f32 %v7954_v1, 0.0  ;;  %v8915_v28 = vmax.f32 %v7956_v3, 0.0 }
  0xf3   : > { %v1681_v29 = vpop.f32.mrf.mxu0  ;;  %v1754_v6 = vpop.f32.mrf.mxu1  ;;  %v1812_v31 = vstv %s7118_s21  ;;  %s8074_s21 = spop %7153 }
  0xf4   : > { %v1766_v8 = vmul.f32 %v1764_v22, %v8931_v21  ;;  %v1767_v7 = vmul.f32 %v1764_v22, %v8915_v28  ;;  %v7964_v12 = vadd.f32 %v1681_v29, %v1464_v47  ;;  %v7966_v15 = vadd.f32 %v1754_v6, %v1464_v47 }
  0xf5   : > { %v6835_v16 = vpop.f32.mrf.mxu0  ;;  %v6840_v17 = vpop.f32.mrf.mxu1  ;;  %v8135_v35 = vstv %s8074_s21  ;;  %s371_s21 = scalar_lea.vmem %s8913_s9, %s6624_s16 }
  0xf6   : > { %9017 = vst [vmem:[#allocation19_spill] sm:$0xff] %v7964_v12  ;;  %9018 = vst [vmem:[#allocation20_spill] sm:$0xff] %v7966_v15  ;;  %v1770_v34 = vadd.f32 %v1766_v8, %v1422_v49  ;;  %v1771_v18 = vadd.f32 %v1767_v7, %v1423_v52  ;;  %v8930_v38 = vmax.f32 %v7964_v12, 0.0  ;;  %v8914_v19 = vmax.f32 %v7966_v15, 0.0 }
  0xf7   : > { %v1883_v41 = vpop.f32.mrf.mxu0  ;;  %v1956_v46 = vpop.f32.mrf.mxu1  ;;  %v2112_v52 = vstv %s7120_s22  ;;  %s7156_s22 = spop %7155 }
  0xf8   : > { %v1768_v61 = vmul.f32 %v1764_v22, %v8930_v38  ;;  %v1769_v62 = vmul.f32 %v1764_v22, %v8914_v19  ;;  %v7974_v47 = vadd.f32 %v1883_v41, %v1812_v31  ;;  %v7976_v63 = vadd.f32 %v1956_v46, %v1812_v31 }
  0xf9   : > { %v6845_v0 = vpop.f32.mrf.mxu0  ;;  %v6850_v49 = vpop.f32.mrf.mxu1  ;;  %v8137_v37 = vstv %s7156_s22 }
  0xfa   : > { %9019 = vst [vmem:[#allocation21_spill] sm:$0xff] %v7974_v47  ;;  %9020 = vst [vmem:[#allocation22_spill] sm:$0xff] %v7976_v63  ;;  %v1772_v4 = vadd.f32 %v1768_v61, %v1424_v23  ;;  %v1773_v20 = vadd.f32 %v1769_v62, %v1425_v24  ;;  %v8929_v29 = vmax.f32 %v7974_v47, 0.0  ;;  %v8916_v6 = vmax.f32 %v7976_v63, 0.0 }
  0xfb   : > { %v2029_v8 = vpop.f32.mrf.mxu0  ;;  %v2102_v7 = vpop.f32.mrf.mxu1  ;;  %v8098_v63 = vstv %s8046_s14 }
  0xfc   : > { %v2114_v16 = vmul.f32 %v2112_v52, %v8929_v29  ;;  %v2115_v22 = vmul.f32 %v2112_v52, %v8916_v6  ;;  %v7984_v17 = vadd.f32 %v2029_v8, %v1812_v31  ;;  %v7986_v41 = vadd.f32 %v2102_v7, %v1812_v31 }
  0xfd   : > { %v6855_v46 = vpop.f32.mrf.mxu0  ;;  %v6860_v0 = vpop.f32.mrf.mxu1 }
  0xfe   : > { %9021 = vst [vmem:[#allocation23_spill] sm:$0xff] %v7984_v17  ;;  %9022 = vst [vmem:[#allocation24_spill] sm:$0xff] %v7986_v41  ;;  %v7988_v23 = vadd.f32 %v2114_v16, %v1770_v34  ;;  %v7990_v24 = vadd.f32 %v2115_v22, %v1771_v18  ;;  %v8927_v61 = vmax.f32 %v7984_v17, 0.0  ;;  %v8922_v62 = vmax.f32 %v7986_v41, 0.0 }
  0xff   : > { %v2231_v49 = vpop.f32.mrf.mxu0  ;;  %v2304_v19 = vpop.f32.mrf.mxu1  ;;  %v2160_v18 = vstv %s7122_s23  ;;  %v8092_v41 = vstv %s8038_s6  ;;  %s7158_s23 = spop %7157 }
 0x100   : > { %v2116_v28 = vmul.f32 %v2112_v52, %v8927_v61  ;;  %v2117_v8 = vmul.f32 %v2112_v52, %v8922_v62  ;;  %v8048_v21 = vadd.f32 %v2231_v49, %v2160_v18  ;;  %v8050_v53 = vadd.f32 %v2304_v19, %v2160_v18  ;;  %s7160_s24 = spop %7159 }
 0x101   : > { %v6865_v31 = vpop.f32.mrf.mxu0  ;;  %v6870_v7 = vpop.f32.mrf.mxu1  ;;  %v2808_v49 = vstv %s7128_s26 }
 0x102   : > { %v7998_v46 = vadd.f32 %v2116_v28, %v1772_v4  ;;  %v2121_v34 = vadd.f32 %v2117_v8, %v1773_v20  ;;  %9024 = vst [vmem:[#allocation26_spill] sm:$0xff] %v8048_v21  ;;  %9025 = vst [vmem:[#allocation27_spill] sm:$0xff] %v8050_v53  ;;  %v9030_v51 = vmax.f32 %v8050_v53, 0.0 }
 0x103   : > { %v2377_v16 = vpop.f32.mrf.mxu0  ;;  %v2450_v22 = vpop.f32.mrf.mxu1 }
 0x104   : > { %v8000_v0 = vadd.f32 %v2450_v22, %v2160_v18  ;;  %v8060_v25 = vadd.f32 %v2377_v16, %v2160_v18  ;;  %v8071_v16 = vstv %s8026_s28  ;;  %v9029_v18 = vmax.f32 %v8048_v21, 0.0 }
 0x105   : > { %v6875_v6 = vpop.f32.mrf.mxu0  ;;  %v6880_v55 = vpop.f32.mrf.mxu1  ;;  %v2463_v54 = vmul.f32 %v8003_v26, %v9030_v51  ;;  %v8145_v21 = vstv %s7160_s24 }
 0x106   : > { %9023 = vst [vmem:[#allocation25_spill] sm:$0xff] %v8000_v0  ;;  %v8928_v33 = vmax.f32 %v8000_v0, 0.0  ;;  %9026 = vst [vmem:[#allocation28_spill] sm:$0xff] %v8060_v25  ;;  %v2462_v14 = vmul.f32 %v8003_v26, %v9029_v18  ;;  %v9031_v51 = vmax.f32 %v8060_v25, 0.0 }
 0x107   : > { %v2579_v2 = vpop.f32.mrf.mxu0  ;;  %v2652_v52 = vpop.f32.mrf.mxu1 }
 0x108   : > { %v2465_v28 = vmul.f32 %v8003_v26, %v8928_v33  ;;  %v2464_v48 = vmul.f32 %v8003_v26, %v9031_v51  ;;  %v2466_v26 = vadd.f32 %v2462_v14, %v7988_v23  ;;  %v2467_v51 = vadd.f32 %v2463_v54, %v7990_v24 }
 0x109   : > { %v6885_v4 = vpop.f32.mrf.mxu0  ;;  %v6890_v20 = vpop.f32.mrf.mxu1 }
 0x10a   : > { %v8008_v8 = vadd.f32 %v2465_v28, %v2121_v34  ;;  %v2468_v54 = vadd.f32 %v2464_v48, %v7998_v46 }
 0x10b   : > { %v2725_v31 = vpop.f32.mrf.mxu0  ;;  %v2798_v7 = vpop.f32.mrf.mxu1 }
 0x10d   : > { %v6895_v22 = vpop.f32.mrf.mxu0  ;;  %v6900_v62 = vpop.f32.mrf.mxu1 }
 0x10f   : > { %v8010_v6 = vpop.f32.mrf.mxu0  ;;  %v8012_v55 = vpop.f32.mrf.mxu1 }
 0x111   : > { %v6905_v57 = vpop.f32.mrf.mxu0  ;;  %v6910_v59 = vpop.f32.mrf.mxu1 }
 0x113   : > { %v8014_v43 = vpop.f32.mrf.mxu0  ;;  %v8016_v42 = vpop.f32.mrf.mxu1 }
 0x115   : > { %v6915_v61 = vpop.f32.mrf.mxu0  ;;  %v6920_v33 = vpop.f32.mrf.mxu1 }
 0x117   : > { %v8018_v4 = vpop.f32.mrf.mxu0  ;;  %v8020_v34 = vpop.f32.mrf.mxu1 }
 0x119   : > { %v6925_v28 = vpop.f32.mrf.mxu0  ;;  %v6930_v20 = vpop.f32.mrf.mxu1 }
 0x11b   : > { %v8022_v22 = vpop.f32.mrf.mxu0  ;;  %v8024_v62 = vpop.f32.mrf.mxu1 }
 0x11d   : > { %v6935_v57 = vpop.f32.mrf.mxu0  ;;  %v6940_v59 = vpop.f32.mrf.mxu1 }
 0x11f   : > { %v8028_v29 = vpop.f32.mrf.mxu0  ;;  %v8030_v33 = vpop.f32.mrf.mxu1 }
 0x121   : > { %v6945_v61 = vpop.f32.mrf.mxu0  ;;  %v6950_v28 = vpop.f32.mrf.mxu1 }
 0x122   : > { %v2508_v61 = vstv %s7126_s25  ;;  %s7162_s25 = spop %7161 }
 0x123   : > { %v8040_v20 = vpop.f32.mrf.mxu0  ;;  %v8042_v57 = vpop.f32.mrf.mxu1  ;;  %v8066_v19 = vadd.f32 %v2652_v52, %v2508_v61  ;;  %v8078_v52 = vadd.f32 %v2798_v7, %v2508_v61  ;;  %v8117_v7 = vstv %s7152_s19  ;;  %v8147_v17 = vstv %s7162_s25  ;;  %s7164_s26 = spop %7163 }
 0x124   : > { %v8174_v23 = vstv %s7164_s26 }
 0x125   : > { %v6955_v59 = vpop.f32.mrf.mxu0  ;;  %v6960_v38 = vpop.f32.mrf.mxu1  ;;  %9028 = vst [vmem:[#allocation30_spill] sm:$0xff] %v8066_v19 }
 0x126   : > { %v8064_v38 = vadd.f32 %v2579_v2, %v2508_v61  ;;  %v2856_v59 = vstv %s7130_s27  ;;  %v8076_v2 = vadd.f32 %v2725_v31, %v2508_v61  ;;  %v8095_v31 = vstv %s8044_s13  ;;  %s6479_s27 = sshll.u32 %s9152_s12, 3 }
 0x127   : > { %v8054_v28 = vpop.f32.mrf.mxu0  ;;  %v8056_v32 = vpop.f32.mrf.mxu1  ;;  %v8122_v61 = vadd.f32 %v8010_v6, %v2856_v59  ;;  %v8125_v36 = vadd.f32 %v8012_v55, %v2856_v59  ;;  %v9033_v55 = vmax.f32 %v8066_v19, 0.0  ;;  %v8152_v25 = vadd.f32 %v8014_v43, %v2856_v59 }
 0x128   : > { %9027 = vst [vmem:[#allocation29_spill] sm:$0xff] %v8064_v38  ;;  %v9032_v6 = vmax.f32 %v8064_v38, 0.0  ;;  %v8155_v38 = vadd.f32 %v8016_v42, %v2856_v59  ;;  %v8169_v43 = vadd.f32 %v8018_v4, %v3204_v60  ;;  %v8172_v42 = vadd.f32 %v8020_v34, %v3204_v60 }
 0x129   : > { %v6965_v56 = vpop.f32.mrf.mxu0  ;;  %v6970_v58 = vpop.f32.mrf.mxu1  ;;  %v2811_v27 = vmul.f32 %v2808_v49, %v9033_v55  ;;  %v8973_v19 = vmax.f32 %v8122_v61, 0.0  ;;  %v8177_v59 = vadd.f32 %v8022_v22, %v3204_v60  ;;  %v8974_v48 = vmax.f32 %v8152_v25, 0.0 }
 0x12a   : > { %v8081_v56 = vstv %s8034_s30  ;;  %v8084_v58 = vstv %s8036_s10  ;;  %9034 = vst [vmem:[#allocation31_spill] sm:$0xff] %v8155_v38  ;;  %9037 = vst [vmem:[#allocation32_spill] sm:$0xff] %v8172_v42  ;;  %v8975_v46 = vmax.f32 %v8155_v38, 0.0  ;;  %s366_s30 = scalar_lea.vmem %s8906_s2, %s6479_s27 }
 0x12b   : > { %v8086_v0 = vpop.f32.mrf.mxu0  ;;  %v8088_v9 = vpop.f32.mrf.mxu1  ;;  %v8186_v4 = vadd.f32 %v8028_v29, %v8084_v58  ;;  %v8190_v34 = vadd.f32 %v8030_v33, %v8084_v58  ;;  %v8976_v29 = vmax.f32 %v8169_v43, 0.0  ;;  %v8203_v33 = vadd.f32 %v8040_v20, %v8084_v58 }
 0x12c   : > { %v3160_v20 = vmul.f32 %v8071_v16, %v8974_v48 }
 0x12d   : > { %v6975_v15 = vpop.f32.mrf.mxu0  ;;  %v6980_v3 = vpop.f32.mrf.mxu1  ;;  %9039 = vst [vmem:[#allocation34_spill] sm:$0xff] %v8190_v34  ;;  %v9045_v38 = vmax.f32 %v8190_v34, 0.0 }
 0x12e   : > { %v8139_v3 = vstv %s7158_s23  ;;  %v2810_v15 = vmul.f32 %v2808_v49, %v9032_v6  ;;  %v9035_v6 = vmax.f32 %v8076_v2, 0.0 }
 0x12f   : > { %v8127_v18 = vpop.f32.mrf.mxu0  ;;  %v8129_v53 = vpop.f32.mrf.mxu1 }
 0x130   : > { %v2812_v55 = vmul.f32 %v2808_v49, %v9035_v6  ;;  %v2814_v24 = vadd.f32 %v2810_v15, %v2466_v26  ;;  %v8180_v6 = vadd.f32 %v8024_v62, %v3204_v60  ;;  %v3158_v60 = vmul.f32 %v8071_v16, %v8973_v19 }
 0x131   : > { %v6985_v10 = vpop.f32.mrf.mxu0  ;;  %v6990_v5 = vpop.f32.mrf.mxu1 }
 0x132   : > { %v9036_v5 = vmax.f32 %v8078_v52, 0.0  ;;  %9038 = vst [vmem:[#allocation33_spill] sm:$0xff] %v8180_v6 }
 0x133   : > { %v8163_v12 = vpop.f32.mrf.mxu0  ;;  %v8165_v14 = vpop.f32.mrf.mxu1 }
 0x134   : > { %v2813_v10 = vmul.f32 %v2808_v49, %v9036_v5  ;;  %v2815_v49 = vadd.f32 %v2811_v27, %v2467_v51  ;;  %v2816_v27 = vadd.f32 %v2812_v55, %v2468_v54  ;;  %v8978_v51 = vmax.f32 %v8172_v42, 0.0 }
 0x135   : > { %v6995_v5 = vpop.f32.mrf.mxu0  ;;  %v7000_v47 = vpop.f32.mrf.mxu1  ;;  %v8213_v54 = vadd.f32 %v8054_v28, %v8095_v31  ;;  %v3162_v28 = vadd.f32 %v3158_v60, %v2814_v24  ;;  %v9044_v24 = vmax.f32 %v8186_v4, 0.0 }
 0x136   : > { %v2817_v22 = vadd.f32 %v2813_v10, %v8008_v8  ;;  %v9040_v47 = vmax.f32 %v8125_v36, 0.0  ;;  %v8207_v8 = vadd.f32 %v8042_v57, %v8084_v58  ;;  %v8217_v5 = vadd.f32 %v8056_v32, %v8095_v31 }
 0x137   : > { %v4667_v15 = vpop.f32.mrf.mxu0  ;;  %v4740_v26 = vpop.f32.mrf.mxu1  ;;  %v3161_v57 = vmul.f32 %v8071_v16, %v8975_v46  ;;  %v8229_v32 = vadd.f32 %v8086_v0, %v8095_v31  ;;  %v3507_v46 = vmul.f32 %v8081_v56, %v8978_v51  ;;  %v9042_v0 = vmax.f32 %v8177_v59, 0.0 }
 0x138   : > { %v3159_v62 = vmul.f32 %v8071_v16, %v9040_v47  ;;  %9041 = vst [vmem:[#allocation35_spill] sm:$0xff] %v8207_v8  ;;  %v3506_v16 = vmul.f32 %v8081_v56, %v8976_v29  ;;  %v3164_v42 = vadd.f32 %v3160_v20, %v2816_v27  ;;  %v8265_v27 = vadd.f32 %v8129_v53, %v8103_v40 }
 0x139   : > { %v7005_v47 = vpop.f32.mrf.mxu0  ;;  %v7010_v19 = vpop.f32.mrf.mxu1  ;;  %v3508_v60 = vmul.f32 %v8081_v56, %v9042_v0  ;;  %v3165_v51 = vadd.f32 %v3161_v57, %v2817_v22  ;;  %v3855_v0 = vmul.f32 %v8092_v41, %v9045_v38  ;;  %v9048_v53 = vmax.f32 %v8217_v5, 0.0 }
 0x13a   : > { %v3163_v55 = vadd.f32 %v3159_v62, %v2815_v49  ;;  %v8233_v19 = vadd.f32 %v8088_v9, %v8095_v31  ;;  %v9043_v9 = vmax.f32 %v8180_v6, 0.0  ;;  %v8984_v62 = vmax.f32 %v8213_v54, 0.0 }
 0x13b   : > { %v4813_v47 = vpop.f32.mrf.mxu0  ;;  %v4886_v48 = vpop.f32.mrf.mxu1  ;;  %v3854_v49 = vmul.f32 %v8092_v41, %v9044_v24  ;;  %v3510_v20 = vadd.f32 %v3506_v16, %v3162_v28  ;;  %v9047_v24 = vmax.f32 %v8207_v8, 0.0  ;;  %v3512_v6 = vadd.f32 %v3508_v60, %v3164_v42 }
 0x13c   : > { %v3509_v31 = vmul.f32 %v8081_v56, %v9043_v9  ;;  %v8261_v9 = vadd.f32 %v8127_v18, %v8103_v40  ;;  %v3511_v57 = vadd.f32 %v3507_v46, %v3163_v55  ;;  %v4202_v18 = vmul.f32 %v8098_v63, %v8984_v62 }
 0x13d   : > { %v7015_v10 = vpop.f32.mrf.mxu0  ;;  %v7020_v58 = vpop.f32.mrf.mxu1  ;;  %v3857_v56 = vmul.f32 %v8092_v41, %v9047_v24  ;;  %v4203_v34 = vmul.f32 %v8098_v63, %v9048_v53  ;;  %v3858_v55 = vadd.f32 %v3854_v49, %v3510_v20  ;;  %v8283_v8 = vadd.f32 %v4740_v26, %v8115_v45 }
 0x13e   : > { %v9046_v58 = vmax.f32 %v8203_v33, 0.0  ;;  %v3513_v29 = vadd.f32 %v3509_v31, %v3165_v51  ;;  %v3859_v16 = vadd.f32 %v3855_v0, %v3511_v57  ;;  %v9050_v51 = vmax.f32 %v8233_v19, 0.0 }
 0x13f   : > { %v5015_v22 = vpop.f32.mrf.mxu0  ;;  %v5088_v10 = vpop.f32.mrf.mxu1  ;;  %v8983_v31 = vmax.f32 %v8261_v9, 0.0  ;;  %v8989_v24 = vmax.f32 %v8265_v27, 0.0  ;;  %v8295_v26 = vadd.f32 %v8163_v12, %v8103_v40  ;;  %v8299_v57 = vadd.f32 %v8165_v14, %v8103_v40 }
 0x140   : > { %v3856_v38 = vmul.f32 %v8092_v41, %v9046_v58  ;;  %v8280_v58 = vadd.f32 %v4667_v15, %v8115_v45  ;;  %v9049_v41 = vmax.f32 %v8229_v32, 0.0  ;;  %v4205_v60 = vmul.f32 %v8098_v63, %v9050_v51 }
 0x141   : > { %v7025_v28 = vpop.f32.mrf.mxu0  ;;  %v7030_v46 = vpop.f32.mrf.mxu1  ;;  %v3861_v15 = vadd.f32 %v3857_v56, %v3513_v29  ;;  %v4206_v53 = vadd.f32 %v4202_v18, %v3858_v55  ;;  %v8986_v29 = vmax.f32 %v8283_v8, 0.0  ;;  %v8310_v12 = vadd.f32 %v4813_v47, %v8115_v45 }
 0x142   : > { %v4204_v42 = vmul.f32 %v8098_v63, %v9049_v41  ;;  %v3860_v20 = vadd.f32 %v3856_v38, %v3512_v6  ;;  %v4207_v28 = vadd.f32 %v4203_v34, %v3859_v16  ;;  %v8302_v63 = vadd.f32 %v5015_v22, %v8135_v35 }
 0x143   : > { %v5161_v49 = vpop.f32.mrf.mxu0  ;;  %v5234_v0 = vpop.f32.mrf.mxu1  ;;  %v8305_v46 = vadd.f32 %v5088_v10, %v8135_v35  ;;  %v8985_v6 = vmax.f32 %v8280_v58, 0.0  ;;  %v8313_v40 = vadd.f32 %v4886_v48, %v8115_v45  ;;  %v4209_v34 = vadd.f32 %v4205_v60, %v3861_v15 }
 0x144   : > { %v4208_v14 = vadd.f32 %v4204_v42, %v3860_v20  ;;  %v4550_v56 = vmul.f32 %v8106_v30, %v8983_v31  ;;  %v4551_v22 = vmul.f32 %v8106_v30, %v8989_v24  ;;  %v8987_v18 = vmax.f32 %v8295_v26, 0.0 }
 0x145   : > { %v7035_v41 = vpop.f32.mrf.mxu0  ;;  %v7040_v51 = vpop.f32.mrf.mxu1  ;;  %v8988_v47 = vmax.f32 %v8299_v57, 0.0  ;;  %v8990_v48 = vmax.f32 %v8302_v63, 0.0  ;;  %v8991_v16 = vmax.f32 %v8305_v46, 0.0  ;;  %v8332_v42 = vadd.f32 %v5161_v49, %v8135_v35 }
 0x146   : > { %v8335_v60 = vadd.f32 %v5234_v0, %v8135_v35  ;;  %v4898_v41 = vmul.f32 %v8117_v7, %v8985_v6  ;;  %v4899_v51 = vmul.f32 %v8117_v7, %v8986_v29  ;;  %v4554_v31 = vadd.f32 %v4550_v56, %v4206_v53 }
 0x147   : > { %v5363_v10 = vpop.f32.mrf.mxu0  ;;  %v5436_v38 = vpop.f32.mrf.mxu1  ;;  %v4555_v49 = vadd.f32 %v4551_v22, %v4207_v28  ;;  %v4553_v6 = vmul.f32 %v8106_v30, %v8988_v47  ;;  %v5246_v28 = vmul.f32 %v8137_v37, %v8990_v48  ;;  %v5247_v56 = vmul.f32 %v8137_v37, %v8991_v16 }
 0x148   : > { %v8324_v55 = vadd.f32 %v5363_v10, %v8139_v3  ;;  %v8327_v45 = vadd.f32 %v5436_v38, %v8139_v3  ;;  %v8992_v10 = vmax.f32 %v8310_v12, 0.0  ;;  %v8994_v38 = vmax.f32 %v8313_v40, 0.0 }
 0x149   : > { %v7045_v20 = vpop.f32.mrf.mxu0  ;;  %v7050_v15 = vpop.f32.mrf.mxu1  ;;  %v8998_v22 = vmax.f32 %v8332_v42, 0.0  ;;  %v4903_v24 = vadd.f32 %v4899_v51, %v4555_v49 }
 0x14a   : > { %9051 = vst [vmem:[#allocation36_spill] sm:$0xff] %v8324_v55  ;;  %v8993_v62 = vmax.f32 %v8324_v55, 0.0  ;;  %v8995_v35 = vmax.f32 %v8327_v45, 0.0  ;;  %v4552_v15 = vmul.f32 %v8106_v30, %v8987_v18  ;;  %v9000_v18 = vmax.f32 %v8335_v60, 0.0 }
 0x14b   : > { %v5509_v0 = vpop.f32.mrf.mxu0  ;;  %v5582_v20 = vpop.f32.mrf.mxu1 }
 0x14c   : > { %v8354_v29 = vadd.f32 %v5509_v0, %v8139_v3  ;;  %v8357_v53 = vadd.f32 %v5582_v20, %v8139_v3  ;;  %v4902_v0 = vadd.f32 %v4898_v41, %v4554_v31  ;;  %v4900_v3 = vmul.f32 %v8117_v7, %v8992_v10 }
 0x14d   : > { %v7055_v30 = vpop.f32.mrf.mxu0  ;;  %v7060_v47 = vpop.f32.mrf.mxu1  ;;  %v4901_v20 = vmul.f32 %v8117_v7, %v8994_v38  ;;  %v5594_v48 = vmul.f32 %v8145_v21, %v8993_v62  ;;  %v5595_v16 = vmul.f32 %v8145_v21, %v8995_v35  ;;  %v4556_v49 = vadd.f32 %v4552_v15, %v4208_v14 }
 0x14e   : > { %v4557_v30 = vadd.f32 %v4553_v6, %v4209_v34  ;;  %v5250_v62 = vadd.f32 %v5246_v28, %v4902_v0  ;;  %v5251_v38 = vadd.f32 %v5247_v56, %v4903_v24  ;;  %v5248_v35 = vmul.f32 %v8137_v37, %v8998_v22 }
 0x14f   : > { %v5711_v41 = vpop.f32.mrf.mxu0  ;;  %v5784_v51 = vpop.f32.mrf.mxu1  ;;  %v5249_v31 = vmul.f32 %v8137_v37, %v9000_v18  ;;  %v4904_v14 = vadd.f32 %v4900_v3, %v4556_v49  ;;  %v9052_v56 = vmax.f32 %v8354_v29, 0.0  ;;  %v9053_v37 = vmax.f32 %v8357_v53, 0.0 }
 0x150   : > { %v8383_v10 = vadd.f32 %v5711_v41, %v8147_v17  ;;  %v8386_v7 = vadd.f32 %v5784_v51, %v8147_v17  ;;  %v4905_v6 = vadd.f32 %v4901_v20, %v4557_v30  ;;  %v5598_v24 = vadd.f32 %v5594_v48, %v5250_v62  ;;  %v8417_v30 = vld [vmem:[%s366_s30] sm:$0xff] }
 0x151   : > { %v7065_v47 = vpop.f32.mrf.mxu0  ;;  %v7070_v55 = vpop.f32.mrf.mxu1  ;;  %v5599_v28 = vadd.f32 %v5595_v16, %v5251_v38  ;;  %v5596_v0 = vmul.f32 %v8145_v21, %v9052_v56  ;;  %v5252_v38 = vadd.f32 %v5248_v35, %v4904_v14  ;;  %vm6022_vm2 = vcmp.gt.f32.partialorder %v8417_v30, 0.0 }
 0x152   : > { %v8997_v34 = vmax.f32 %v8383_v10, 0.0  ;;  %v8999_v15 = vmax.f32 %v8386_v7, 0.0  ;;  %v5597_v55 = vmul.f32 %v8145_v21, %v9053_v37  ;;  %v6031_v16 = vpop.permute.xlu0 %6030  ;;  %v5253_v51 = vadd.f32 %v5249_v31, %v4905_v6 }
 0x153   : > { %v5857_v3 = vpop.f32.mrf.mxu0  ;;  %v5930_v20 = vpop.f32.mrf.mxu1 }
 0x154   : > { %v5942_v47 = vmul.f32 %v8174_v23, %v8997_v34  ;;  %v5943_v41 = vmul.f32 %v8174_v23, %v8999_v15  ;;  %v8412_v62 = vadd.f32 %v5857_v3, %v8147_v17  ;;  %v8415_v48 = vadd.f32 %v5930_v20, %v8147_v17 }
 0x155   : > { %v7075_v21 = vpop.f32.mrf.mxu0  ;;  %v7080_v49 = vpop.f32.mrf.mxu1  ;;  %v5600_v15 = vadd.f32 %v5596_v0, %v5252_v38  ;;  %v5601_v18 = vadd.f32 %v5597_v55, %v5253_v51 }
 0x156   : > { %v5936_v56 = vmax.f32 %v8412_v62, 0.0  ;;  %v5937_v37 = vmax.f32 %v8415_v48, 0.0  ;;  %v5947_v34 = vadd.f32 %v5943_v41, %v5599_v28  ;;  %v5946_v22 = vadd.f32 %v5942_v47, %v5598_v24  ;;  %v8584_v48 = vld [vmem:[%s8911_s7] sm:$0xff] }
 0x157   : > { %v9055_v41 = vmax.f32 %v7904_v50, 0.0  ;;  %v9056_v21 = vmax.f32 %v7920_v13, 0.0  ;;  %v9059_v13 = vmax.f32 %v7954_v1, 0.0  ;;  %v9064_v1 = vld [vmem:[#allocation23_spill] sm:$0xff] }
 0x158   : > { %v5944_v17 = vmul.f32 %v8174_v23, %v5936_v56  ;;  %v5945_v35 = vmul.f32 %v8174_v23, %v5937_v37  ;;  %v6034_v31 = vadd.f32 %v6031_v16, %v5947_v34  ;;  %v6033_v14 = vadd.f32 %v6031_v16, %v5946_v22 }
 0x159   : > { %v9054_v23 = vmax.f32 %v7900_v44, 0.0  ;;  %v1078_v38 = vmul.f32 %v9055_v41, %v8417_v30  ;;  %v1080_v49 = vmul.f32 %v9056_v21, %v8417_v30  ;;  %v9065_v41 = vmax.f32 %v9064_v1, 0.0 }
 0x15a   : > { %v5948_v6 = vadd.f32 %v5944_v17, %v5600_v15  ;;  %v5949_v3 = vadd.f32 %v5945_v35, %v5601_v18  ;;  %v8430_v28 = vsel %vm6022_vm2, %v6034_v31, -1e+09  ;;  %v8434_v24 = vsel %vm6022_vm2, %v6033_v14, -1e+09 }
 0x15b   : > { %v6046_v0 = vsel %vm409_vm1, %v8430_v28, -inf  ;;  %v6043_v55 = vsel %vm409_vm1, %v8434_v24, -inf  ;;  %v732_v22 = vmul.f32 %v9054_v23, %v8417_v30  ;;  %v1088_v50 = vsel %vm409_vm1, %v1080_v49, 0.0 }
 0x15c   : > { %6047 = vmax.xlane.f32.xlu1 %v6046_v0  ;;  %6044 = vmax.xlane.f32.xlu0 %v6043_v55  ;;  %v6035_v18 = vadd.f32 %v6031_v16, %v5948_v6  ;;  %v6036_v34 = vadd.f32 %v6031_v16, %v5949_v3  ;;  %v1082_v16 = vsel %vm409_vm1, %v1078_v38, 0.0  ;;  %v9057_v17 = vmax.f32 %v7934_v11, 0.0  ;;  %v9060_v11 = vld [vmem:[#allocation19_spill] sm:$0xff] }
 0x15d   : > { %v740_v20 = vsel %vm409_vm1, %v732_v22, 0.0  ;;  %v9058_v14 = vmax.f32 %v7944_v39, 0.0  ;;  %v1774_v0 = vmul.f32 %v9059_v13, %v8417_v30  ;;  %v9061_v23 = vmax.f32 %v9060_v11, 0.0  ;;  %v9062_v39 = vld [vmem:[#allocation21_spill] sm:$0xff] }
 0x15e   : > { %v8445_v15 = vsel %vm6022_vm2, %v6035_v18, -1e+09  ;;  %v8455_v44 = vsel %vm6022_vm2, %v6036_v34, -1e+09  ;;  %v1426_v35 = vmul.f32 %v9057_v17, %v8417_v30  ;;  %v9063_v34 = vmax.f32 %v9062_v39, 0.0  ;;  %v9068_v17 = vld [vmem:[#allocation28_spill] sm:$0xff] }
 0x15f   : > { %v6049_v47 = vsel %vm409_vm1, %v8445_v15, -inf  ;;  %v6052_v51 = vsel %vm409_vm1, %v8455_v44, -inf  ;;  %v1428_v6 = vmul.f32 %v9058_v14, %v8417_v30  ;;  %v1778_v55 = vsel %vm409_vm1, %v1774_v0, 0.0 }
 0x160   : > { %741 = vadd.xlane.f32.xlu0 %v740_v20  ;;  %6050 = vmax.xlane.f32.xlu1 %v6049_v47  ;;  %v1430_v31 = vsel %vm409_vm1, %v1426_v35, 0.0  ;;  %v1776_v22 = vmul.f32 %v9061_v23, %v8417_v30  ;;  %v2122_v20 = vmul.f32 %v9063_v34, %v8417_v30  ;;  %v2124_v38 = vmul.f32 %v9065_v41, %v8417_v30 }
 0x161   : > { %v1436_v3 = vsel %vm409_vm1, %v1428_v6, 0.0  ;;  %v9069_v35 = vmax.f32 %v9068_v17, 0.0  ;;  %v9070_v6 = vld [vmem:[#allocation29_spill] sm:$0xff]  ;;  %v9074_v34 = vmax.f32 %v8152_v25, 0.0  ;;  %v9077_v25 = vmax.f32 %v8186_v4, 0.0 }
 0x162   : > { %v1784_v18 = vsel %vm409_vm1, %v1776_v22, 0.0  ;;  %v2126_v47 = vsel %vm409_vm1, %v2122_v20, 0.0  ;;  %v9073_v22 = vmax.f32 %v8122_v61, 0.0  ;;  %v9076_v61 = vmax.f32 %v8177_v59, 0.0 }
 0x163   : > { %v3168_v20 = vmul.f32 %v9074_v34, %v8417_v30  ;;  %v5978_v59 = vsel %vm409_vm1, %v8417_v30, 0.0  ;;  %v9079_v17 = vmax.f32 %v8217_v5, 0.0  ;;  %v9082_v5 = vmax.f32 %v8299_v57, 0.0 }
 0x164   : > { %1083 = vadd.xlane.f32.xlu0 %v1082_v16  ;;  %6053 = vmax.xlane.f32.xlu1 %v6052_v51  ;;  %v2132_v16 = vsel %vm409_vm1, %v2124_v38, 0.0  ;;  %v9066_v51 = vld [vmem:[#allocation26_spill] sm:$0xff]  ;;  %v3516_v38 = vmul.f32 %v9076_v61, %v8417_v30  ;;  %v9085_v57 = vmax.f32 %v8305_v46, 0.0  ;;  %v9088_v46 = vmax.f32 %v8357_v53, 0.0 }
 0x165   : > { %v9067_v21 = vmax.f32 %v9066_v51, 0.0  ;;  %v3862_v51 = vmul.f32 %v9077_v25, %v8417_v30 }
 0x167   : > { %v2470_v49 = vmul.f32 %v9067_v21, %v8417_v30  ;;  %v3866_v21 = vsel %vm409_vm1, %v3862_v51, 0.0 }
 0x168   : > { %1089 = vadd.xlane.f32.xlu0 %v1088_v50 }
 0x169   : > { %v2474_v50 = vsel %vm409_vm1, %v2470_v49, 0.0 }
 0x16c   : > { %1431 = vadd.xlane.f32.xlu0 %v1430_v31  ;;  %v2472_v31 = vmul.f32 %v9069_v35, %v8417_v30  ;;  %v4211_v35 = vmul.f32 %v9079_v17, %v8417_v30 }
 0x16e   : > { %v2480_v14 = vsel %vm409_vm1, %v2472_v31, 0.0  ;;  %v4217_v4 = vsel %vm409_vm1, %v4211_v35, 0.0  ;;  %v9080_v31 = vmax.f32 %v8233_v19, 0.0  ;;  %v9083_v19 = vmax.f32 %v8283_v8, 0.0 }
 0x16f   : > { %v9086_v8 = vmax.f32 %v8335_v60, 0.0  ;;  %v9089_v60 = vmax.f32 %v8386_v7, 0.0 }
 0x170   : > { %1437 = vadd.xlane.f32.xlu0 %v1436_v3  ;;  %v9071_v3 = vmax.f32 %v9070_v6, 0.0  ;;  %v9081_v6 = vmax.f32 %v8265_v27, 0.0  ;;  %v9084_v27 = vmax.f32 %v8313_v40, 0.0  ;;  %v9087_v40 = vmax.f32 %v8327_v45, 0.0 }
 0x171   : > { %v5953_v45 = vmul.f32 %v5937_v37, %v8417_v30 }
 0x172   : > { %v2818_v13 = vmul.f32 %v9071_v3, %v8417_v30  ;;  %v4559_v3 = vmul.f32 %v9081_v6, %v8417_v30 }
 0x173   : > { %v5963_v25 = vsel %vm409_vm1, %v5953_v45, 0.0  ;;  %v9096_v45 = vld [vmem:[#allocation7_spill] sm:$0xff] }
 0x174   : > { %1779 = vadd.xlane.f32.xlu0 %v1778_v55  ;;  %v2822_v0 = vsel %vm409_vm1, %v2818_v13, 0.0  ;;  %v9072_v55 = vmax.f32 %v8076_v2, 0.0  ;;  %v9075_v2 = vmax.f32 %v8169_v43, 0.0  ;;  %v9078_v43 = vmax.f32 %v8203_v33, 0.0 }
 0x175   : > { %v4565_v13 = vsel %vm409_vm1, %v4559_v3, 0.0 }
 0x176   : > { %v2820_v11 = vmul.f32 %v9072_v55, %v8417_v30  ;;  %v3514_v1 = vmul.f32 %v9075_v2, %v8417_v30  ;;  %v3864_v49 = vmul.f32 %v9078_v43, %v8417_v30  ;;  %v5603_v2 = vmul.f32 %v9087_v40, %v8417_v30 }
 0x178   : > { %1785 = vadd.xlane.f32.xlu0 %v1784_v18  ;;  %v2828_v23 = vsel %vm409_vm1, %v2820_v11, 0.0  ;;  %v3166_v18 = vmul.f32 %v9073_v22, %v8417_v30  ;;  %v3518_v41 = vsel %vm409_vm1, %v3514_v1, 0.0  ;;  %v4907_v11 = vmul.f32 %v9083_v19, %v8417_v30  ;;  %v9092_v19 = vld [vmem:[#allocation5_spill] sm:$0xff] }
 0x179   : > { %v4909_v22 = vmul.f32 %v9084_v27, %v8417_v30  ;;  %v5609_v1 = vsel %vm409_vm1, %v5603_v2, 0.0 }
 0x17a   : > { %v3170_v39 = vsel %vm409_vm1, %v3166_v18, 0.0 }
 0x17b   : > { %v4919_v18 = vsel %vm409_vm1, %v4909_v22, 0.0 }
 0x17c   : > { %2127 = vadd.xlane.f32.xlu0 %v2126_v47  ;;  %v3176_v47 = vsel %vm409_vm1, %v3168_v20, 0.0  ;;  %v5257_v20 = vmul.f32 %v9086_v8, %v8417_v30  ;;  %v9093_v8 = vld [vmem:[#allocation6_spill] sm:$0xff] }
 0x180   : > { %2133 = vadd.xlane.f32.xlu0 %v2132_v16  ;;  %v3524_v16 = vsel %vm409_vm1, %v3516_v38, 0.0  ;;  %v5951_v38 = vmul.f32 %v9089_v60, %v8417_v30  ;;  %v9094_v60 = vld [vmem:[#allocation11_spill] sm:$0xff] }
 0x184   : > { %2475 = vadd.xlane.f32.xlu0 %v2474_v50  ;;  %v3872_v50 = vsel %vm409_vm1, %v3864_v49, 0.0 }
 0x188   : > { %2481 = vadd.xlane.f32.xlu0 %v2480_v14  ;;  %v4213_v14 = vmul.f32 %v9080_v31, %v8417_v30 }
 0x18a   : > { %v4223_v33 = vsel %vm409_vm1, %v4213_v14, 0.0  ;;  %v9091_v14 = vld [vmem:[#allocation4_spill] sm:$0xff] }
 0x18c   : > { %2823 = vadd.xlane.f32.xlu0 %v2822_v0  ;;  %v4561_v0 = vmul.f32 %v9082_v5, %v8417_v30 }
 0x18e   : > { %v4571_v55 = vsel %vm409_vm1, %v4561_v0, 0.0 }
 0x190   : > { %2829 = vadd.xlane.f32.xlu0 %v2828_v23  ;;  %v4913_v23 = vsel %vm409_vm1, %v4907_v11, 0.0 }
 0x194   : > { %3171 = vadd.xlane.f32.xlu0 %v3170_v39  ;;  %v5255_v39 = vmul.f32 %v9085_v57, %v8417_v30 }
 0x196   : > { %v5261_v34 = vsel %vm409_vm1, %v5255_v39, 0.0 }
 0x198   : > { %3177 = vadd.xlane.f32.xlu0 %v3176_v47  ;;  %v5267_v47 = vsel %vm409_vm1, %v5257_v20, 0.0  ;;  %v8620_v20 = vrot.slane %v8584_v48, %v9093_v8 }
 0x19c   : > { %3519 = vadd.xlane.f32.xlu0 %v3518_v41  ;;  %v5605_v41 = vmul.f32 %v9088_v46, %v8417_v30 }
 0x19e   : > { %v5615_v61 = vsel %vm409_vm1, %v5605_v41, 0.0 }
 0x1a0   : > { %3525 = vadd.xlane.f32.xlu0 %v3524_v16  ;;  %v5957_v16 = vsel %vm409_vm1, %v5951_v38, 0.0  ;;  %v9095_v38 = vmax.f32 %v9094_v60, 0.0  ;;  %v385_v60 = vld [vmem:[%s7310_s20 + $0x28] sm:$0xff] }
 0x1a1   : > { %7087 = vmatpush3.msra.mxu1 %v385_v60 }
 0x1a4   : > { %3867 = vadd.xlane.f32.xlu0 %v3866_v21 }
 0x1a8   : > { %3873 = vadd.xlane.f32.xlu0 %v3872_v50 }
 0x1ac   : > { %5979 = vadd.xlane.f32.xlu0 %v5978_v59 }
 0x1b0   : > { %4218 = vadd.xlane.f32.xlu0 %v4217_v4 }
 0x1b4   : > { %4224 = vadd.xlane.f32.xlu0 %v4223_v33 }
 0x1b8   : > { %4566 = vadd.xlane.f32.xlu0 %v4565_v13 }
 0x1bc   : > { %4572 = vadd.xlane.f32.xlu0 %v4571_v55 }
 0x1c0   : > { %4914 = vadd.xlane.f32.xlu0 %v4913_v23 }
 0x1c4   : > { %4920 = vadd.xlane.f32.xlu0 %v4919_v18 }
 0x1c8   : > { %5262 = vadd.xlane.f32.xlu0 %v5261_v34 }
 0x1cc   : > { %5268 = vadd.xlane.f32.xlu0 %v5267_v47 }
 0x1d0   : > { %5610 = vadd.xlane.f32.xlu0 %v5609_v1 }
 0x1d4   : > { %5616 = vadd.xlane.f32.xlu0 %v5615_v61 }
 0x1d8   : > { %5958 = vadd.xlane.f32.xlu0 %v5957_v16  ;;  %v730_v16 = vmul.f32 %v9095_v38, %v8417_v30 }
 0x1dc   : > { %5964 = vadd.xlane.f32.xlu0 %v5963_v25  ;;  %v8636_v25 = vrot.slane %v8584_v48, %v9096_v45 }
 0x1e5   : > { %v6048_v53 = vpop.xlane.xlu1 %6047  ;;  %v6045_v51 = vpop.xlane.xlu0 %6044 }
 0x1e6   : > { %v6056_v21 = vsub.f32 %v8430_v28, %v6048_v53  ;;  %v6055_v43 = vsub.f32 %v8434_v24, %v6045_v51  ;;  %v9090_v28 = vld [vmem:[#allocation3_spill] sm:$0xff]  ;;  %v734_v51 = vsel %vm409_vm1, %v730_v16, 0.0  ;;  %v9107_v16 = vld [vmem:[#allocation16_spill] sm:$0xff] }
 0x1e7   : > { %v8590_v24 = vrot.slane %v8584_v48, %v9090_v28 }
 0x1e8   : > { %v6059_v49 = vmul.f32 1.442695, %v6055_v43  ;;  %v6061_v7 = vmul.f32 1.442695, %v6056_v21  ;;  %v9097_v21 = vld [vmem:[#allocation12_spill] sm:$0xff] }
 0x1e9   : > { %v742_v50 = vpop.xlane.xlu0 %741  ;;  %v6051_v59 = vpop.xlane.xlu1 %6050  ;;  %v9098_v43 = vmax.f32 %v9097_v21, 0.0 }
 0x1ea   : > { %v6057_v17 = vsub.f32 %v8445_v15, %v6051_v59  ;;  %7177 = vpow2.f32 %v6059_v49  ;;  %v8595_v15 = vrot.slane %v8584_v48, %v9091_v14  ;;  %v752_v3 = vmul.f32 %v8590_v24, %v742_v50 }
 0x1eb   : > { %7179 = vpow2.f32 %v6061_v7  ;;  %v731_v49 = vmul.f32 %v9098_v43, %v8417_v30  ;;  %v9109_v43 = vld [vmem:[#allocation17_spill] sm:$0xff] }
 0x1ec   : > { %v6063_v37 = vmul.f32 1.442695, %v6057_v17 }
 0x1ed   : > { %v8586_v35 = vpop.xlane.xlu0 %1083  ;;  %v6054_v4 = vpop.xlane.xlu1 %6053  ;;  %v737_v17 = vsel %vm409_vm1, %v731_v49, 0.0  ;;  %v9110_v49 = vmax.f32 %v9109_v43, 0.0 }
 0x1ee   : > { %v6058_v31 = vsub.f32 %v8455_v44, %v6054_v4  ;;  %7181 = vpow2.f32 %v6063_v37  ;;  %v8605_v44 = vrot.slane %v8584_v48, %v9092_v19  ;;  %v9099_v37 = vld [vmem:[#allocation13_spill] sm:$0xff]  ;;  %v1098_v62 = vmul.f32 %v8595_v15, %v8586_v35 }
 0x1ef   : > { %v9100_v4 = vmax.f32 %v9099_v37, 0.0 }
 0x1f0   : > { %v6065_v33 = vmul.f32 1.442695, %v6058_v31 }
 0x1f1   : > { %v1090_v6 = vpop.xlane.xlu0 %1089  ;;  %v733_v31 = vmul.f32 %v9100_v4, %v8417_v30 }
 0x1f2   : > { %v1100_v13 = vmul.f32 %v8595_v15, %v1090_v6  ;;  %7183 = vpow2.f32 %v6065_v33  ;;  %v9101_v33 = vld [vmem:[#allocation8_spill] sm:$0xff] }
 0x1f3   : > { %v8651_v6 = vrot.slane %v8584_v48, %v9101_v33 }
 0x1f4   : > { %v1104_v5 = vadd.f32 %v1100_v13, %v752_v3  ;;  %v384_v3 = vld [vmem:[%s7310_s20 + $0x20] sm:$0xff] }
 0x1f5   : > { %v8599_v0 = vpop.xlane.xlu0 %1431  ;;  %7082 = vmatpush3.msra.mxu0 %v384_v3  ;;  %v9113_v3 = vld [vmem:[#allocation20_spill] sm:$0xff] }
 0x1f7   : > { %v8601_v55 = vpop.eup %7177 }
 0x1f8   : > { %v6067_v23 = vsel %vm409_vm1, %v8601_v55, 0.0  ;;  %v8609_v27 = vpop.eup %7179 }
 0x1f9   : > { %v1438_v11 = vpop.xlane.xlu0 %1437  ;;  %6068 = vadd.xlane.f32.xlu1 %v6067_v23  ;;  %v6070_v39 = vsel %vm409_vm1, %v8609_v27, 0.0 }
 0x1fa   : > { %v1448_v22 = vmul.f32 %v8605_v44, %v1438_v11  ;;  %v9102_v11 = vld [vmem:[#allocation14_spill] sm:$0xff] }
 0x1fb   : > { %v8616_v34 = vpop.eup %7181  ;;  %v9103_v23 = vmax.f32 %v9102_v11, 0.0 }
 0x1fc   : > { %v1452_v18 = vadd.f32 %v1448_v22, %v1104_v5  ;;  %v6073_v40 = vsel %vm409_vm1, %v8616_v34, 0.0  ;;  %v743_v5 = vsel %vm409_vm1, %v733_v31, 0.0 }
 0x1fd   : > { %v8612_v57 = vpop.xlane.xlu0 %1779  ;;  %6071 = vadd.xlane.f32.xlu1 %v6070_v39  ;;  %v1079_v22 = vmul.f32 %v9103_v23, %v8417_v30  ;;  %v9104_v39 = vmov 0.0   ;;  %v9115_v23 = vld [vmem:[#allocation22_spill] sm:$0xff] }
 0x1fe   : > { %7091 = vmatprep.subr.mxu0 %v9104_v39  ;;  %7096 = vmatprep.subr.mxu1 %v9104_v39  ;;  %v1794_v35 = vmul.f32 %v8620_v20, %v8612_v57 }
 0x1ff   : > { %v8624_v2 = vpop.eup %7183 }
 0x200   : > { %v6076_v61 = vsel %vm409_vm1, %v8624_v2, 0.0 }
 0x201   : > { %v1786_v47 = vpop.xlane.xlu0 %1785  ;;  %6074 = vadd.xlane.f32.xlu1 %v6073_v40  ;;  %v1085_v40 = vsel %vm409_vm1, %v1079_v22, 0.0  ;;  %v9116_v22 = vmax.f32 %v9115_v23, 0.0 }
 0x202   : > { %v1796_v1 = vmul.f32 %v8620_v20, %v1786_v47 }
 0x204   : > { %v1800_v46 = vadd.f32 %v1796_v1, %v1452_v18  ;;  %v9105_v1 = vld [vmem:[#allocation15_spill] sm:$0xff] }
 0x205   : > { %v8627_v41 = vpop.xlane.xlu0 %2127  ;;  %6077 = vadd.xlane.f32.xlu1 %v6076_v61 }
 0x209   : > { %v2134_v53 = vpop.xlane.xlu0 %2133  ;;  %735 = vadd.xlane.f32.xlu1 %v734_v51 }
 0x20a   : > { %v2144_v7 = vmul.f32 %v8636_v25, %v2134_v53  ;;  %v9108_v53 = vmax.f32 %v9107_v16, 0.0 }
 0x20c   : > { %v2148_v50 = vadd.f32 %v2144_v7, %v1800_v46  ;;  %v9106_v46 = vmax.f32 %v9105_v1, 0.0  ;;  %v1427_v51 = vmul.f32 %v9108_v53, %v8417_v30  ;;  %v1429_v7 = vmul.f32 %v9110_v49, %v8417_v30  ;;  %v9117_v1 = vld [vmem:[#allocation24_spill] sm:$0xff] }
 0x20d   : > { %v8643_v59 = vpop.xlane.xlu0 %2475  ;;  %738 = vadd.xlane.f32.xlu1 %v737_v17  ;;  %v9111_v17 = vld [vmem:[#allocation18_spill] sm:$0xff] }
 0x20e   : > { %v1081_v61 = vmul.f32 %v9106_v46, %v8417_v30  ;;  %v1433_v21 = vsel %vm409_vm1, %v1427_v51, 0.0  ;;  %v9112_v37 = vmax.f32 %v9111_v17, 0.0  ;;  %v9118_v46 = vmax.f32 %v9117_v1, 0.0 }
 0x210   : > { %v1091_v38 = vsel %vm409_vm1, %v1081_v61, 0.0  ;;  %v1775_v4 = vmul.f32 %v9112_v37, %v8417_v30  ;;  %v2125_v61 = vmul.f32 %v9118_v46, %v8417_v30 }
 0x211   : > { %v2482_v13 = vpop.xlane.xlu0 %2481  ;;  %744 = vadd.xlane.f32.xlu1 %v743_v5 }
 0x212   : > { %v2492_v18 = vmul.f32 %v8651_v6, %v2482_v13  ;;  %v1781_v31 = vsel %vm409_vm1, %v1775_v4, 0.0  ;;  %v9114_v13 = vmax.f32 %v9113_v3, 0.0  ;;  %v2135_v60 = vsel %vm409_vm1, %v2125_v61, 0.0 }
 0x214   : > { %v8660_v47 = vadd.f32 %v2492_v18, %v2148_v50  ;;  %v1439_v50 = vsel %vm409_vm1, %v1429_v7, 0.0  ;;  %v1777_v5 = vmul.f32 %v9114_v13, %v8417_v30  ;;  %v2123_v18 = vmul.f32 %v9116_v22, %v8417_v30  ;;  %v9127_v22 = vld [vmem:[#allocation31_spill] sm:$0xff] }
 0x215   : > { %1086 = vadd.xlane.f32.xlu1 %v1085_v40 }
 0x216   : > { %v1787_v11 = vsel %vm409_vm1, %v1777_v5, 0.0  ;;  %v2129_v40 = vsel %vm409_vm1, %v2123_v18, 0.0  ;;  %v9126_v5 = vmax.f32 %v8125_v36, 0.0  ;;  %v9128_v18 = vmax.f32 %v9127_v22, 0.0  ;;  %v9131_v36 = vld [vmem:[#allocation33_spill] sm:$0xff] }
 0x219   : > { %1092 = vadd.xlane.f32.xlu1 %v1091_v38  ;;  %v9119_v38 = vld [vmem:[#allocation27_spill] sm:$0xff] }
 0x21a   : > { %v9120_v16 = vmax.f32 %v9119_v38, 0.0  ;;  %v9132_v38 = vmax.f32 %v9131_v36, 0.0 }
 0x21c   : > { %v2471_v53 = vmul.f32 %v9120_v16, %v8417_v30  ;;  %v3517_v16 = vmul.f32 %v9132_v38, %v8417_v30 }
 0x21d   : > { %1434 = vadd.xlane.f32.xlu1 %v1433_v21  ;;  %v9121_v21 = vld [vmem:[#allocation25_spill] sm:$0xff] }
 0x21e   : > { %v2477_v51 = vsel %vm409_vm1, %v2471_v53, 0.0  ;;  %v9122_v43 = vmax.f32 %v9121_v21, 0.0  ;;  %v3527_v53 = vsel %vm409_vm1, %v3517_v16, 0.0 }
 0x220   : > { %v2473_v49 = vmul.f32 %v9122_v43, %v8417_v30 }
 0x221   : > { %1440 = vadd.xlane.f32.xlu1 %v1439_v50  ;;  %v9123_v50 = vld [vmem:[#allocation30_spill] sm:$0xff] }
 0x222   : > { %v2483_v7 = vsel %vm409_vm1, %v2473_v49, 0.0  ;;  %v9124_v17 = vmax.f32 %v9123_v50, 0.0 }
 0x224   : > { %v2819_v37 = vmul.f32 %v9124_v17, %v8417_v30 }
 0x225   : > { %1782 = vadd.xlane.f32.xlu1 %v1781_v31  ;;  %v9125_v31 = vmax.f32 %v8078_v52, 0.0  ;;  %v9129_v52 = vld [vmem:[#allocation32_spill] sm:$0xff] }
 0x226   : > { %v2825_v4 = vsel %vm409_vm1, %v2819_v37, 0.0  ;;  %v9130_v46 = vmax.f32 %v9129_v52, 0.0 }
 0x227   : > { %v2821_v3 = vmul.f32 %v9125_v31, %v8417_v30 }
 0x228   : > { %v3515_v61 = vmul.f32 %v9130_v46, %v8417_v30 }
 0x229   : > { %1788 = vadd.xlane.f32.xlu1 %v1787_v11  ;;  %v2831_v13 = vsel %vm409_vm1, %v2821_v3, 0.0  ;;  %v3167_v11 = vmul.f32 %v9126_v5, %v8417_v30 }
 0x22b   : > { %v3173_v23 = vsel %vm409_vm1, %v3167_v11, 0.0 }
 0x22d   : > { %2130 = vadd.xlane.f32.xlu1 %v2129_v40  ;;  %v3169_v40 = vmul.f32 %v9128_v18, %v8417_v30 }
 0x22f   : > { %v3179_v1 = vsel %vm409_vm1, %v3169_v40, 0.0 }
 0x231   : > { %2136 = vadd.xlane.f32.xlu1 %v2135_v60  ;;  %v3521_v60 = vsel %vm409_vm1, %v3515_v61, 0.0 }
 0x235   : > { %2478 = vadd.xlane.f32.xlu1 %v2477_v51  ;;  %v9133_v51 = vld [vmem:[#allocation34_spill] sm:$0xff] }
 0x236   : > { %v9134_v21 = vmax.f32 %v9133_v51, 0.0 }
 0x238   : > { %v3863_v43 = vmul.f32 %v9134_v21, %v8417_v30 }
 0x239   : > { %2484 = vadd.xlane.f32.xlu1 %v2483_v7  ;;  %v9135_v7 = vld [vmem:[#allocation35_spill] sm:$0xff] }
 0x23a   : > { %v3869_v49 = vsel %vm409_vm1, %v3863_v43, 0.0  ;;  %v9136_v50 = vmax.f32 %v9135_v7, 0.0 }
 0x23c   : > { %v3865_v17 = vmul.f32 %v9136_v50, %v8417_v30 }
 0x23d   : > { %2826 = vadd.xlane.f32.xlu1 %v2825_v4  ;;  %v9137_v4 = vmax.f32 %v8213_v54, 0.0  ;;  %v9140_v54 = vmax.f32 %v8295_v26, 0.0  ;;  %v9143_v26 = vmax.f32 %v8302_v63, 0.0  ;;  %v9147_v63 = vmax.f32 %v8354_v29, 0.0 }
 0x23e   : > { %v3875_v37 = vsel %vm409_vm1, %v3865_v17, 0.0 }
 0x23f   : > { %v4210_v31 = vmul.f32 %v9137_v4, %v8417_v30  ;;  %v4560_v40 = vmul.f32 %v9140_v54, %v8417_v30  ;;  %v5254_v36 = vmul.f32 %v9143_v26, %v8417_v30  ;;  %v5952_v4 = vmul.f32 %v5936_v56, %v8417_v30  ;;  %v387_v54 = vld [vmem:[%s7310_s20 + $0x38] sm:$0xff] }
 0x241   : > { %2832 = vadd.xlane.f32.xlu1 %v2831_v13  ;;  %v4214_v3 = vsel %vm409_vm1, %v4210_v31, 0.0  ;;  %v9138_v13 = vmax.f32 %v8229_v32, 0.0  ;;  %v9141_v32 = vmax.f32 %v8280_v58, 0.0  ;;  %v5258_v38 = vsel %vm409_vm1, %v5254_v36, 0.0 }
 0x242   : > { %v9144_v58 = vmax.f32 %v8332_v42, 0.0  ;;  %v9148_v42 = vmax.f32 %v8383_v10, 0.0  ;;  %v5960_v31 = vsel %vm409_vm1, %v5952_v4, 0.0 }
 0x243   : > { %v4212_v5 = vmul.f32 %v9138_v13, %v8417_v30  ;;  %v4906_v52 = vmul.f32 %v9141_v32, %v8417_v30 }
 0x244   : > { %v5256_v16 = vmul.f32 %v9144_v58, %v8417_v30  ;;  %v5950_v50 = vmul.f32 %v9148_v42, %v8417_v30 }
 0x245   : > { %3174 = vadd.xlane.f32.xlu1 %v3173_v23  ;;  %v4220_v11 = vsel %vm409_vm1, %v4212_v5, 0.0  ;;  %v9139_v23 = vmax.f32 %v8261_v9, 0.0  ;;  %v4910_v46 = vsel %vm409_vm1, %v4906_v52, 0.0  ;;  %v9142_v9 = vmax.f32 %v8310_v12, 0.0  ;;  %v9145_v12 = vld [vmem:[#allocation36_spill] sm:$0xff] }
 0x246   : > { %v9146_v51 = vmax.f32 %v9145_v12, 0.0  ;;  %v2142_v52 = vmul.f32 %v8636_v25, %v8627_v41 }
 0x247   : > { %v4558_v22 = vmul.f32 %v9139_v23, %v8417_v30  ;;  %v4908_v61 = vmul.f32 %v9142_v9, %v8417_v30 }
 0x248   : > { %v5602_v21 = vmul.f32 %v9146_v51, %v8417_v30 }
 0x249   : > { %3180 = vadd.xlane.f32.xlu1 %v3179_v1  ;;  %v4562_v18 = vsel %vm409_vm1, %v4558_v22, 0.0  ;;  %v4568_v1 = vsel %vm409_vm1, %v4560_v40, 0.0  ;;  %v1446_v22 = vmul.f32 %v8605_v44, %v8599_v0 }
 0x24a   : > { %v5606_v43 = vsel %vm409_vm1, %v5602_v21, 0.0 }
 0x24d   : > { %3522 = vadd.xlane.f32.xlu1 %v3521_v60  ;;  %v4916_v60 = vsel %vm409_vm1, %v4908_v61, 0.0 }
 0x251   : > { %3528 = vadd.xlane.f32.xlu1 %v3527_v53  ;;  %v5264_v53 = vsel %vm409_vm1, %v5256_v16, 0.0 }
 0x255   : > { %3870 = vadd.xlane.f32.xlu1 %v3869_v49  ;;  %v5604_v49 = vmul.f32 %v9147_v63, %v8417_v30 }
 0x257   : > { %v5612_v7 = vsel %vm409_vm1, %v5604_v49, 0.0  ;;  %v2824_v49 = vpop.xlane.xlu0 %2823 }
 0x259   : > { %3876 = vadd.xlane.f32.xlu1 %v3875_v37  ;;  %v5954_v37 = vsel %vm409_vm1, %v5950_v50, 0.0 }
 0x25d   : > { %4215 = vadd.xlane.f32.xlu1 %v4214_v3 }
 0x261   : > { %4221 = vadd.xlane.f32.xlu1 %v4220_v11  ;;  %v386_v11 = vld [vmem:[%s7310_s20 + $0x30] sm:$0xff] }
 0x265   : > { %4563 = vadd.xlane.f32.xlu1 %v4562_v18 }
 0x269   : > { %4569 = vadd.xlane.f32.xlu1 %v4568_v1 }
 0x26d   : > { %4911 = vadd.xlane.f32.xlu1 %v4910_v46 }
 0x271   : > { %4917 = vadd.xlane.f32.xlu1 %v4916_v60 }
 0x275   : > { %5259 = vadd.xlane.f32.xlu1 %v5258_v38 }
 0x279   : > { %5265 = vadd.xlane.f32.xlu1 %v5264_v53 }
 0x27d   : > { %5607 = vadd.xlane.f32.xlu1 %v5606_v43 }
 0x281   : > { %5613 = vadd.xlane.f32.xlu1 %v5612_v7 }
 0x282   : > { %v6069_v17 = vpop.xlane.xlu1 %6068 }
 0x283   : > { %7185 = vrcp.f32 %v6069_v17  ;;  %v8814_v17 = vpop.xlane.xlu0 %2829 }
 0x285   : > { %5955 = vadd.xlane.f32.xlu1 %v5954_v37 }
 0x286   : > { %v6072_v29 = vpop.xlane.xlu1 %6071 }
 0x287   : > { %7187 = vrcp.f32 %v6072_v29 }
 0x289   : > { %5961 = vadd.xlane.f32.xlu1 %v5960_v31 }
 0x28a   : > { %v6075_v3 = vpop.xlane.xlu1 %6074 }
 0x28b   : > { %7189 = vrcp.f32 %v6075_v3 }
 0x28e   : > { %v6078_v10 = vpop.xlane.xlu1 %6077 }
 0x28f   : > { %7191 = vrcp.f32 %v6078_v10 }
 0x290   : > { %v7186_v13 = vpop.eup %7185 }
 0x291   : > { %v6080_v5 = vmul.f32 %v7186_v13, %v8601_v55 }
 0x292   : > { %v736_v23 = vpop.xlane.xlu1 %735 }
 0x293   : > { %v750_v30 = vmul.f32 %v8590_v24, %v736_v23  ;;  %7084 = vmatmul.mubr.msk.f32.vlgmr.msra.gmra.mxu0 %vm409_vm1, %v6080_v5 }
 0x294   : > { %v7188_v56 = vpop.eup %7187  ;;  %7092 = vmatpush3.msra.mxu0 %v386_v11  ;;  %7093 = vmatprep.mubr.msk.f32.mxu0 %vm7220_vm0, %v9104_v39 }
 0x295   : > { %v1102_v18 = vadd.f32 %v1098_v62, %v750_v30  ;;  %v6082_v55 = vmul.f32 %v7188_v56, %v8609_v27 }
 0x296   : > { %v739_v40 = vpop.xlane.xlu1 %738 }
 0x297   : > { %v1450_v1 = vadd.f32 %v1446_v22, %v1102_v18  ;;  %7089 = vmatmul.mubr.msk.f32.vlgmr.msra.gmra.mxu1 %vm409_vm1, %v6082_v55  ;;  %v751_v26 = vmul.f32 %v8590_v24, %v739_v40 }
 0x298   : > { %v7190_v32 = vpop.eup %7189  ;;  %7097 = vmatpush3.msra.mxu1 %v387_v54  ;;  %7098 = vmatprep.mubr.msk.f32.mxu1 %vm7220_vm0, %v9104_v39 }
 0x299   : > { %v1798_v0 = vadd.f32 %v1794_v35, %v1450_v1  ;;  %v6084_v46 = vmul.f32 %v7190_v32, %v8616_v34 }
 0x29a   : > { %v745_v27 = vpop.xlane.xlu1 %744 }
 0x29b   : > { %v8801_v9 = vadd.f32 %v2142_v52, %v1798_v0  ;;  %7094 = vmatmul.mubr.msk.f32.vlgmr.msra.gmra.mxu0 %vm409_vm1, %v6084_v46  ;;  %v753_v38 = vmul.f32 %v8590_v24, %v745_v27 }
 0x29c   : > { %v7192_v57 = vpop.eup %7191 }
 0x29d   : > { %v6086_v61 = vmul.f32 %v7192_v57, %v8624_v2 }
 0x29e   : > { %v1087_v60 = vpop.xlane.xlu1 %1086 }
 0x29f   : > { %v1099_v36 = vmul.f32 %v8595_v15, %v1087_v60  ;;  %7099 = vmatmul.mubr.msk.f32.vlgmr.msra.gmra.mxu1 %vm409_vm1, %v6086_v61 }
 0x2a1   : > { %v1103_v39 = vadd.f32 %v1099_v36, %v751_v26 }
 0x2a2   : > { %v1093_v41 = vpop.xlane.xlu1 %1092 }
 0x2a3   : > { %v1101_v34 = vmul.f32 %v8595_v15, %v1093_v41 }
 0x2a5   : > { %v1105_v58 = vadd.f32 %v1101_v34, %v753_v38 }
 0x2a6   : > { %v1435_v16 = vpop.xlane.xlu1 %1434 }
 0x2a7   : > { %v1447_v53 = vmul.f32 %v8605_v44, %v1435_v16 }
 0x2a9   : > { %v1451_v12 = vadd.f32 %v1447_v53, %v1103_v39  ;;  %v8843_v53 = vld [vmem:[%s8911_s7 + $0x8] sm:$0xff] }
 0x2aa   : > { %v1441_v51 = vpop.xlane.xlu1 %1440 }
 0x2ab   : > { %v1449_v2 = vmul.f32 %v8605_v44, %v1441_v51  ;;  %v3172_v44 = vpop.xlane.xlu0 %3171  ;;  %v9150_v51 = vld [vmem:[#allocation10_spill] sm:$0xff] }
 0x2ad   : > { %v1453_v21 = vadd.f32 %v1449_v2, %v1105_v58  ;;  %v9149_v58 = vld [vmem:[#allocation9_spill] sm:$0xff]  ;;  %v3185_v2 = vrot.slane %v8584_v48, %v9150_v51 }
 0x2ae   : > { %v1783_v43 = vpop.xlane.xlu1 %1782  ;;  %v2837_v16 = vrot.slane %v8584_v48, %v9149_v58 }
 0x2af   : > { %v1795_v63 = vmul.f32 %v8620_v20, %v1783_v43  ;;  %v8819_v11 = vpop.xlane.xlu0 %3177 }
 0x2b1   : > { %v1799_v7 = vadd.f32 %v1795_v63, %v1451_v12  ;;  %v2490_v63 = vmul.f32 %v8651_v6, %v8643_v59  ;;  %v4229_v59 = vrot.slane %v8843_v53, %v9092_v19 }
 0x2b2   : > { %v1789_v42 = vpop.xlane.xlu1 %1788 }
 0x2b3   : > { %v1797_v50 = vmul.f32 %v8620_v20, %v1789_v42  ;;  %v3520_v56 = vpop.xlane.xlu0 %3519 }
 0x2b5   : > { %v1801_v24 = vadd.f32 %v1797_v50, %v1453_v21  ;;  %v2494_v50 = vadd.f32 %v2490_v63, %v8801_v9 }
 0x2b6   : > { %v2131_v15 = vpop.xlane.xlu1 %2130 }
 0x2b7   : > { %v2143_v37 = vmul.f32 %v8636_v25, %v2131_v15  ;;  %v8822_v18 = vpop.xlane.xlu0 %3525 }
 0x2b9   : > { %v2147_v4 = vadd.f32 %v2143_v37, %v1799_v7  ;;  %v3533_v7 = vrot.slane %v8843_v53, %v9090_v28  ;;  %v3186_v28 = vmul.f32 %v3185_v2, %v3172_v44  ;;  %v2840_v44 = vmul.f32 %v2837_v16, %v8814_v17 }
 0x2ba   : > { %v2137_v29 = vpop.xlane.xlu1 %2136 }
 0x2bb   : > { %v2145_v31 = vmul.f32 %v8636_v25, %v2137_v29  ;;  %v3868_v25 = vpop.xlane.xlu0 %3867  ;;  %v3536_v17 = vmul.f32 %v3533_v7, %v8822_v18 }
 0x2bd   : > { %v2149_v3 = vadd.f32 %v2145_v31, %v1801_v24  ;;  %v3881_v24 = vrot.slane %v8843_v53, %v9091_v14 }
 0x2be   : > { %v2479_v10 = vpop.xlane.xlu1 %2478 }
 0x2bf   : > { %v2491_v13 = vmul.f32 %v8651_v6, %v2479_v10  ;;  %v8824_v35 = vpop.xlane.xlu0 %3873 }
 0x2c1   : > { %v2495_v5 = vadd.f32 %v2491_v13, %v2147_v4  ;;  %v2838_v4 = vmul.f32 %v2837_v16, %v2824_v49  ;;  %v4577_v49 = vrot.slane %v8843_v53, %v9093_v8 }
 0x2c2   : > { %v2485_v23 = vpop.xlane.xlu1 %2484 }
 0x2c3   : > { %v2493_v20 = vmul.f32 %v8651_v6, %v2485_v23  ;;  %v8826_v52 = vpop.xlane.xlu0 %5979  ;;  %v2842_v10 = vadd.f32 %v2838_v4, %v2494_v50  ;;  %v4925_v50 = vrot.slane %v8843_v53, %v9096_v45  ;;  %v5273_v45 = vrot.slane %v8843_v53, %v9101_v33 }
 0x2c4   : > { %v5969_v33 = vrot.slane %v8843_v53, %v9150_v51 }
 0x2c5   : > { %v2497_v62 = vadd.f32 %v2493_v20, %v2149_v3  ;;  %v3190_v14 = vadd.f32 %v3186_v28, %v2842_v10 }
 0x2c6   : > { %v2827_v30 = vpop.xlane.xlu1 %2826 }
 0x2c7   : > { %v4219_v46 = vpop.xlane.xlu0 %4218  ;;  %v2839_v21 = vmul.f32 %v2837_v16, %v2827_v30 }
 0x2c9   : > { %v2843_v15 = vadd.f32 %v2839_v21, %v2495_v5  ;;  %v4231_v5 = vmul.f32 %v4229_v59, %v4219_v46  ;;  %v5981_v46 = vmax.f32 %v8826_v52, 1.0 }
 0x2ca   : > { %v2833_v22 = vpop.xlane.xlu1 %2832 }
 0x2cb   : > { %v8830_v61 = vpop.xlane.xlu0 %4224  ;;  %v2841_v13 = vmul.f32 %v2837_v16, %v2833_v22  ;;  %7193 = vrcp.f32 %v5981_v46 }
 0x2ce   : > { %v3175_v55 = vpop.xlane.xlu1 %3174 }
 0x2cf   : > { %v4567_v26 = vpop.xlane.xlu0 %4566  ;;  %v3187_v42 = vmul.f32 %v3185_v2, %v3175_v55  ;;  %v3534_v55 = vmul.f32 %v3533_v7, %v3520_v56  ;;  %v3188_v56 = vmul.f32 %v3185_v2, %v8819_v11  ;;  %v3884_v11 = vmul.f32 %v3881_v24, %v8824_v35 }
 0x2d0   : > { %v4579_v22 = vmul.f32 %v4577_v49, %v4567_v26 }
 0x2d1   : > { %v3191_v31 = vadd.f32 %v3187_v42, %v2843_v15  ;;  %v3538_v19 = vadd.f32 %v3534_v55, %v3190_v14 }
 0x2d2   : > { %v3181_v54 = vpop.xlane.xlu1 %3180 }
 0x2d3   : > { %v8834_v39 = vpop.xlane.xlu0 %4572  ;;  %v3189_v20 = vmul.f32 %v3185_v2, %v3181_v54  ;;  %v3882_v54 = vmul.f32 %v3881_v24, %v3868_v25  ;;  %v4233_v25 = vmul.f32 %v4229_v59, %v8830_v61 }
 0x2d4   : > { %v4581_v61 = vmul.f32 %v4577_v49, %v8834_v39 }
 0x2d6   : > { %v3523_v40 = vpop.xlane.xlu1 %3522 }
 0x2d7   : > { %v4915_v38 = vpop.xlane.xlu0 %4914  ;;  %v3535_v37 = vmul.f32 %v3533_v7, %v3523_v40  ;;  %v2845_v40 = vadd.f32 %v2841_v13, %v2497_v62 }
 0x2d8   : > { %v4927_v26 = vmul.f32 %v4925_v50, %v4915_v38 }
 0x2d9   : > { %v3539_v6 = vadd.f32 %v3535_v37, %v3191_v31  ;;  %v3193_v63 = vadd.f32 %v3189_v20, %v2845_v40  ;;  %v3886_v31 = vadd.f32 %v3882_v54, %v3538_v19  ;;  %v7194_v19 = vpop.eup %7193 }
 0x2da   : > { %v3529_v1 = vpop.xlane.xlu1 %3528 }
 0x2db   : > { %v8845_v12 = vpop.xlane.xlu0 %4920 }
 0x2de   : > { %v3871_v32 = vpop.xlane.xlu1 %3870 }
 0x2df   : > { %v5263_v29 = vpop.xlane.xlu0 %5262  ;;  %v3883_v48 = vmul.f32 %v3881_v24, %v3871_v32  ;;  %v3537_v32 = vmul.f32 %v3533_v7, %v3529_v1 }
 0x2e0   : > { %v5275_v7 = vmul.f32 %v5273_v45, %v5263_v29  ;;  %v4929_v29 = vmul.f32 %v4925_v50, %v8845_v12 }
 0x2e1   : > { %v3887_v23 = vadd.f32 %v3883_v48, %v3539_v6  ;;  %v3541_v37 = vadd.f32 %v3537_v32, %v3193_v63  ;;  %v2844_v48 = vadd.f32 %v2840_v44, %v8660_v47 }
 0x2e2   : > { %v3877_v0 = vpop.xlane.xlu1 %3876 }
 0x2e3   : > { %v8860_v9 = vpop.xlane.xlu0 %5268  ;;  %v4235_v21 = vadd.f32 %v4231_v5, %v3887_v23  ;;  %v3885_v42 = vmul.f32 %v3881_v24, %v3877_v0  ;;  %v3192_v16 = vadd.f32 %v3188_v56, %v2844_v48 }
 0x2e5   : > { %v4583_v62 = vadd.f32 %v4579_v22, %v4235_v21  ;;  %v3889_v4 = vadd.f32 %v3885_v42, %v3541_v37  ;;  %v3540_v38 = vadd.f32 %v3536_v17, %v3192_v16 }
 0x2e6   : > { %v4216_v27 = vpop.xlane.xlu1 %4215 }
 0x2e7   : > { %v5611_v15 = vpop.xlane.xlu0 %5610  ;;  %v4230_v8 = vmul.f32 %v4229_v59, %v4216_v27  ;;  %v4931_v2 = vadd.f32 %v4927_v26, %v4583_v62  ;;  %v4237_v47 = vadd.f32 %v4233_v25, %v3889_v4  ;;  %v3888_v24 = vadd.f32 %v3884_v11, %v3540_v38 }
 0x2e9   : > { %v4234_v52 = vadd.f32 %v4230_v8, %v3886_v31  ;;  %v5279_v23 = vadd.f32 %v5275_v7, %v4931_v2  ;;  %v4585_v20 = vadd.f32 %v4581_v61, %v4237_v47  ;;  %v377_v61 = vld [vmem:[%s7305_s17 + $0x28] sm:$0xff] }
 0x2ea   : > { %v8828_v57 = vpop.xlane.xlu1 %4221 }
 0x2eb   : > { %v5617_v10 = vpop.xlane.xlu0 %5616  ;;  %v4933_v32 = vadd.f32 %v4929_v29, %v4585_v20  ;;  %v378_v20 = vld [vmem:[%s7305_s17 + $0x30] sm:$0xff] }
 0x2ee   : > { %v4564_v60 = vpop.xlane.xlu1 %4563 }
 0x2ef   : > { %v4578_v0 = vmul.f32 %v4577_v49, %v4564_v60  ;;  %v5621_v60 = vrot.slane %v8843_v53, %v9149_v58  ;;  %v5959_v55 = vpop.xlane.xlu0 %5958 }
 0x2f0   : > { %v5971_v21 = vmul.f32 %v5969_v33, %v5959_v55  ;;  %v379_v55 = vld [vmem:[%s7305_s17 + $0x38] sm:$0xff] }
 0x2f1   : > { %v4582_v6 = vadd.f32 %v4578_v0, %v4234_v52 }
 0x2f2   : > { %v8832_v36 = vpop.xlane.xlu1 %4569 }
 0x2f3   : > { %v4580_v58 = vmul.f32 %v4577_v49, %v8832_v36  ;;  %v5277_v36 = vmul.f32 %v5273_v45, %v8860_v9 }
 0x2f5   : > { %v5281_v12 = vadd.f32 %v5277_v36, %v4933_v32 }
 0x2f6   : > { %v4912_v41 = vpop.xlane.xlu1 %4911 }
 0x2f7   : > { %v4926_v27 = vmul.f32 %v4925_v50, %v4912_v41  ;;  %v4232_v41 = vmul.f32 %v4229_v59, %v8828_v57 }
 0x2f9   : > { %v4930_v13 = vadd.f32 %v4926_v27, %v4582_v6  ;;  %v4236_v40 = vadd.f32 %v4232_v41, %v3888_v24 }
 0x2fa   : > { %v8836_v34 = vpop.xlane.xlu1 %4917 }
 0x2fb   : > { %v4928_v53 = vmul.f32 %v4925_v50, %v8836_v34  ;;  %v4584_v57 = vadd.f32 %v4580_v58, %v4236_v40  ;;  %v5625_v34 = vmul.f32 %v5621_v60, %v5617_v10 }
 0x2fd   : > { %v4932_v49 = vadd.f32 %v4928_v53, %v4584_v57  ;;  %v5629_v37 = vadd.f32 %v5625_v34, %v5281_v12 }
 0x2fe   : > { %v5260_v43 = vpop.xlane.xlu1 %5259 }
 0x2ff   : > { %v5274_v18 = vmul.f32 %v5273_v45, %v5260_v43  ;;  %v5623_v43 = vmul.f32 %v5621_v60, %v5611_v15  ;;  %v5965_v15 = vpop.xlane.xlu0 %5964 }
 0x300   : > { %v5973_v9 = vmul.f32 %v5969_v33, %v5965_v15 }
 0x301   : > { %v5278_v14 = vadd.f32 %v5274_v18, %v4930_v13  ;;  %v5627_v39 = vadd.f32 %v5623_v43, %v5279_v23  ;;  %v376_v18 = vld [vmem:[%s7305_s17 + $0x20] sm:$0xff] }
 0x302   : > { %v8856_v3 = vpop.xlane.xlu1 %5265  ;;  %v5977_v4 = vadd.f32 %v5973_v9, %v5629_v37 }
 0x303   : > { %v5276_v59 = vmul.f32 %v5273_v45, %v8856_v3  ;;  %v5975_v44 = vadd.f32 %v5971_v21, %v5627_v39  ;;  %v6610_v3 = vld [vmem:[%s8912_s8] ss:$0 sm:$0xff] }
 0x304   : > { %v5986_v48 = vmul.f32 %v7194_v19, %v5977_v4 }
 0x305   : > { %v5280_v22 = vadd.f32 %v5276_v59, %v4932_v49  ;;  %v5984_v8 = vmul.f32 %v7194_v19, %v5975_v44 }
 0x306   : > { %v5608_v30 = vpop.xlane.xlu1 %5607  ;;  %v5997_v45 = vadd.f32 %v6610_v3, %v5986_v48 }
 0x307   : > { %v5622_v35 = vmul.f32 %v5621_v60, %v5608_v30 }
 0x308   : > { %v6614_v52 = vmul.f32 -1.442695, %v5997_v45 }
 0x309   : > { %v5626_v51 = vadd.f32 %v5622_v35, %v5278_v14 }
 0x30a   : > { %v5614_v1 = vpop.xlane.xlu1 %5613 }
 0x30b   : > { %v5624_v42 = vmul.f32 %v5621_v60, %v5614_v1  ;;  %v5995_v1 = vadd.f32 %v6610_v3, %v5984_v8 }
 0x30d   : > { %v5628_v50 = vadd.f32 %v5624_v42, %v5280_v22  ;;  %v6612_v17 = vmul.f32 -1.442695, %v5995_v1 }
 0x30e   : > { %v5956_v28 = vpop.xlane.xlu1 %5955 }
 0x30f   : > { %v5970_v5 = vmul.f32 %v5969_v33, %v5956_v28 }
 0x311   : > { %v5974_v30 = vadd.f32 %v5970_v5, %v5626_v51 }
 0x312   : > { %v5962_v63 = vpop.xlane.xlu1 %5961 }
 0x313   : > { %v5983_v54 = vmul.f32 %v7194_v19, %v5974_v30  ;;  %v5972_v46 = vmul.f32 %v5969_v33, %v5962_v63 }
 0x315   : > { %v5994_v56 = vadd.f32 %v6610_v3, %v5983_v54  ;;  %v5976_v62 = vadd.f32 %v5972_v46, %v5628_v50 }
 0x317   : > { %v6611_v31 = vmul.f32 -1.442695, %v5994_v56  ;;  %v5985_v0 = vmul.f32 %v7194_v19, %v5976_v62 }
 0x319   : > { %7195 = vpow2.f32 %v6611_v31  ;;  %v5996_v26 = vadd.f32 %v6610_v3, %v5985_v0 }
 0x31a   : > { %7197 = vpow2.f32 %v6612_v17 }
 0x31b   : > { %v6613_v25 = vmul.f32 -1.442695, %v5996_v26 }
 0x31d   : > { %7199 = vpow2.f32 %v6613_v25 }
 0x31e   : > { %7201 = vpow2.f32 %v6614_v52 }
 0x326   : > { %v7196_v27 = vpop.eup %7195 }
 0x327   : > { %v6010_v16 = vadd.f32 1.0, %v7196_v27  ;;  %v7198_v11 = vpop.eup %7197 }
 0x328   : > { %v6011_v2 = vadd.f32 1.0, %v7198_v11 }
 0x329   : > { %7203 = vrcp.f32 %v6010_v16 }
 0x32a   : > { %v7200_v60 = vpop.eup %7199  ;;  %7205 = vrcp.f32 %v6011_v2 }
 0x32b   : > { %v6012_v10 = vadd.f32 1.0, %v7200_v60  ;;  %v7202_v47 = vpop.eup %7201 }
 0x32c   : > { %v6013_v6 = vadd.f32 1.0, %v7202_v47 }
 0x32d   : > { %7207 = vrcp.f32 %v6012_v10 }
 0x32e   : > { %7209 = vrcp.f32 %v6013_v6 }
 0x336   : > { %v7204_v33 = vpop.eup %7203 }
 0x337   : > { %v7206_v24 = vpop.eup %7205 }
 0x33a   : > { %v7208_v43 = vpop.eup %7207 }
 0x33b   : > { %v7210_v39 = vpop.eup %7209 }
 0x353   : > { %v6156_v38 = vpop.f32.mrf.mxu0 }
 0x354   : > { %v6379_v7 = vmul.f32 %v6156_v38, %v376_v18 }
 0x355   : > { %v7085_v28 = vpop.f32.mrf.mxu0 }
 0x356   : > { %v6383_v41 = vmul.f32 %v7204_v33, %v6379_v7 }
 0x357   : > { %v6229_v13 = vpop.f32.mrf.mxu1 }
 0x358   : > { %6387 = vst.msk [vmem:[%s371_s21] sm:$0xff] %vm409_vm1, %v6383_v41  ;;  %v6380_v35 = vmul.f32 %v6229_v13, %v377_v61 }
 0x359   : > { %v7090_v23 = vpop.f32.mrf.mxu1 }
 0x35a   : > { %v6384_v58 = vmul.f32 %v7206_v24, %v6380_v35 }
 0x35b   : > { %v6302_v14 = vpop.f32.mrf.mxu0 }
 0x35c   : > { %6388 = vst.msk [vmem:[%s371_s21 + $0x8] sm:$0xff] %vm409_vm1, %v6384_v58  ;;  %v6381_v5 = vmul.f32 %v6302_v14, %v378_v20 }
 0x35d   : > { %v7095_v29 = vpop.f32.mrf.mxu0 }
 0x35e   : > { %v6385_v40 = vmul.f32 %v7208_v43, %v6381_v5 }
 0x35f   : > { %v6375_v53 = vpop.f32.mrf.mxu1 }
 0x360   : > { %6389 = vst.msk [vmem:[%s371_s21 + $0x10] sm:$0xff] %vm409_vm1, %v6385_v40  ;;  %v6382_v51 = vmul.f32 %v6375_v53, %v379_v55 }
 0x361   : > { %v7100_v32 = vpop.f32.mrf.mxu1 }
 0x362   : > { %v6386_v57 = vmul.f32 %v7210_v39, %v6382_v51 }
 0x364   : > { %6390 = vst.msk [vmem:[%s371_s21 + $0x18] sm:$0xff] %vm409_vm1, %v6386_v57 }
 0x365 PF: > { %s21_s11 = sadd.s32 1, %s7217_s11  }
 0x366   : > { %p18_p4 = scmp.ge.s32.totalorder %s21_s11, 4  }
 0x368   :  { %20 = sbr.rel (!%p18_p4) target bundleno = 3 (0x3), region = 92 }

// kernel: decoder_layer_forward.16
= control target key start
LH: loop header
LB: loop body
LE: loop exit
PB: predicated region body
PF: predicated region fallthrough
CT: control target
= control target key end

     0   :  { %s7576_s11 = smov 0   ;;  %s9279_s0 = inlined_call_operand.vmem [shape: f32[2,8,8,8], index: 0, kind: input, shape index: {}]   ;;  %s9280_s1 = inlined_call_operand.vmem [shape: f32[2,8,16,8], index: 1, kind: input, shape index: {}]   ;;  %s9281_s2 = inlined_call_operand.vmem [shape: f32[2,8,16], index: 2, kind: input, shape index: {}]   ;;  %s9282_s3 = inlined_call_operand.vmem [shape: f32[16,8], index: 3, kind: input, shape index: {}]   ;;  %s9283_s4 = inlined_call_operand.vmem [shape: f32[16,1], index: 4, kind: input, shape index: {}]   ;;  %s9284_s5 = inlined_call_operand.vmem [shape: f32[16,1], index: 5, kind: input, shape index: {}]   ;;  %s9285_s6 = inlined_call_operand.<no memory space> [shape: f32[1,1], index: 6, kind: input, shape index: {}]   ;;  %s9286_s7 = inlined_call_operand.vmem [shape: f32[16,8], index: 7, kind: input, shape index: {}]   ;;  %s9287_s8 = inlined_call_operand.vmem [shape: f32[1,8], index: 8, kind: input, shape index: {}]   ;;  %s9288_s9 = inlined_call_operand.vmem [shape: f32[2,4,8,8], index: 9, kind: output, shape index: {}]  }
   0x1   :  { %v14_v0 = vstv %s9285_s6 }
   0x2   :  { %15 = vst [vmem:[#allocation2] sm:$0x1] %v14_v0 }
   0x3 LB: > { %s6491_s12 = sadd.s32 4294967295, %s7518_s11   ;;  %p6495_p0 = scmp.ge.s32.totalorder %s7518_s11, 1  ;;  %s7518_s11 = sphi %s7576_s11, %s21_s11  }
   0x4   : > { %p308_p1 = scmp.lt.s32.totalorder %s7518_s11, 3 }
   0x6   : > { %p309_p2 = pnand %p6495_p0, %p308_p1 }
   0x8   : > { %312 = sbr.rel (%p309_p2) target bundleno = 992 (0x3e0), region = 56 }
   0xd   : > { %p353_p3 = scmp.lt.s32.totalorder %s6491_s12, 1  ;;  %v405_v1 = vlaneseq  ;;  %v9296_v2 = vmov 0.0   ;;  %vm7521_vm0 = vmmov 0   ;;  %v7597_v4 = vld [vmem:[%s9282_s3] sm:$0xff]  ;;  %vm417_vm1 = vcmask 64512  }
   0xe   : > { %6914 = vmatprep.subr.mxu0 %v9296_v2  ;;  %6921 = vmatprep.subr.mxu1 %v9296_v2  ;;  %v7712_v27 = vld [vmem:[%s9283_s4] sm:$0xff]  ;;  %vm754_vm3 = vcmask 130048  }
   0xf   : > { %s9526_s12 = smov (!%p353_p3, %s6491_s12), 1  ;;  %6918 = vmatprep.mubr.msk.f32.mxu0 %vm7521_vm0, %v9296_v2  ;;  %v7590_v3 = vshrl.u32 %v405_v1, 7  ;;  %6925 = vmatprep.mubr.msk.f32.mxu1 %vm7521_vm0, %v9296_v2  ;;  %7390 = vpush %v7712_v27  ;;  %v7726_v28 = vld [vmem:[%s9284_s5] sm:$0xff]  ;;  %v787_v35 = vrot.slane %v7712_v27, 1  ;;  %v1135_v43 = vrot.slane %v7712_v27, 2  ;;  %v1483_v51 = vrot.slane %v7712_v27, 3 }
  0x10   : > { %s6708_s14 = sshll.u32 %s9526_s12, 7  ;;  %s6707_s18 = sshll.u32 %s9526_s12, 6  ;;  %7392 = vpush %v7726_v28  ;;  %v1087_v36 = vrot.slane %v7726_v28, 1  ;;  %v1435_v44 = vrot.slane %v7726_v28, 2  ;;  %v1783_v52 = vrot.slane %v7726_v28, 3  ;;  %v1831_v59 = vrot.slane %v7712_v27, 4 }
  0x11   : > { %v7601_v5 = vsub.s32 0, %v7590_v3  ;;  %s7606_s17 = scalar_lea.vmem %s9280_s1, %s6708_s14  ;;  %s7627_s21 = scalar_lea.vmem %s9279_s0, %s6707_s18  ;;  %v7681_v23 = vsub.s32 1, %v7590_v3  ;;  %v7738_v31 = vsub.s32 2, %v7590_v3  ;;  %7394 = vpush %v787_v35  ;;  %v7785_v39 = vsub.s32 3, %v7590_v3 }
  0x12   : > { %v7609_v6 = vld [vmem:[%s7606_s17 + $0x8] sm:$0xff]  ;;  %v7612_v7 = vld [vmem:[%s7606_s17 + $0x18] sm:$0xff]  ;;  %v7622_v9 = vld [vmem:[%s7606_s17] sm:$0xff]  ;;  %7396 = vpush %v1087_v36  ;;  %v7832_v47 = vsub.s32 4, %v7590_v3  ;;  %v7879_v55 = vsub.s32 5, %v7590_v3  ;;  %v2131_v60 = vrot.slane %v7726_v28, 4 }
  0x13   : > { %v408_v8 = vrot.slane %v7597_v4, %v7601_v5  ;;  %6915 = vmatpush3.xpose.msk.msra.mxu0 %vm417_vm1, %v7609_v6  ;;  %6922 = vmatpush3.xpose.msk.msra.mxu1 %vm417_vm1, %v7612_v7  ;;  %v7632_v10 = vld [vmem:[%s7606_s17 + $0x10] sm:$0xff]  ;;  %v7635_v11 = vld [vmem:[%s7627_s21] sm:$0xff]  ;;  %v7638_v12 = vld [vmem:[%s7627_s21 + $0x8] sm:$0xff]  ;;  %9382 = vst [vmem:[#allocation3_spill] sm:$0xff] %v7681_v23  ;;  %v782_v24 = vrot.slane %v7597_v4, %v7681_v23  ;;  %v7926_v63 = vsub.s32 6, %v7590_v3 }
  0x14   : > { %6916 = vmatprep.subr.mxu0 %v9296_v2  ;;  %6923 = vmatprep.subr.mxu1 %v9296_v2  ;;  %v7649_v15 = vld [vmem:[%s7606_s17 + $0x28] sm:$0xff]  ;;  %v7652_v16 = vld [vmem:[%s7606_s17 + $0x38] sm:$0xff]  ;;  %v7661_v17 = vld [vmem:[%s7627_s21 + $0x10] sm:$0xff]  ;;  %9383 = vst [vmem:[#allocation4_spill] sm:$0xff] %v7738_v31  ;;  %v1130_v32 = vrot.slane %v7597_v4, %v7738_v31  ;;  %v1478_v40 = vrot.slane %v7597_v4, %v7785_v39 }
  0x15   : > { %v409_v13 = vmul.f32 %v408_v8, %v7635_v11  ;;  %v410_v14 = vmul.f32 %v408_v8, %v7638_v12  ;;  %v7664_v18 = vld [vmem:[%s7627_s21 + $0x18] sm:$0xff]  ;;  %v7669_v19 = vld [vmem:[%s7606_s17 + $0x20] sm:$0xff]  ;;  %v7672_v20 = vld [vmem:[%s7606_s17 + $0x30] sm:$0xff]  ;;  %v411_v21 = vmul.f32 %v408_v8, %v7661_v17  ;;  %v783_v25 = vmul.f32 %v782_v24, %v7635_v11  ;;  %9384 = vst [vmem:[#allocation5_spill] sm:$0xff] %v7785_v39 }
  0x16   : > { %v412_v22 = vmul.f32 %v408_v8, %v7664_v18  ;;  %v784_v26 = vmul.f32 %v782_v24, %v7638_v12  ;;  %v785_v29 = vmul.f32 %v782_v24, %v7661_v17  ;;  %v786_v30 = vmul.f32 %v782_v24, %v7664_v18  ;;  %7398 = vpush %v1135_v43  ;;  %v8097_v43 = vld [vmem:[%s9283_s4 + $0x8] sm:$0xff] }
  0x17   : > { %6917 = vmatpush3.xpose.msk.msra.mxu0 %vm417_vm1, %v7622_v9  ;;  %6924 = vmatpush3.xpose.msk.msra.mxu1 %vm417_vm1, %v7632_v10  ;;  %v1131_v33 = vmul.f32 %v1130_v32, %v7635_v11  ;;  %v1132_v34 = vmul.f32 %v1130_v32, %v7638_v12  ;;  %v1133_v37 = vmul.f32 %v1130_v32, %v7661_v17  ;;  %v7973_v24 = vsub.s32 7, %v7590_v3 }
  0x18   : > { %6928 = vmatprep.subr.mxu0 %v9296_v2  ;;  %6935 = vmatprep.subr.mxu1 %v9296_v2  ;;  %v1134_v38 = vmul.f32 %v1130_v32, %v7664_v18  ;;  %v1479_v41 = vmul.f32 %v1478_v40, %v7635_v11  ;;  %v1480_v42 = vmul.f32 %v1478_v40, %v7638_v12 }
  0x19   : > { %7400 = vpush %v1435_v44  ;;  %v1481_v45 = vmul.f32 %v1478_v40, %v7661_v17  ;;  %v1482_v46 = vmul.f32 %v1478_v40, %v7664_v18  ;;  %9385 = vst [vmem:[#allocation6_spill] sm:$0xff] %v7832_v47  ;;  %v1826_v48 = vrot.slane %v7597_v4, %v7832_v47  ;;  %v8111_v44 = vld [vmem:[%s9284_s5 + $0x8] sm:$0xff] }
  0x1a   : > { %6919 = vmatmul.mubr.msk.f32.vlgmr.msra.gmra.mxu0 %vm417_vm1, %v409_v13  ;;  %6926 = vmatmul.mubr.msk.f32.vlgmr.msra.gmra.mxu1 %vm417_vm1, %v410_v14  ;;  %7402 = vpush %v1483_v51  ;;  %9386 = vst [vmem:[#allocation7_spill] sm:$0xff] %v7879_v55  ;;  %v2174_v56 = vrot.slane %v7597_v4, %v7879_v55  ;;  %v2522_v0 = vrot.slane %v7597_v4, %v7926_v63  ;;  %v2179_v13 = vrot.slane %v7712_v27, 5 }
  0x1b   : > { %6929 = vmatpush3.xpose.msk.msra.mxu0 %vm417_vm1, %v7649_v15  ;;  %6936 = vmatpush3.xpose.msk.msra.mxu1 %vm417_vm1, %v7652_v16  ;;  %v1827_v49 = vmul.f32 %v1826_v48, %v7635_v11  ;;  %v1828_v50 = vmul.f32 %v1826_v48, %v7638_v12  ;;  %7404 = vpush %v1783_v52  ;;  %9387 = vst [vmem:[#allocation8_spill] sm:$0xff] %v7926_v63  ;;  %v2479_v14 = vrot.slane %v7726_v28, 5 }
  0x1c   : > { %6930 = vmatprep.subr.mxu0 %v9296_v2  ;;  %6937 = vmatprep.subr.mxu1 %v9296_v2  ;;  %v1829_v53 = vmul.f32 %v1826_v48, %v7661_v17  ;;  %v1830_v54 = vmul.f32 %v1826_v48, %v7664_v18  ;;  %v2175_v57 = vmul.f32 %v2174_v56, %v7635_v11  ;;  %v3571_v51 = vrot.slane %v8097_v43, 1 }
  0x1d   : > { %6932 = vmatprep.mubr.msk.f32.mxu0 %vm7521_vm0, %v9296_v2  ;;  %6939 = vmatprep.mubr.msk.f32.mxu1 %vm7521_vm0, %v9296_v2  ;;  %v2176_v58 = vmul.f32 %v2174_v56, %v7638_v12  ;;  %7406 = vpush %v1831_v59  ;;  %v2177_v61 = vmul.f32 %v2174_v56, %v7661_v17  ;;  %9388 = vst [vmem:[#allocation9_spill] sm:$0xff] %v7973_v24  ;;  %v3871_v52 = vrot.slane %v8111_v44, 1 }
  0x1e   : > { %7408 = vpush %v2131_v60  ;;  %v2178_v62 = vmul.f32 %v2174_v56, %v7664_v18  ;;  %v2523_v1 = vmul.f32 %v2522_v0, %v7635_v11  ;;  %v2524_v8 = vmul.f32 %v2522_v0, %v7638_v12  ;;  %v3919_v59 = vrot.slane %v8097_v43, 2 }
  0x1f   : > { %6931 = vmatpush3.xpose.msk.msra.mxu0 %vm417_vm1, %v7669_v19  ;;  %6938 = vmatpush3.xpose.msk.msra.mxu1 %vm417_vm1, %v7672_v20  ;;  %7410 = vpush %v2179_v13  ;;  %v4219_v60 = vrot.slane %v8111_v44, 2  ;;  %v7522_v13 = vmov 0  }
  0x20   : > { %6942 = vmatprep.subr.mxu0 %v9296_v2  ;;  %6949 = vmatprep.subr.mxu1 %v9296_v2  ;;  %7412 = vpush %v2479_v14  ;;  %v6700_v14 = vld [vmem:[#allocation2] ss:$0 sm:$0xff] }
  0x21   : > { %7465 = vset.pattern.permute.xlu0 %v7522_v13  ;;  %v8343_v13 = vld [vmem:[%s7606_s17 + $0x8] sm:$0xff] }
  0x22   : > { %6933 = vmatmul.mubr.msk.f32.vlgmr.msra.gmra.mxu0 %vm417_vm1, %v411_v21  ;;  %6940 = vmatmul.mubr.msk.f32.vlgmr.msra.gmra.mxu1 %vm417_vm1, %v412_v22  ;;  %v2525_v21 = vmul.f32 %v2522_v0, %v7661_v17  ;;  %v2526_v22 = vmul.f32 %v2522_v0, %v7664_v18 }
  0x23   : > { %6943 = vmatpush3.xpose.msk.msra.mxu0 %vm417_vm1, %v7609_v6  ;;  %6950 = vmatpush3.xpose.msk.msra.mxu1 %vm417_vm1, %v7612_v7 }
  0x24   : > { %6944 = vmatprep.subr.mxu0 %v9296_v2  ;;  %6951 = vmatprep.subr.mxu1 %v9296_v2 }
  0x25   : > { %6946 = vmatprep.mubr.msk.f32.mxu0 %vm7521_vm0, %v9296_v2  ;;  %6953 = vmatprep.mubr.msk.f32.mxu1 %vm7521_vm0, %v9296_v2 }
  0x26   : > { %6051 = vperm.xlu0 %7465, %v6700_v14   ;;  %v8348_v14 = vld [vmem:[%s7606_s17 + $0x18] sm:$0xff] }
  0x27   : > { %6945 = vmatpush3.xpose.msk.msra.mxu0 %vm417_vm1, %v7622_v9  ;;  %6952 = vmatpush3.xpose.msk.msra.mxu1 %vm417_vm1, %v7632_v10 }
  0x28   : > { %6956 = vmatprep.subr.mxu0 %v9296_v2  ;;  %6963 = vmatprep.subr.mxu1 %v9296_v2 }
  0x2a   : > { %6947 = vmatmul.mubr.msk.f32.vlgmr.msra.gmra.mxu0 %vm417_vm1, %v783_v25  ;;  %6954 = vmatmul.mubr.msk.f32.vlgmr.msra.gmra.mxu1 %vm417_vm1, %v784_v26  ;;  %v2870_v25 = vrot.slane %v7597_v4, %v7973_v24  ;;  %v2527_v26 = vrot.slane %v7712_v27, 6 }
  0x2b   : > { %6957 = vmatpush3.xpose.msk.msra.mxu0 %vm417_vm1, %v7649_v15  ;;  %6964 = vmatpush3.xpose.msk.msra.mxu1 %vm417_vm1, %v7652_v16 }
  0x2c   : > { %6958 = vmatprep.subr.mxu0 %v9296_v2  ;;  %6965 = vmatprep.subr.mxu1 %v9296_v2  ;;  %v2871_v3 = vmul.f32 %v2870_v25, %v7635_v11  ;;  %v2872_v4 = vmul.f32 %v2870_v25, %v7638_v12  ;;  %7414 = vpush %v2527_v26 }
  0x2d   : > { %6960 = vmatprep.mubr.msk.f32.mxu0 %vm7521_vm0, %v9296_v2  ;;  %6967 = vmatprep.mubr.msk.f32.mxu1 %vm7521_vm0, %v9296_v2  ;;  %v2874_v32 = vmul.f32 %v2870_v25, %v7664_v18 }
  0x2f   : > { %6959 = vmatpush3.xpose.msk.msra.mxu0 %vm417_vm1, %v7669_v19  ;;  %6966 = vmatpush3.xpose.msk.msra.mxu1 %vm417_vm1, %v7672_v20 }
  0x30   : > { %6970 = vmatprep.subr.mxu0 %v9296_v2  ;;  %6977 = vmatprep.subr.mxu1 %v9296_v2 }
  0x32   : > { %6961 = vmatmul.mubr.msk.f32.vlgmr.msra.gmra.mxu0 %vm417_vm1, %v785_v29  ;;  %6968 = vmatmul.mubr.msk.f32.vlgmr.msra.gmra.mxu1 %vm417_vm1, %v786_v30  ;;  %v2827_v29 = vrot.slane %v7726_v28, 6  ;;  %v2873_v30 = vmul.f32 %v2870_v25, %v7661_v17 }
  0x33   : > { %6971 = vmatpush3.xpose.msk.msra.mxu0 %vm417_vm1, %v7609_v6  ;;  %6978 = vmatpush3.xpose.msk.msra.mxu1 %vm417_vm1, %v7612_v7 }
  0x34   : > { %6972 = vmatprep.subr.mxu0 %v9296_v2  ;;  %6979 = vmatprep.subr.mxu1 %v9296_v2  ;;  %7416 = vpush %v2827_v29 }
  0x35   : > { %6974 = vmatprep.mubr.msk.f32.mxu0 %vm7521_vm0, %v9296_v2  ;;  %6981 = vmatprep.mubr.msk.f32.mxu1 %vm7521_vm0, %v9296_v2 }
  0x37   : > { %6973 = vmatpush3.xpose.msk.msra.mxu0 %vm417_vm1, %v7622_v9  ;;  %6980 = vmatpush3.xpose.msk.msra.mxu1 %vm417_vm1, %v7632_v10 }
  0x38   : > { %6984 = vmatprep.subr.mxu0 %v9296_v2  ;;  %6991 = vmatprep.subr.mxu1 %v9296_v2 }
  0x3a   : > { %6975 = vmatmul.mubr.msk.f32.vlgmr.msra.gmra.mxu0 %vm417_vm1, %v1131_v33  ;;  %6982 = vmatmul.mubr.msk.f32.vlgmr.msra.gmra.mxu1 %vm417_vm1, %v1132_v34  ;;  %v8026_v33 = vld [vmem:[%s9282_s3 + $0x8] sm:$0xff] }
  0x3b   : > { %6985 = vmatpush3.xpose.msk.msra.mxu0 %vm417_vm1, %v7649_v15  ;;  %6992 = vmatpush3.xpose.msk.msra.mxu1 %vm417_vm1, %v7652_v16  ;;  %v3218_v34 = vrot.slane %v8026_v33, %v7601_v5  ;;  %v3566_v40 = vrot.slane %v8026_v33, %v7681_v23  ;;  %v3914_v48 = vrot.slane %v8026_v33, %v7738_v31 }
  0x3c   : > { %6986 = vmatprep.subr.mxu0 %v9296_v2  ;;  %6993 = vmatprep.subr.mxu1 %v9296_v2  ;;  %v4262_v56 = vrot.slane %v8026_v33, %v7785_v39  ;;  %v4610_v0 = vrot.slane %v8026_v33, %v7832_v47 }
  0x3d   : > { %6988 = vmatprep.mubr.msk.f32.mxu0 %vm7521_vm0, %v9296_v2  ;;  %6995 = vmatprep.mubr.msk.f32.mxu1 %vm7521_vm0, %v9296_v2  ;;  %v3219_v35 = vmul.f32 %v3218_v34, %v7635_v11  ;;  %v3220_v36 = vmul.f32 %v3218_v34, %v7638_v12 }
  0x3e   : > { %v4613_v29 = vmul.f32 %v4610_v0, %v7661_v17 }
  0x3f   : > { %6987 = vmatpush3.xpose.msk.msra.mxu0 %vm417_vm1, %v7669_v19  ;;  %6994 = vmatpush3.xpose.msk.msra.mxu1 %vm417_vm1, %v7672_v20 }
  0x40   : > { %6998 = vmatprep.subr.mxu0 %v9296_v2  ;;  %7005 = vmatprep.subr.mxu1 %v9296_v2  ;;  %s7391_s6 = spop %7390 }
  0x41   : > { %s7393_s13 = spop %7392 }
  0x42   : > { %6989 = vmatmul.mubr.msk.f32.vlgmr.msra.gmra.mxu0 %vm417_vm1, %v1133_v37  ;;  %6996 = vmatmul.mubr.msk.f32.vlgmr.msra.gmra.mxu1 %vm417_vm1, %v1134_v38  ;;  %v2875_v37 = vrot.slane %v7712_v27, 7  ;;  %v3175_v38 = vrot.slane %v7726_v28, 7  ;;  %v3221_v27 = vmul.f32 %v3218_v34, %v7661_v17  ;;  %v3222_v28 = vmul.f32 %v3218_v34, %v7664_v18  ;;  %s7395_s14 = spop %7394 }
  0x43   : > { %6999 = vmatpush3.xpose.msk.msra.mxu0 %vm417_vm1, %v7609_v6  ;;  %7006 = vmatpush3.xpose.msk.msra.mxu1 %vm417_vm1, %v7612_v7  ;;  %s7397_s15 = spop %7396 }
  0x44   : > { %7000 = vmatprep.subr.mxu0 %v9296_v2  ;;  %7007 = vmatprep.subr.mxu1 %v9296_v2  ;;  %7418 = vpush %v2875_v37 }
  0x45   : > { %7002 = vmatprep.mubr.msk.f32.mxu0 %vm7521_vm0, %v9296_v2  ;;  %7009 = vmatprep.mubr.msk.f32.mxu1 %vm7521_vm0, %v9296_v2  ;;  %7420 = vpush %v3175_v38 }
  0x46   : > { %7422 = vpush %v8097_v43 }
  0x47   : > { %7001 = vmatpush3.xpose.msk.msra.mxu0 %vm417_vm1, %v7622_v9  ;;  %7008 = vmatpush3.xpose.msk.msra.mxu1 %vm417_vm1, %v7632_v10  ;;  %7424 = vpush %v8111_v44  ;;  %s7399_s16 = spop %7398 }
  0x48   : > { %7012 = vmatprep.subr.mxu0 %v9296_v2  ;;  %7019 = vmatprep.subr.mxu1 %v9296_v2  ;;  %7426 = vpush %v3571_v51 }
  0x49   : > { %7428 = vpush %v3871_v52 }
  0x4a   : > { %7003 = vmatmul.mubr.msk.f32.vlgmr.msra.gmra.mxu0 %vm417_vm1, %v1479_v41  ;;  %7010 = vmatmul.mubr.msk.f32.vlgmr.msra.gmra.mxu1 %vm417_vm1, %v1480_v42  ;;  %v3567_v41 = vmul.f32 %v3566_v40, %v7635_v11  ;;  %v3568_v42 = vmul.f32 %v3566_v40, %v7638_v12  ;;  %7430 = vpush %v3919_v59  ;;  %s7401_s18 = spop %7400 }
  0x4b   : > { %7013 = vmatpush3.xpose.msk.msra.mxu0 %vm417_vm1, %v7649_v15  ;;  %7020 = vmatpush3.xpose.msk.msra.mxu1 %vm417_vm1, %v7652_v16  ;;  %7432 = vpush %v4219_v60  ;;  %s7403_s19 = spop %7402 }
  0x4c   : > { %7014 = vmatprep.subr.mxu0 %v9296_v2  ;;  %7021 = vmatprep.subr.mxu1 %v9296_v2  ;;  %s7405_s20 = spop %7404 }
  0x4d   : > { %7016 = vmatprep.mubr.msk.f32.mxu0 %vm7521_vm0, %v9296_v2  ;;  %7023 = vmatprep.mubr.msk.f32.mxu1 %vm7521_vm0, %v9296_v2 }
  0x4e   : > { %s7407_s22 = spop %7406 }
  0x4f   : > { %7015 = vmatpush3.xpose.msk.msra.mxu0 %vm417_vm1, %v7669_v19  ;;  %7022 = vmatpush3.xpose.msk.msra.mxu1 %vm417_vm1, %v7672_v20  ;;  %s7409_s23 = spop %7408 }
  0x50   : > { %7026 = vmatprep.subr.mxu0 %v9296_v2  ;;  %7033 = vmatprep.subr.mxu1 %v9296_v2  ;;  %s7411_s24 = spop %7410 }
  0x51   : > { %s7413_s25 = spop %7412 }
  0x52   : > { %7017 = vmatmul.mubr.msk.f32.vlgmr.msra.gmra.mxu0 %vm417_vm1, %v1481_v45  ;;  %7024 = vmatmul.mubr.msk.f32.vlgmr.msra.gmra.mxu1 %vm417_vm1, %v1482_v46  ;;  %v3569_v45 = vmul.f32 %v3566_v40, %v7661_v17  ;;  %v3570_v46 = vmul.f32 %v3566_v40, %v7664_v18  ;;  %v4615_v40 = vrot.slane %v8097_v43, 4 }
  0x53   : > { %7027 = vmatpush3.xpose.msk.msra.mxu0 %vm417_vm1, %v7609_v6  ;;  %7034 = vmatpush3.xpose.msk.msra.mxu1 %vm417_vm1, %v7612_v7 }
  0x54   : > { %7028 = vmatprep.subr.mxu0 %v9296_v2  ;;  %7035 = vmatprep.subr.mxu1 %v9296_v2 }
  0x55   : > { %7030 = vmatprep.mubr.msk.f32.mxu0 %vm7521_vm0, %v9296_v2  ;;  %7037 = vmatprep.mubr.msk.f32.mxu1 %vm7521_vm0, %v9296_v2 }
  0x57   : > { %7029 = vmatpush3.xpose.msk.msra.mxu0 %vm417_vm1, %v7622_v9  ;;  %7036 = vmatpush3.xpose.msk.msra.mxu1 %vm417_vm1, %v7632_v10 }
  0x58   : > { %7040 = vmatprep.subr.mxu0 %v9296_v2  ;;  %7047 = vmatprep.subr.mxu1 %v9296_v2 }
  0x5a   : > { %7031 = vmatmul.mubr.msk.f32.vlgmr.msra.gmra.mxu0 %vm417_vm1, %v1827_v49  ;;  %7038 = vmatmul.mubr.msk.f32.vlgmr.msra.gmra.mxu1 %vm417_vm1, %v1828_v50  ;;  %v3915_v49 = vmul.f32 %v3914_v48, %v7635_v11  ;;  %v3916_v50 = vmul.f32 %v3914_v48, %v7638_v12 }
  0x5b   : > { %7041 = vmatpush3.xpose.msk.msra.mxu0 %vm417_vm1, %v7649_v15  ;;  %7048 = vmatpush3.xpose.msk.msra.mxu1 %vm417_vm1, %v7652_v16 }
  0x5c   : > { %7042 = vmatprep.subr.mxu0 %v9296_v2  ;;  %7049 = vmatprep.subr.mxu1 %v9296_v2 }
  0x5d   : > { %7044 = vmatprep.mubr.msk.f32.mxu0 %vm7521_vm0, %v9296_v2  ;;  %7051 = vmatprep.mubr.msk.f32.mxu1 %vm7521_vm0, %v9296_v2  ;;  %s7415_s26 = spop %7414 }
  0x5f   : > { %7043 = vmatpush3.xpose.msk.msra.mxu0 %vm417_vm1, %v7669_v19  ;;  %7050 = vmatpush3.xpose.msk.msra.mxu1 %vm417_vm1, %v7672_v20 }
  0x60   : > { %7054 = vmatprep.subr.mxu0 %v9296_v2  ;;  %7061 = vmatprep.subr.mxu1 %v9296_v2 }
  0x62   : > { %7045 = vmatmul.mubr.msk.f32.vlgmr.msra.gmra.mxu0 %vm417_vm1, %v1829_v53  ;;  %7052 = vmatmul.mubr.msk.f32.vlgmr.msra.gmra.mxu1 %vm417_vm1, %v1830_v54  ;;  %v3917_v53 = vmul.f32 %v3914_v48, %v7661_v17  ;;  %v3918_v54 = vmul.f32 %v3914_v48, %v7664_v18 }
  0x63   : > { %7055 = vmatpush3.xpose.msk.msra.mxu0 %vm417_vm1, %v7609_v6  ;;  %7062 = vmatpush3.xpose.msk.msra.mxu1 %vm417_vm1, %v7612_v7 }
  0x64   : > { %7056 = vmatprep.subr.mxu0 %v9296_v2  ;;  %7063 = vmatprep.subr.mxu1 %v9296_v2 }
  0x65   : > { %7058 = vmatprep.mubr.msk.f32.mxu0 %vm7521_vm0, %v9296_v2  ;;  %7065 = vmatprep.mubr.msk.f32.mxu1 %vm7521_vm0, %v9296_v2  ;;  %s7417_s27 = spop %7416 }
  0x67   : > { %7057 = vmatpush3.xpose.msk.msra.mxu0 %vm417_vm1, %v7622_v9  ;;  %7064 = vmatpush3.xpose.msk.msra.mxu1 %vm417_vm1, %v7632_v10 }
  0x68   : > { %7068 = vmatprep.subr.mxu0 %v9296_v2  ;;  %7075 = vmatprep.subr.mxu1 %v9296_v2 }
  0x6a   : > { %7059 = vmatmul.mubr.msk.f32.vlgmr.msra.gmra.mxu0 %vm417_vm1, %v2175_v57  ;;  %7066 = vmatmul.mubr.msk.f32.vlgmr.msra.gmra.mxu1 %vm417_vm1, %v2176_v58  ;;  %v4263_v57 = vmul.f32 %v4262_v56, %v7635_v11  ;;  %v4264_v58 = vmul.f32 %v4262_v56, %v7638_v12 }
  0x6b   : > { %7069 = vmatpush3.xpose.msk.msra.mxu0 %vm417_vm1, %v7649_v15  ;;  %7076 = vmatpush3.xpose.msk.msra.mxu1 %vm417_vm1, %v7652_v16 }
  0x6c   : > { %7070 = vmatprep.subr.mxu0 %v9296_v2  ;;  %7077 = vmatprep.subr.mxu1 %v9296_v2 }
  0x6d   : > { %7072 = vmatprep.mubr.msk.f32.mxu0 %vm7521_vm0, %v9296_v2  ;;  %7079 = vmatprep.mubr.msk.f32.mxu1 %vm7521_vm0, %v9296_v2 }
  0x6f   : > { %7071 = vmatpush3.xpose.msk.msra.mxu0 %vm417_vm1, %v7669_v19  ;;  %7078 = vmatpush3.xpose.msk.msra.mxu1 %vm417_vm1, %v7672_v20 }
  0x70   : > { %7082 = vmatprep.subr.mxu0 %v9296_v2  ;;  %7089 = vmatprep.subr.mxu1 %v9296_v2 }
  0x72   : > { %7073 = vmatmul.mubr.msk.f32.vlgmr.msra.gmra.mxu0 %vm417_vm1, %v2177_v61  ;;  %7080 = vmatmul.mubr.msk.f32.vlgmr.msra.gmra.mxu1 %vm417_vm1, %v2178_v62  ;;  %v4265_v61 = vmul.f32 %v4262_v56, %v7661_v17  ;;  %v4266_v62 = vmul.f32 %v4262_v56, %v7664_v18 }
  0x73   : > { %7083 = vmatpush3.xpose.msk.msra.mxu0 %vm417_vm1, %v7609_v6  ;;  %7090 = vmatpush3.xpose.msk.msra.mxu1 %vm417_vm1, %v7612_v7 }
  0x74   : > { %7084 = vmatprep.subr.mxu0 %v9296_v2  ;;  %7091 = vmatprep.subr.mxu1 %v9296_v2 }
  0x75   : > { %7086 = vmatprep.mubr.msk.f32.mxu0 %vm7521_vm0, %v9296_v2  ;;  %7093 = vmatprep.mubr.msk.f32.mxu1 %vm7521_vm0, %v9296_v2  ;;  %s7419_s28 = spop %7418 }
  0x76   : > { %s7421_s29 = spop %7420 }
  0x77   : > { %7085 = vmatpush3.xpose.msk.msra.mxu0 %vm417_vm1, %v7622_v9  ;;  %7092 = vmatpush3.xpose.msk.msra.mxu1 %vm417_vm1, %v7632_v10  ;;  %s7423_s30 = spop %7422 }
  0x78   : > { %7096 = vmatprep.subr.mxu0 %v9296_v2  ;;  %7103 = vmatprep.subr.mxu1 %v9296_v2  ;;  %s7425_s10 = spop %7424 }
  0x7a   : > { %7087 = vmatmul.mubr.msk.f32.vlgmr.msra.gmra.mxu0 %vm417_vm1, %v2523_v1  ;;  %7094 = vmatmul.mubr.msk.f32.vlgmr.msra.gmra.mxu1 %vm417_vm1, %v2524_v8  ;;  %v4611_v1 = vmul.f32 %v4610_v0, %v7635_v11  ;;  %v4612_v8 = vmul.f32 %v4610_v0, %v7638_v12 }
  0x7b   : > { %7097 = vmatpush3.xpose.msk.msra.mxu0 %vm417_vm1, %v7649_v15  ;;  %7104 = vmatpush3.xpose.msk.msra.mxu1 %vm417_vm1, %v7652_v16 }
  0x7c   : > { %7098 = vmatprep.subr.mxu0 %v9296_v2  ;;  %7105 = vmatprep.subr.mxu1 %v9296_v2 }
  0x7d   : > { %7100 = vmatprep.mubr.msk.f32.mxu0 %vm7521_vm0, %v9296_v2  ;;  %7107 = vmatprep.mubr.msk.f32.mxu1 %vm7521_vm0, %v9296_v2 }
  0x7f   : > { %7099 = vmatpush3.xpose.msk.msra.mxu0 %vm417_vm1, %v7669_v19  ;;  %7106 = vmatpush3.xpose.msk.msra.mxu1 %vm417_vm1, %v7672_v20 }
  0x80   : > { %7110 = vmatprep.subr.mxu0 %v9296_v2  ;;  %7117 = vmatprep.subr.mxu1 %v9296_v2 }
  0x82   : > { %7101 = vmatmul.mubr.msk.f32.vlgmr.msra.gmra.mxu0 %vm417_vm1, %v2525_v21  ;;  %7108 = vmatmul.mubr.msk.f32.vlgmr.msra.gmra.mxu1 %vm417_vm1, %v2526_v22  ;;  %v4267_v21 = vrot.slane %v8097_v43, 3 }
  0x83   : > { %7111 = vmatpush3.xpose.msk.msra.mxu0 %vm417_vm1, %v7609_v6  ;;  %7118 = vmatpush3.xpose.msk.msra.mxu1 %vm417_vm1, %v7612_v7 }
  0x84   : > { %7112 = vmatprep.subr.mxu0 %v9296_v2  ;;  %7119 = vmatprep.subr.mxu1 %v9296_v2  ;;  %7434 = vpush %v4267_v21 }
  0x85   : > { %7114 = vmatprep.mubr.msk.f32.mxu0 %vm7521_vm0, %v9296_v2  ;;  %7121 = vmatprep.mubr.msk.f32.mxu1 %vm7521_vm0, %v9296_v2 }
  0x87   : > { %7113 = vmatpush3.xpose.msk.msra.mxu0 %vm417_vm1, %v7622_v9  ;;  %7120 = vmatpush3.xpose.msk.msra.mxu1 %vm417_vm1, %v7632_v10 }
  0x88   : > { %7124 = vmatprep.subr.mxu0 %v9296_v2  ;;  %7131 = vmatprep.subr.mxu1 %v9296_v2 }
  0x8a   : > { %7115 = vmatmul.mubr.msk.f32.vlgmr.msra.gmra.mxu0 %vm417_vm1, %v2871_v3  ;;  %7122 = vmatmul.mubr.msk.f32.vlgmr.msra.gmra.mxu1 %vm417_vm1, %v2872_v4  ;;  %v4567_v3 = vrot.slane %v8111_v44, 3 }
  0x8b   : > { %7125 = vmatpush3.xpose.msk.msra.mxu0 %vm417_vm1, %v7649_v15  ;;  %7132 = vmatpush3.xpose.msk.msra.mxu1 %vm417_vm1, %v7652_v16 }
  0x8c   : > { %7126 = vmatprep.subr.mxu0 %v9296_v2  ;;  %7133 = vmatprep.subr.mxu1 %v9296_v2  ;;  %7436 = vpush %v4567_v3 }
  0x8d   : > { %7128 = vmatprep.mubr.msk.f32.mxu0 %vm7521_vm0, %v9296_v2  ;;  %7135 = vmatprep.mubr.msk.f32.mxu1 %vm7521_vm0, %v9296_v2  ;;  %7438 = vpush %v4615_v40 }
  0x8f   : > { %7127 = vmatpush3.xpose.msk.msra.mxu0 %vm417_vm1, %v7669_v19  ;;  %7134 = vmatpush3.xpose.msk.msra.mxu1 %vm417_vm1, %v7672_v20 }
  0x90   : > { %7138 = vmatprep.subr.mxu0 %v9296_v2  ;;  %7145 = vmatprep.subr.mxu1 %v9296_v2 }
  0x92   : > { %7129 = vmatmul.mubr.msk.f32.vlgmr.msra.gmra.mxu0 %vm417_vm1, %v2873_v30  ;;  %7136 = vmatmul.mubr.msk.f32.vlgmr.msra.gmra.mxu1 %vm417_vm1, %v2874_v32  ;;  %v4614_v30 = vmul.f32 %v4610_v0, %v7664_v18  ;;  %v4958_v32 = vrot.slane %v8026_v33, %v7879_v55 }
  0x93   : > { %7139 = vmatpush3.xpose.msk.msra.mxu0 %vm417_vm1, %v7609_v6  ;;  %7146 = vmatpush3.xpose.msk.msra.mxu1 %vm417_vm1, %v7612_v7 }
  0x94   : > { %7140 = vmatprep.subr.mxu0 %v9296_v2  ;;  %7147 = vmatprep.subr.mxu1 %v9296_v2 }
  0x95   : > { %7142 = vmatprep.mubr.msk.f32.mxu0 %vm7521_vm0, %v9296_v2  ;;  %7149 = vmatprep.mubr.msk.f32.mxu1 %vm7521_vm0, %v9296_v2 }
  0x97   : > { %7141 = vmatpush3.xpose.msk.msra.mxu0 %vm417_vm1, %v7622_v9  ;;  %7148 = vmatpush3.xpose.msk.msra.mxu1 %vm417_vm1, %v7632_v10 }
  0x98   : > { %7152 = vmatprep.subr.mxu0 %v9296_v2  ;;  %7159 = vmatprep.subr.mxu1 %v9296_v2 }
  0x9a   : > { %7143 = vmatmul.mubr.msk.f32.vlgmr.msra.gmra.mxu0 %vm417_vm1, %v3219_v35  ;;  %7150 = vmatmul.mubr.msk.f32.vlgmr.msra.gmra.mxu1 %vm417_vm1, %v3220_v36  ;;  %v415_v36 = vstv %s7391_s6  ;;  %s7427_s6 = spop %7426 }
  0x9b   : > { %7153 = vmatpush3.xpose.msk.msra.mxu0 %vm417_vm1, %v7649_v15  ;;  %7160 = vmatpush3.xpose.msk.msra.mxu1 %vm417_vm1, %v7652_v16 }
  0x9c   : > { %7154 = vmatprep.subr.mxu0 %v9296_v2  ;;  %7161 = vmatprep.subr.mxu1 %v9296_v2 }
  0x9d   : > { %7156 = vmatprep.mubr.msk.f32.mxu0 %vm7521_vm0, %v9296_v2  ;;  %7163 = vmatprep.mubr.msk.f32.mxu1 %vm7521_vm0, %v9296_v2 }
  0x9f   : > { %7155 = vmatpush3.xpose.msk.msra.mxu0 %vm417_vm1, %v7669_v19  ;;  %7162 = vmatpush3.xpose.msk.msra.mxu1 %vm417_vm1, %v7672_v20 }
  0xa0   : > { %7166 = vmatprep.subr.mxu0 %v9296_v2  ;;  %7173 = vmatprep.subr.mxu1 %v9296_v2 }
  0xa2   : > { %7157 = vmatmul.mubr.msk.f32.vlgmr.msra.gmra.mxu0 %vm417_vm1, %v3221_v27  ;;  %7164 = vmatmul.mubr.msk.f32.vlgmr.msra.gmra.mxu1 %vm417_vm1, %v3222_v28  ;;  %v4959_v27 = vmul.f32 %v4958_v32, %v7635_v11 }
  0xa3   : > { %7167 = vmatpush3.xpose.msk.msra.mxu0 %vm417_vm1, %v7609_v6  ;;  %7174 = vmatpush3.xpose.msk.msra.mxu1 %vm417_vm1, %v7612_v7 }
  0xa4   : > { %7168 = vmatprep.subr.mxu0 %v9296_v2  ;;  %7175 = vmatprep.subr.mxu1 %v9296_v2 }
  0xa5   : > { %7170 = vmatprep.mubr.msk.f32.mxu0 %vm7521_vm0, %v9296_v2  ;;  %7177 = vmatprep.mubr.msk.f32.mxu1 %vm7521_vm0, %v9296_v2 }
  0xa7   : > { %7169 = vmatpush3.xpose.msk.msra.mxu0 %vm417_vm1, %v7622_v9  ;;  %7176 = vmatpush3.xpose.msk.msra.mxu1 %vm417_vm1, %v7632_v10 }
  0xa8   : > { %7180 = vmatprep.subr.mxu0 %v9296_v2  ;;  %7187 = vmatprep.subr.mxu1 %v9296_v2 }
  0xaa   : > { %7171 = vmatmul.mubr.msk.f32.vlgmr.msra.gmra.mxu0 %vm417_vm1, %v3567_v41  ;;  %7178 = vmatmul.mubr.msk.f32.vlgmr.msra.gmra.mxu1 %vm417_vm1, %v3568_v42  ;;  %v789_v41 = vstv %s7395_s14 }
  0xab   : > { %7181 = vmatpush3.xpose.msk.msra.mxu0 %vm417_vm1, %v7649_v15  ;;  %7188 = vmatpush3.xpose.msk.msra.mxu1 %vm417_vm1, %v7652_v16 }
  0xac   : > { %7182 = vmatprep.subr.mxu0 %v9296_v2  ;;  %7189 = vmatprep.subr.mxu1 %v9296_v2 }
  0xad   : > { %7184 = vmatprep.mubr.msk.f32.mxu0 %vm7521_vm0, %v9296_v2  ;;  %7191 = vmatprep.mubr.msk.f32.mxu1 %vm7521_vm0, %v9296_v2 }
  0xaf   : > { %7183 = vmatpush3.xpose.msk.msra.mxu0 %vm417_vm1, %v7669_v19  ;;  %7190 = vmatpush3.xpose.msk.msra.mxu1 %vm417_vm1, %v7672_v20 }
  0xb0   : > { %7194 = vmatprep.subr.mxu0 %v9296_v2  ;;  %7201 = vmatprep.subr.mxu1 %v9296_v2 }
  0xb2   : > { %7185 = vmatmul.mubr.msk.f32.vlgmr.msra.gmra.mxu0 %vm417_vm1, %v3569_v45  ;;  %7192 = vmatmul.mubr.msk.f32.vlgmr.msra.gmra.mxu1 %vm417_vm1, %v3570_v46 }
  0xb3   : > { %7195 = vmatpush3.xpose.msk.msra.mxu0 %vm417_vm1, %v7609_v6  ;;  %7202 = vmatpush3.xpose.msk.msra.mxu1 %vm417_vm1, %v7612_v7 }
  0xb4   : > { %7196 = vmatprep.subr.mxu0 %v9296_v2  ;;  %7203 = vmatprep.subr.mxu1 %v9296_v2 }
  0xb5   : > { %7198 = vmatprep.mubr.msk.f32.mxu0 %vm7521_vm0, %v9296_v2  ;;  %7205 = vmatprep.mubr.msk.f32.mxu1 %vm7521_vm0, %v9296_v2 }
  0xb7   : > { %7197 = vmatpush3.xpose.msk.msra.mxu0 %vm417_vm1, %v7622_v9  ;;  %7204 = vmatpush3.xpose.msk.msra.mxu1 %vm417_vm1, %v7632_v10 }
  0xb8   : > { %7208 = vmatprep.subr.mxu0 %v9296_v2  ;;  %7215 = vmatprep.subr.mxu1 %v9296_v2 }
  0xba   : > { %7199 = vmatmul.mubr.msk.f32.vlgmr.msra.gmra.mxu0 %vm417_vm1, %v3915_v49  ;;  %7206 = vmatmul.mubr.msk.f32.vlgmr.msra.gmra.mxu1 %vm417_vm1, %v3916_v50  ;;  %v1089_v50 = vstv %s7397_s15 }
  0xbb   : > { %7209 = vmatpush3.xpose.msk.msra.mxu0 %vm417_vm1, %v7649_v15  ;;  %7216 = vmatpush3.xpose.msk.msra.mxu1 %vm417_vm1, %v7652_v16 }
  0xbc   : > { %7210 = vmatprep.subr.mxu0 %v9296_v2  ;;  %7217 = vmatprep.subr.mxu1 %v9296_v2 }
  0xbd   : > { %7212 = vmatprep.mubr.msk.f32.mxu0 %vm7521_vm0, %v9296_v2  ;;  %7219 = vmatprep.mubr.msk.f32.mxu1 %vm7521_vm0, %v9296_v2 }
  0xbf   : > { %7211 = vmatpush3.xpose.msk.msra.mxu0 %vm417_vm1, %v7669_v19  ;;  %7218 = vmatpush3.xpose.msk.msra.mxu1 %vm417_vm1, %v7672_v20 }
  0xc0   : > { %7222 = vmatprep.subr.mxu0 %v9296_v2  ;;  %7229 = vmatprep.subr.mxu1 %v9296_v2 }
  0xc2   : > { %7213 = vmatmul.mubr.msk.f32.vlgmr.msra.gmra.mxu0 %vm417_vm1, %v3917_v53  ;;  %7220 = vmatmul.mubr.msk.f32.vlgmr.msra.gmra.mxu1 %vm417_vm1, %v3918_v54 }
  0xc3   : > { %7223 = vmatpush3.xpose.msk.msra.mxu0 %vm417_vm1, %v7609_v6  ;;  %7230 = vmatpush3.xpose.msk.msra.mxu1 %vm417_vm1, %v7612_v7 }
  0xc4   : > { %7224 = vmatprep.subr.mxu0 %v9296_v2  ;;  %7231 = vmatprep.subr.mxu1 %v9296_v2 }
  0xc5   : > { %7226 = vmatprep.mubr.msk.f32.mxu0 %vm7521_vm0, %v9296_v2  ;;  %7233 = vmatprep.mubr.msk.f32.mxu1 %vm7521_vm0, %v9296_v2 }
  0xc7   : > { %7225 = vmatpush3.xpose.msk.msra.mxu0 %vm417_vm1, %v7622_v9  ;;  %7232 = vmatpush3.xpose.msk.msra.mxu1 %vm417_vm1, %v7632_v10 }
  0xc8   : > { %7236 = vmatprep.subr.mxu0 %v9296_v2  ;;  %7243 = vmatprep.subr.mxu1 %v9296_v2 }
  0xca   : > { %7227 = vmatmul.mubr.msk.f32.vlgmr.msra.gmra.mxu0 %vm417_vm1, %v4263_v57  ;;  %7234 = vmatmul.mubr.msk.f32.vlgmr.msra.gmra.mxu1 %vm417_vm1, %v4264_v58  ;;  %v4962_v57 = vmul.f32 %v4958_v32, %v7664_v18 }
  0xcb   : > { %7237 = vmatpush3.xpose.msk.msra.mxu0 %vm417_vm1, %v7649_v15  ;;  %7244 = vmatpush3.xpose.msk.msra.mxu1 %vm417_vm1, %v7652_v16 }
  0xcc   : > { %7238 = vmatprep.subr.mxu0 %v9296_v2  ;;  %7245 = vmatprep.subr.mxu1 %v9296_v2 }
  0xcd   : > { %7240 = vmatprep.mubr.msk.f32.mxu0 %vm7521_vm0, %v9296_v2  ;;  %7247 = vmatprep.mubr.msk.f32.mxu1 %vm7521_vm0, %v9296_v2 }
  0xcf   : > { %7239 = vmatpush3.xpose.msk.msra.mxu0 %vm417_vm1, %v7669_v19  ;;  %7246 = vmatpush3.xpose.msk.msra.mxu1 %vm417_vm1, %v7672_v20 }
  0xd0   : > { %7250 = vmatprep.subr.mxu0 %v9296_v2  ;;  %7257 = vmatprep.subr.mxu1 %v9296_v2 }
  0xd2   : > { %7241 = vmatmul.mubr.msk.f32.vlgmr.msra.gmra.mxu0 %vm417_vm1, %v4265_v61  ;;  %7248 = vmatmul.mubr.msk.f32.vlgmr.msra.gmra.mxu1 %vm417_vm1, %v4266_v62 }
  0xd3   : > { %7251 = vmatpush3.xpose.msk.msra.mxu0 %vm417_vm1, %v7609_v6  ;;  %7258 = vmatpush3.xpose.msk.msra.mxu1 %vm417_vm1, %v7612_v7 }
  0xd4   : > { %7252 = vmatprep.subr.mxu0 %v9296_v2  ;;  %7259 = vmatprep.subr.mxu1 %v9296_v2 }
  0xd5   : > { %7254 = vmatprep.mubr.msk.f32.mxu0 %vm7521_vm0, %v9296_v2  ;;  %7261 = vmatprep.mubr.msk.f32.mxu1 %vm7521_vm0, %v9296_v2 }
  0xd7   : > { %7253 = vmatpush3.xpose.msk.msra.mxu0 %vm417_vm1, %v7622_v9  ;;  %7260 = vmatpush3.xpose.msk.msra.mxu1 %vm417_vm1, %v7632_v10 }
  0xd8   : > { %7264 = vmatprep.subr.mxu0 %v9296_v2  ;;  %7271 = vmatprep.subr.mxu1 %v9296_v2 }
  0xda   : > { %v493_v22 = vpop.f32.mrf.mxu0  ;;  %7255 = vmatmul.mubr.msk.f32.vlgmr.msra.gmra.mxu0 %vm417_vm1, %v4611_v1  ;;  %7262 = vmatmul.mubr.msk.f32.vlgmr.msra.gmra.mxu1 %vm417_vm1, %v4612_v8  ;;  %v572_v25 = vpop.f32.mrf.mxu1 }
  0xdb   : > { %7265 = vmatpush3.xpose.msk.msra.mxu0 %vm417_vm1, %v7649_v15  ;;  %7272 = vmatpush3.xpose.msk.msra.mxu1 %vm417_vm1, %v7652_v16  ;;  %v8277_v28 = vadd.f32 %v572_v25, %v415_v36 }
  0xdc   : > { %v6920_v4 = vpop.f32.mrf.mxu0  ;;  %7266 = vmatprep.subr.mxu0 %v9296_v2  ;;  %7273 = vmatprep.subr.mxu1 %v9296_v2  ;;  %v6927_v26 = vpop.f32.mrf.mxu1 }
  0xdd   : > { %7268 = vmatprep.mubr.msk.f32.mxu0 %vm7521_vm0, %v9296_v2  ;;  %7275 = vmatprep.mubr.msk.f32.mxu1 %vm7521_vm0, %v9296_v2  ;;  %9390 = vst [vmem:[#allocation11_spill] sm:$0xff] %v8277_v28  ;;  %v9301_v42 = vmax.f32 %v8277_v28, 0.0  ;;  %v8363_v26 = vld [vmem:[%s7627_s21] sm:$0xff] }
  0xdf   : > { %7267 = vmatpush3.xpose.msk.msra.mxu0 %vm417_vm1, %v7669_v19  ;;  %7274 = vmatpush3.xpose.msk.msra.mxu1 %vm417_vm1, %v7672_v20 }
  0xe0   : > { %7278 = vmatprep.subr.mxu0 %v9296_v2  ;;  %7285 = vmatprep.subr.mxu1 %v9296_v2 }
  0xe2   : > { %v651_v34 = vpop.f32.mrf.mxu0  ;;  %7269 = vmatmul.mubr.msk.f32.vlgmr.msra.gmra.mxu0 %vm417_vm1, %v4613_v29  ;;  %7276 = vmatmul.mubr.msk.f32.vlgmr.msra.gmra.mxu1 %vm417_vm1, %v4614_v30  ;;  %v730_v35 = vpop.f32.mrf.mxu1  ;;  %v8367_v30 = vld [vmem:[%s7627_s21 + $0x8] sm:$0xff] }
  0xe3   : > { %7279 = vmatpush3.xpose.msk.msra.mxu0 %vm417_vm1, %v7609_v6  ;;  %7286 = vmatpush3.xpose.msk.msra.mxu1 %vm417_vm1, %v7612_v7  ;;  %v8275_v6 = vadd.f32 %v493_v22, %v415_v36  ;;  %v4960_v7 = vmul.f32 %v4958_v32, %v7638_v12  ;;  %v8313_v56 = vadd.f32 %v651_v34, %v415_v36  ;;  %v4963_v34 = vrot.slane %v8097_v43, 5 }
  0xe4   : > { %v6934_v37 = vpop.f32.mrf.mxu0  ;;  %7280 = vmatprep.subr.mxu0 %v9296_v2  ;;  %7287 = vmatprep.subr.mxu1 %v9296_v2  ;;  %v6941_v38 = vpop.f32.mrf.mxu1  ;;  %v8316_v58 = vadd.f32 %v730_v35, %v415_v36 }
  0xe5   : > { %7282 = vmatprep.mubr.msk.f32.mxu0 %vm7521_vm0, %v9296_v2  ;;  %7289 = vmatprep.mubr.msk.f32.mxu1 %vm7521_vm0, %v9296_v2  ;;  %9389 = vst [vmem:[#allocation10_spill] sm:$0xff] %v8275_v6  ;;  %v9303_v11 = vmax.f32 %v8275_v6, 0.0  ;;  %v9324_v61 = vmax.f32 %v8313_v56, 0.0  ;;  %v8378_v38 = vld [vmem:[%s7606_s17] sm:$0xff] }
  0xe6   : > { %9392 = vst [vmem:[#allocation13_spill] sm:$0xff] %v8316_v58 }
  0xe7   : > { %7281 = vmatpush3.xpose.msk.msra.mxu0 %vm417_vm1, %v7622_v9  ;;  %7288 = vmatpush3.xpose.msk.msra.mxu1 %vm417_vm1, %v7632_v10  ;;  %v4915_v9 = vrot.slane %v8111_v44, 4  ;;  %v740_v10 = vstv %s7393_s13  ;;  %s7429_s13 = spop %7428 }
  0xe8   : > { %7292 = vmatprep.subr.mxu0 %v9296_v2  ;;  %7299 = vmatprep.subr.mxu1 %v9296_v2  ;;  %v743_v54 = vmul.f32 %v740_v10, %v9301_v42  ;;  %v744_v4 = vmul.f32 %v740_v10, %v9324_v61  ;;  %s7431_s14 = spop %7430 }
  0xe9   : > { %7440 = vpush %v4915_v9  ;;  %v5263_v9 = vrot.slane %v8111_v44, 5  ;;  %s7433_s15 = spop %7432 }
  0xea   : > { %v860_v12 = vpop.f32.mrf.mxu0  ;;  %v933_v45 = vpop.f32.mrf.mxu1  ;;  %7283 = vmatmul.mubr.msk.f32.vlgmr.msra.gmra.mxu0 %vm417_vm1, %v4959_v27  ;;  %7290 = vmatmul.mubr.msk.f32.vlgmr.msra.gmra.mxu1 %vm417_vm1, %v4960_v7  ;;  %v8383_v27 = vld [vmem:[%s7606_s17 + $0x10] sm:$0xff]  ;;  %v1137_v7 = vstv %s7399_s16  ;;  %7442 = vpush %v4963_v34  ;;  %s7435_s16 = spop %7434 }
  0xeb   : > { %v8292_v46 = vadd.f32 %v860_v12, %v789_v41  ;;  %v8294_v48 = vadd.f32 %v933_v45, %v789_v41  ;;  %7293 = vmatpush3.xpose.msk.msra.mxu0 %vm417_vm1, %v7649_v15  ;;  %7300 = vmatpush3.xpose.msk.msra.mxu1 %vm417_vm1, %v7652_v16  ;;  %v4961_v15 = vmul.f32 %v4958_v32, %v7661_v17 }
  0xec   : > { %v6948_v49 = vpop.f32.mrf.mxu0  ;;  %7294 = vmatprep.subr.mxu0 %v9296_v2  ;;  %7301 = vmatprep.subr.mxu1 %v9296_v2  ;;  %v6955_v51 = vpop.f32.mrf.mxu1  ;;  %v742_v16 = vmul.f32 %v740_v10, %v9303_v11  ;;  %7444 = vpush %v5263_v9 }
  0xed   : > { %9391 = vst [vmem:[#allocation12_spill] sm:$0xff] %v8294_v48  ;;  %v9323_v52 = vmax.f32 %v8292_v46, 0.0  ;;  %v9299_v53 = vmax.f32 %v8294_v48, 0.0  ;;  %7296 = vmatprep.mubr.msk.f32.mxu0 %vm7521_vm0, %v9296_v2  ;;  %7303 = vmatprep.mubr.msk.f32.mxu1 %vm7521_vm0, %v9296_v2  ;;  %v8406_v51 = vld [vmem:[%s7606_s17 + $0x38] sm:$0xff] }
  0xef   : > { %v1091_v59 = vmul.f32 %v1089_v50, %v9323_v52  ;;  %v1092_v60 = vmul.f32 %v1089_v50, %v9299_v53  ;;  %7295 = vmatpush3.xpose.msk.msra.mxu0 %vm417_vm1, %v7669_v19  ;;  %7302 = vmatpush3.xpose.msk.msra.mxu1 %vm417_vm1, %v7672_v20  ;;  %v5306_v19 = vrot.slane %v8026_v33, %v7926_v63  ;;  %v9300_v20 = vmax.f32 %v8316_v58, 0.0 }
  0xf0   : > { %7306 = vmatprep.subr.mxu0 %v9296_v2  ;;  %7313 = vmatprep.subr.mxu1 %v9296_v2 }
  0xf1   : > { %v8328_v17 = vadd.f32 %v1091_v59, %v742_v16  ;;  %v8330_v18 = vadd.f32 %v1092_v60, %v743_v54  ;;  %v5307_v29 = vmul.f32 %v8363_v26, %v5306_v19  ;;  %v5308_v32 = vmul.f32 %v8367_v30, %v5306_v19  ;;  %v8419_v60 = vld [vmem:[%s7627_s21 + $0x10] sm:$0xff] }
  0xf2   : > { %v1006_v62 = vpop.f32.mrf.mxu0  ;;  %v1079_v0 = vpop.f32.mrf.mxu1  ;;  %7297 = vmatmul.mubr.msk.f32.vlgmr.msra.gmra.mxu0 %vm417_vm1, %v4961_v15  ;;  %7304 = vmatmul.mubr.msk.f32.vlgmr.msra.gmra.mxu1 %vm417_vm1, %v4962_v57  ;;  %v745_v35 = vmul.f32 %v740_v10, %v9300_v20  ;;  %v1437_v16 = vstv %s7401_s18  ;;  %s7437_s18 = spop %7436 }
  0xf3   : > { %v8338_v1 = vadd.f32 %v1006_v62, %v789_v41  ;;  %v8340_v8 = vadd.f32 %v1079_v0, %v789_v41  ;;  %7307 = vmatpush3.xpose.msk.msra.mxu0 %vm417_vm1, %v8343_v13  ;;  %7314 = vmatpush3.xpose.msk.msra.mxu1 %vm417_vm1, %v8348_v14  ;;  %v5309_v62 = vmul.f32 %v8419_v60, %v5306_v19  ;;  %v8423_v0 = vld [vmem:[%s7627_s21 + $0x18] sm:$0xff] }
  0xf4   : > { %v6962_v21 = vpop.f32.mrf.mxu0  ;;  %7308 = vmatprep.subr.mxu0 %v9296_v2  ;;  %7315 = vmatprep.subr.mxu1 %v9296_v2  ;;  %v6969_v22 = vpop.f32.mrf.mxu1 }
  0xf5   : > { %9393 = vst [vmem:[#allocation14_spill] sm:$0xff] %v8340_v8  ;;  %v9320_v25 = vmax.f32 %v8338_v1, 0.0  ;;  %v9295_v3 = vmax.f32 %v8340_v8, 0.0  ;;  %7310 = vmatprep.mubr.msk.f32.mxu0 %vm7521_vm0, %v9296_v2  ;;  %7317 = vmatprep.mubr.msk.f32.mxu1 %vm7521_vm0, %v9296_v2  ;;  %v5310_v21 = vmul.f32 %v8423_v0, %v5306_v19 }
  0xf7   : > { %v1093_v36 = vmul.f32 %v1089_v50, %v9320_v25  ;;  %v1094_v37 = vmul.f32 %v1089_v50, %v9295_v3  ;;  %7309 = vmatpush3.xpose.msk.msra.mxu0 %vm417_vm1, %v8378_v38  ;;  %7316 = vmatpush3.xpose.msk.msra.mxu1 %vm417_vm1, %v8383_v27  ;;  %v8401_v50 = vld [vmem:[%s7606_s17 + $0x28] sm:$0xff] }
  0xf8   : > { %7320 = vmatprep.subr.mxu0 %v9296_v2  ;;  %7327 = vmatprep.subr.mxu1 %v9296_v2 }
  0xf9   : > { %v8389_v40 = vadd.f32 %v1093_v36, %v744_v4  ;;  %v8391_v41 = vadd.f32 %v1094_v37, %v745_v35  ;;  %v5654_v37 = vrot.slane %v8026_v33, %v7973_v24 }
  0xfa   : > { %v1208_v12 = vpop.f32.mrf.mxu0  ;;  %v1281_v45 = vpop.f32.mrf.mxu1  ;;  %7311 = vmatmul.mubr.msk.f32.vlgmr.msra.gmra.mxu0 %vm417_vm1, %v5307_v29  ;;  %7318 = vmatmul.mubr.msk.f32.vlgmr.msra.gmra.mxu1 %vm417_vm1, %v5308_v32  ;;  %v8431_v29 = vld [vmem:[%s7606_s17 + $0x20] sm:$0xff]  ;;  %v7511_v32 = vld [vmem:[%s7606_s17 + $0x30] sm:$0xff] }
  0xfb   : > { %v8396_v10 = vadd.f32 %v1208_v12, %v1137_v7  ;;  %v8398_v49 = vadd.f32 %v1281_v45, %v1137_v7  ;;  %7321 = vmatpush3.xpose.msk.msra.mxu0 %vm417_vm1, %v8401_v50  ;;  %7328 = vmatpush3.xpose.msk.msra.mxu1 %vm417_vm1, %v8406_v51 }
  0xfc   : > { %v6976_v15 = vpop.f32.mrf.mxu0  ;;  %7322 = vmatprep.subr.mxu0 %v9296_v2  ;;  %7329 = vmatprep.subr.mxu1 %v9296_v2  ;;  %v6983_v54 = vpop.f32.mrf.mxu1 }
  0xfd   : > { %9394 = vst [vmem:[#allocation15_spill] sm:$0xff] %v8398_v49  ;;  %v9319_v57 = vmax.f32 %v8396_v10, 0.0  ;;  %v9294_v59 = vmax.f32 %v8398_v49, 0.0  ;;  %7324 = vmatprep.mubr.msk.f32.mxu0 %vm7521_vm0, %v9296_v2  ;;  %7331 = vmatprep.mubr.msk.f32.mxu1 %vm7521_vm0, %v9296_v2 }
  0xff   : > { %v1439_v22 = vmul.f32 %v1437_v16, %v9319_v57  ;;  %v1440_v4 = vmul.f32 %v1437_v16, %v9294_v59  ;;  %7323 = vmatpush3.xpose.msk.msra.mxu0 %vm417_vm1, %v8431_v29  ;;  %7330 = vmatpush3.xpose.msk.msra.mxu1 %vm417_vm1, %v7511_v32 }
 0x100   : > { %7334 = vmatprep.subr.mxu0 %v9296_v2  ;;  %7341 = vmatprep.subr.mxu1 %v9296_v2 }
 0x101   : > { %v1443_v19 = vadd.f32 %v1439_v22, %v8328_v17  ;;  %v1444_v34 = vadd.f32 %v1440_v4, %v8330_v18 }
 0x102   : > { %v1354_v35 = vpop.f32.mrf.mxu0  ;;  %v1427_v36 = vpop.f32.mrf.mxu1  ;;  %7325 = vmatmul.mubr.msk.f32.vlgmr.msra.gmra.mxu0 %vm417_vm1, %v5309_v62  ;;  %7332 = vmatmul.mubr.msk.f32.vlgmr.msra.gmra.mxu1 %vm417_vm1, %v5310_v21  ;;  %v1485_v62 = vstv %s7403_s19  ;;  %s7439_s19 = spop %7438 }
 0x103   : > { %v8445_v12 = vadd.f32 %v1354_v35, %v1137_v7  ;;  %v8447_v45 = vadd.f32 %v1427_v36, %v1137_v7  ;;  %7335 = vmatpush3.xpose.msk.msra.mxu0 %vm417_vm1, %v8343_v13  ;;  %7342 = vmatpush3.xpose.msk.msra.mxu1 %vm417_vm1, %v8348_v14  ;;  %v5655_v13 = vmul.f32 %v8363_v26, %v5654_v37  ;;  %v5311_v7 = vrot.slane %v8097_v43, 6 }
 0x104   : > { %v6990_v17 = vpop.f32.mrf.mxu0  ;;  %7336 = vmatprep.subr.mxu0 %v9296_v2  ;;  %7343 = vmatprep.subr.mxu1 %v9296_v2  ;;  %v6997_v18 = vpop.f32.mrf.mxu1  ;;  %v5656_v14 = vmul.f32 %v8367_v30, %v5654_v37 }
 0x105   : > { %9395 = vst [vmem:[#allocation16_spill] sm:$0xff] %v8447_v45  ;;  %v9316_v9 = vmax.f32 %v8445_v12, 0.0  ;;  %v9292_v33 = vmax.f32 %v8447_v45, 0.0  ;;  %7338 = vmatprep.mubr.msk.f32.mxu0 %vm7521_vm0, %v9296_v2  ;;  %7345 = vmatprep.mubr.msk.f32.mxu1 %vm7521_vm0, %v9296_v2  ;;  %7446 = vpush %v5311_v7 }
 0x107   : > { %v1441_v15 = vmul.f32 %v1437_v16, %v9316_v9  ;;  %v1442_v54 = vmul.f32 %v1437_v16, %v9292_v33  ;;  %7337 = vmatpush3.xpose.msk.msra.mxu0 %vm417_vm1, %v8378_v38  ;;  %7344 = vmatpush3.xpose.msk.msra.mxu1 %vm417_vm1, %v8383_v27  ;;  %v5611_v38 = vrot.slane %v8111_v44, 6 }
 0x108   : > { %7348 = vmatprep.subr.mxu0 %v9296_v2  ;;  %7355 = vmatprep.subr.mxu1 %v9296_v2 }
 0x109   : > { %v1445_v26 = vadd.f32 %v1441_v15, %v8389_v40  ;;  %v1446_v30 = vadd.f32 %v1442_v54, %v8391_v41  ;;  %v1785_v41 = vstv %s7405_s20  ;;  %7448 = vpush %v5611_v38  ;;  %v5659_v15 = vrot.slane %v8097_v43, 7 }
 0x10a   : > { %v1556_v21 = vpop.f32.mrf.mxu0  ;;  %v1629_v22 = vpop.f32.mrf.mxu1  ;;  %7339 = vmatmul.mubr.msk.f32.vlgmr.msra.gmra.mxu0 %vm417_vm1, %v5655_v13  ;;  %7346 = vmatmul.mubr.msk.f32.vlgmr.msra.gmra.mxu1 %vm417_vm1, %v5656_v14 }
 0x10b   : > { %v8479_v27 = vadd.f32 %v1556_v21, %v1485_v62  ;;  %v8481_v16 = vadd.f32 %v1629_v22, %v1485_v62  ;;  %7349 = vmatpush3.xpose.msk.msra.mxu0 %vm417_vm1, %v8401_v50  ;;  %7356 = vmatpush3.xpose.msk.msra.mxu1 %vm417_vm1, %v8406_v51  ;;  %v5657_v50 = vmul.f32 %v8419_v60, %v5654_v37  ;;  %v1833_v21 = vstv %s7407_s22 }
 0x10c   : > { %v7004_v40 = vpop.f32.mrf.mxu0  ;;  %7350 = vmatprep.subr.mxu0 %v9296_v2  ;;  %7357 = vmatprep.subr.mxu1 %v9296_v2  ;;  %v7011_v4 = vpop.f32.mrf.mxu1  ;;  %v5658_v51 = vmul.f32 %v8423_v0, %v5654_v37  ;;  %7450 = vpush %v5659_v15 }
 0x10d   : > { %9396 = vst [vmem:[#allocation17_spill] sm:$0xff] %v8481_v16  ;;  %v9315_v35 = vmax.f32 %v8479_v27, 0.0  ;;  %v9291_v36 = vmax.f32 %v8481_v16, 0.0  ;;  %7352 = vmatprep.mubr.msk.f32.mxu0 %vm7521_vm0, %v9296_v2  ;;  %7359 = vmatprep.mubr.msk.f32.mxu1 %vm7521_vm0, %v9296_v2  ;;  %v4569_v16 = vstv %s7437_s18  ;;  %s6709_s18 = sshll.u32 %s9526_s12, 5 }
 0x10f   : > { %v1787_v17 = vmul.f32 %v1785_v41, %v9315_v35  ;;  %v1788_v18 = vmul.f32 %v1785_v41, %v9291_v36  ;;  %7351 = vmatpush3.xpose.msk.msra.mxu0 %vm417_vm1, %v8431_v29  ;;  %7358 = vmatpush3.xpose.msk.msra.mxu1 %vm417_vm1, %v7511_v32 }
 0x110   : > { %7362 = vmatprep.subr.mxu0 %v9296_v2  ;;  %7369 = vmatprep.subr.mxu1 %v9296_v2 }
 0x111   : > { %v1791_v13 = vadd.f32 %v1787_v17, %v1443_v19  ;;  %v1792_v14 = vadd.f32 %v1788_v18, %v1444_v34  ;;  %v2133_v18 = vstv %s7409_s23 }
 0x112   : > { %v1702_v60 = vpop.f32.mrf.mxu0  ;;  %v1775_v7 = vpop.f32.mrf.mxu1  ;;  %7353 = vmatmul.mubr.msk.f32.vlgmr.msra.gmra.mxu0 %vm417_vm1, %v5657_v50  ;;  %7360 = vmatmul.mubr.msk.f32.vlgmr.msra.gmra.mxu1 %vm417_vm1, %v5658_v51  ;;  %v5959_v50 = vrot.slane %v8111_v44, 7 }
 0x113   : > { %v8508_v0 = vadd.f32 %v1702_v60, %v1485_v62  ;;  %v8510_v37 = vadd.f32 %v1775_v7, %v1485_v62  ;;  %7366 = vmatprep.mubr.msk.f32.mxu0 %vm7521_vm0, %v9296_v2  ;;  %7373 = vmatprep.mubr.msk.f32.mxu1 %vm7521_vm0, %v9296_v2 }
 0x114   : > { %v7018_v29 = vpop.f32.mrf.mxu0  ;;  %v7025_v32 = vpop.f32.mrf.mxu1  ;;  %7452 = vpush %v5959_v50 }
 0x115   : > { %9397 = vst [vmem:[#allocation18_spill] sm:$0xff] %v8510_v37  ;;  %v9312_v19 = vmax.f32 %v8508_v0, 0.0  ;;  %v9290_v34 = vmax.f32 %v8510_v37, 0.0 }
 0x117   : > { %v1789_v54 = vmul.f32 %v1785_v41, %v9312_v19  ;;  %v1790_v62 = vmul.f32 %v1785_v41, %v9290_v34 }
 0x119   : > { %v1793_v22 = vadd.f32 %v1789_v54, %v1445_v26  ;;  %v1794_v38 = vadd.f32 %v1790_v62, %v1446_v30 }
 0x11a   : > { %v1904_v40 = vpop.f32.mrf.mxu0  ;;  %v1977_v4 = vpop.f32.mrf.mxu1  ;;  %s7441_s20 = spop %7440 }
 0x11b   : > { %v8524_v51 = vadd.f32 %v1904_v40, %v1833_v21  ;;  %v8526_v17 = vadd.f32 %v1977_v4, %v1833_v21  ;;  %s7443_s22 = spop %7442 }
 0x11c   : > { %v7032_v43 = vpop.f32.mrf.mxu0  ;;  %v7039_v60 = vpop.f32.mrf.mxu1 }
 0x11d   : > { %9398 = vst [vmem:[#allocation19_spill] sm:$0xff] %v8526_v17  ;;  %v9311_v7 = vmax.f32 %v8524_v51, 0.0  ;;  %v9289_v41 = vmax.f32 %v8526_v17, 0.0  ;;  %s7445_s23 = spop %7444 }
 0x11f   : > { %v2135_v26 = vmul.f32 %v2133_v18, %v9311_v7  ;;  %v2136_v30 = vmul.f32 %v2133_v18, %v9289_v41  ;;  %v2481_v41 = vstv %s7413_s25 }
 0x121   : > { %v2139_v29 = vadd.f32 %v2135_v26, %v1791_v13  ;;  %v2140_v44 = vadd.f32 %v2136_v30, %v1792_v14  ;;  %v2181_v14 = vstv %s7411_s24 }
 0x122   : > { %v2050_v32 = vpop.f32.mrf.mxu0  ;;  %v2123_v15 = vpop.f32.mrf.mxu1 }
 0x123   : > { %v8534_v54 = vadd.f32 %v2050_v32, %v1833_v21  ;;  %v8536_v62 = vadd.f32 %v2123_v15, %v1833_v21 }
 0x124   : > { %v7046_v40 = vpop.f32.mrf.mxu0  ;;  %v7053_v4 = vpop.f32.mrf.mxu1 }
 0x125   : > { %9399 = vst [vmem:[#allocation20_spill] sm:$0xff] %v8536_v62  ;;  %v9308_v50 = vmax.f32 %v8534_v54, 0.0  ;;  %v9293_v43 = vmax.f32 %v8536_v62, 0.0 }
 0x127   : > { %v2137_v60 = vmul.f32 %v2133_v18, %v9308_v50  ;;  %v2138_v13 = vmul.f32 %v2133_v18, %v9293_v43 }
 0x129   : > { %v2141_v26 = vadd.f32 %v2137_v60, %v1793_v22  ;;  %v2142_v30 = vadd.f32 %v2138_v13, %v1794_v38 }
 0x12a   : > { %v2252_v32 = vpop.f32.mrf.mxu0  ;;  %v2325_v21 = vpop.f32.mrf.mxu1 }
 0x12b   : > { %v8544_v15 = vadd.f32 %v2252_v32, %v2181_v14  ;;  %v8546_v40 = vadd.f32 %v2325_v21, %v2181_v14 }
 0x12c   : > { %v7060_v4 = vpop.f32.mrf.mxu0  ;;  %v7067_v34 = vpop.f32.mrf.mxu1 }
 0x12d   : > { %9400 = vst [vmem:[#allocation21_spill] sm:$0xff] %v8546_v40  ;;  %v9307_v36 = vmax.f32 %v8544_v15, 0.0  ;;  %v9298_v33 = vmax.f32 %v8546_v40, 0.0 }
 0x12f   : > { %v2483_v18 = vmul.f32 %v2481_v41, %v9307_v36  ;;  %v2484_v22 = vmul.f32 %v2481_v41, %v9298_v33  ;;  %v2829_v33 = vstv %s7417_s27 }
 0x131   : > { %v2487_v38 = vadd.f32 %v2483_v18, %v2139_v29  ;;  %v2488_v60 = vadd.f32 %v2484_v22, %v2140_v44  ;;  %v2529_v44 = vstv %s7415_s26 }
 0x132   : > { %v2398_v13 = vpop.f32.mrf.mxu0  ;;  %v2471_v32 = vpop.f32.mrf.mxu1 }
 0x133   : > { %v8554_v43 = vadd.f32 %v2398_v13, %v2181_v14  ;;  %v8556_v21 = vadd.f32 %v2471_v32, %v2181_v14 }
 0x134   : > { %v7074_v4 = vpop.f32.mrf.mxu0  ;;  %v7081_v34 = vpop.f32.mrf.mxu1 }
 0x135   : > { %9401 = vst [vmem:[#allocation22_spill] sm:$0xff] %v8556_v21  ;;  %v9304_v59 = vmax.f32 %v8554_v43, 0.0  ;;  %v9302_v3 = vmax.f32 %v8556_v21, 0.0 }
 0x136   : > { %s7447_s24 = spop %7446 }
 0x137   : > { %v2485_v2 = vmul.f32 %v2481_v41, %v9304_v59  ;;  %v2486_v29 = vmul.f32 %v2481_v41, %v9302_v3  ;;  %v5313_v45 = vstv %s7447_s24 }
 0x139   : > { %v2489_v18 = vadd.f32 %v2485_v2, %v2141_v26  ;;  %v2490_v22 = vadd.f32 %v2486_v29, %v2142_v30 }
 0x13a   : > { %v2600_v13 = vpop.f32.mrf.mxu0  ;;  %v2673_v14 = vpop.f32.mrf.mxu1  ;;  %s7449_s25 = spop %7448 }
 0x13b   : > { %v8564_v32 = vadd.f32 %v2600_v13, %v2529_v44  ;;  %v8566_v4 = vadd.f32 %v2673_v14, %v2529_v44  ;;  %v8700_v58 = vstv %s7449_s25 }
 0x13c   : > { %v7088_v34 = vpop.f32.mrf.mxu0  ;;  %v7095_v53 = vpop.f32.mrf.mxu1 }
 0x13d   : > { %9402 = vst [vmem:[#allocation23_spill] sm:$0xff] %v8566_v4  ;;  %v9305_v20 = vmax.f32 %v8564_v32, 0.0  ;;  %v9306_v42 = vmax.f32 %v8566_v4, 0.0  ;;  %s7451_s26 = spop %7450 }
 0x13f   : > { %v2831_v41 = vmul.f32 %v2829_v33, %v9305_v20  ;;  %v2832_v2 = vmul.f32 %v2829_v33, %v9306_v42  ;;  %v3177_v42 = vstv %s7421_s29 }
 0x141   : > { %v2835_v26 = vadd.f32 %v2831_v41, %v2487_v38  ;;  %v2836_v30 = vadd.f32 %v2832_v2, %v2488_v60  ;;  %v2877_v60 = vstv %s7419_s28  ;;  %s6500_s28 = sshll.u32 %s9526_s12, 3 }
 0x142   : > { %v2746_v29 = vpop.f32.mrf.mxu0  ;;  %v2819_v13 = vpop.f32.mrf.mxu1 }
 0x143   : > { %v8574_v3 = vadd.f32 %v2746_v29, %v2529_v44  ;;  %v8576_v14 = vadd.f32 %v2819_v13, %v2529_v44 }
 0x144   : > { %v7102_v34 = vpop.f32.mrf.mxu0  ;;  %v7109_v53 = vpop.f32.mrf.mxu1 }
 0x145   : > { %9403 = vst [vmem:[#allocation24_spill] sm:$0xff] %v8576_v14  ;;  %v9309_v11 = vmax.f32 %v8574_v3, 0.0  ;;  %v9310_v59 = vmax.f32 %v8576_v14, 0.0  ;;  %s7453_s27 = spop %7452 }
 0x147   : > { %v2833_v20 = vmul.f32 %v2829_v33, %v9309_v11  ;;  %v2834_v38 = vmul.f32 %v2829_v33, %v9310_v59 }
 0x149   : > { %v2837_v41 = vadd.f32 %v2833_v20, %v2489_v18  ;;  %v2838_v2 = vadd.f32 %v2834_v38, %v2490_v22 }
 0x14a   : > { %v2948_v29 = vpop.f32.mrf.mxu0  ;;  %v3021_v44 = vpop.f32.mrf.mxu1 }
 0x14b   : > { %v8584_v13 = vadd.f32 %v2948_v29, %v2877_v60  ;;  %v8586_v34 = vadd.f32 %v3021_v44, %v2877_v60 }
 0x14c   : > { %v7116_v53 = vpop.f32.mrf.mxu0  ;;  %v7123_v36 = vpop.f32.mrf.mxu1 }
 0x14d   : > { %9404 = vst [vmem:[#allocation25_spill] sm:$0xff] %v8586_v34  ;;  %v9313_v50 = vmax.f32 %v8584_v13, 0.0  ;;  %v9314_v11 = vmax.f32 %v8586_v34, 0.0 }
 0x14f   : > { %v3179_v33 = vmul.f32 %v3177_v42, %v9313_v50  ;;  %v3180_v20 = vmul.f32 %v3177_v42, %v9314_v11  ;;  %v3525_v11 = vstv %s7425_s10  ;;  %s366_s10 = scalar_lea.vmem %s9281_s2, %s6500_s28 }
 0x151   : > { %v3183_v18 = vadd.f32 %v3179_v33, %v2835_v26  ;;  %v3184_v22 = vadd.f32 %v3180_v20, %v2836_v30  ;;  %v3225_v30 = vstv %s7423_s30 }
 0x152   : > { %v3094_v38 = vpop.f32.mrf.mxu0  ;;  %v3167_v29 = vpop.f32.mrf.mxu1 }
 0x153   : > { %v8594_v59 = vadd.f32 %v3094_v38, %v2877_v60  ;;  %v8596_v44 = vadd.f32 %v3167_v29, %v2877_v60 }
 0x154   : > { %v7130_v53 = vpop.f32.mrf.mxu0  ;;  %v7137_v36 = vpop.f32.mrf.mxu1 }
 0x155   : > { %9405 = vst [vmem:[#allocation26_spill] sm:$0xff] %v8596_v44  ;;  %v9317_v7 = vmax.f32 %v8594_v59, 0.0  ;;  %v9318_v19 = vmax.f32 %v8596_v44, 0.0 }
 0x157   : > { %v3181_v50 = vmul.f32 %v3177_v42, %v9317_v7  ;;  %v3182_v26 = vmul.f32 %v3177_v42, %v9318_v19 }
 0x159   : > { %v3185_v33 = vadd.f32 %v3181_v50, %v2837_v41  ;;  %v3186_v20 = vadd.f32 %v3182_v26, %v2838_v2 }
 0x15a   : > { %v3296_v38 = vpop.f32.mrf.mxu0  ;;  %v3369_v60 = vpop.f32.mrf.mxu1 }
 0x15b   : > { %v8604_v29 = vadd.f32 %v3296_v38, %v3225_v30  ;;  %v8606_v53 = vadd.f32 %v3369_v60, %v3225_v30 }
 0x15c   : > { %v7144_v36 = vpop.f32.mrf.mxu0  ;;  %v7151_v35 = vpop.f32.mrf.mxu1 }
 0x15d   : > { %9406 = vst [vmem:[#allocation27_spill] sm:$0xff] %v8606_v53  ;;  %v9321_v9 = vmax.f32 %v8604_v29, 0.0  ;;  %v9322_v7 = vmax.f32 %v8606_v53, 0.0 }
 0x15f   : > { %v3527_v42 = vmul.f32 %v3525_v11, %v9321_v9  ;;  %v3528_v50 = vmul.f32 %v3525_v11, %v9322_v7  ;;  %v3873_v7 = vstv %s7429_s13 }
 0x161   : > { %v3531_v41 = vadd.f32 %v3527_v42, %v3183_v18  ;;  %v3532_v2 = vadd.f32 %v3528_v50, %v3184_v22  ;;  %v3573_v22 = vstv %s7427_s6 }
 0x162   : > { %v3442_v26 = vpop.f32.mrf.mxu0  ;;  %v3515_v38 = vpop.f32.mrf.mxu1 }
 0x163   : > { %v8614_v19 = vadd.f32 %v3442_v26, %v3225_v30  ;;  %v8616_v60 = vadd.f32 %v3515_v38, %v3225_v30 }
 0x164   : > { %v7158_v36 = vpop.f32.mrf.mxu0  ;;  %v7165_v35 = vpop.f32.mrf.mxu1 }
 0x165   : > { %9407 = vst [vmem:[#allocation28_spill] sm:$0xff] %v8616_v60  ;;  %v9325_v57 = vmax.f32 %v8614_v19, 0.0  ;;  %v9326_v25 = vmax.f32 %v8616_v60, 0.0 }
 0x167   : > { %v3529_v9 = vmul.f32 %v3525_v11, %v9325_v57  ;;  %v3530_v18 = vmul.f32 %v3525_v11, %v9326_v25 }
 0x169   : > { %v3533_v42 = vadd.f32 %v3529_v9, %v3185_v33  ;;  %v3534_v50 = vadd.f32 %v3530_v18, %v3186_v20 }
 0x16a   : > { %v3644_v26 = vpop.f32.mrf.mxu0  ;;  %v3717_v30 = vpop.f32.mrf.mxu1 }
 0x16b   : > { %v8624_v38 = vadd.f32 %v3644_v26, %v3573_v22  ;;  %v8626_v36 = vadd.f32 %v3717_v30, %v3573_v22 }
 0x16c   : > { %v7172_v35 = vpop.f32.mrf.mxu0  ;;  %v7179_v52 = vpop.f32.mrf.mxu1 }
 0x16d   : > { %9408 = vst [vmem:[#allocation29_spill] sm:$0xff] %v8626_v36  ;;  %v9331_v61 = vmax.f32 %v8624_v38, 0.0  ;;  %v9332_v57 = vmax.f32 %v8626_v36, 0.0 }
 0x16f   : > { %v3875_v11 = vmul.f32 %v3873_v7, %v9331_v61  ;;  %v3876_v9 = vmul.f32 %v3873_v7, %v9332_v57  ;;  %v4221_v57 = vstv %s7433_s15 }
 0x171   : > { %v3879_v33 = vadd.f32 %v3875_v11, %v3531_v41  ;;  %v3880_v20 = vadd.f32 %v3876_v9, %v3532_v2  ;;  %v3921_v2 = vstv %s7431_s14 }
 0x172   : > { %v3790_v18 = vpop.f32.mrf.mxu0  ;;  %v3863_v26 = vpop.f32.mrf.mxu1 }
 0x173   : > { %v8634_v25 = vadd.f32 %v3790_v18, %v3573_v22  ;;  %v8636_v30 = vadd.f32 %v3863_v26, %v3573_v22 }
 0x174   : > { %v7186_v35 = vpop.f32.mrf.mxu0  ;;  %v7193_v52 = vpop.f32.mrf.mxu1 }
 0x175   : > { %9409 = vst [vmem:[#allocation30_spill] sm:$0xff] %v8636_v30  ;;  %v9335_v24 = vmax.f32 %v8634_v25, 0.0  ;;  %v9336_v63 = vmax.f32 %v8636_v30, 0.0 }
 0x177   : > { %v3877_v61 = vmul.f32 %v3873_v7, %v9335_v24  ;;  %v3878_v41 = vmul.f32 %v3873_v7, %v9336_v63 }
 0x179   : > { %v3881_v11 = vadd.f32 %v3877_v61, %v3533_v42  ;;  %v3882_v9 = vadd.f32 %v3878_v41, %v3534_v50 }
 0x17a   : > { %v3992_v18 = vpop.f32.mrf.mxu0  ;;  %v4065_v22 = vpop.f32.mrf.mxu1 }
 0x17b   : > { %v8644_v26 = vadd.f32 %v3992_v18, %v3921_v2  ;;  %v8646_v35 = vadd.f32 %v4065_v22, %v3921_v2 }
 0x17c   : > { %v7200_v52 = vpop.f32.mrf.mxu0  ;;  %v7207_v36 = vpop.f32.mrf.mxu1 }
 0x17d   : > { %9410 = vst [vmem:[#allocation31_spill] sm:$0xff] %v8644_v26  ;;  %v9339_v60 = vmax.f32 %v8644_v26, 0.0  ;;  %v9340_v24 = vmax.f32 %v8646_v35, 0.0 }
 0x17f   : > { %v4223_v7 = vmul.f32 %v4221_v57, %v9339_v60  ;;  %v4224_v61 = vmul.f32 %v4221_v57, %v9340_v24 }
 0x181   : > { %v8654_v42 = vadd.f32 %v4223_v7, %v3879_v33  ;;  %v8656_v50 = vadd.f32 %v4224_v61, %v3880_v20 }
 0x182   : > { %v4138_v41 = vpop.f32.mrf.mxu0  ;;  %v4211_v18 = vpop.f32.mrf.mxu1 }
 0x183   : > { %v8658_v22 = vadd.f32 %v4138_v41, %v3921_v2  ;;  %v8660_v52 = vadd.f32 %v4211_v18, %v3921_v2 }
 0x184   : > { %v7214_v36 = vpop.f32.mrf.mxu0  ;;  %v7221_v63 = vpop.f32.mrf.mxu1 }
 0x185   : > { %9411 = vst [vmem:[#allocation32_spill] sm:$0xff] %v8658_v22  ;;  %v9346_v30 = vmax.f32 %v8658_v22, 0.0  ;;  %v9349_v26 = vmax.f32 %v8660_v52, 0.0 }
 0x187   : > { %v4225_v60 = vmul.f32 %v4221_v57, %v9346_v30  ;;  %v4226_v33 = vmul.f32 %v4221_v57, %v9349_v26 }
 0x189   : > { %v8668_v20 = vadd.f32 %v4225_v60, %v3881_v11  ;;  %v8670_v7 = vadd.f32 %v4226_v33, %v3882_v9 }
 0x18a   : > { %v4340_v61 = vpop.f32.mrf.mxu0  ;;  %v4413_v41 = vpop.f32.mrf.mxu1 }
 0x18c   : > { %v7228_v2 = vpop.f32.mrf.mxu0  ;;  %v7235_v18 = vpop.f32.mrf.mxu1 }
 0x192   : > { %v4486_v36 = vpop.f32.mrf.mxu0  ;;  %v4559_v63 = vpop.f32.mrf.mxu1 }
 0x194   : > { %v7242_v24 = vpop.f32.mrf.mxu0  ;;  %v7249_v53 = vpop.f32.mrf.mxu1 }
 0x195   : > { %v4269_v24 = vstv %s7435_s16  ;;  %v4617_v53 = vstv %s7439_s19 }
 0x196   : > { %v8672_v62 = vadd.f32 %v4340_v61, %v4269_v24 }
 0x198   : > { %9412 = vst [vmem:[#allocation33_spill] sm:$0xff] %v8672_v62  ;;  %v9366_v17 = vmax.f32 %v8672_v62, 0.0 }
 0x19a   : > { %v4688_v44 = vpop.f32.mrf.mxu0  ;;  %v4761_v34 = vpop.f32.mrf.mxu1  ;;  %v4571_v8 = vmul.f32 %v4569_v16, %v9366_v17 }
 0x19c   : > { %v7256_v14 = vpop.f32.mrf.mxu0  ;;  %v7263_v22 = vpop.f32.mrf.mxu1 }
 0x1a2   : > { %v4834_v30 = vpop.f32.mrf.mxu0  ;;  %v4907_v4 = vpop.f32.mrf.mxu1 }
 0x1a3   : > { %v8708_v39 = vadd.f32 %v4834_v30, %v4617_v53 }
 0x1a4   : > { %v7270_v21 = vpop.f32.mrf.mxu0  ;;  %v7277_v57 = vpop.f32.mrf.mxu1 }
 0x1a5   : > { %v8674_v21 = vadd.f32 %v4413_v41, %v4269_v24  ;;  %v5265_v41 = vstv %s7445_s23 }
 0x1a7   : > { %v9368_v37 = vmax.f32 %v8674_v21, 0.0 }
 0x1a9   : > { %v4572_v48 = vmul.f32 %v4569_v16, %v9368_v37 }
 0x1aa   : > { %v5036_v60 = vpop.f32.mrf.mxu0  ;;  %v5109_v11 = vpop.f32.mrf.mxu1 }
 0x1ac   : > { %v7284_v9 = vpop.f32.mrf.mxu0  ;;  %v7291_v33 = vpop.f32.mrf.mxu1 }
 0x1ad   : > { %v8676_v33 = vadd.f32 %v4688_v44, %v4617_v53  ;;  %v4917_v44 = vstv %s7441_s20 }
 0x1af   : > { %9413 = vst [vmem:[#allocation34_spill] sm:$0xff] %v8676_v33  ;;  %v9415_v62 = vmax.f32 %v8676_v33, 0.0 }
 0x1b1   : > { %v4919_v17 = vmul.f32 %v4917_v44, %v9415_v62 }
 0x1b2   : > { %v5182_v26 = vpop.f32.mrf.mxu0  ;;  %v5255_v40 = vpop.f32.mrf.mxu1 }
 0x1b4   : > { %v7298_v2 = vpop.f32.mrf.mxu0  ;;  %v7305_v18 = vpop.f32.mrf.mxu1 }
 0x1b5   : > { %v8678_v2 = vadd.f32 %v4761_v34, %v4617_v53  ;;  %v4965_v18 = vstv %s7443_s22  ;;  %s371_s22 = scalar_lea.vmem %s9288_s9, %s6709_s18 }
 0x1b6   : > { %v8684_v49 = vadd.f32 %v5036_v60, %v4965_v18  ;;  %v8696_v60 = vadd.f32 %v4486_v36, %v4269_v24  ;;  %v8710_v36 = vadd.f32 %v4907_v4, %v4617_v53  ;;  %v8720_v30 = vadd.f32 %v5182_v26, %v4965_v18 }
 0x1b7   : > { %v9416_v6 = vmax.f32 %v8678_v2, 0.0  ;;  %v8722_v33 = vadd.f32 %v5255_v40, %v4965_v18 }
 0x1b8   : > { %v9417_v31 = vmax.f32 %v8684_v49, 0.0 }
 0x1b9   : > { %v4920_v37 = vmul.f32 %v4917_v44, %v9416_v6 }
 0x1ba   : > { %v5384_v14 = vpop.f32.mrf.mxu0  ;;  %v5457_v22 = vpop.f32.mrf.mxu1  ;;  %v5267_v23 = vmul.f32 %v5265_v41, %v9417_v31 }
 0x1bb   : > { %v8692_v55 = vadd.f32 %v5384_v14, %v5313_v45  ;;  %v8694_v61 = vadd.f32 %v5457_v22, %v5313_v45 }
 0x1bc   : > { %v7312_v57 = vpop.f32.mrf.mxu0  ;;  %v7319_v9 = vpop.f32.mrf.mxu1 }
 0x1bd   : > { %v8686_v57 = vadd.f32 %v5109_v11, %v4965_v18  ;;  %9414 = vst [vmem:[#allocation35_spill] sm:$0xff] %v8692_v55  ;;  %v8698_v11 = vadd.f32 %v4559_v63, %v4269_v24  ;;  %v5661_v63 = vstv %s7451_s26  ;;  %v8712_v24 = vstv %s7453_s27 }
 0x1be   : > { %v9376_v62 = vmax.f32 %v8692_v55, 0.0  ;;  %v9377_v6 = vmax.f32 %v8694_v61, 0.0 }
 0x1c0   : > { %v5616_v31 = vmul.f32 %v8700_v58, %v9377_v6 }
 0x1c2   : > { %v5530_v34 = vpop.f32.mrf.mxu0  ;;  %v5603_v9 = vpop.f32.mrf.mxu1 }
 0x1c3   : > { %v8731_v14 = vadd.f32 %v5530_v34, %v5313_v45  ;;  %v8733_v22 = vadd.f32 %v5603_v9, %v5313_v45  ;;  %v9421_v45 = vmax.f32 %v8698_v11, 0.0 }
 0x1c4   : > { %v7326_v28 = vpop.f32.mrf.mxu0  ;;  %v7333_v47 = vpop.f32.mrf.mxu1 }
 0x1c5   : > { %v4575_v47 = vadd.f32 %v4571_v8, %v8654_v42  ;;  %v4576_v28 = vadd.f32 %v4572_v48, %v8656_v50  ;;  %v9418_v8 = vmax.f32 %v8686_v57, 0.0  ;;  %v4574_v9 = vmul.f32 %v4569_v16, %v9421_v45 }
 0x1c7   : > { %v4923_v4 = vadd.f32 %v4919_v17, %v4575_v47  ;;  %v4924_v53 = vadd.f32 %v4920_v37, %v4576_v28  ;;  %v5268_v48 = vmul.f32 %v5265_v41, %v9418_v8  ;;  %v5615_v37 = vmul.f32 %v8700_v58, %v9376_v62 }
 0x1c8   : > { %v9420_v47 = vmax.f32 %v8696_v60, 0.0 }
 0x1c9   : > { %v5272_v6 = vadd.f32 %v5268_v48, %v4924_v53  ;;  %v8768_v53 = vld [vmem:[%s366_s10] sm:$0xff] }
 0x1ca   : > { %v5732_v26 = vpop.f32.mrf.mxu0  ;;  %v5805_v40 = vpop.f32.mrf.mxu1  ;;  %v4573_v34 = vmul.f32 %v4569_v16, %v9420_v47  ;;  %v9422_v47 = vmax.f32 %v8708_v39, 0.0  ;;  %v9423_v16 = vmax.f32 %v8710_v36, 0.0  ;;  %vm6043_vm2 = vcmp.gt.f32.partialorder %v8768_v53, 0.0 }
 0x1cb   : > { %v8741_v17 = vadd.f32 %v5732_v26, %v5661_v63  ;;  %v8743_v18 = vadd.f32 %v5805_v40, %v5661_v63  ;;  %v5271_v26 = vadd.f32 %v5267_v23, %v4923_v4  ;;  %v5620_v28 = vadd.f32 %v5616_v31, %v5272_v6  ;;  %v6052_v31 = vpop.permute.xlu0 %6051 }
 0x1cc   : > { %v7340_v50 = vpop.f32.mrf.mxu0  ;;  %v7347_v62 = vpop.f32.mrf.mxu1  ;;  %v4921_v55 = vmul.f32 %v4917_v44, %v9422_v47  ;;  %v4922_v45 = vmul.f32 %v4917_v44, %v9423_v16  ;;  %v4577_v48 = vadd.f32 %v4573_v34, %v8668_v20  ;;  %v4578_v44 = vadd.f32 %v4574_v9, %v8670_v7 }
 0x1cd   : > { %9419 = vst [vmem:[#allocation36_spill] sm:$0xff] %v8741_v17  ;;  %v9379_v40 = vmax.f32 %v8741_v17, 0.0  ;;  %v9380_v42 = vmax.f32 %v8743_v18, 0.0  ;;  %v5619_v50 = vadd.f32 %v5615_v37, %v5271_v26  ;;  %v9424_v47 = vmax.f32 %v8720_v30, 0.0 }
 0x1ce   : > { %v9425_v37 = vmax.f32 %v8722_v33, 0.0  ;;  %v4925_v62 = vadd.f32 %v4921_v55, %v4577_v48  ;;  %v4926_v8 = vadd.f32 %v4922_v45, %v4578_v44  ;;  %v9427_v20 = vmax.f32 %v8733_v22, 0.0 }
 0x1cf   : > { %v5963_v23 = vmul.f32 %v8712_v24, %v9379_v40  ;;  %v5964_v4 = vmul.f32 %v8712_v24, %v9380_v42  ;;  %v5269_v16 = vmul.f32 %v5265_v41, %v9424_v47  ;;  %v9426_v42 = vmax.f32 %v8731_v14, 0.0 }
 0x1d0   : > { %v5270_v6 = vmul.f32 %v5265_v41, %v9425_v37  ;;  %v5618_v7 = vmul.f32 %v8700_v58, %v9427_v20 }
 0x1d1   : > { %v5968_v26 = vadd.f32 %v5964_v4, %v5620_v28  ;;  %v5967_v40 = vadd.f32 %v5963_v23, %v5619_v50  ;;  %v5617_v17 = vmul.f32 %v8700_v58, %v9426_v42  ;;  %v5273_v37 = vadd.f32 %v5269_v16, %v4925_v62 }
 0x1d2   : > { %v5878_v34 = vpop.f32.mrf.mxu0  ;;  %v5951_v9 = vpop.f32.mrf.mxu1  ;;  %v5274_v50 = vadd.f32 %v5270_v6, %v4926_v8  ;;  %v9428_v62 = vmax.f32 %v8313_v56, 0.0 }
 0x1d3   : > { %v8783_v47 = vadd.f32 %v5878_v34, %v5661_v63  ;;  %v8785_v41 = vadd.f32 %v5951_v9, %v5661_v63  ;;  %v6055_v28 = vadd.f32 %v6052_v31, %v5968_v26  ;;  %v6054_v4 = vadd.f32 %v6052_v31, %v5967_v40 }
 0x1d4   : > { %v7354_v55 = vpop.f32.mrf.mxu0  ;;  %v7361_v45 = vpop.f32.mrf.mxu1  ;;  %v5621_v63 = vadd.f32 %v5617_v17, %v5273_v37  ;;  %v752_v44 = vmul.f32 %v9428_v62, %v8768_v53  ;;  %v5622_v16 = vadd.f32 %v5618_v7, %v5274_v50  ;;  %v9429_v9 = vmax.f32 %v8292_v46, 0.0 }
 0x1d5   : > { %v5957_v23 = vmax.f32 %v8783_v47, 0.0  ;;  %v5958_v42 = vmax.f32 %v8785_v41, 0.0  ;;  %v8791_v58 = vsel %vm6043_vm2, %v6055_v28, -1e+09  ;;  %v8795_v48 = vsel %vm6043_vm2, %v6054_v4, -1e+09 }
 0x1d6   : > { %v6067_v40 = vsel %vm754_vm3, %v8791_v58, -inf  ;;  %v6064_v8 = vsel %vm754_vm3, %v8795_v48, -inf  ;;  %v761_v34 = vsel %vm754_vm3, %v752_v44, 0.0  ;;  %v1099_v56 = vmul.f32 %v9429_v9, %v8768_v53 }
 0x1d7   : > { %v5965_v6 = vmul.f32 %v8712_v24, %v5957_v23  ;;  %v5966_v26 = vmul.f32 %v8712_v24, %v5958_v42  ;;  %6068 = vmax.xlane.f32.xlu1 %v6067_v40  ;;  %6065 = vmax.xlane.f32.xlu0 %v6064_v8  ;;  %v9430_v50 = vmax.f32 %v8338_v1, 0.0  ;;  %v9432_v8 = vmax.f32 %v8445_v12, 0.0 }
 0x1d8   : > { %v1103_v37 = vsel %vm754_vm3, %v1099_v56, 0.0  ;;  %v9435_v12 = vmax.f32 %v8524_v51, 0.0  ;;  %v9438_v51 = vmax.f32 %v8554_v43, 0.0  ;;  %v9441_v43 = vmax.f32 %v8584_v13, 0.0 }
 0x1d9   : > { %v5969_v17 = vadd.f32 %v5965_v6, %v5621_v63  ;;  %v5970_v20 = vadd.f32 %v5966_v26, %v5622_v16  ;;  %v1101_v55 = vmul.f32 %v9430_v50, %v8768_v53  ;;  %v9431_v63 = vmax.f32 %v8396_v10, 0.0 }
 0x1da   : > { %v1449_v62 = vmul.f32 %v9432_v8, %v8768_v53  ;;  %v9433_v16 = vmax.f32 %v8479_v27, 0.0  ;;  %v9434_v10 = vmax.f32 %v8508_v0, 0.0  ;;  %v9436_v27 = vmax.f32 %v8534_v54, 0.0 }
 0x1db   : > { %762 = vadd.xlane.f32.xlu0 %v761_v34  ;;  %v6056_v7 = vadd.f32 %v6052_v31, %v5969_v17  ;;  %v6057_v28 = vadd.f32 %v6052_v31, %v5970_v20  ;;  %v1109_v31 = vsel %vm754_vm3, %v1101_v55, 0.0  ;;  %v1447_v40 = vmul.f32 %v9431_v63, %v8768_v53 }
 0x1dc   : > { %v1457_v44 = vsel %vm754_vm3, %v1449_v62, 0.0  ;;  %v1795_v6 = vmul.f32 %v9433_v16, %v8768_v53  ;;  %v1797_v17 = vmul.f32 %v9434_v10, %v8768_v53  ;;  %v2143_v34 = vmul.f32 %v9435_v12, %v8768_v53 }
 0x1dd   : > { %v8816_v4 = vsel %vm6043_vm2, %v6056_v7, -1e+09  ;;  %v8826_v46 = vsel %vm6043_vm2, %v6057_v28, -1e+09  ;;  %v1451_v1 = vsel %vm754_vm3, %v1447_v40, 0.0  ;;  %v2145_v56 = vmul.f32 %v9436_v27, %v8768_v53 }
 0x1de   : > { %v6070_v24 = vsel %vm754_vm3, %v8816_v4, -inf  ;;  %v6073_v45 = vsel %vm754_vm3, %v8826_v46, -inf  ;;  %v1799_v26 = vsel %vm754_vm3, %v1795_v6, 0.0  ;;  %v1805_v20 = vsel %vm754_vm3, %v1797_v17, 0.0 }
 0x1df   : > { %1104 = vadd.xlane.f32.xlu0 %v1103_v37  ;;  %6071 = vmax.xlane.f32.xlu1 %v6070_v24  ;;  %v2147_v9 = vsel %vm754_vm3, %v2143_v34, 0.0  ;;  %v2153_v7 = vsel %vm754_vm3, %v2145_v56, 0.0  ;;  %v9437_v0 = vmax.f32 %v8544_v15, 0.0  ;;  %v2493_v24 = vmul.f32 %v9438_v51, %v8768_v53 }
 0x1e0   : > { %v9439_v54 = vmax.f32 %v8564_v32, 0.0  ;;  %v9440_v15 = vmax.f32 %v8574_v3, 0.0  ;;  %v3187_v40 = vmul.f32 %v9441_v43, %v8768_v53  ;;  %v9442_v32 = vmax.f32 %v8594_v59, 0.0 }
 0x1e1   : > { %v2491_v28 = vmul.f32 %v9437_v0, %v8768_v53  ;;  %v2501_v50 = vsel %vm754_vm3, %v2493_v24, 0.0  ;;  %v9443_v3 = vmax.f32 %v8604_v29, 0.0  ;;  %v9444_v13 = vmax.f32 %v8614_v19, 0.0 }
 0x1e2   : > { %v2839_v55 = vmul.f32 %v9439_v54, %v8768_v53  ;;  %v3189_v8 = vmul.f32 %v9442_v32, %v8768_v53  ;;  %v9445_v59 = vmax.f32 %v8624_v38, 0.0  ;;  %v9446_v29 = vmax.f32 %v8634_v25, 0.0 }
 0x1e3   : > { %1110 = vadd.xlane.f32.xlu0 %v1109_v31  ;;  %6074 = vmax.xlane.f32.xlu1 %v6073_v45  ;;  %v2495_v37 = vsel %vm754_vm3, %v2491_v28, 0.0  ;;  %v2841_v45 = vmul.f32 %v9440_v15, %v8768_v53  ;;  %v3537_v6 = vmul.f32 %v9444_v13, %v8768_v53  ;;  %v5999_v19 = vsel %vm754_vm3, %v8768_v53, 0.0 }
 0x1e4   : > { %v2843_v31 = vsel %vm754_vm3, %v2839_v55, 0.0  ;;  %v3197_v62 = vsel %vm754_vm3, %v3189_v8, 0.0  ;;  %v3883_v10 = vmul.f32 %v9445_v59, %v8768_v53  ;;  %v9447_v34 = vmax.f32 %v8646_v35, 0.0  ;;  %v8950_v59 = vld [vmem:[%s9286_s7] sm:$0xff] }
 0x1e5   : > { %v2849_v63 = vsel %vm754_vm3, %v2841_v45, 0.0  ;;  %v9448_v27 = vmax.f32 %v8660_v52, 0.0  ;;  %v9450_v35 = vmax.f32 %v8698_v11, 0.0  ;;  %v9451_v52 = vmax.f32 %v8678_v2, 0.0 }
 0x1e6   : > { %v3887_v17 = vsel %vm754_vm3, %v3883_v10, 0.0  ;;  %v9453_v11 = vmax.f32 %v8686_v57, 0.0  ;;  %v9454_v2 = vmax.f32 %v8722_v33, 0.0  ;;  %v9456_v57 = vmax.f32 %v8733_v22, 0.0 }
 0x1e7   : > { %1452 = vadd.xlane.f32.xlu0 %v1451_v1  ;;  %v3191_v1 = vsel %vm754_vm3, %v3187_v40, 0.0  ;;  %v4234_v56 = vmul.f32 %v9448_v27, %v8768_v53  ;;  %v4928_v24 = vmul.f32 %v9451_v52, %v8768_v53  ;;  %v9457_v33 = vmax.f32 %v8743_v18, 0.0 }
 0x1e8   : > { %v5278_v45 = vmul.f32 %v9454_v2, %v8768_v53  ;;  %v8956_v10 = vrot.slane %v8950_v59, %v7601_v5 }
 0x1e9   : > { %v4244_v25 = vsel %vm754_vm3, %v4234_v56, 0.0  ;;  %v5972_v8 = vmul.f32 %v9457_v33, %v8768_v53  ;;  %v9464_v33 = vld [vmem:[#allocation11_spill] sm:$0xff] }
 0x1eb   : > { %1458 = vadd.xlane.f32.xlu0 %v1457_v44  ;;  %v3535_v44 = vmul.f32 %v9443_v3, %v8768_v53 }
 0x1ed   : > { %v3539_v16 = vsel %vm754_vm3, %v3535_v44, 0.0 }
 0x1ef   : > { %1800 = vadd.xlane.f32.xlu0 %v1799_v26  ;;  %v3545_v26 = vsel %vm754_vm3, %v3537_v6, 0.0 }
 0x1f3   : > { %1806 = vadd.xlane.f32.xlu0 %v1805_v20  ;;  %v3885_v20 = vmul.f32 %v9446_v29, %v8768_v53 }
 0x1f5   : > { %v3893_v12 = vsel %vm754_vm3, %v3885_v20, 0.0 }
 0x1f7   : > { %2148 = vadd.xlane.f32.xlu0 %v2147_v9  ;;  %v4232_v9 = vmul.f32 %v9447_v34, %v8768_v53 }
 0x1f9   : > { %v4238_v38 = vsel %vm754_vm3, %v4232_v9, 0.0 }
 0x1fb   : > { %2154 = vadd.xlane.f32.xlu0 %v2153_v7  ;;  %v9449_v7 = vmax.f32 %v8674_v21, 0.0  ;;  %v9452_v21 = vmax.f32 %v8710_v36, 0.0  ;;  %v9455_v36 = vmax.f32 %v8694_v61, 0.0  ;;  %v5974_v61 = vmul.f32 %v5958_v42, %v8768_v53 }
 0x1fd   : > { %v4580_v0 = vmul.f32 %v9449_v7, %v8768_v53  ;;  %v4930_v54 = vmul.f32 %v9452_v21, %v8768_v53  ;;  %v5624_v43 = vmul.f32 %v9455_v36, %v8768_v53  ;;  %v5984_v3 = vsel %vm754_vm3, %v5974_v61, 0.0 }
 0x1ff   : > { %2496 = vadd.xlane.f32.xlu0 %v2495_v37  ;;  %v4586_v28 = vsel %vm754_vm3, %v4580_v0, 0.0  ;;  %v4582_v37 = vmul.f32 %v9450_v35, %v8768_v53  ;;  %v4940_v55 = vsel %vm754_vm3, %v4930_v54, 0.0  ;;  %v5630_v40 = vsel %vm754_vm3, %v5624_v43, 0.0 }
 0x201   : > { %v4592_v51 = vsel %vm754_vm3, %v4582_v37, 0.0 }
 0x203   : > { %2502 = vadd.xlane.f32.xlu0 %v2501_v50  ;;  %v4934_v50 = vsel %vm754_vm3, %v4928_v24, 0.0 }
 0x207   : > { %2844 = vadd.xlane.f32.xlu0 %v2843_v31  ;;  %v5276_v31 = vmul.f32 %v9453_v11, %v8768_v53 }
 0x209   : > { %v5282_v15 = vsel %vm754_vm3, %v5276_v31, 0.0 }
 0x20b   : > { %2850 = vadd.xlane.f32.xlu0 %v2849_v63  ;;  %v5288_v63 = vsel %vm754_vm3, %v5278_v45, 0.0 }
 0x20f   : > { %3192 = vadd.xlane.f32.xlu0 %v3191_v1  ;;  %v5626_v1 = vmul.f32 %v9456_v57, %v8768_v53 }
 0x211   : > { %v5636_v32 = vsel %vm754_vm3, %v5626_v1, 0.0 }
 0x213   : > { %3198 = vadd.xlane.f32.xlu0 %v3197_v62  ;;  %v5978_v62 = vsel %vm754_vm3, %v5972_v8, 0.0  ;;  %v9465_v8 = vmax.f32 %v9464_v33, 0.0  ;;  %v9478_v33 = vld [vmem:[#allocation17_spill] sm:$0xff] }
 0x217   : > { %3540 = vadd.xlane.f32.xlu0 %v3539_v16 }
 0x21b   : > { %3546 = vadd.xlane.f32.xlu0 %v3545_v26 }
 0x21f   : > { %3888 = vadd.xlane.f32.xlu0 %v3887_v17 }
 0x223   : > { %3894 = vadd.xlane.f32.xlu0 %v3893_v12 }
 0x227   : > { %6000 = vadd.xlane.f32.xlu0 %v5999_v19 }
 0x22b   : > { %4239 = vadd.xlane.f32.xlu0 %v4238_v38 }
 0x22f   : > { %4245 = vadd.xlane.f32.xlu0 %v4244_v25  ;;  %v9459_v25 = vld [vmem:[#allocation4_spill] sm:$0xff] }
 0x230   : > { %v8972_v7 = vrot.slane %v8950_v59, %v9459_v25 }
 0x233   : > { %4587 = vadd.xlane.f32.xlu0 %v4586_v28 }
 0x237   : > { %4593 = vadd.xlane.f32.xlu0 %v4592_v51 }
 0x23b   : > { %4935 = vadd.xlane.f32.xlu0 %v4934_v50  ;;  %v9460_v50 = vld [vmem:[#allocation5_spill] sm:$0xff] }
 0x23c   : > { %v8987_v21 = vrot.slane %v8950_v59, %v9460_v50 }
 0x23f   : > { %4941 = vadd.xlane.f32.xlu0 %v4940_v55 }
 0x243   : > { %5283 = vadd.xlane.f32.xlu0 %v5282_v15 }
 0x247   : > { %5289 = vadd.xlane.f32.xlu0 %v5288_v63  ;;  %v9461_v63 = vld [vmem:[#allocation10_spill] sm:$0xff] }
 0x248   : > { %v9462_v36 = vmax.f32 %v9461_v63, 0.0 }
 0x24a   : > { %v750_v43 = vmul.f32 %v9462_v36, %v8768_v53  ;;  %v9476_v36 = vld [vmem:[#allocation16_spill] sm:$0xff] }
 0x24b   : > { %5631 = vadd.xlane.f32.xlu0 %v5630_v40  ;;  %v9463_v40 = vld [vmem:[#allocation6_spill] sm:$0xff] }
 0x24c   : > { %v9003_v57 = vrot.slane %v8950_v59, %v9463_v40 }
 0x24f   : > { %5637 = vadd.xlane.f32.xlu0 %v5636_v32  ;;  %v755_v32 = vsel %vm754_vm3, %v750_v43, 0.0  ;;  %v9477_v43 = vmax.f32 %v9476_v36, 0.0  ;;  %v9492_v36 = vld [vmem:[#allocation24_spill] sm:$0xff] }
 0x253   : > { %5979 = vadd.xlane.f32.xlu0 %v5978_v62  ;;  %v751_v62 = vmul.f32 %v9465_v8, %v8768_v53  ;;  %v9479_v8 = vmax.f32 %v9478_v33, 0.0  ;;  %v9494_v33 = vld [vmem:[#allocation25_spill] sm:$0xff] }
 0x257   : > { %5985 = vadd.xlane.f32.xlu0 %v5984_v3 }
 0x260   : > { %v6069_v22 = vpop.xlane.xlu1 %6068  ;;  %v6066_v44 = vpop.xlane.xlu0 %6065 }
 0x261   : > { %v6077_v16 = vsub.f32 %v8791_v58, %v6069_v22  ;;  %v6076_v13 = vsub.f32 %v8795_v48, %v6066_v44  ;;  %v9458_v48 = vld [vmem:[#allocation3_spill] sm:$0xff]  ;;  %v758_v44 = vsel %vm754_vm3, %v751_v62, 0.0  ;;  %v1796_v62 = vmul.f32 %v9479_v8, %v8768_v53 }
 0x262   : > { %v8961_v17 = vrot.slane %v8950_v59, %v9458_v48  ;;  %v9495_v8 = vmax.f32 %v9494_v33, 0.0  ;;  %v9510_v33 = vld [vmem:[#allocation33_spill] sm:$0xff] }
 0x263   : > { %v6080_v6 = vmul.f32 1.442695, %v6076_v13  ;;  %v6082_v18 = vmul.f32 1.442695, %v6077_v16  ;;  %v9466_v16 = vld [vmem:[#allocation13_spill] sm:$0xff] }
 0x264   : > { %v763_v26 = vpop.xlane.xlu0 %762  ;;  %v9467_v13 = vmax.f32 %v9466_v16, 0.0 }
 0x265   : > { %7466 = vpow2.f32 %v6080_v6  ;;  %v773_v19 = vmul.f32 %v8956_v10, %v763_v26 }
 0x266   : > { %7468 = vpow2.f32 %v6082_v18  ;;  %v753_v6 = vmul.f32 %v9467_v13, %v8768_v53  ;;  %v9468_v18 = vld [vmem:[#allocation7_spill] sm:$0xff] }
 0x267   : > { %v9018_v26 = vrot.slane %v8950_v59, %v9468_v18 }
 0x268   : > { %v8952_v41 = vpop.xlane.xlu0 %1104  ;;  %v6072_v42 = vpop.xlane.xlu1 %6071 }
 0x269   : > { %v6078_v58 = vsub.f32 %v8816_v4, %v6072_v42  ;;  %v389_v42 = vld [vmem:[%s7606_s17 + $0x48] sm:$0xff] }
 0x26a   : > { %7363 = vmatpush3.msra.mxu0 %v389_v42 }
 0x26b   : > { %v6084_v29 = vmul.f32 1.442695, %v6078_v58  ;;  %v388_v58 = vld [vmem:[%s7606_s17 + $0x40] sm:$0xff] }
 0x26c   : > { %v1111_v20 = vpop.xlane.xlu0 %1110  ;;  %v6075_v12 = vpop.xlane.xlu1 %6074 }
 0x26d   : > { %7470 = vpow2.f32 %v6084_v29  ;;  %v1121_v34 = vmul.f32 %v8961_v17, %v1111_v20  ;;  %v6079_v9 = vsub.f32 %v8826_v46, %v6075_v12  ;;  %v764_v20 = vsel %vm754_vm3, %v753_v6, 0.0  ;;  %v9469_v12 = vld [vmem:[#allocation12_spill] sm:$0xff]  ;;  %v9482_v6 = vld [vmem:[#allocation19_spill] sm:$0xff] }
 0x26e   : > { %v9483_v42 = vmax.f32 %v9482_v6, 0.0  ;;  %v9498_v6 = vld [vmem:[#allocation27_spill] sm:$0xff] }
 0x26f   : > { %v1125_v38 = vadd.f32 %v1121_v34, %v773_v19  ;;  %v6086_v27 = vmul.f32 1.442695, %v6079_v9  ;;  %v9470_v19 = vmax.f32 %v9469_v12, 0.0 }
 0x270   : > { %v8966_v56 = vpop.xlane.xlu0 %1452 }
 0x271   : > { %7472 = vpow2.f32 %v6086_v27  ;;  %v1100_v34 = vmul.f32 %v9470_v19, %v8768_v53 }
 0x272   : > { %v8968_v4 = vpop.eup %7466 }
 0x273   : > { %v6088_v28 = vsel %vm754_vm3, %v8968_v4, 0.0  ;;  %v8976_v35 = vpop.eup %7468 }
 0x274   : > { %v1459_v0 = vpop.xlane.xlu0 %1458  ;;  %6089 = vadd.xlane.f32.xlu1 %v6088_v28  ;;  %v6091_v52 = vsel %vm754_vm3, %v8976_v35, 0.0  ;;  %v1106_v28 = vsel %vm754_vm3, %v1100_v34, 0.0 }
 0x275   : > { %v1469_v37 = vmul.f32 %v8972_v7, %v1459_v0  ;;  %v391_v0 = vld [vmem:[%s7606_s17 + $0x58] sm:$0xff] }
 0x276   : > { %7370 = vmatpush3.msra.mxu1 %v391_v0 }
 0x277   : > { %v1473_v46 = vadd.f32 %v1469_v37, %v1125_v38  ;;  %v9471_v38 = vmov 0.0   ;;  %v9472_v37 = vld [vmem:[#allocation14_spill] sm:$0xff] }
 0x278   : > { %v8979_v51 = vpop.xlane.xlu0 %1800  ;;  %6092 = vadd.xlane.f32.xlu1 %v6091_v52  ;;  %7364 = vmatprep.subr.mxu0 %v9471_v38 }
 0x279   : > { %7365 = vmatpush3.msra.mxu0 %v388_v58  ;;  %7371 = vmatprep.subr.mxu1 %v9471_v38  ;;  %v2144_v58 = vmul.f32 %v9483_v42, %v8768_v53  ;;  %v9499_v42 = vmax.f32 %v9498_v6, 0.0 }
 0x27a   : > { %v8983_v24 = vpop.eup %7470  ;;  %7376 = vmatprep.subr.mxu0 %v9471_v38 }
 0x27b   : > { %v6094_v54 = vsel %vm754_vm3, %v8983_v24, 0.0 }
 0x27c   : > { %v1807_v55 = vpop.xlane.xlu0 %1806  ;;  %6095 = vadd.xlane.f32.xlu1 %v6094_v54  ;;  %v390_v54 = vld [vmem:[%s7606_s17 + $0x50] sm:$0xff] }
 0x27d   : > { %v1817_v11 = vmul.f32 %v8987_v21, %v1807_v55  ;;  %7372 = vmatpush3.msra.mxu1 %v390_v54 }
 0x27e   : > { %v8992_v31 = vpop.eup %7472  ;;  %7383 = vmatprep.subr.mxu1 %v9471_v38 }
 0x27f   : > { %v1821_v15 = vadd.f32 %v1817_v11, %v1473_v46  ;;  %v6097_v2 = vsel %vm754_vm3, %v8992_v31, 0.0  ;;  %v9473_v46 = vmax.f32 %v9472_v37, 0.0  ;;  %v9474_v11 = vld [vmem:[#allocation15_spill] sm:$0xff] }
 0x280   : > { %v8996_v45 = vpop.xlane.xlu0 %2148  ;;  %6098 = vadd.xlane.f32.xlu1 %v6097_v2 }
 0x281   : > { %v1102_v52 = vmul.f32 %v9473_v46, %v8768_v53  ;;  %v9488_v46 = vld [vmem:[#allocation22_spill] sm:$0xff] }
 0x283   : > { %v1112_v55 = vsel %vm754_vm3, %v1102_v52, 0.0  ;;  %v9489_v52 = vmax.f32 %v9488_v46, 0.0  ;;  %v9504_v46 = vld [vmem:[#allocation30_spill] sm:$0xff] }
 0x284   : > { %v2155_v1 = vpop.xlane.xlu0 %2154  ;;  %756 = vadd.xlane.f32.xlu1 %v755_v32 }
 0x285   : > { %v2165_v61 = vmul.f32 %v9003_v57, %v2155_v1  ;;  %v1450_v1 = vmul.f32 %v9477_v43, %v8768_v53  ;;  %v2494_v54 = vmul.f32 %v9489_v52, %v8768_v53  ;;  %v9493_v43 = vmax.f32 %v9492_v36, 0.0  ;;  %v9508_v36 = vld [vmem:[#allocation32_spill] sm:$0xff] }
 0x286   : > { %v9505_v52 = vmax.f32 %v9504_v46, 0.0 }
 0x287   : > { %v2169_v3 = vadd.f32 %v2165_v61, %v1821_v15  ;;  %v9475_v15 = vmax.f32 %v9474_v11, 0.0  ;;  %v1460_v32 = vsel %vm754_vm3, %v1450_v1, 0.0  ;;  %v1802_v61 = vsel %vm754_vm3, %v1796_v62, 0.0  ;;  %v9490_v11 = vld [vmem:[#allocation23_spill] sm:$0xff] }
 0x288   : > { %v9010_v22 = vpop.xlane.xlu0 %2496  ;;  %759 = vadd.xlane.f32.xlu1 %v758_v44  ;;  %v2842_v1 = vmul.f32 %v9493_v43, %v8768_v53  ;;  %v3188_v62 = vmul.f32 %v9495_v8, %v8768_v53  ;;  %v9509_v43 = vmax.f32 %v9508_v36, 0.0  ;;  %v9511_v8 = vmax.f32 %v9510_v33, 0.0 }
 0x289   : > { %v1448_v2 = vmul.f32 %v9475_v15, %v8768_v53  ;;  %v9491_v15 = vmax.f32 %v9490_v11, 0.0  ;;  %v9506_v11 = vld [vmem:[#allocation31_spill] sm:$0xff]  ;;  %v5973_v36 = vmul.f32 %v5957_v23, %v8768_v53 }
 0x28a   : > { %v392_v23 = vld [vmem:[%s7606_s17 + $0x60] sm:$0xff] }
 0x28b   : > { %v1454_v63 = vsel %vm754_vm3, %v1448_v2, 0.0  ;;  %v2840_v2 = vmul.f32 %v9491_v15, %v8768_v53  ;;  %v9507_v15 = vmax.f32 %v9506_v11, 0.0 }
 0x28c   : > { %v2503_v29 = vpop.xlane.xlu0 %2502  ;;  %765 = vadd.xlane.f32.xlu1 %v764_v20  ;;  %v9484_v20 = vld [vmem:[#allocation20_spill] sm:$0xff] }
 0x28d   : > { %v2513_v9 = vmul.f32 %v9018_v26, %v2503_v29  ;;  %v2150_v29 = vsel %vm754_vm3, %v2144_v58, 0.0  ;;  %v9485_v12 = vmax.f32 %v9484_v20, 0.0  ;;  %v3536_v58 = vmul.f32 %v9499_v42, %v8768_v53  ;;  %v9500_v20 = vld [vmem:[#allocation28_spill] sm:$0xff] }
 0x28f   : > { %v9028_v27 = vadd.f32 %v2513_v9, %v2169_v3  ;;  %v9480_v3 = vld [vmem:[#allocation18_spill] sm:$0xff]  ;;  %v2146_v19 = vmul.f32 %v9485_v12, %v8768_v53  ;;  %v9486_v9 = vld [vmem:[#allocation21_spill] sm:$0xff]  ;;  %v9501_v12 = vmax.f32 %v9500_v20, 0.0 }
 0x290   : > { %1107 = vadd.xlane.f32.xlu1 %v1106_v28  ;;  %v9481_v44 = vmax.f32 %v9480_v3, 0.0  ;;  %v9487_v0 = vmax.f32 %v9486_v9, 0.0  ;;  %v9496_v3 = vld [vmem:[#allocation26_spill] sm:$0xff]  ;;  %v9502_v9 = vld [vmem:[#allocation29_spill] sm:$0xff] }
 0x291   : > { %v2156_v34 = vsel %vm754_vm3, %v2146_v19, 0.0  ;;  %v3538_v19 = vmul.f32 %v9501_v12, %v8768_v53 }
 0x292   : > { %v1798_v16 = vmul.f32 %v9481_v44, %v8768_v53  ;;  %v2492_v28 = vmul.f32 %v9487_v0, %v8768_v53  ;;  %v9497_v44 = vmax.f32 %v9496_v3, 0.0  ;;  %v9503_v0 = vmax.f32 %v9502_v9, 0.0 }
 0x293   : > { %v9512_v3 = vmax.f32 %v8696_v60, 0.0  ;;  %v9516_v60 = vmax.f32 %v8684_v49, 0.0  ;;  %v9517_v9 = vmax.f32 %v8720_v30, 0.0  ;;  %v9520_v49 = vmax.f32 %v8731_v14, 0.0  ;;  %v9521_v30 = vld [vmem:[#allocation36_spill] sm:$0xff] }
 0x294   : > { %1113 = vadd.xlane.f32.xlu1 %v1112_v55  ;;  %v1808_v13 = vsel %vm754_vm3, %v1798_v16, 0.0  ;;  %v2498_v37 = vsel %vm754_vm3, %v2492_v28, 0.0  ;;  %v2504_v55 = vsel %vm754_vm3, %v2494_v54, 0.0  ;;  %v3190_v16 = vmul.f32 %v9497_v44, %v8768_v53 }
 0x295   : > { %v3884_v28 = vmul.f32 %v9503_v0, %v8768_v53  ;;  %v3886_v54 = vmul.f32 %v9505_v52, %v8768_v53  ;;  %v4581_v44 = vmul.f32 %v9512_v3, %v8768_v53  ;;  %v5277_v0 = vmul.f32 %v9517_v9, %v8768_v53 }
 0x296   : > { %v9522_v11 = vmax.f32 %v9521_v30, 0.0 }
 0x298   : > { %1455 = vadd.xlane.f32.xlu1 %v1454_v63  ;;  %v2846_v63 = vsel %vm754_vm3, %v2840_v2, 0.0  ;;  %v4231_v2 = vmul.f32 %v9507_v15, %v8768_v53  ;;  %v5971_v15 = vmul.f32 %v9522_v11, %v8768_v53  ;;  %v2845_v11 = vpop.xlane.xlu0 %2844 }
 0x29c   : > { %1461 = vadd.xlane.f32.xlu1 %v1460_v32  ;;  %v2852_v32 = vsel %vm754_vm3, %v2842_v1, 0.0  ;;  %v4233_v1 = vmul.f32 %v9509_v43, %v8768_v53  ;;  %v5981_v43 = vsel %vm754_vm3, %v5973_v36, 0.0  ;;  %v9189_v36 = vpop.xlane.xlu0 %2850 }
 0x2a0   : > { %1803 = vadd.xlane.f32.xlu1 %v1802_v61  ;;  %v3194_v61 = vsel %vm754_vm3, %v3188_v62, 0.0  ;;  %v4579_v62 = vmul.f32 %v9511_v8, %v8768_v53 }
 0x2a4   : > { %1809 = vadd.xlane.f32.xlu1 %v1808_v13  ;;  %v3200_v13 = vsel %vm754_vm3, %v3190_v16, 0.0  ;;  %v4589_v16 = vsel %vm754_vm3, %v4581_v44, 0.0  ;;  %v1467_v44 = vmul.f32 %v8972_v7, %v8966_v56  ;;  %v2163_v56 = vmul.f32 %v9003_v57, %v8996_v45 }
 0x2a8   : > { %2151 = vadd.xlane.f32.xlu1 %v2150_v29  ;;  %v3542_v29 = vsel %vm754_vm3, %v3536_v58, 0.0 }
 0x2ac   : > { %2157 = vadd.xlane.f32.xlu1 %v2156_v34  ;;  %v3548_v34 = vsel %vm754_vm3, %v3538_v19, 0.0  ;;  %v5275_v19 = vmul.f32 %v9516_v60, %v8768_v53 }
 0x2b0   : > { %2499 = vadd.xlane.f32.xlu1 %v2498_v37  ;;  %v3890_v37 = vsel %vm754_vm3, %v3884_v28, 0.0  ;;  %v5285_v28 = vsel %vm754_vm3, %v5277_v0, 0.0 }
 0x2b4   : > { %2505 = vadd.xlane.f32.xlu1 %v2504_v55  ;;  %v3896_v55 = vsel %vm754_vm3, %v3886_v54, 0.0  ;;  %v5625_v54 = vmul.f32 %v9520_v49, %v8768_v53 }
 0x2b8   : > { %2847 = vadd.xlane.f32.xlu1 %v2846_v63  ;;  %v4235_v63 = vsel %vm754_vm3, %v4231_v2, 0.0 }
 0x2bc   : > { %2853 = vadd.xlane.f32.xlu1 %v2852_v32  ;;  %v4241_v32 = vsel %vm754_vm3, %v4233_v1, 0.0 }
 0x2c0   : > { %3195 = vadd.xlane.f32.xlu1 %v3194_v61  ;;  %v4583_v61 = vsel %vm754_vm3, %v4579_v62, 0.0  ;;  %v393_v62 = vld [vmem:[%s7606_s17 + $0x68] sm:$0xff] }
 0x2c4   : > { %3201 = vadd.xlane.f32.xlu1 %v3200_v13  ;;  %v9513_v13 = vld [vmem:[#allocation34_spill] sm:$0xff] }
 0x2c5   : > { %v9514_v6 = vmax.f32 %v9513_v13, 0.0 }
 0x2c7   : > { %v4927_v42 = vmul.f32 %v9514_v6, %v8768_v53  ;;  %v1815_v6 = vmul.f32 %v8987_v21, %v8979_v51 }
 0x2c8   : > { %3543 = vadd.xlane.f32.xlu1 %v3542_v29  ;;  %v9515_v29 = vmax.f32 %v8708_v39, 0.0  ;;  %v9518_v39 = vld [vmem:[#allocation35_spill] sm:$0xff] }
 0x2c9   : > { %v4931_v58 = vsel %vm754_vm3, %v4927_v42, 0.0 }
 0x2ca   : > { %v4929_v20 = vmul.f32 %v9515_v29, %v8768_v53 }
 0x2cc   : > { %3549 = vadd.xlane.f32.xlu1 %v3548_v34  ;;  %v4937_v12 = vsel %vm754_vm3, %v4929_v20, 0.0  ;;  %v5279_v34 = vsel %vm754_vm3, %v5275_v19, 0.0 }
 0x2d0   : > { %3891 = vadd.xlane.f32.xlu1 %v3890_v37  ;;  %v9519_v37 = vmax.f32 %v9518_v39, 0.0 }
 0x2d2   : > { %v5623_v46 = vmul.f32 %v9519_v37, %v8768_v53  ;;  %v1119_v53 = vmul.f32 %v8961_v17, %v8952_v41  ;;  %v395_v41 = vld [vmem:[%s7606_s17 + $0x78] sm:$0xff] }
 0x2d4   : > { %3897 = vadd.xlane.f32.xlu1 %v3896_v55  ;;  %v5627_v52 = vsel %vm754_vm3, %v5623_v46, 0.0  ;;  %v5633_v55 = vsel %vm754_vm3, %v5625_v54, 0.0 }
 0x2d8   : > { %4236 = vadd.xlane.f32.xlu1 %v4235_v63  ;;  %v5975_v63 = vsel %vm754_vm3, %v5971_v15, 0.0 }
 0x2dc   : > { %4242 = vadd.xlane.f32.xlu1 %v4241_v32 }
 0x2e0   : > { %4584 = vadd.xlane.f32.xlu1 %v4583_v61 }
 0x2e4   : > { %4590 = vadd.xlane.f32.xlu1 %v4589_v16 }
 0x2e8   : > { %4932 = vadd.xlane.f32.xlu1 %v4931_v58  ;;  %v394_v58 = vld [vmem:[%s7606_s17 + $0x70] sm:$0xff] }
 0x2ec   : > { %4938 = vadd.xlane.f32.xlu1 %v4937_v12 }
 0x2f0   : > { %5280 = vadd.xlane.f32.xlu1 %v5279_v34 }
 0x2f4   : > { %5286 = vadd.xlane.f32.xlu1 %v5285_v28 }
 0x2f8   : > { %5628 = vadd.xlane.f32.xlu1 %v5627_v52 }
 0x2fc   : > { %5634 = vadd.xlane.f32.xlu1 %v5633_v55 }
 0x2fd   : > { %v6090_v2 = vpop.xlane.xlu1 %6089 }
 0x2fe   : > { %7474 = vrcp.f32 %v6090_v2 }
 0x300   : > { %5976 = vadd.xlane.f32.xlu1 %v5975_v63 }
 0x301   : > { %v6093_v14 = vpop.xlane.xlu1 %6092 }
 0x302   : > { %7476 = vrcp.f32 %v6093_v14 }
 0x304   : > { %5982 = vadd.xlane.f32.xlu1 %v5981_v43 }
 0x305   : > { %v6096_v1 = vpop.xlane.xlu1 %6095 }
 0x306   : > { %7478 = vrcp.f32 %v6096_v1 }
 0x309   : > { %v6099_v32 = vpop.xlane.xlu1 %6098 }
 0x30a   : > { %7480 = vrcp.f32 %v6099_v32 }
 0x30b   : > { %v7475_v33 = vpop.eup %7474 }
 0x30c   : > { %v6101_v8 = vmul.f32 %v7475_v33, %v8968_v4 }
 0x30d   : > { %v757_v61 = vpop.xlane.xlu1 %756 }
 0x30e   : > { %v771_v47 = vmul.f32 %v8956_v10, %v757_v61  ;;  %7367 = vmatmul.mubr.msk.f32.vlgmr.msra.gmra.mxu0 %vm754_vm3, %v6101_v8 }
 0x30f   : > { %v7477_v3 = vpop.eup %7476  ;;  %7377 = vmatpush3.msra.mxu0 %v393_v62  ;;  %7380 = vmatprep.mubr.msk.f32.mxu0 %vm7521_vm0, %v9471_v38 }
 0x310   : > { %v1123_v4 = vadd.f32 %v1119_v53, %v771_v47  ;;  %v6103_v16 = vmul.f32 %v7477_v3, %v8976_v35  ;;  %7378 = vmatprep.subr.mxu0 %v9471_v38 }
 0x311   : > { %v760_v13 = vpop.xlane.xlu1 %759  ;;  %7379 = vmatpush3.msra.mxu0 %v392_v23 }
 0x312   : > { %v1471_v42 = vadd.f32 %v1467_v44, %v1123_v4  ;;  %7374 = vmatmul.mubr.msk.f32.vlgmr.msra.gmra.mxu1 %vm754_vm3, %v6103_v16  ;;  %v772_v9 = vmul.f32 %v8956_v10, %v760_v13 }
 0x313   : > { %v7479_v29 = vpop.eup %7478  ;;  %7384 = vmatpush3.msra.mxu1 %v395_v41  ;;  %7387 = vmatprep.mubr.msk.f32.mxu1 %vm7521_vm0, %v9471_v38 }
 0x314   : > { %v1819_v35 = vadd.f32 %v1815_v6, %v1471_v42  ;;  %v6105_v20 = vmul.f32 %v7479_v29, %v8983_v24  ;;  %7385 = vmatprep.subr.mxu1 %v9471_v38 }
 0x315   : > { %v766_v12 = vpop.xlane.xlu1 %765  ;;  %7386 = vmatpush3.msra.mxu1 %v394_v58 }
 0x316   : > { %v9176_v51 = vadd.f32 %v2163_v56, %v1819_v35  ;;  %7381 = vmatmul.mubr.msk.f32.vlgmr.msra.gmra.mxu0 %vm754_vm3, %v6105_v20  ;;  %v774_v38 = vmul.f32 %v8956_v10, %v766_v12 }
 0x317   : > { %v7481_v60 = vpop.eup %7480 }
 0x318   : > { %v6107_v19 = vmul.f32 %v7481_v60, %v8992_v31 }
 0x319   : > { %v1108_v34 = vpop.xlane.xlu1 %1107 }
 0x31a   : > { %v1120_v0 = vmul.f32 %v8961_v17, %v1108_v34  ;;  %7388 = vmatmul.mubr.msk.f32.vlgmr.msra.gmra.mxu1 %vm754_vm3, %v6107_v19 }
 0x31c   : > { %v1124_v45 = vadd.f32 %v1120_v0, %v772_v9 }
 0x31d   : > { %v1114_v24 = vpop.xlane.xlu1 %1113 }
 0x31e   : > { %v1122_v28 = vmul.f32 %v8961_v17, %v1114_v24 }
 0x320   : > { %v1126_v39 = vadd.f32 %v1122_v28, %v774_v38 }
 0x321   : > { %v1456_v37 = vpop.xlane.xlu1 %1455 }
 0x322   : > { %v1468_v46 = vmul.f32 %v8972_v7, %v1456_v37 }
 0x324   : > { %v1472_v52 = vadd.f32 %v1468_v46, %v1124_v45  ;;  %v9218_v46 = vld [vmem:[%s9286_s7 + $0x8] sm:$0xff] }
 0x325   : > { %v1462_v49 = vpop.xlane.xlu1 %1461 }
 0x326   : > { %v1470_v31 = vmul.f32 %v8972_v7, %v1462_v49  ;;  %v3193_v7 = vpop.xlane.xlu0 %3192  ;;  %v9524_v49 = vld [vmem:[#allocation9_spill] sm:$0xff] }
 0x328   : > { %v1474_v54 = vadd.f32 %v1470_v31, %v1126_v39  ;;  %v9523_v39 = vld [vmem:[#allocation8_spill] sm:$0xff]  ;;  %v3206_v31 = vrot.slane %v8950_v59, %v9524_v49 }
 0x329   : > { %v1804_v55 = vpop.xlane.xlu1 %1803  ;;  %v2858_v37 = vrot.slane %v8950_v59, %v9523_v39 }
 0x32a   : > { %v1816_v30 = vmul.f32 %v8987_v21, %v1804_v55  ;;  %v9194_v53 = vpop.xlane.xlu0 %3198 }
 0x32c   : > { %v1820_v15 = vadd.f32 %v1816_v30, %v1472_v52  ;;  %v2511_v30 = vmul.f32 %v9018_v26, %v9010_v22  ;;  %v4250_v22 = vrot.slane %v9218_v46, %v9459_v25 }
 0x32d   : > { %v1810_v2 = vpop.xlane.xlu1 %1809 }
 0x32e   : > { %v1818_v63 = vmul.f32 %v8987_v21, %v1810_v2  ;;  %v3541_v44 = vpop.xlane.xlu0 %3540 }
 0x330   : > { %v1822_v10 = vadd.f32 %v1818_v63, %v1474_v54  ;;  %v2515_v63 = vadd.f32 %v2511_v30, %v9176_v51 }
 0x331   : > { %v2152_v17 = vpop.xlane.xlu1 %2151 }
 0x332   : > { %v2164_v14 = vmul.f32 %v9003_v57, %v2152_v17  ;;  %v9197_v16 = vpop.xlane.xlu0 %3546 }
 0x334   : > { %v2168_v43 = vadd.f32 %v2164_v14, %v1820_v15  ;;  %v3554_v15 = vrot.slane %v9218_v46, %v7601_v5  ;;  %v3207_v5 = vmul.f32 %v3206_v31, %v3193_v7  ;;  %v2861_v7 = vmul.f32 %v2858_v37, %v9189_v36 }
 0x335   : > { %v2158_v1 = vpop.xlane.xlu1 %2157 }
 0x336   : > { %v2166_v32 = vmul.f32 %v9003_v57, %v2158_v1  ;;  %v3889_v57 = vpop.xlane.xlu0 %3888  ;;  %v3557_v36 = vmul.f32 %v3554_v15, %v9197_v16 }
 0x338   : > { %v2170_v33 = vadd.f32 %v2166_v32, %v1822_v10  ;;  %v3902_v10 = vrot.slane %v9218_v46, %v9458_v48 }
 0x339   : > { %v2500_v8 = vpop.xlane.xlu1 %2499 }
 0x33a   : > { %v2512_v62 = vmul.f32 %v9018_v26, %v2500_v8  ;;  %v9199_v42 = vpop.xlane.xlu0 %3894 }
 0x33c   : > { %v2516_v61 = vadd.f32 %v2512_v62, %v2168_v43  ;;  %v2859_v43 = vmul.f32 %v2858_v37, %v2845_v11  ;;  %v4598_v11 = vrot.slane %v9218_v46, %v9460_v50 }
 0x33d   : > { %v2506_v47 = vpop.xlane.xlu1 %2505 }
 0x33e   : > { %v2514_v21 = vmul.f32 %v9018_v26, %v2506_v47  ;;  %v9201_v56 = vpop.xlane.xlu0 %6000  ;;  %v2863_v8 = vadd.f32 %v2859_v43, %v2515_v63  ;;  %v4946_v63 = vrot.slane %v9218_v46, %v9463_v40  ;;  %v5294_v40 = vrot.slane %v9218_v46, %v9468_v18 }
 0x33f   : > { %v5990_v18 = vrot.slane %v9218_v46, %v9524_v49 }
 0x340   : > { %v2518_v23 = vadd.f32 %v2514_v21, %v2170_v33  ;;  %v3211_v48 = vadd.f32 %v3207_v5, %v2863_v8 }
 0x341   : > { %v2848_v3 = vpop.xlane.xlu1 %2847 }
 0x342   : > { %v4240_v20 = vpop.xlane.xlu0 %4239  ;;  %v2860_v54 = vmul.f32 %v2858_v37, %v2848_v3 }
 0x344   : > { %v2864_v17 = vadd.f32 %v2860_v54, %v2516_v61  ;;  %v4252_v61 = vmul.f32 %v4250_v22, %v4240_v20  ;;  %v6002_v20 = vmax.f32 %v9201_v56, 1.0 }
 0x345   : > { %v2854_v4 = vpop.xlane.xlu1 %2853 }
 0x346   : > { %v9205_v19 = vpop.xlane.xlu0 %4245  ;;  %v2862_v62 = vmul.f32 %v2858_v37, %v2854_v4  ;;  %7482 = vrcp.f32 %v6002_v20 }
 0x349   : > { %v3196_v41 = vpop.xlane.xlu1 %3195 }
 0x34a   : > { %v4588_v9 = vpop.xlane.xlu0 %4587  ;;  %v3208_v2 = vmul.f32 %v3206_v31, %v3196_v41  ;;  %v3555_v41 = vmul.f32 %v3554_v15, %v3541_v44  ;;  %v3209_v44 = vmul.f32 %v3206_v31, %v9194_v53  ;;  %v3905_v53 = vmul.f32 %v3902_v10, %v9199_v42 }
 0x34b   : > { %v4600_v4 = vmul.f32 %v4598_v11, %v4588_v9 }
 0x34c   : > { %v3212_v32 = vadd.f32 %v3208_v2, %v2864_v17  ;;  %v3559_v25 = vadd.f32 %v3555_v41, %v3211_v48 }
 0x34d   : > { %v3202_v13 = vpop.xlane.xlu1 %3201 }
 0x34e   : > { %v9209_v45 = vpop.xlane.xlu0 %4593  ;;  %v3210_v21 = vmul.f32 %v3206_v31, %v3202_v13  ;;  %v3903_v13 = vmul.f32 %v3902_v10, %v3889_v57  ;;  %v4254_v57 = vmul.f32 %v4250_v22, %v9205_v19 }
 0x34f   : > { %v4602_v19 = vmul.f32 %v4598_v11, %v9209_v45 }
 0x351   : > { %v3544_v6 = vpop.xlane.xlu1 %3543 }
 0x352   : > { %v4936_v38 = vpop.xlane.xlu0 %4935  ;;  %v3556_v14 = vmul.f32 %v3554_v15, %v3544_v6  ;;  %v2866_v6 = vadd.f32 %v2862_v62, %v2518_v23 }
 0x353   : > { %v4948_v9 = vmul.f32 %v4946_v63, %v4936_v38 }
 0x354   : > { %v3560_v26 = vadd.f32 %v3556_v14, %v3212_v32  ;;  %v3214_v30 = vadd.f32 %v3210_v21, %v2866_v6  ;;  %v3907_v32 = vadd.f32 %v3903_v13, %v3559_v25  ;;  %v7483_v25 = vpop.eup %7482 }
 0x355   : > { %v3550_v58 = vpop.xlane.xlu1 %3549 }
 0x356   : > { %v9220_v52 = vpop.xlane.xlu0 %4941 }
 0x359   : > { %v3892_v29 = vpop.xlane.xlu1 %3891 }
 0x35a   : > { %v5284_v1 = vpop.xlane.xlu0 %5283  ;;  %v3904_v59 = vmul.f32 %v3902_v10, %v3892_v29  ;;  %v3558_v29 = vmul.f32 %v3554_v15, %v3550_v58 }
 0x35b   : > { %v5296_v15 = vmul.f32 %v5294_v40, %v5284_v1  ;;  %v4950_v1 = vmul.f32 %v4946_v63, %v9220_v52 }
 0x35c   : > { %v3908_v47 = vadd.f32 %v3904_v59, %v3560_v26  ;;  %v3562_v14 = vadd.f32 %v3558_v29, %v3214_v30  ;;  %v2865_v59 = vadd.f32 %v2861_v7, %v9028_v27 }
 0x35d   : > { %v3898_v35 = vpop.xlane.xlu1 %3897 }
 0x35e   : > { %v9235_v51 = vpop.xlane.xlu0 %5289  ;;  %v4256_v54 = vadd.f32 %v4252_v61, %v3908_v47  ;;  %v3906_v2 = vmul.f32 %v3902_v10, %v3898_v35  ;;  %v3213_v37 = vadd.f32 %v3209_v44, %v2865_v59 }
 0x360   : > { %v4604_v23 = vadd.f32 %v4600_v4, %v4256_v54  ;;  %v3910_v43 = vadd.f32 %v3906_v2, %v3562_v14  ;;  %v3561_v38 = vadd.f32 %v3557_v36, %v3213_v37 }
 0x361   : > { %v4237_v12 = vpop.xlane.xlu1 %4236 }
 0x362   : > { %v5632_v17 = vpop.xlane.xlu0 %5631  ;;  %v4251_v50 = vmul.f32 %v4250_v22, %v4237_v12  ;;  %v4952_v31 = vadd.f32 %v4948_v9, %v4604_v23  ;;  %v4258_v27 = vadd.f32 %v4254_v57, %v3910_v43  ;;  %v3909_v10 = vadd.f32 %v3905_v53, %v3561_v38 }
 0x364   : > { %v4255_v56 = vadd.f32 %v4251_v50, %v3907_v32  ;;  %v5300_v47 = vadd.f32 %v5296_v15, %v4952_v31  ;;  %v4606_v21 = vadd.f32 %v4602_v19, %v4258_v27  ;;  %v377_v19 = vld [vmem:[%s7627_s21 + $0x28] sm:$0xff] }
 0x365   : > { %v9203_v60 = vpop.xlane.xlu1 %4242 }
 0x366   : > { %v5638_v8 = vpop.xlane.xlu0 %5637  ;;  %v4954_v29 = vadd.f32 %v4950_v1, %v4606_v21  ;;  %v378_v21 = vld [vmem:[%s7627_s21 + $0x30] sm:$0xff] }
 0x369   : > { %v4585_v34 = vpop.xlane.xlu1 %4584 }
 0x36a   : > { %v4599_v35 = vmul.f32 %v4598_v11, %v4585_v34  ;;  %v5642_v34 = vrot.slane %v9218_v46, %v9523_v39  ;;  %v5980_v41 = vpop.xlane.xlu0 %5979 }
 0x36b   : > { %v5992_v54 = vmul.f32 %v5990_v18, %v5980_v41  ;;  %v379_v41 = vld [vmem:[%s7627_s21 + $0x38] sm:$0xff] }
 0x36c   : > { %v4603_v26 = vadd.f32 %v4599_v35, %v4255_v56 }
 0x36d   : > { %v9207_v0 = vpop.xlane.xlu1 %4590 }
 0x36e   : > { %v4601_v39 = vmul.f32 %v4598_v11, %v9207_v0  ;;  %v5298_v0 = vmul.f32 %v5294_v40, %v9235_v51 }
 0x370   : > { %v5302_v52 = vadd.f32 %v5298_v0, %v4954_v29 }
 0x371   : > { %v4933_v24 = vpop.xlane.xlu1 %4932 }
 0x372   : > { %v4947_v12 = vmul.f32 %v4946_v63, %v4933_v24  ;;  %v4253_v24 = vmul.f32 %v4250_v22, %v9203_v60 }
 0x374   : > { %v4951_v62 = vadd.f32 %v4947_v12, %v4603_v26  ;;  %v4257_v6 = vadd.f32 %v4253_v24, %v3909_v10 }
 0x375   : > { %v9211_v28 = vpop.xlane.xlu1 %4938 }
 0x376   : > { %v4949_v46 = vmul.f32 %v4946_v63, %v9211_v28  ;;  %v4605_v60 = vadd.f32 %v4601_v39, %v4257_v6  ;;  %v5646_v28 = vmul.f32 %v5642_v34, %v5638_v8 }
 0x378   : > { %v4953_v11 = vadd.f32 %v4949_v46, %v4605_v60  ;;  %v5650_v14 = vadd.f32 %v5646_v28, %v5302_v52 }
 0x379   : > { %v5281_v55 = vpop.xlane.xlu1 %5280 }
 0x37a   : > { %v5295_v16 = vmul.f32 %v5294_v40, %v5281_v55  ;;  %v5644_v55 = vmul.f32 %v5642_v34, %v5632_v17  ;;  %v5986_v17 = vpop.xlane.xlu0 %5985 }
 0x37b   : > { %v5994_v51 = vmul.f32 %v5990_v18, %v5986_v17 }
 0x37c   : > { %v5299_v48 = vadd.f32 %v5295_v16, %v4951_v62  ;;  %v5648_v45 = vadd.f32 %v5644_v55, %v5300_v47  ;;  %v376_v16 = vld [vmem:[%s7627_s21 + $0x20] sm:$0xff] }
 0x37d   : > { %v9231_v33 = vpop.xlane.xlu1 %5286  ;;  %v5998_v43 = vadd.f32 %v5994_v51, %v5650_v14 }
 0x37e   : > { %v5297_v22 = vmul.f32 %v5294_v40, %v9231_v33  ;;  %v5996_v7 = vadd.f32 %v5992_v54, %v5648_v45  ;;  %v6695_v33 = vld [vmem:[%s9287_s8] ss:$0 sm:$0xff] }
 0x37f   : > { %v6007_v59 = vmul.f32 %v7483_v25, %v5998_v43 }
 0x380   : > { %v5301_v4 = vadd.f32 %v5297_v22, %v4953_v11  ;;  %v6005_v50 = vmul.f32 %v7483_v25, %v5996_v7 }
 0x381   : > { %v5629_v3 = vpop.xlane.xlu1 %5628  ;;  %v6018_v40 = vadd.f32 %v6695_v33, %v6007_v59 }
 0x382   : > { %v5643_v42 = vmul.f32 %v5642_v34, %v5629_v3 }
 0x383   : > { %v6699_v56 = vmul.f32 -1.442695, %v6018_v40 }
 0x384   : > { %v5647_v49 = vadd.f32 %v5643_v42, %v5299_v48 }
 0x385   : > { %v5635_v58 = vpop.xlane.xlu1 %5634 }
 0x386   : > { %v5645_v2 = vmul.f32 %v5642_v34, %v5635_v58  ;;  %v6016_v58 = vadd.f32 %v6695_v33, %v6005_v50 }
 0x388   : > { %v5649_v63 = vadd.f32 %v5645_v2, %v5301_v4  ;;  %v6697_v36 = vmul.f32 -1.442695, %v6016_v58 }
 0x389   : > { %v5977_v5 = vpop.xlane.xlu1 %5976 }
 0x38a   : > { %v5991_v61 = vmul.f32 %v5990_v18, %v5977_v5 }
 0x38c   : > { %v5995_v3 = vadd.f32 %v5991_v61, %v5647_v49 }
 0x38d   : > { %v5983_v30 = vpop.xlane.xlu1 %5982 }
 0x38e   : > { %v6004_v13 = vmul.f32 %v7483_v25, %v5995_v3  ;;  %v5993_v20 = vmul.f32 %v5990_v18, %v5983_v30 }
 0x390   : > { %v6015_v44 = vadd.f32 %v6695_v33, %v6004_v13  ;;  %v5997_v23 = vadd.f32 %v5993_v20, %v5649_v63 }
 0x392   : > { %v6696_v32 = vmul.f32 -1.442695, %v6015_v44  ;;  %v6006_v35 = vmul.f32 %v7483_v25, %v5997_v23 }
 0x394   : > { %7484 = vpow2.f32 %v6696_v32  ;;  %v6017_v9 = vadd.f32 %v6695_v33, %v6006_v35 }
 0x395   : > { %7486 = vpow2.f32 %v6697_v36 }
 0x396   : > { %v6698_v57 = vmul.f32 -1.442695, %v6017_v9 }
 0x398   : > { %7488 = vpow2.f32 %v6698_v57 }
 0x399   : > { %7490 = vpow2.f32 %v6699_v56 }
 0x3a1   : > { %v7485_v12 = vpop.eup %7484 }
 0x3a2   : > { %v6031_v37 = vadd.f32 1.0, %v7485_v12  ;;  %v7487_v53 = vpop.eup %7486 }
 0x3a3   : > { %v6032_v31 = vadd.f32 1.0, %v7487_v53 }
 0x3a4   : > { %7492 = vrcp.f32 %v6031_v37 }
 0x3a5   : > { %v7489_v34 = vpop.eup %7488  ;;  %7494 = vrcp.f32 %v6032_v31 }
 0x3a6   : > { %v6033_v8 = vadd.f32 1.0, %v7489_v34  ;;  %v7491_v27 = vpop.eup %7490 }
 0x3a7   : > { %v6034_v26 = vadd.f32 1.0, %v7491_v27 }
 0x3a8   : > { %7496 = vrcp.f32 %v6033_v8 }
 0x3a9   : > { %7498 = vrcp.f32 %v6034_v26 }
 0x3b1   : > { %v7493_v18 = vpop.eup %7492 }
 0x3b2   : > { %v7495_v10 = vpop.eup %7494 }
 0x3b5   : > { %v7497_v55 = vpop.eup %7496 }
 0x3b6   : > { %v7499_v45 = vpop.eup %7498 }
 0x3ce   : > { %v6177_v38 = vpop.f32.mrf.mxu0 }
 0x3cf   : > { %v6400_v15 = vmul.f32 %v6177_v38, %v376_v16 }
 0x3d0   : > { %v7368_v5 = vpop.f32.mrf.mxu0 }
 0x3d1   : > { %v6404_v24 = vmul.f32 %v7493_v18, %v6400_v15 }
 0x3d2   : > { %v6250_v62 = vpop.f32.mrf.mxu1 }
 0x3d3   : > { %6408 = vst.msk [vmem:[%s371_s22] sm:$0xff] %vm417_vm1, %v6404_v24  ;;  %v6401_v42 = vmul.f32 %v6250_v62, %v377_v19 }
 0x3d4   : > { %v7375_v47 = vpop.f32.mrf.mxu1 }
 0x3d5   : > { %v6405_v39 = vmul.f32 %v7495_v10, %v6401_v42 }
 0x3d6   : > { %v6323_v48 = vpop.f32.mrf.mxu0 }
 0x3d7   : > { %6409 = vst.msk [vmem:[%s371_s22 + $0x8] sm:$0xff] %vm417_vm1, %v6405_v39  ;;  %v6402_v61 = vmul.f32 %v6323_v48, %v378_v21 }
 0x3d8   : > { %v7382_v1 = vpop.f32.mrf.mxu0 }
 0x3d9   : > { %v6406_v6 = vmul.f32 %v7497_v55, %v6402_v61 }
 0x3da   : > { %v6396_v46 = vpop.f32.mrf.mxu1 }
 0x3db   : > { %6410 = vst.msk [vmem:[%s371_s22 + $0x10] sm:$0xff] %vm417_vm1, %v6406_v6  ;;  %v6403_v49 = vmul.f32 %v6396_v46, %v379_v41 }
 0x3dc   : > { %v7389_v29 = vpop.f32.mrf.mxu1 }
 0x3dd   : > { %v6407_v60 = vmul.f32 %v7499_v45, %v6403_v49 }
 0x3df   : > { %6411 = vst.msk [vmem:[%s371_s22 + $0x18] sm:$0xff] %vm417_vm1, %v6407_v60 }
 0x3e0 PF: > { %s21_s11 = sadd.s32 1, %s7518_s11  }
 0x3e1   : > { %p18_p4 = scmp.ge.s32.totalorder %s21_s11, 4  }
 0x3e3   :  { %20 = sbr.rel (!%p18_p4) target bundleno = 3 (0x3), region = 92 }

</bundles_post_ra>
